<compile_context>
chip_gen: v5e
topology: v5e:2x2
jax: 0.10.0
libtpu: 0.0.40
codegen_flags: <defaults>
</compile_context>

<pallas_src>
import functools

import numpy as np
import jax
import jax.numpy as jnp
from jax.experimental import pallas as pl
from jax.experimental.pallas import tpu as pltpu

LN_EPS = 1e-5


# ----------------------------- chip-aware sizing ------------------------------

def _detect_vmem_bytes():
    try:
        cap = getattr(pltpu.get_tpu_info(), "vmem_capacity_bytes", None)
        if cap:
            return int(cap)
    except Exception:
        pass
    return 64 * 1024 * 1024                       # conservative (v7x per-TC VMEM)


_VMEM_BYTES = _detect_vmem_bytes()
if _VMEM_BYTES >= 100 * 1024 * 1024:              # v5e / v6e: 128 MiB physical
    VMEM_LIMIT_BYTES = 96 * 1024 * 1024
    ROW_TILE_CAP = 2048
else:                                             # v7x: 64 MiB per TensorCore
    VMEM_LIMIT_BYTES = 32 * 1024 * 1024
    ROW_TILE_CAP = 512


def _supports_buffered_blockspec():
    """Probe once whether BlockSpec(pipeline_mode=pl.Buffered(1)) lowers & runs."""
    try:
        if not hasattr(pl, "Buffered"):
            return False

        def probe(x_ref, o_ref):
            o_ref[...] = x_ref[...] + 1.0

        fn = pl.pallas_call(
            probe,
            out_shape=jax.ShapeDtypeStruct((16, 128), jnp.float32),
            grid=(2,),
            in_specs=[pl.BlockSpec((8, 128), lambda i: (0, 0),
                                   pipeline_mode=pl.Buffered(1))],
            out_specs=pl.BlockSpec((8, 128), lambda i: (i, 0)),
        )
        jax.block_until_ready(fn(jnp.zeros((8, 128), jnp.float32)))
        return True
    except Exception:
        return False


_BUFFERED_OK = _supports_buffered_blockspec()


def _const_spec(shape):
    """Grid-invariant operand (weights / LN params / biases).

    Single-buffered when supported: grid-invariant blocks never need two copies,
    which matters under v7x's 64 MiB VMEM at production D/DH.
    """
    idx = lambda *_: (0,) * len(shape)
    if _BUFFERED_OK:
        return pl.BlockSpec(shape, idx, pipeline_mode=pl.Buffered(1))
    return pl.BlockSpec(shape, idx)


def _batch_tile(batch, length, row_cap):
    """Whole sequences per grid step.

    Preference order:
      1. largest bb under the row cap that still leaves >= 2 grid steps
         (so both v7x TensorCores get work via the 'parallel' axis);
      2. largest bb under the row cap;
      3. the smallest legal bb (one sequence per step) -- never fall back to
         one giant (B*L, D) tile unless that is the only legal option.
    """
    def legal(bb):
        return batch % bb == 0 and ((bb * length) % 8 == 0 or bb == batch)

    for bb in range(batch, 0, -1):
        if legal(bb) and bb * length <= row_cap and (batch // bb >= 2 or batch == 1):
            return bb
    for bb in range(batch, 0, -1):
        if legal(bb) and bb * length <= row_cap:
            return bb
    for bb in range(1, batch + 1):
        if legal(bb):
            return bb
    return batch


# ----------------------------- in-kernel helpers -------------------------------

def _layer_norm(x, g, b):
    mu = jnp.mean(x, axis=-1, keepdims=True)
    xc = x - mu
    var = jnp.mean(xc * xc, axis=-1, keepdims=True)
    return xc * jax.lax.rsqrt(var + LN_EPS) * g + b


# ------------------------------ ByteNetBlock kernel ----------------------------

def _block_kernel(x_ref, m_ref,
                  ln1g_ref, ln1b_ref, w1_ref, b1_ref,
                  ln2g_ref, ln2b_ref, wc_ref, bc_ref,
                  ln3g_ref, ln3b_ref, w2_ref, b2_ref,
                  o_ref, *, L, K, dil):
    R = x_ref.shape[0]                 # R = (sequences in tile) * L
    DH = w1_ref.shape[1]
    pad = dil * (K - 1) // 2

    x = x_ref[...]                     # (R, D) f32

    # sequence1: LayerNorm(d_in) -> ReLU -> PFF(d_in, d_h) -> LayerNorm(d_h) -> ReLU
    h = _layer_norm(x, ln1g_ref[...], ln1b_ref[...])
    h = jnp.maximum(h, 0.0).astype(jnp.bfloat16)
    h = jnp.dot(h, w1_ref[...], preferred_element_type=jnp.float32) + b1_ref[...]
    h = _layer_norm(h, ln2g_ref[...], ln2b_ref[...])
    h = jnp.maximum(h, 0.0)

    # MaskedConv1d: multiply by input_mask, then dilated same-padding conv.
    # Single bf16 cast, single wide MXU op against [Wc_0 | ... | Wc_{K-1}]:
    #   y[:, k*DH:(k+1)*DH] = (h*m) @ Wc_k
    # Tap k's contribution to output row l is y_k[l + off_k] (off_k = k*dil-pad),
    # realised as a sublane roll (XLU) + per-sequence boundary mask; masking
    # also kills any cross-sequence leakage inside the tile.
    hb = (h * m_ref[...]).astype(jnp.bfloat16)                          # (R, DH) bf16
    y = jnp.dot(hb, wc_ref[...], preferred_element_type=jnp.float32)    # (R, K*DH) f32
    pos = jax.lax.broadcasted_iota(jnp.int32, (R, 1), 0) % L            # position in seq
    acc = jnp.zeros((R, DH), jnp.float32)
    for k in range(K):
        off = k * dil - pad
        yk = y[:, k * DH:(k + 1) * DH]
        if off == 0:
            acc = acc + yk
        else:
            yk = pltpu.roll(yk, (-off) % R, axis=0)
            src = pos + off
            valid = jnp.logical_and(src >= 0, src < L)
            acc = acc + jnp.where(valid, yk, 0.0)
    conv = acc + bc_ref[...]

    # sequence2: LayerNorm(d_h) -> ReLU -> PFF(d_h, d_out), then residual.
    g = _layer_norm(conv, ln3g_ref[...], ln3b_ref[...])
    g = jnp.maximum(g, 0.0).astype(jnp.bfloat16)
    g = jnp.dot(g, w2_ref[...], preferred_element_type=jnp.float32) + b2_ref[...]

    o_ref[...] = x + g


def bytenet_block(x, input_mask, p, dilation, K):
    """Residual ByteNetBlock. x: (B, L, D) f32, input_mask: (B, L, 1) f32."""
    B, L, D = x.shape
    DH = p["w1"].shape[1]
    rows = B * L
    bb = _batch_tile(B, L, ROW_TILE_CAP)
    rt = bb * L
    x2 = x.reshape(rows, D)
    m2 = input_mask.reshape(rows, 1)
    kern = functools.partial(_block_kernel, L=L, K=K, dil=dilation)
    y = pl.pallas_call(
        kern,
        out_shape=jax.ShapeDtypeStruct((rows, D), jnp.float32),
        grid=(rows // rt,),
        in_specs=[
            pl.BlockSpec((rt, D), lambda i: (i, 0)),   # x (whole sequences per tile)
            pl.BlockSpec((rt, 1), lambda i: (i, 0)),   # input_mask
            _const_spec((1, D)),                       # ln1 gamma
            _const_spec((1, D)),                       # ln1 beta
            _const_spec((D, DH)),                      # w1 (bf16)
            _const_spec((1, DH)),                      # b1
            _const_spec((1, DH)),                      # ln2 gamma
            _const_spec((1, DH)),                      # ln2 beta
            _const_spec((DH, K * DH)),                 # conv weights, wide layout (bf16)
            _const_spec((1, DH)),                      # conv bias
            _const_spec((1, DH)),                      # ln3 gamma
            _const_spec((1, DH)),                      # ln3 beta
            _const_spec((DH, D)),                      # w2 (bf16)
            _const_spec((1, D)),                       # b2
        ],
        out_specs=pl.BlockSpec((rt, D), lambda i: (i, 0)),
        input_output_aliases={0: 0},                   # residual reuses x buffer
        compiler_params=pltpu.CompilerParams(
            dimension_semantics=("parallel",),
            vmem_limit_bytes=VMEM_LIMIT_BYTES),
    )(x2, m2, p["ln1_g"], p["ln1_b"], p["w1"], p["b1"],
      p["ln2_g"], p["ln2_b"], p["w_conv"], p["b_conv"],
      p["ln3_g"], p["ln3_b"], p["w2"], p["b2"])
    return y.reshape(B, L, D)


# ------------------------------ glue / parameters ------------------------------

def init_params(key, n_tokens, d_emb, d_model, d_h, n_layers, K):
    keys = jax.random.split(key, 4 + n_layers)
    f32, bf16 = jnp.float32, jnp.bfloat16
    params = {
        "embed": 0.1 * jax.random.normal(keys[0], (n_tokens, d_emb), f32),
        "up_w": (0.1 * jax.random.normal(keys[1], (d_emb, d_model), f32)).astype(bf16),
        "up_b": 0.1 * jax.random.normal(keys[2], (1, d_model), f32),
        "blocks": [],
    }
    for i in range(n_layers):
        ks = jax.random.split(keys[4 + i], 6)
        params["blocks"].append(dict(
            ln1_g=jnp.ones((1, d_model), f32),
            ln1_b=jnp.zeros((1, d_model), f32),
            w1=(0.1 * jax.random.normal(ks[0], (d_model, d_h), f32)).astype(bf16),
            b1=0.1 * jax.random.normal(ks[1], (1, d_h), f32),
            ln2_g=jnp.ones((1, d_h), f32),
            ln2_b=jnp.zeros((1, d_h), f32),
            # conv weights stored "wide": columns [k*d_h:(k+1)*d_h] = Wc_k
            w_conv=(0.1 * jax.random.normal(ks[2], (d_h, K * d_h), f32)).astype(bf16),
            b_conv=0.1 * jax.random.normal(ks[3], (1, d_h), f32),
            ln3_g=jnp.ones((1, d_h), f32),
            ln3_b=jnp.zeros((1, d_h), f32),
            w2=(0.1 * jax.random.normal(ks[4], (d_h, d_model), f32)).astype(bf16),
            b2=0.1 * jax.random.normal(ks[5], (1, d_model), f32),
        ))
    return params


def bytenet_forward(params, tokens, input_mask, *, dilations, K):
    # ByteNet._embed: the up_embedder PFF is linear, so it is folded into the
    # embedding table (embed @ up_w + up_b) and the lookup becomes one gather --
    # no tiny 32-wide-contraction matmul kernel, no extra HBM round trip.
    table = jnp.dot(params["embed"].astype(jnp.bfloat16), params["up_w"],
                    preferred_element_type=jnp.float32) + params["up_b"]
    e = jnp.take(table, tokens, axis=0)                           # (B, L, d_model)
    # ByteNet._convolve: stacked residual ByteNetBlocks (dropout = 0.0).
    for bp, dil in zip(params["blocks"], dilations):
        e = bytenet_block(e, input_mask, bp, dil, K)
    return e
    # TODO(synk): MaskedCausalConv1d sequential/cached O(L) generation mode (stateful
    # recurrent_state) has no kernel here; only the train-time conv path is implemented.


# ------------------------------ pure-JAX reference -----------------------------

def _ln_ref(x, g, b):
    mu = jnp.mean(x, -1, keepdims=True)
    xc = x - mu
    var = jnp.mean(xc * xc, -1, keepdims=True)
    return xc * jax.lax.rsqrt(var + LN_EPS) * g + b


def _mm(x, w):
    return jnp.dot(x.astype(jnp.bfloat16), w.astype(jnp.bfloat16),
                   preferred_element_type=jnp.float32)


def reference_forward(params, tokens, input_mask, dilations, K):
    e = jnp.take(params["embed"], tokens, axis=0)
    e = _mm(e, params["up_w"]) + params["up_b"]
    B, L, _ = e.shape
    for bp, dil in zip(params["blocks"], dilations):
        DH = bp["w1"].shape[1]
        h = jnp.maximum(_ln_ref(e, bp["ln1_g"], bp["ln1_b"]), 0.0)
        h = _mm(h, bp["w1"]) + bp["b1"]
        h = jnp.maximum(_ln_ref(h, bp["ln2_g"], bp["ln2_b"]), 0.0)
        h = h * input_mask
        pad = dil * (K - 1) // 2
        hp = jnp.pad(h, ((0, 0), (pad, pad), (0, 0)))
        conv = jnp.zeros((B, L, DH), jnp.float32) + bp["b_conv"]
        for k in range(K):
            wk = bp["w_conv"][:, k * DH:(k + 1) * DH]
            conv = conv + _mm(hp[:, k * dil:k * dil + L, :], wk)
        g = jnp.maximum(_ln_ref(conv, bp["ln3_g"], bp["ln3_b"]), 0.0)
        e = e + (_mm(g, bp["w2"]) + bp["b2"])
    return e


# ------------------------------------ main -------------------------------------

if __name__ == "__main__":
    # ByteNet(n_tokens, d_embedding, d_model, n_layers, kernel_size, r,
    #         slim=True, causal=False, dropout=0.0, down_embed=True)
    n_tokens, d_embedding, d_model, n_layers, kernel_size, r = 32, 32, 256, 4, 3, 4
    d_h = d_model // 2                      # slim=True -> 128 (lane-aligned)
    B, L = 2, 32
    log2 = int(np.log2(r)) + 1
    dilations = tuple(2 ** (n % log2) for n in range(n_layers))   # (1, 2, 4, 1)

    key = jax.random.PRNGKey(0)
    kp, kx = jax.random.split(key)
    params = init_params(kp, n_tokens, d_embedding, d_model, d_h, n_layers, kernel_size)

    tokens = jax.random.randint(kx, (B, L), 0, n_tokens)          # (B, L) int tokens
    input_mask = jnp.ones((B, L, 1), jnp.float32)                 # (B, L, 1)
    input_mask = input_mask.at[1, L - 5:, :].set(0.0)

    fwd = jax.jit(functools.partial(bytenet_forward,
                                    dilations=dilations, K=kernel_size))
    out = jax.block_until_ready(fwd(params, tokens, input_mask))

    ref = reference_forward(params, tokens, input_mask, dilations, kernel_size)
    assert out.shape == (B, L, d_model)
    np.testing.assert_allclose(np.asarray(out), np.asarray(ref), rtol=1e-2, atol=1e-2)

    print("KERNEL_OK")
</pallas_src>

<mosaic_0001>
module attributes {stable_mosaic.version = 11 : i64} {
  func.func @probe(%arg0: i32, %arg1: memref<8x128xf32, #tpu.memory_space<vmem>>, %arg2: memref<8x128xf32, #tpu.memory_space<vmem>>) attributes {dimension_semantics = [#tpu.dimension_semantics<arbitrary>], iteration_bounds = array<i64: 2>, scalar_prefetch = 0 : i64, scratch_operands = 0 : i64, tpu.core_type = #tpu.core_type<tc>, window_params = [{pipeline_mode = #tpu.pipeline_mode<synchronous>, transform_indices = @transform_0, window_bounds = array<i64: 8, 128>}, {transform_indices = @transform_1, window_bounds = array<i64: 8, 128>}]} {
    %c0 = arith.constant 0 : index
    %c0_0 = arith.constant 0 : index
    %0 = vector.load %arg1[%c0, %c0_0] : memref<8x128xf32, #tpu.memory_space<vmem>>, vector<8x128xf32>
    %cst = arith.constant 1.000000e+00 : f32
    %1 = vector.broadcast %cst : f32 to vector<8x128xf32>
    %2 = arith.addf %0, %1 : vector<8x128xf32>
    %c0_1 = arith.constant 0 : index
    %c0_2 = arith.constant 0 : index
    %3 = vector.load %arg2[%c0_1, %c0_2] : memref<8x128xf32, #tpu.memory_space<vmem>>, vector<8x128xf32>
    tpu.vector_store %arg2[%c0_1, %c0_2], %2 {strides = array<i32>} : memref<8x128xf32, #tpu.memory_space<vmem>>, vector<8x128xf32>,
    return
  }
  func.func @transform_0(%arg0: i32) -> (i32, i32) {
    %c0_i32 = arith.constant 0 : i32
    %c0_i32_0 = arith.constant 0 : i32
    %c0_i32_1 = arith.constant 0 : i32
    return %c0_i32, %c0_i32_0 : i32, i32
  }
  func.func @transform_1(%arg0: i32) -> (i32, i32) {
    %c0_i32 = arith.constant 0 : i32
    %c0_i32_0 = arith.constant 0 : i32
    return %arg0, %c0_i32 : i32, i32
  }
}

module attributes {stable_mosaic.version = 11 : i64} {
  func.func @_block_kernel(%arg0: i32, %arg1: memref<32x256xf32, #tpu.memory_space<vmem>>, %arg2: memref<32x1xf32, #tpu.memory_space<vmem>>, %arg3: memref<1x256xf32, #tpu.memory_space<vmem>>, %arg4: memref<1x256xf32, #tpu.memory_space<vmem>>, %arg5: memref<256x128xbf16, #tpu.memory_space<vmem>>, %arg6: memref<1x128xf32, #tpu.memory_space<vmem>>, %arg7: memref<1x128xf32, #tpu.memory_space<vmem>>, %arg8: memref<1x128xf32, #tpu.memory_space<vmem>>, %arg9: memref<128x384xbf16, #tpu.memory_space<vmem>>, %arg10: memref<1x128xf32, #tpu.memory_space<vmem>>, %arg11: memref<1x128xf32, #tpu.memory_space<vmem>>, %arg12: memref<1x128xf32, #tpu.memory_space<vmem>>, %arg13: memref<128x256xbf16, #tpu.memory_space<vmem>>, %arg14: memref<1x256xf32, #tpu.memory_space<vmem>>, %arg15: memref<32x256xf32, #tpu.memory_space<vmem>>) attributes {dimension_semantics = [#tpu.dimension_semantics<parallel>], iteration_bounds = array<i64: 2>, scalar_prefetch = 0 : i64, scratch_operands = 0 : i64, tpu.core_type = #tpu.core_type<tc>, window_params = [{transform_indices = @transform_0, window_bounds = array<i64: 32, 256>}, {transform_indices = @transform_1, window_bounds = array<i64: 32, 1>}, {pipeline_mode = #tpu.pipeline_mode<synchronous>, transform_indices = @transform_2, window_bounds = array<i64: 1, 256>}, {pipeline_mode = #tpu.pipeline_mode<synchronous>, transform_indices = @transform_3, window_bounds = array<i64: 1, 256>}, {pipeline_mode = #tpu.pipeline_mode<synchronous>, transform_indices = @transform_4, window_bounds = array<i64: 256, 128>}, {pipeline_mode = #tpu.pipeline_mode<synchronous>, transform_indices = @transform_5, window_bounds = array<i64: 1, 128>}, {pipeline_mode = #tpu.pipeline_mode<synchronous>, transform_indices = @transform_6, window_bounds = array<i64: 1, 128>}, {pipeline_mode = #tpu.pipeline_mode<synchronous>, transform_indices = @transform_7, window_bounds = array<i64: 1, 128>}, {pipeline_mode = #tpu.pipeline_mode<synchronous>, transform_indices = @transform_8, window_bounds = array<i64: 128, 384>}, {pipeline_mode = #tpu.pipeline_mode<synchronous>, transform_indices = @transform_9, window_bounds = array<i64: 1, 128>}, {pipeline_mode = #tpu.pipeline_mode<synchronous>, transform_indices = @transform_10, window_bounds = array<i64: 1, 128>}, {pipeline_mode = #tpu.pipeline_mode<synchronous>, transform_indices = @transform_11, window_bounds = array<i64: 1, 128>}, {pipeline_mode = #tpu.pipeline_mode<synchronous>, transform_indices = @transform_12, window_bounds = array<i64: 128, 256>}, {pipeline_mode = #tpu.pipeline_mode<synchronous>, transform_indices = @transform_13, window_bounds = array<i64: 1, 256>}, {transform_indices = @transform_14, window_bounds = array<i64: 32, 256>}]} {
    %c0 = arith.constant 0 : index
    %c0_0 = arith.constant 0 : index
    %0 = vector.load %arg1[%c0, %c0_0] : memref<32x256xf32, #tpu.memory_space<vmem>>, vector<32x256xf32>
    %c0_1 = arith.constant 0 : index
    %c0_2 = arith.constant 0 : index
    %1 = vector.load %arg3[%c0_1, %c0_2] : memref<1x256xf32, #tpu.memory_space<vmem>>, vector<1x256xf32>
    %c0_3 = arith.constant 0 : index
    %c0_4 = arith.constant 0 : index
    %2 = vector.load %arg4[%c0_3, %c0_4] : memref<1x256xf32, #tpu.memory_space<vmem>>, vector<1x256xf32>
    %cst = arith.constant dense<0.000000e+00> : vector<32xf32>
    %3 = vector.multi_reduction <add>, %0, %cst [1] : vector<32x256xf32> to vector<32xf32>
    %4 = vector.shape_cast %3 : vector<32xf32> to vector<32x1xf32>
    %cst_5 = arith.constant 2.560000e+02 : f32
    %5 = vector.broadcast %cst_5 : f32 to vector<32x1xf32>
    %6 = arith.divf %4, %5 : vector<32x1xf32>
    %7 = vector.broadcast %6 : vector<32x1xf32> to vector<32x256xf32>
    %8 = arith.subf %0, %7 : vector<32x256xf32>
    %9 = arith.mulf %8, %8 : vector<32x256xf32>
    %cst_6 = arith.constant dense<0.000000e+00> : vector<32xf32>
    %10 = vector.multi_reduction <add>, %9, %cst_6 [1] : vector<32x256xf32> to vector<32xf32>
    %11 = vector.shape_cast %10 : vector<32xf32> to vector<32x1xf32>
    %cst_7 = arith.constant 2.560000e+02 : f32
    %12 = vector.broadcast %cst_7 : f32 to vector<32x1xf32>
    %13 = arith.divf %11, %12 : vector<32x1xf32>
    %cst_8 = arith.constant 9.99999974E-6 : f32
    %14 = vector.broadcast %cst_8 : f32 to vector<32x1xf32>
    %15 = arith.addf %13, %14 : vector<32x1xf32>
    %16 = math.rsqrt %15 : vector<32x1xf32>
    %17 = vector.broadcast %16 : vector<32x1xf32> to vector<32x256xf32>
    %18 = arith.mulf %8, %17 : vector<32x256xf32>
    %19 = vector.broadcast %1 : vector<1x256xf32> to vector<32x256xf32>
    %20 = arith.mulf %18, %19 : vector<32x256xf32>
    %21 = vector.broadcast %2 : vector<1x256xf32> to vector<32x256xf32>
    %22 = arith.addf %20, %21 : vector<32x256xf32>
    %cst_9 = arith.constant 0.000000e+00 : f32
    %23 = vector.broadcast %cst_9 : f32 to vector<32x256xf32>
    %24 = arith.maximumf %22, %23 : vector<32x256xf32>
    %25 = arith.truncf %24 : vector<32x256xf32> to vector<32x256xbf16>
    %c0_10 = arith.constant 0 : index
    %c0_11 = arith.constant 0 : index
    %26 = vector.load %arg5[%c0_10, %c0_11] : memref<256x128xbf16, #tpu.memory_space<vmem>>, vector<256x128xbf16>
    %cst_12 = arith.constant dense<0.000000e+00> : vector<32x128xf32>
    %27 = tpu.matmul %25, %26, %cst_12 {dimension_numbers = #tpu.dot_dimension_numbers<[1], [0], [0], [1], [0, 0, 1, 1], [], []>} : vector<32x256xbf16>, vector<256x128xbf16>, vector<32x128xf32> -> vector<32x128xf32>
    %c0_13 = arith.constant 0 : index
    %c0_14 = arith.constant 0 : index
    %28 = vector.load %arg6[%c0_13, %c0_14] : memref<1x128xf32, #tpu.memory_space<vmem>>, vector<1x128xf32>
    %29 = vector.broadcast %28 : vector<1x128xf32> to vector<32x128xf32>
    %30 = arith.addf %27, %29 : vector<32x128xf32>
    %c0_15 = arith.constant 0 : index
    %c0_16 = arith.constant 0 : index
    %31 = vector.load %arg7[%c0_15, %c0_16] : memref<1x128xf32, #tpu.memory_space<vmem>>, vector<1x128xf32>
    %c0_17 = arith.constant 0 : index
    %c0_18 = arith.constant 0 : index
    %32 = vector.load %arg8[%c0_17, %c0_18] : memref<1x128xf32, #tpu.memory_space<vmem>>, vector<1x128xf32>
    %cst_19 = arith.constant dense<0.000000e+00> : vector<32xf32>
    %33 = vector.multi_reduction <add>, %30, %cst_19 [1] : vector<32x128xf32> to vector<32xf32>
    %34 = vector.shape_cast %33 : vector<32xf32> to vector<32x1xf32>
    %cst_20 = arith.constant 1.280000e+02 : f32
    %35 = vector.broadcast %cst_20 : f32 to vector<32x1xf32>
    %36 = arith.divf %34, %35 : vector<32x1xf32>
    %37 = vector.broadcast %36 : vector<32x1xf32> to vector<32x128xf32>
    %38 = arith.subf %30, %37 : vector<32x128xf32>
    %39 = arith.mulf %38, %38 : vector<32x128xf32>
    %cst_21 = arith.constant dense<0.000000e+00> : vector<32xf32>
    %40 = vector.multi_reduction <add>, %39, %cst_21 [1] : vector<32x128xf32> to vector<32xf32>
    %41 = vector.shape_cast %40 : vector<32xf32> to vector<32x1xf32>
    %cst_22 = arith.constant 1.280000e+02 : f32
    %42 = vector.broadcast %cst_22 : f32 to vector<32x1xf32>
    %43 = arith.divf %41, %42 : vector<32x1xf32>
    %cst_23 = arith.constant 9.99999974E-6 : f32
    %44 = vector.broadcast %cst_23 : f32 to vector<32x1xf32>
    %45 = arith.addf %43, %44 : vector<32x1xf32>
    %46 = math.rsqrt %45 : vector<32x1xf32>
    %47 = vector.broadcast %46 : vector<32x1xf32> to vector<32x128xf32>
    %48 = arith.mulf %38, %47 : vector<32x128xf32>
    %49 = vector.broadcast %31 : vector<1x128xf32> to vector<32x128xf32>
    %50 = arith.mulf %48, %49 : vector<32x128xf32>
    %51 = vector.broadcast %32 : vector<1x128xf32> to vector<32x128xf32>
    %52 = arith.addf %50, %51 : vector<32x128xf32>
    %cst_24 = arith.constant 0.000000e+00 : f32
    %53 = vector.broadcast %cst_24 : f32 to vector<32x128xf32>
    %54 = arith.maximumf %52, %53 : vector<32x128xf32>
    %c0_25 = arith.constant 0 : index
    %c0_26 = arith.constant 0 : index
    %55 = vector.load %arg2[%c0_25, %c0_26] : memref<32x1xf32, #tpu.memory_space<vmem>>, vector<32x1xf32>
    %56 = vector.broadcast %55 : vector<32x1xf32> to vector<32x128xf32>
    %57 = arith.mulf %54, %56 : vector<32x128xf32>
    %58 = arith.truncf %57 : vector<32x128xf32> to vector<32x128xbf16>
    %c0_27 = arith.constant 0 : index
    %c0_28 = arith.constant 0 : index
    %59 = vector.load %arg9[%c0_27, %c0_28] : memref<128x384xbf16, #tpu.memory_space<vmem>>, vector<128x384xbf16>
    %cst_29 = arith.constant dense<0.000000e+00> : vector<32x384xf32>
    %60 = tpu.matmul %58, %59, %cst_29 {dimension_numbers = #tpu.dot_dimension_numbers<[1], [0], [0], [1], [0, 0, 1, 1], [], []>} : vector<32x128xbf16>, vector<128x384xbf16>, vector<32x384xf32> -> vector<32x384xf32>
    %61 = tpu.iota {dimensions = array<i32: 0>} : vector<32x1xi32>
    %c32_i32 = arith.constant 32 : i32
    %c0_i32 = arith.constant 0 : i32
    %62 = arith.cmpi eq, %c32_i32, %c0_i32 : i32
    %c1_i32 = arith.constant 1 : i32
    %63 = arith.select %62, %c1_i32, %c32_i32 : i32
    %64 = vector.broadcast %63 : i32 to vector<32x1xi32>
    %65 = arith.remsi %61, %64 : vector<32x1xi32>
    %c0_i32_30 = arith.constant 0 : i32
    %66 = vector.broadcast %c0_i32_30 : i32 to vector<32x1xi32>
    %67 = arith.cmpi ne, %65, %66 : vector<32x1xi32>
    %c0_i32_31 = arith.constant 0 : i32
    %68 = vector.broadcast %c0_i32_31 : i32 to vector<32x1xi32>
    %69 = arith.cmpi slt, %65, %68 : vector<32x1xi32>
    %c0_i32_32 = arith.constant 0 : i32
    %70 = arith.cmpi slt, %63, %c0_i32_32 : i32
    %71 = vector.broadcast %70 : i1 to vector<32x1xi1>
    %72 = vector.broadcast %71 : vector<32x1xi1> to vector<32x1xi1>
    %73 = arith.xori %69, %72 : vector<32x1xi1>
    %74 = arith.andi %73, %67 : vector<32x1xi1>
    %75 = vector.broadcast %63 : i32 to vector<32x1xi32>
    %76 = arith.addi %65, %75 : vector<32x1xi32>
    %77 = arith.select %74, %76, %65 : vector<32x1xi1>, vector<32x1xi32>
    %cst_33 = arith.constant 0.000000e+00 : f32
    %78 = vector.broadcast %cst_33 : f32 to vector<32x128xf32>
    %79 = vector.extract_strided_slice %60 {offsets = [0, 0], sizes = [32, 128], strides = [1, 1]} : vector<32x384xf32> to vector<32x128xf32>
    %c1_i32_34 = arith.constant 1 : i32
    %80 = tpu.dynamic_rotate %79 by %c1_i32_34 dim 0 : vector<32x128xf32>, i32 -> vector<32x128xf32>
    %c-1_i32 = arith.constant -1 : i32
    %81 = vector.broadcast %c-1_i32 : i32 to vector<32x1xi32>
    %82 = arith.addi %77, %81 : vector<32x1xi32>
    %c0_i32_35 = arith.constant 0 : i32
    %83 = vector.broadcast %c0_i32_35 : i32 to vector<32x1xi32>
    %84 = arith.cmpi sge, %82, %83 : vector<32x1xi32>
    %c32_i32_36 = arith.constant 32 : i32
    %85 = vector.broadcast %c32_i32_36 : i32 to vector<32x1xi32>
    %86 = arith.cmpi slt, %82, %85 : vector<32x1xi32>
    %87 = arith.andi %84, %86 : vector<32x1xi1>
    %cst_37 = arith.constant 0.000000e+00 : f32
    %88 = vector.shape_cast %87 : vector<32x1xi1> to vector<32x1xi1>
    %89 = vector.broadcast %88 : vector<32x1xi1> to vector<32x128xi1>
    %90 = vector.broadcast %cst_37 : f32 to vector<32x128xf32>
    %91 = arith.select %89, %80, %90 : vector<32x128xi1>, vector<32x128xf32>
    %92 = arith.addf %78, %91 : vector<32x128xf32>
    %93 = vector.extract_strided_slice %60 {offsets = [0, 128], sizes = [32, 128], strides = [1, 1]} : vector<32x384xf32> to vector<32x128xf32>
    %94 = arith.addf %92, %93 : vector<32x128xf32>
    %95 = vector.extract_strided_slice %60 {offsets = [0, 256], sizes = [32, 128], strides = [1, 1]} : vector<32x384xf32> to vector<32x128xf32>
    %c31_i32 = arith.constant 31 : i32
    %96 = tpu.dynamic_rotate %95 by %c31_i32 dim 0 : vector<32x128xf32>, i32 -> vector<32x128xf32>
    %c1_i32_38 = arith.constant 1 : i32
    %97 = vector.broadcast %c1_i32_38 : i32 to vector<32x1xi32>
    %98 = arith.addi %77, %97 : vector<32x1xi32>
    %c0_i32_39 = arith.constant 0 : i32
    %99 = vector.broadcast %c0_i32_39 : i32 to vector<32x1xi32>
    %100 = arith.cmpi sge, %98, %99 : vector<32x1xi32>
    %c32_i32_40 = arith.constant 32 : i32
    %101 = vector.broadcast %c32_i32_40 : i32 to vector<32x1xi32>
    %102 = arith.cmpi slt, %98, %101 : vector<32x1xi32>
    %103 = arith.andi %100, %102 : vector<32x1xi1>
    %cst_41 = arith.constant 0.000000e+00 : f32
    %104 = vector.shape_cast %103 : vector<32x1xi1> to vector<32x1xi1>
    %105 = vector.broadcast %104 : vector<32x1xi1> to vector<32x128xi1>
    %106 = vector.broadcast %cst_41 : f32 to vector<32x128xf32>
    %107 = arith.select %105, %96, %106 : vector<32x128xi1>, vector<32x128xf32>
    %108 = arith.addf %94, %107 : vector<32x128xf32>
    %c0_42 = arith.constant 0 : index
    %c0_43 = arith.constant 0 : index
    %109 = vector.load %arg10[%c0_42, %c0_43] : memref<1x128xf32, #tpu.memory_space<vmem>>, vector<1x128xf32>
    %110 = vector.broadcast %109 : vector<1x128xf32> to vector<32x128xf32>
    %111 = arith.addf %108, %110 : vector<32x128xf32>
    %c0_44 = arith.constant 0 : index
    %c0_45 = arith.constant 0 : index
    %112 = vector.load %arg11[%c0_44, %c0_45] : memref<1x128xf32, #tpu.memory_space<vmem>>, vector<1x128xf32>
    %c0_46 = arith.constant 0 : index
    %c0_47 = arith.constant 0 : index
    %113 = vector.load %arg12[%c0_46, %c0_47] : memref<1x128xf32, #tpu.memory_space<vmem>>, vector<1x128xf32>
    %cst_48 = arith.constant dense<0.000000e+00> : vector<32xf32>
    %114 = vector.multi_reduction <add>, %111, %cst_48 [1] : vector<32x128xf32> to vector<32xf32>
    %115 = vector.shape_cast %114 : vector<32xf32> to vector<32x1xf32>
    %cst_49 = arith.constant 1.280000e+02 : f32
    %116 = vector.broadcast %cst_49 : f32 to vector<32x1xf32>
    %117 = arith.divf %115, %116 : vector<32x1xf32>
    %118 = vector.broadcast %117 : vector<32x1xf32> to vector<32x128xf32>
    %119 = arith.subf %111, %118 : vector<32x128xf32>
    %120 = arith.mulf %119, %119 : vector<32x128xf32>
    %cst_50 = arith.constant dense<0.000000e+00> : vector<32xf32>
    %121 = vector.multi_reduction <add>, %120, %cst_50 [1] : vector<32x128xf32> to vector<32xf32>
    %122 = vector.shape_cast %121 : vector<32xf32> to vector<32x1xf32>
    %cst_51 = arith.constant 1.280000e+02 : f32
    %123 = vector.broadcast %cst_51 : f32 to vector<32x1xf32>
    %124 = arith.divf %122, %123 : vector<32x1xf32>
    %cst_52 = arith.constant 9.99999974E-6 : f32
    %125 = vector.broadcast %cst_52 : f32 to vector<32x1xf32>
    %126 = arith.addf %124, %125 : vector<32x1xf32>
    %127 = math.rsqrt %126 : vector<32x1xf32>
    %128 = vector.broadcast %127 : vector<32x1xf32> to vector<32x128xf32>
    %129 = arith.mulf %119, %128 : vector<32x128xf32>
    %130 = vector.broadcast %112 : vector<1x128xf32> to vector<32x128xf32>
    %131 = arith.mulf %129, %130 : vector<32x128xf32>
    %132 = vector.broadcast %113 : vector<1x128xf32> to vector<32x128xf32>
    %133 = arith.addf %131, %132 : vector<32x128xf32>
    %cst_53 = arith.constant 0.000000e+00 : f32
    %134 = vector.broadcast %cst_53 : f32 to vector<32x128xf32>
    %135 = arith.maximumf %133, %134 : vector<32x128xf32>
    %136 = arith.truncf %135 : vector<32x128xf32> to vector<32x128xbf16>
    %c0_54 = arith.constant 0 : index
    %c0_55 = arith.constant 0 : index
    %137 = vector.load %arg13[%c0_54, %c0_55] : memref<128x256xbf16, #tpu.memory_space<vmem>>, vector<128x256xbf16>
    %cst_56 = arith.constant dense<0.000000e+00> : vector<32x256xf32>
    %138 = tpu.matmul %136, %137, %cst_56 {dimension_numbers = #tpu.dot_dimension_numbers<[1], [0], [0], [1], [0, 0, 1, 1], [], []>} : vector<32x128xbf16>, vector<128x256xbf16>, vector<32x256xf32> -> vector<32x256xf32>
    %c0_57 = arith.constant 0 : index
    %c0_58 = arith.constant 0 : index
    %139 = vector.load %arg14[%c0_57, %c0_58] : memref<1x256xf32, #tpu.memory_space<vmem>>, vector<1x256xf32>
    %140 = vector.broadcast %139 : vector<1x256xf32> to vector<32x256xf32>
    %141 = arith.addf %138, %140 : vector<32x256xf32>
    %142 = arith.addf %0, %141 : vector<32x256xf32>
    %c0_59 = arith.constant 0 : index
    %c0_60 = arith.constant 0 : index
    %143 = vector.load %arg15[%c0_59, %c0_60] : memref<32x256xf32, #tpu.memory_space<vmem>>, vector<32x256xf32>
    tpu.vector_store %arg15[%c0_59, %c0_60], %142 {strides = array<i32>} : memref<32x256xf32, #tpu.memory_space<vmem>>, vector<32x256xf32>,
    return
  }
  func.func @transform_0(%arg0: i32) -> (i32, i32) {
    %c0_i32 = arith.constant 0 : i32
    %c0_i32_0 = arith.constant 0 : i32
    return %arg0, %c0_i32 : i32, i32
  }
  func.func @transform_1(%arg0: i32) -> (i32, i32) {
    %c0_i32 = arith.constant 0 : i32
    %c0_i32_0 = arith.constant 0 : i32
    return %arg0, %c0_i32 : i32, i32
  }
  func.func @transform_2(%arg0: i32) -> (i32, i32) {
    %c0_i32 = arith.constant 0 : i32
    %c0_i32_0 = arith.constant 0 : i32
    %c0_i32_1 = arith.constant 0 : i32
    return %c0_i32, %c0_i32_0 : i32, i32
  }
  func.func @transform_3(%arg0: i32) -> (i32, i32) {
    %c0_i32 = arith.constant 0 : i32
    %c0_i32_0 = arith.constant 0 : i32
    %c0_i32_1 = arith.constant 0 : i32
    return %c0_i32, %c0_i32_0 : i32, i32
  }
  func.func @transform_4(%arg0: i32) -> (i32, i32) {
    %c0_i32 = arith.constant 0 : i32
    %c0_i32_0 = arith.constant 0 : i32
    %c0_i32_1 = arith.constant 0 : i32
    return %c0_i32, %c0_i32_0 : i32, i32
  }
  func.func @transform_5(%arg0: i32) -> (i32, i32) {
    %c0_i32 = arith.constant 0 : i32
    %c0_i32_0 = arith.constant 0 : i32
    %c0_i32_1 = arith.constant 0 : i32
    return %c0_i32, %c0_i32_0 : i32, i32
  }
  func.func @transform_6(%arg0: i32) -> (i32, i32) {
    %c0_i32 = arith.constant 0 : i32
    %c0_i32_0 = arith.constant 0 : i32
    %c0_i32_1 = arith.constant 0 : i32
    return %c0_i32, %c0_i32_0 : i32, i32
  }
  func.func @transform_7(%arg0: i32) -> (i32, i32) {
    %c0_i32 = arith.constant 0 : i32
    %c0_i32_0 = arith.constant 0 : i32
    %c0_i32_1 = arith.constant 0 : i32
    return %c0_i32, %c0_i32_0 : i32, i32
  }
  func.func @transform_8(%arg0: i32) -> (i32, i32) {
    %c0_i32 = arith.constant 0 : i32
    %c0_i32_0 = arith.constant 0 : i32
    %c0_i32_1 = arith.constant 0 : i32
    return %c0_i32, %c0_i32_0 : i32, i32
  }
  func.func @transform_9(%arg0: i32) -> (i32, i32) {
    %c0_i32 = arith.constant 0 : i32
    %c0_i32_0 = arith.constant 0 : i32
    %c0_i32_1 = arith.constant 0 : i32
    return %c0_i32, %c0_i32_0 : i32, i32
  }
  func.func @transform_10(%arg0: i32) -> (i32, i32) {
    %c0_i32 = arith.constant 0 : i32
    %c0_i32_0 = arith.constant 0 : i32
    %c0_i32_1 = arith.constant 0 : i32
    return %c0_i32, %c0_i32_0 : i32, i32
  }
  func.func @transform_11(%arg0: i32) -> (i32, i32) {
    %c0_i32 = arith.constant 0 : i32
    %c0_i32_0 = arith.constant 0 : i32
    %c0_i32_1 = arith.constant 0 : i32
    return %c0_i32, %c0_i32_0 : i32, i32
  }
  func.func @transform_12(%arg0: i32) -> (i32, i32) {
    %c0_i32 = arith.constant 0 : i32
    %c0_i32_0 = arith.constant 0 : i32
    %c0_i32_1 = arith.constant 0 : i32
    return %c0_i32, %c0_i32_0 : i32, i32
  }
  func.func @transform_13(%arg0: i32) -> (i32, i32) {
    %c0_i32 = arith.constant 0 : i32
    %c0_i32_0 = arith.constant 0 : i32
    %c0_i32_1 = arith.constant 0 : i32
    return %c0_i32, %c0_i32_0 : i32, i32
  }
  func.func @transform_14(%arg0: i32) -> (i32, i32) {
    %c0_i32 = arith.constant 0 : i32
    %c0_i32_0 = arith.constant 0 : i32
    return %arg0, %c0_i32 : i32, i32
  }
}

module attributes {stable_mosaic.version = 11 : i64} {
  func.func @_block_kernel(%arg0: i32, %arg1: memref<32x256xf32, #tpu.memory_space<vmem>>, %arg2: memref<32x1xf32, #tpu.memory_space<vmem>>, %arg3: memref<1x256xf32, #tpu.memory_space<vmem>>, %arg4: memref<1x256xf32, #tpu.memory_space<vmem>>, %arg5: memref<256x128xbf16, #tpu.memory_space<vmem>>, %arg6: memref<1x128xf32, #tpu.memory_space<vmem>>, %arg7: memref<1x128xf32, #tpu.memory_space<vmem>>, %arg8: memref<1x128xf32, #tpu.memory_space<vmem>>, %arg9: memref<128x384xbf16, #tpu.memory_space<vmem>>, %arg10: memref<1x128xf32, #tpu.memory_space<vmem>>, %arg11: memref<1x128xf32, #tpu.memory_space<vmem>>, %arg12: memref<1x128xf32, #tpu.memory_space<vmem>>, %arg13: memref<128x256xbf16, #tpu.memory_space<vmem>>, %arg14: memref<1x256xf32, #tpu.memory_space<vmem>>, %arg15: memref<32x256xf32, #tpu.memory_space<vmem>>) attributes {dimension_semantics = [#tpu.dimension_semantics<parallel>], iteration_bounds = array<i64: 2>, scalar_prefetch = 0 : i64, scratch_operands = 0 : i64, tpu.core_type = #tpu.core_type<tc>, window_params = [{transform_indices = @transform_0, window_bounds = array<i64: 32, 256>}, {transform_indices = @transform_1, window_bounds = array<i64: 32, 1>}, {pipeline_mode = #tpu.pipeline_mode<synchronous>, transform_indices = @transform_2, window_bounds = array<i64: 1, 256>}, {pipeline_mode = #tpu.pipeline_mode<synchronous>, transform_indices = @transform_3, window_bounds = array<i64: 1, 256>}, {pipeline_mode = #tpu.pipeline_mode<synchronous>, transform_indices = @transform_4, window_bounds = array<i64: 256, 128>}, {pipeline_mode = #tpu.pipeline_mode<synchronous>, transform_indices = @transform_5, window_bounds = array<i64: 1, 128>}, {pipeline_mode = #tpu.pipeline_mode<synchronous>, transform_indices = @transform_6, window_bounds = array<i64: 1, 128>}, {pipeline_mode = #tpu.pipeline_mode<synchronous>, transform_indices = @transform_7, window_bounds = array<i64: 1, 128>}, {pipeline_mode = #tpu.pipeline_mode<synchronous>, transform_indices = @transform_8, window_bounds = array<i64: 128, 384>}, {pipeline_mode = #tpu.pipeline_mode<synchronous>, transform_indices = @transform_9, window_bounds = array<i64: 1, 128>}, {pipeline_mode = #tpu.pipeline_mode<synchronous>, transform_indices = @transform_10, window_bounds = array<i64: 1, 128>}, {pipeline_mode = #tpu.pipeline_mode<synchronous>, transform_indices = @transform_11, window_bounds = array<i64: 1, 128>}, {pipeline_mode = #tpu.pipeline_mode<synchronous>, transform_indices = @transform_12, window_bounds = array<i64: 128, 256>}, {pipeline_mode = #tpu.pipeline_mode<synchronous>, transform_indices = @transform_13, window_bounds = array<i64: 1, 256>}, {transform_indices = @transform_14, window_bounds = array<i64: 32, 256>}]} {
    %c0 = arith.constant 0 : index
    %c0_0 = arith.constant 0 : index
    %0 = vector.load %arg1[%c0, %c0_0] : memref<32x256xf32, #tpu.memory_space<vmem>>, vector<32x256xf32>
    %c0_1 = arith.constant 0 : index
    %c0_2 = arith.constant 0 : index
    %1 = vector.load %arg3[%c0_1, %c0_2] : memref<1x256xf32, #tpu.memory_space<vmem>>, vector<1x256xf32>
    %c0_3 = arith.constant 0 : index
    %c0_4 = arith.constant 0 : index
    %2 = vector.load %arg4[%c0_3, %c0_4] : memref<1x256xf32, #tpu.memory_space<vmem>>, vector<1x256xf32>
    %cst = arith.constant dense<0.000000e+00> : vector<32xf32>
    %3 = vector.multi_reduction <add>, %0, %cst [1] : vector<32x256xf32> to vector<32xf32>
    %4 = vector.shape_cast %3 : vector<32xf32> to vector<32x1xf32>
    %cst_5 = arith.constant 2.560000e+02 : f32
    %5 = vector.broadcast %cst_5 : f32 to vector<32x1xf32>
    %6 = arith.divf %4, %5 : vector<32x1xf32>
    %7 = vector.broadcast %6 : vector<32x1xf32> to vector<32x256xf32>
    %8 = arith.subf %0, %7 : vector<32x256xf32>
    %9 = arith.mulf %8, %8 : vector<32x256xf32>
    %cst_6 = arith.constant dense<0.000000e+00> : vector<32xf32>
    %10 = vector.multi_reduction <add>, %9, %cst_6 [1] : vector<32x256xf32> to vector<32xf32>
    %11 = vector.shape_cast %10 : vector<32xf32> to vector<32x1xf32>
    %cst_7 = arith.constant 2.560000e+02 : f32
    %12 = vector.broadcast %cst_7 : f32 to vector<32x1xf32>
    %13 = arith.divf %11, %12 : vector<32x1xf32>
    %cst_8 = arith.constant 9.99999974E-6 : f32
    %14 = vector.broadcast %cst_8 : f32 to vector<32x1xf32>
    %15 = arith.addf %13, %14 : vector<32x1xf32>
    %16 = math.rsqrt %15 : vector<32x1xf32>
    %17 = vector.broadcast %16 : vector<32x1xf32> to vector<32x256xf32>
    %18 = arith.mulf %8, %17 : vector<32x256xf32>
    %19 = vector.broadcast %1 : vector<1x256xf32> to vector<32x256xf32>
    %20 = arith.mulf %18, %19 : vector<32x256xf32>
    %21 = vector.broadcast %2 : vector<1x256xf32> to vector<32x256xf32>
    %22 = arith.addf %20, %21 : vector<32x256xf32>
    %cst_9 = arith.constant 0.000000e+00 : f32
    %23 = vector.broadcast %cst_9 : f32 to vector<32x256xf32>
    %24 = arith.maximumf %22, %23 : vector<32x256xf32>
    %25 = arith.truncf %24 : vector<32x256xf32> to vector<32x256xbf16>
    %c0_10 = arith.constant 0 : index
    %c0_11 = arith.constant 0 : index
    %26 = vector.load %arg5[%c0_10, %c0_11] : memref<256x128xbf16, #tpu.memory_space<vmem>>, vector<256x128xbf16>
    %cst_12 = arith.constant dense<0.000000e+00> : vector<32x128xf32>
    %27 = tpu.matmul %25, %26, %cst_12 {dimension_numbers = #tpu.dot_dimension_numbers<[1], [0], [0], [1], [0, 0, 1, 1], [], []>} : vector<32x256xbf16>, vector<256x128xbf16>, vector<32x128xf32> -> vector<32x128xf32>
    %c0_13 = arith.constant 0 : index
    %c0_14 = arith.constant 0 : index
    %28 = vector.load %arg6[%c0_13, %c0_14] : memref<1x128xf32, #tpu.memory_space<vmem>>, vector<1x128xf32>
    %29 = vector.broadcast %28 : vector<1x128xf32> to vector<32x128xf32>
    %30 = arith.addf %27, %29 : vector<32x128xf32>
    %c0_15 = arith.constant 0 : index
    %c0_16 = arith.constant 0 : index
    %31 = vector.load %arg7[%c0_15, %c0_16] : memref<1x128xf32, #tpu.memory_space<vmem>>, vector<1x128xf32>
    %c0_17 = arith.constant 0 : index
    %c0_18 = arith.constant 0 : index
    %32 = vector.load %arg8[%c0_17, %c0_18] : memref<1x128xf32, #tpu.memory_space<vmem>>, vector<1x128xf32>
    %cst_19 = arith.constant dense<0.000000e+00> : vector<32xf32>
    %33 = vector.multi_reduction <add>, %30, %cst_19 [1] : vector<32x128xf32> to vector<32xf32>
    %34 = vector.shape_cast %33 : vector<32xf32> to vector<32x1xf32>
    %cst_20 = arith.constant 1.280000e+02 : f32
    %35 = vector.broadcast %cst_20 : f32 to vector<32x1xf32>
    %36 = arith.divf %34, %35 : vector<32x1xf32>
    %37 = vector.broadcast %36 : vector<32x1xf32> to vector<32x128xf32>
    %38 = arith.subf %30, %37 : vector<32x128xf32>
    %39 = arith.mulf %38, %38 : vector<32x128xf32>
    %cst_21 = arith.constant dense<0.000000e+00> : vector<32xf32>
    %40 = vector.multi_reduction <add>, %39, %cst_21 [1] : vector<32x128xf32> to vector<32xf32>
    %41 = vector.shape_cast %40 : vector<32xf32> to vector<32x1xf32>
    %cst_22 = arith.constant 1.280000e+02 : f32
    %42 = vector.broadcast %cst_22 : f32 to vector<32x1xf32>
    %43 = arith.divf %41, %42 : vector<32x1xf32>
    %cst_23 = arith.constant 9.99999974E-6 : f32
    %44 = vector.broadcast %cst_23 : f32 to vector<32x1xf32>
    %45 = arith.addf %43, %44 : vector<32x1xf32>
    %46 = math.rsqrt %45 : vector<32x1xf32>
    %47 = vector.broadcast %46 : vector<32x1xf32> to vector<32x128xf32>
    %48 = arith.mulf %38, %47 : vector<32x128xf32>
    %49 = vector.broadcast %31 : vector<1x128xf32> to vector<32x128xf32>
    %50 = arith.mulf %48, %49 : vector<32x128xf32>
    %51 = vector.broadcast %32 : vector<1x128xf32> to vector<32x128xf32>
    %52 = arith.addf %50, %51 : vector<32x128xf32>
    %cst_24 = arith.constant 0.000000e+00 : f32
    %53 = vector.broadcast %cst_24 : f32 to vector<32x128xf32>
    %54 = arith.maximumf %52, %53 : vector<32x128xf32>
    %c0_25 = arith.constant 0 : index
    %c0_26 = arith.constant 0 : index
    %55 = vector.load %arg2[%c0_25, %c0_26] : memref<32x1xf32, #tpu.memory_space<vmem>>, vector<32x1xf32>
    %56 = vector.broadcast %55 : vector<32x1xf32> to vector<32x128xf32>
    %57 = arith.mulf %54, %56 : vector<32x128xf32>
    %58 = arith.truncf %57 : vector<32x128xf32> to vector<32x128xbf16>
    %c0_27 = arith.constant 0 : index
    %c0_28 = arith.constant 0 : index
    %59 = vector.load %arg9[%c0_27, %c0_28] : memref<128x384xbf16, #tpu.memory_space<vmem>>, vector<128x384xbf16>
    %cst_29 = arith.constant dense<0.000000e+00> : vector<32x384xf32>
    %60 = tpu.matmul %58, %59, %cst_29 {dimension_numbers = #tpu.dot_dimension_numbers<[1], [0], [0], [1], [0, 0, 1, 1], [], []>} : vector<32x128xbf16>, vector<128x384xbf16>, vector<32x384xf32> -> vector<32x384xf32>
    %61 = tpu.iota {dimensions = array<i32: 0>} : vector<32x1xi32>
    %c32_i32 = arith.constant 32 : i32
    %c0_i32 = arith.constant 0 : i32
    %62 = arith.cmpi eq, %c32_i32, %c0_i32 : i32
    %c1_i32 = arith.constant 1 : i32
    %63 = arith.select %62, %c1_i32, %c32_i32 : i32
    %64 = vector.broadcast %63 : i32 to vector<32x1xi32>
    %65 = arith.remsi %61, %64 : vector<32x1xi32>
    %c0_i32_30 = arith.constant 0 : i32
    %66 = vector.broadcast %c0_i32_30 : i32 to vector<32x1xi32>
    %67 = arith.cmpi ne, %65, %66 : vector<32x1xi32>
    %c0_i32_31 = arith.constant 0 : i32
    %68 = vector.broadcast %c0_i32_31 : i32 to vector<32x1xi32>
    %69 = arith.cmpi slt, %65, %68 : vector<32x1xi32>
    %c0_i32_32 = arith.constant 0 : i32
    %70 = arith.cmpi slt, %63, %c0_i32_32 : i32
    %71 = vector.broadcast %70 : i1 to vector<32x1xi1>
    %72 = vector.broadcast %71 : vector<32x1xi1> to vector<32x1xi1>
    %73 = arith.xori %69, %72 : vector<32x1xi1>
    %74 = arith.andi %73, %67 : vector<32x1xi1>
    %75 = vector.broadcast %63 : i32 to vector<32x1xi32>
    %76 = arith.addi %65, %75 : vector<32x1xi32>
    %77 = arith.select %74, %76, %65 : vector<32x1xi1>, vector<32x1xi32>
    %cst_33 = arith.constant 0.000000e+00 : f32
    %78 = vector.broadcast %cst_33 : f32 to vector<32x128xf32>
    %79 = vector.extract_strided_slice %60 {offsets = [0, 0], sizes = [32, 128], strides = [1, 1]} : vector<32x384xf32> to vector<32x128xf32>
    %c2_i32 = arith.constant 2 : i32
    %80 = tpu.dynamic_rotate %79 by %c2_i32 dim 0 : vector<32x128xf32>, i32 -> vector<32x128xf32>
    %c-2_i32 = arith.constant -2 : i32
    %81 = vector.broadcast %c-2_i32 : i32 to vector<32x1xi32>
    %82 = arith.addi %77, %81 : vector<32x1xi32>
    %c0_i32_34 = arith.constant 0 : i32
    %83 = vector.broadcast %c0_i32_34 : i32 to vector<32x1xi32>
    %84 = arith.cmpi sge, %82, %83 : vector<32x1xi32>
    %c32_i32_35 = arith.constant 32 : i32
    %85 = vector.broadcast %c32_i32_35 : i32 to vector<32x1xi32>
    %86 = arith.cmpi slt, %82, %85 : vector<32x1xi32>
    %87 = arith.andi %84, %86 : vector<32x1xi1>
    %cst_36 = arith.constant 0.000000e+00 : f32
    %88 = vector.shape_cast %87 : vector<32x1xi1> to vector<32x1xi1>
    %89 = vector.broadcast %88 : vector<32x1xi1> to vector<32x128xi1>
    %90 = vector.broadcast %cst_36 : f32 to vector<32x128xf32>
    %91 = arith.select %89, %80, %90 : vector<32x128xi1>, vector<32x128xf32>
    %92 = arith.addf %78, %91 : vector<32x128xf32>
    %93 = vector.extract_strided_slice %60 {offsets = [0, 128], sizes = [32, 128], strides = [1, 1]} : vector<32x384xf32> to vector<32x128xf32>
    %94 = arith.addf %92, %93 : vector<32x128xf32>
    %95 = vector.extract_strided_slice %60 {offsets = [0, 256], sizes = [32, 128], strides = [1, 1]} : vector<32x384xf32> to vector<32x128xf32>
    %c30_i32 = arith.constant 30 : i32
    %96 = tpu.dynamic_rotate %95 by %c30_i32 dim 0 : vector<32x128xf32>, i32 -> vector<32x128xf32>
    %c2_i32_37 = arith.constant 2 : i32
    %97 = vector.broadcast %c2_i32_37 : i32 to vector<32x1xi32>
    %98 = arith.addi %77, %97 : vector<32x1xi32>
    %c0_i32_38 = arith.constant 0 : i32
    %99 = vector.broadcast %c0_i32_38 : i32 to vector<32x1xi32>
    %100 = arith.cmpi sge, %98, %99 : vector<32x1xi32>
    %c32_i32_39 = arith.constant 32 : i32
    %101 = vector.broadcast %c32_i32_39 : i32 to vector<32x1xi32>
    %102 = arith.cmpi slt, %98, %101 : vector<32x1xi32>
    %103 = arith.andi %100, %102 : vector<32x1xi1>
    %cst_40 = arith.constant 0.000000e+00 : f32
    %104 = vector.shape_cast %103 : vector<32x1xi1> to vector<32x1xi1>
    %105 = vector.broadcast %104 : vector<32x1xi1> to vector<32x128xi1>
    %106 = vector.broadcast %cst_40 : f32 to vector<32x128xf32>
    %107 = arith.select %105, %96, %106 : vector<32x128xi1>, vector<32x128xf32>
    %108 = arith.addf %94, %107 : vector<32x128xf32>
    %c0_41 = arith.constant 0 : index
    %c0_42 = arith.constant 0 : index
    %109 = vector.load %arg10[%c0_41, %c0_42] : memref<1x128xf32, #tpu.memory_space<vmem>>, vector<1x128xf32>
    %110 = vector.broadcast %109 : vector<1x128xf32> to vector<32x128xf32>
    %111 = arith.addf %108, %110 : vector<32x128xf32>
    %c0_43 = arith.constant 0 : index
    %c0_44 = arith.constant 0 : index
    %112 = vector.load %arg11[%c0_43, %c0_44] : memref<1x128xf32, #tpu.memory_space<vmem>>, vector<1x128xf32>
    %c0_45 = arith.constant 0 : index
    %c0_46 = arith.constant 0 : index
    %113 = vector.load %arg12[%c0_45, %c0_46] : memref<1x128xf32, #tpu.memory_space<vmem>>, vector<1x128xf32>
    %cst_47 = arith.constant dense<0.000000e+00> : vector<32xf32>
    %114 = vector.multi_reduction <add>, %111, %cst_47 [1] : vector<32x128xf32> to vector<32xf32>
    %115 = vector.shape_cast %114 : vector<32xf32> to vector<32x1xf32>
    %cst_48 = arith.constant 1.280000e+02 : f32
    %116 = vector.broadcast %cst_48 : f32 to vector<32x1xf32>
    %117 = arith.divf %115, %116 : vector<32x1xf32>
    %118 = vector.broadcast %117 : vector<32x1xf32> to vector<32x128xf32>
    %119 = arith.subf %111, %118 : vector<32x128xf32>
    %120 = arith.mulf %119, %119 : vector<32x128xf32>
    %cst_49 = arith.constant dense<0.000000e+00> : vector<32xf32>
    %121 = vector.multi_reduction <add>, %120, %cst_49 [1] : vector<32x128xf32> to vector<32xf32>
    %122 = vector.shape_cast %121 : vector<32xf32> to vector<32x1xf32>
    %cst_50 = arith.constant 1.280000e+02 : f32
    %123 = vector.broadcast %cst_50 : f32 to vector<32x1xf32>
    %124 = arith.divf %122, %123 : vector<32x1xf32>
    %cst_51 = arith.constant 9.99999974E-6 : f32
    %125 = vector.broadcast %cst_51 : f32 to vector<32x1xf32>
    %126 = arith.addf %124, %125 : vector<32x1xf32>
    %127 = math.rsqrt %126 : vector<32x1xf32>
    %128 = vector.broadcast %127 : vector<32x1xf32> to vector<32x128xf32>
    %129 = arith.mulf %119, %128 : vector<32x128xf32>
    %130 = vector.broadcast %112 : vector<1x128xf32> to vector<32x128xf32>
    %131 = arith.mulf %129, %130 : vector<32x128xf32>
    %132 = vector.broadcast %113 : vector<1x128xf32> to vector<32x128xf32>
    %133 = arith.addf %131, %132 : vector<32x128xf32>
    %cst_52 = arith.constant 0.000000e+00 : f32
    %134 = vector.broadcast %cst_52 : f32 to vector<32x128xf32>
    %135 = arith.maximumf %133, %134 : vector<32x128xf32>
    %136 = arith.truncf %135 : vector<32x128xf32> to vector<32x128xbf16>
    %c0_53 = arith.constant 0 : index
    %c0_54 = arith.constant 0 : index
    %137 = vector.load %arg13[%c0_53, %c0_54] : memref<128x256xbf16, #tpu.memory_space<vmem>>, vector<128x256xbf16>
    %cst_55 = arith.constant dense<0.000000e+00> : vector<32x256xf32>
    %138 = tpu.matmul %136, %137, %cst_55 {dimension_numbers = #tpu.dot_dimension_numbers<[1], [0], [0], [1], [0, 0, 1, 1], [], []>} : vector<32x128xbf16>, vector<128x256xbf16>, vector<32x256xf32> -> vector<32x256xf32>
    %c0_56 = arith.constant 0 : index
    %c0_57 = arith.constant 0 : index
    %139 = vector.load %arg14[%c0_56, %c0_57] : memref<1x256xf32, #tpu.memory_space<vmem>>, vector<1x256xf32>
    %140 = vector.broadcast %139 : vector<1x256xf32> to vector<32x256xf32>
    %141 = arith.addf %138, %140 : vector<32x256xf32>
    %142 = arith.addf %0, %141 : vector<32x256xf32>
    %c0_58 = arith.constant 0 : index
    %c0_59 = arith.constant 0 : index
    %143 = vector.load %arg15[%c0_58, %c0_59] : memref<32x256xf32, #tpu.memory_space<vmem>>, vector<32x256xf32>
    tpu.vector_store %arg15[%c0_58, %c0_59], %142 {strides = array<i32>} : memref<32x256xf32, #tpu.memory_space<vmem>>, vector<32x256xf32>,
    return
  }
  func.func @transform_0(%arg0: i32) -> (i32, i32) {
    %c0_i32 = arith.constant 0 : i32
    %c0_i32_0 = arith.constant 0 : i32
    return %arg0, %c0_i32 : i32, i32
  }
  func.func @transform_1(%arg0: i32) -> (i32, i32) {
    %c0_i32 = arith.constant 0 : i32
    %c0_i32_0 = arith.constant 0 : i32
    return %arg0, %c0_i32 : i32, i32
  }
  func.func @transform_2(%arg0: i32) -> (i32, i32) {
    %c0_i32 = arith.constant 0 : i32
    %c0_i32_0 = arith.constant 0 : i32
    %c0_i32_1 = arith.constant 0 : i32
    return %c0_i32, %c0_i32_0 : i32, i32
  }
  func.func @transform_3(%arg0: i32) -> (i32, i32) {
    %c0_i32 = arith.constant 0 : i32
    %c0_i32_0 = arith.constant 0 : i32
    %c0_i32_1 = arith.constant 0 : i32
    return %c0_i32, %c0_i32_0 : i32, i32
  }
  func.func @transform_4(%arg0: i32) -> (i32, i32) {
    %c0_i32 = arith.constant 0 : i32
    %c0_i32_0 = arith.constant 0 : i32
    %c0_i32_1 = arith.constant 0 : i32
    return %c0_i32, %c0_i32_0 : i32, i32
  }
  func.func @transform_5(%arg0: i32) -> (i32, i32) {
    %c0_i32 = arith.constant 0 : i32
    %c0_i32_0 = arith.constant 0 : i32
    %c0_i32_1 = arith.constant 0 : i32
    return %c0_i32, %c0_i32_0 : i32, i32
  }
  func.func @transform_6(%arg0: i32) -> (i32, i32) {
    %c0_i32 = arith.constant 0 : i32
    %c0_i32_0 = arith.constant 0 : i32
    %c0_i32_1 = arith.constant 0 : i32
    return %c0_i32, %c0_i32_0 : i32, i32
  }
  func.func @transform_7(%arg0: i32) -> (i32, i32) {
    %c0_i32 = arith.constant 0 : i32
    %c0_i32_0 = arith.constant 0 : i32
    %c0_i32_1 = arith.constant 0 : i32
    return %c0_i32, %c0_i32_0 : i32, i32
  }
  func.func @transform_8(%arg0: i32) -> (i32, i32) {
    %c0_i32 = arith.constant 0 : i32
    %c0_i32_0 = arith.constant 0 : i32
    %c0_i32_1 = arith.constant 0 : i32
    return %c0_i32, %c0_i32_0 : i32, i32
  }
  func.func @transform_9(%arg0: i32) -> (i32, i32) {
    %c0_i32 = arith.constant 0 : i32
    %c0_i32_0 = arith.constant 0 : i32
    %c0_i32_1 = arith.constant 0 : i32
    return %c0_i32, %c0_i32_0 : i32, i32
  }
  func.func @transform_10(%arg0: i32) -> (i32, i32) {
    %c0_i32 = arith.constant 0 : i32
    %c0_i32_0 = arith.constant 0 : i32
    %c0_i32_1 = arith.constant 0 : i32
    return %c0_i32, %c0_i32_0 : i32, i32
  }
  func.func @transform_11(%arg0: i32) -> (i32, i32) {
    %c0_i32 = arith.constant 0 : i32
    %c0_i32_0 = arith.constant 0 : i32
    %c0_i32_1 = arith.constant 0 : i32
    return %c0_i32, %c0_i32_0 : i32, i32
  }
  func.func @transform_12(%arg0: i32) -> (i32, i32) {
    %c0_i32 = arith.constant 0 : i32
    %c0_i32_0 = arith.constant 0 : i32
    %c0_i32_1 = arith.constant 0 : i32
    return %c0_i32, %c0_i32_0 : i32, i32
  }
  func.func @transform_13(%arg0: i32) -> (i32, i32) {
    %c0_i32 = arith.constant 0 : i32
    %c0_i32_0 = arith.constant 0 : i32
    %c0_i32_1 = arith.constant 0 : i32
    return %c0_i32, %c0_i32_0 : i32, i32
  }
  func.func @transform_14(%arg0: i32) -> (i32, i32) {
    %c0_i32 = arith.constant 0 : i32
    %c0_i32_0 = arith.constant 0 : i32
    return %arg0, %c0_i32 : i32, i32
  }
}

module attributes {stable_mosaic.version = 11 : i64} {
  func.func @_block_kernel(%arg0: i32, %arg1: memref<32x256xf32, #tpu.memory_space<vmem>>, %arg2: memref<32x1xf32, #tpu.memory_space<vmem>>, %arg3: memref<1x256xf32, #tpu.memory_space<vmem>>, %arg4: memref<1x256xf32, #tpu.memory_space<vmem>>, %arg5: memref<256x128xbf16, #tpu.memory_space<vmem>>, %arg6: memref<1x128xf32, #tpu.memory_space<vmem>>, %arg7: memref<1x128xf32, #tpu.memory_space<vmem>>, %arg8: memref<1x128xf32, #tpu.memory_space<vmem>>, %arg9: memref<128x384xbf16, #tpu.memory_space<vmem>>, %arg10: memref<1x128xf32, #tpu.memory_space<vmem>>, %arg11: memref<1x128xf32, #tpu.memory_space<vmem>>, %arg12: memref<1x128xf32, #tpu.memory_space<vmem>>, %arg13: memref<128x256xbf16, #tpu.memory_space<vmem>>, %arg14: memref<1x256xf32, #tpu.memory_space<vmem>>, %arg15: memref<32x256xf32, #tpu.memory_space<vmem>>) attributes {dimension_semantics = [#tpu.dimension_semantics<parallel>], iteration_bounds = array<i64: 2>, scalar_prefetch = 0 : i64, scratch_operands = 0 : i64, tpu.core_type = #tpu.core_type<tc>, window_params = [{transform_indices = @transform_0, window_bounds = array<i64: 32, 256>}, {transform_indices = @transform_1, window_bounds = array<i64: 32, 1>}, {pipeline_mode = #tpu.pipeline_mode<synchronous>, transform_indices = @transform_2, window_bounds = array<i64: 1, 256>}, {pipeline_mode = #tpu.pipeline_mode<synchronous>, transform_indices = @transform_3, window_bounds = array<i64: 1, 256>}, {pipeline_mode = #tpu.pipeline_mode<synchronous>, transform_indices = @transform_4, window_bounds = array<i64: 256, 128>}, {pipeline_mode = #tpu.pipeline_mode<synchronous>, transform_indices = @transform_5, window_bounds = array<i64: 1, 128>}, {pipeline_mode = #tpu.pipeline_mode<synchronous>, transform_indices = @transform_6, window_bounds = array<i64: 1, 128>}, {pipeline_mode = #tpu.pipeline_mode<synchronous>, transform_indices = @transform_7, window_bounds = array<i64: 1, 128>}, {pipeline_mode = #tpu.pipeline_mode<synchronous>, transform_indices = @transform_8, window_bounds = array<i64: 128, 384>}, {pipeline_mode = #tpu.pipeline_mode<synchronous>, transform_indices = @transform_9, window_bounds = array<i64: 1, 128>}, {pipeline_mode = #tpu.pipeline_mode<synchronous>, transform_indices = @transform_10, window_bounds = array<i64: 1, 128>}, {pipeline_mode = #tpu.pipeline_mode<synchronous>, transform_indices = @transform_11, window_bounds = array<i64: 1, 128>}, {pipeline_mode = #tpu.pipeline_mode<synchronous>, transform_indices = @transform_12, window_bounds = array<i64: 128, 256>}, {pipeline_mode = #tpu.pipeline_mode<synchronous>, transform_indices = @transform_13, window_bounds = array<i64: 1, 256>}, {transform_indices = @transform_14, window_bounds = array<i64: 32, 256>}]} {
    %c0 = arith.constant 0 : index
    %c0_0 = arith.constant 0 : index
    %0 = vector.load %arg1[%c0, %c0_0] : memref<32x256xf32, #tpu.memory_space<vmem>>, vector<32x256xf32>
    %c0_1 = arith.constant 0 : index
    %c0_2 = arith.constant 0 : index
    %1 = vector.load %arg3[%c0_1, %c0_2] : memref<1x256xf32, #tpu.memory_space<vmem>>, vector<1x256xf32>
    %c0_3 = arith.constant 0 : index
    %c0_4 = arith.constant 0 : index
    %2 = vector.load %arg4[%c0_3, %c0_4] : memref<1x256xf32, #tpu.memory_space<vmem>>, vector<1x256xf32>
    %cst = arith.constant dense<0.000000e+00> : vector<32xf32>
    %3 = vector.multi_reduction <add>, %0, %cst [1] : vector<32x256xf32> to vector<32xf32>
    %4 = vector.shape_cast %3 : vector<32xf32> to vector<32x1xf32>
    %cst_5 = arith.constant 2.560000e+02 : f32
    %5 = vector.broadcast %cst_5 : f32 to vector<32x1xf32>
    %6 = arith.divf %4, %5 : vector<32x1xf32>
    %7 = vector.broadcast %6 : vector<32x1xf32> to vector<32x256xf32>
    %8 = arith.subf %0, %7 : vector<32x256xf32>
    %9 = arith.mulf %8, %8 : vector<32x256xf32>
    %cst_6 = arith.constant dense<0.000000e+00> : vector<32xf32>
    %10 = vector.multi_reduction <add>, %9, %cst_6 [1] : vector<32x256xf32> to vector<32xf32>
    %11 = vector.shape_cast %10 : vector<32xf32> to vector<32x1xf32>
    %cst_7 = arith.constant 2.560000e+02 : f32
    %12 = vector.broadcast %cst_7 : f32 to vector<32x1xf32>
    %13 = arith.divf %11, %12 : vector<32x1xf32>
    %cst_8 = arith.constant 9.99999974E-6 : f32
    %14 = vector.broadcast %cst_8 : f32 to vector<32x1xf32>
    %15 = arith.addf %13, %14 : vector<32x1xf32>
    %16 = math.rsqrt %15 : vector<32x1xf32>
    %17 = vector.broadcast %16 : vector<32x1xf32> to vector<32x256xf32>
    %18 = arith.mulf %8, %17 : vector<32x256xf32>
    %19 = vector.broadcast %1 : vector<1x256xf32> to vector<32x256xf32>
    %20 = arith.mulf %18, %19 : vector<32x256xf32>
    %21 = vector.broadcast %2 : vector<1x256xf32> to vector<32x256xf32>
    %22 = arith.addf %20, %21 : vector<32x256xf32>
    %cst_9 = arith.constant 0.000000e+00 : f32
    %23 = vector.broadcast %cst_9 : f32 to vector<32x256xf32>
    %24 = arith.maximumf %22, %23 : vector<32x256xf32>
    %25 = arith.truncf %24 : vector<32x256xf32> to vector<32x256xbf16>
    %c0_10 = arith.constant 0 : index
    %c0_11 = arith.constant 0 : index
    %26 = vector.load %arg5[%c0_10, %c0_11] : memref<256x128xbf16, #tpu.memory_space<vmem>>, vector<256x128xbf16>
    %cst_12 = arith.constant dense<0.000000e+00> : vector<32x128xf32>
    %27 = tpu.matmul %25, %26, %cst_12 {dimension_numbers = #tpu.dot_dimension_numbers<[1], [0], [0], [1], [0, 0, 1, 1], [], []>} : vector<32x256xbf16>, vector<256x128xbf16>, vector<32x128xf32> -> vector<32x128xf32>
    %c0_13 = arith.constant 0 : index
    %c0_14 = arith.constant 0 : index
    %28 = vector.load %arg6[%c0_13, %c0_14] : memref<1x128xf32, #tpu.memory_space<vmem>>, vector<1x128xf32>
    %29 = vector.broadcast %28 : vector<1x128xf32> to vector<32x128xf32>
    %30 = arith.addf %27, %29 : vector<32x128xf32>
    %c0_15 = arith.constant 0 : index
    %c0_16 = arith.constant 0 : index
    %31 = vector.load %arg7[%c0_15, %c0_16] : memref<1x128xf32, #tpu.memory_space<vmem>>, vector<1x128xf32>
    %c0_17 = arith.constant 0 : index
    %c0_18 = arith.constant 0 : index
    %32 = vector.load %arg8[%c0_17, %c0_18] : memref<1x128xf32, #tpu.memory_space<vmem>>, vector<1x128xf32>
    %cst_19 = arith.constant dense<0.000000e+00> : vector<32xf32>
    %33 = vector.multi_reduction <add>, %30, %cst_19 [1] : vector<32x128xf32> to vector<32xf32>
    %34 = vector.shape_cast %33 : vector<32xf32> to vector<32x1xf32>
    %cst_20 = arith.constant 1.280000e+02 : f32
    %35 = vector.broadcast %cst_20 : f32 to vector<32x1xf32>
    %36 = arith.divf %34, %35 : vector<32x1xf32>
    %37 = vector.broadcast %36 : vector<32x1xf32> to vector<32x128xf32>
    %38 = arith.subf %30, %37 : vector<32x128xf32>
    %39 = arith.mulf %38, %38 : vector<32x128xf32>
    %cst_21 = arith.constant dense<0.000000e+00> : vector<32xf32>
    %40 = vector.multi_reduction <add>, %39, %cst_21 [1] : vector<32x128xf32> to vector<32xf32>
    %41 = vector.shape_cast %40 : vector<32xf32> to vector<32x1xf32>
    %cst_22 = arith.constant 1.280000e+02 : f32
    %42 = vector.broadcast %cst_22 : f32 to vector<32x1xf32>
    %43 = arith.divf %41, %42 : vector<32x1xf32>
    %cst_23 = arith.constant 9.99999974E-6 : f32
    %44 = vector.broadcast %cst_23 : f32 to vector<32x1xf32>
    %45 = arith.addf %43, %44 : vector<32x1xf32>
    %46 = math.rsqrt %45 : vector<32x1xf32>
    %47 = vector.broadcast %46 : vector<32x1xf32> to vector<32x128xf32>
    %48 = arith.mulf %38, %47 : vector<32x128xf32>
    %49 = vector.broadcast %31 : vector<1x128xf32> to vector<32x128xf32>
    %50 = arith.mulf %48, %49 : vector<32x128xf32>
    %51 = vector.broadcast %32 : vector<1x128xf32> to vector<32x128xf32>
    %52 = arith.addf %50, %51 : vector<32x128xf32>
    %cst_24 = arith.constant 0.000000e+00 : f32
    %53 = vector.broadcast %cst_24 : f32 to vector<32x128xf32>
    %54 = arith.maximumf %52, %53 : vector<32x128xf32>
    %c0_25 = arith.constant 0 : index
    %c0_26 = arith.constant 0 : index
    %55 = vector.load %arg2[%c0_25, %c0_26] : memref<32x1xf32, #tpu.memory_space<vmem>>, vector<32x1xf32>
    %56 = vector.broadcast %55 : vector<32x1xf32> to vector<32x128xf32>
    %57 = arith.mulf %54, %56 : vector<32x128xf32>
    %58 = arith.truncf %57 : vector<32x128xf32> to vector<32x128xbf16>
    %c0_27 = arith.constant 0 : index
    %c0_28 = arith.constant 0 : index
    %59 = vector.load %arg9[%c0_27, %c0_28] : memref<128x384xbf16, #tpu.memory_space<vmem>>, vector<128x384xbf16>
    %cst_29 = arith.constant dense<0.000000e+00> : vector<32x384xf32>
    %60 = tpu.matmul %58, %59, %cst_29 {dimension_numbers = #tpu.dot_dimension_numbers<[1], [0], [0], [1], [0, 0, 1, 1], [], []>} : vector<32x128xbf16>, vector<128x384xbf16>, vector<32x384xf32> -> vector<32x384xf32>
    %61 = tpu.iota {dimensions = array<i32: 0>} : vector<32x1xi32>
    %c32_i32 = arith.constant 32 : i32
    %c0_i32 = arith.constant 0 : i32
    %62 = arith.cmpi eq, %c32_i32, %c0_i32 : i32
    %c1_i32 = arith.constant 1 : i32
    %63 = arith.select %62, %c1_i32, %c32_i32 : i32
    %64 = vector.broadcast %63 : i32 to vector<32x1xi32>
    %65 = arith.remsi %61, %64 : vector<32x1xi32>
    %c0_i32_30 = arith.constant 0 : i32
    %66 = vector.broadcast %c0_i32_30 : i32 to vector<32x1xi32>
    %67 = arith.cmpi ne, %65, %66 : vector<32x1xi32>
    %c0_i32_31 = arith.constant 0 : i32
    %68 = vector.broadcast %c0_i32_31 : i32 to vector<32x1xi32>
    %69 = arith.cmpi slt, %65, %68 : vector<32x1xi32>
    %c0_i32_32 = arith.constant 0 : i32
    %70 = arith.cmpi slt, %63, %c0_i32_32 : i32
    %71 = vector.broadcast %70 : i1 to vector<32x1xi1>
    %72 = vector.broadcast %71 : vector<32x1xi1> to vector<32x1xi1>
    %73 = arith.xori %69, %72 : vector<32x1xi1>
    %74 = arith.andi %73, %67 : vector<32x1xi1>
    %75 = vector.broadcast %63 : i32 to vector<32x1xi32>
    %76 = arith.addi %65, %75 : vector<32x1xi32>
    %77 = arith.select %74, %76, %65 : vector<32x1xi1>, vector<32x1xi32>
    %cst_33 = arith.constant 0.000000e+00 : f32
    %78 = vector.broadcast %cst_33 : f32 to vector<32x128xf32>
    %79 = vector.extract_strided_slice %60 {offsets = [0, 0], sizes = [32, 128], strides = [1, 1]} : vector<32x384xf32> to vector<32x128xf32>
    %c4_i32 = arith.constant 4 : i32
    %80 = tpu.dynamic_rotate %79 by %c4_i32 dim 0 : vector<32x128xf32>, i32 -> vector<32x128xf32>
    %c-4_i32 = arith.constant -4 : i32
    %81 = vector.broadcast %c-4_i32 : i32 to vector<32x1xi32>
    %82 = arith.addi %77, %81 : vector<32x1xi32>
    %c0_i32_34 = arith.constant 0 : i32
    %83 = vector.broadcast %c0_i32_34 : i32 to vector<32x1xi32>
    %84 = arith.cmpi sge, %82, %83 : vector<32x1xi32>
    %c32_i32_35 = arith.constant 32 : i32
    %85 = vector.broadcast %c32_i32_35 : i32 to vector<32x1xi32>
    %86 = arith.cmpi slt, %82, %85 : vector<32x1xi32>
    %87 = arith.andi %84, %86 : vector<32x1xi1>
    %cst_36 = arith.constant 0.000000e+00 : f32
    %88 = vector.shape_cast %87 : vector<32x1xi1> to vector<32x1xi1>
    %89 = vector.broadcast %88 : vector<32x1xi1> to vector<32x128xi1>
    %90 = vector.broadcast %cst_36 : f32 to vector<32x128xf32>
    %91 = arith.select %89, %80, %90 : vector<32x128xi1>, vector<32x128xf32>
    %92 = arith.addf %78, %91 : vector<32x128xf32>
    %93 = vector.extract_strided_slice %60 {offsets = [0, 128], sizes = [32, 128], strides = [1, 1]} : vector<32x384xf32> to vector<32x128xf32>
    %94 = arith.addf %92, %93 : vector<32x128xf32>
    %95 = vector.extract_strided_slice %60 {offsets = [0, 256], sizes = [32, 128], strides = [1, 1]} : vector<32x384xf32> to vector<32x128xf32>
    %c28_i32 = arith.constant 28 : i32
    %96 = tpu.dynamic_rotate %95 by %c28_i32 dim 0 : vector<32x128xf32>, i32 -> vector<32x128xf32>
    %c4_i32_37 = arith.constant 4 : i32
    %97 = vector.broadcast %c4_i32_37 : i32 to vector<32x1xi32>
    %98 = arith.addi %77, %97 : vector<32x1xi32>
    %c0_i32_38 = arith.constant 0 : i32
    %99 = vector.broadcast %c0_i32_38 : i32 to vector<32x1xi32>
    %100 = arith.cmpi sge, %98, %99 : vector<32x1xi32>
    %c32_i32_39 = arith.constant 32 : i32
    %101 = vector.broadcast %c32_i32_39 : i32 to vector<32x1xi32>
    %102 = arith.cmpi slt, %98, %101 : vector<32x1xi32>
    %103 = arith.andi %100, %102 : vector<32x1xi1>
    %cst_40 = arith.constant 0.000000e+00 : f32
    %104 = vector.shape_cast %103 : vector<32x1xi1> to vector<32x1xi1>
    %105 = vector.broadcast %104 : vector<32x1xi1> to vector<32x128xi1>
    %106 = vector.broadcast %cst_40 : f32 to vector<32x128xf32>
    %107 = arith.select %105, %96, %106 : vector<32x128xi1>, vector<32x128xf32>
    %108 = arith.addf %94, %107 : vector<32x128xf32>
    %c0_41 = arith.constant 0 : index
    %c0_42 = arith.constant 0 : index
    %109 = vector.load %arg10[%c0_41, %c0_42] : memref<1x128xf32, #tpu.memory_space<vmem>>, vector<1x128xf32>
    %110 = vector.broadcast %109 : vector<1x128xf32> to vector<32x128xf32>
    %111 = arith.addf %108, %110 : vector<32x128xf32>
    %c0_43 = arith.constant 0 : index
    %c0_44 = arith.constant 0 : index
    %112 = vector.load %arg11[%c0_43, %c0_44] : memref<1x128xf32, #tpu.memory_space<vmem>>, vector<1x128xf32>
    %c0_45 = arith.constant 0 : index
    %c0_46 = arith.constant 0 : index
    %113 = vector.load %arg12[%c0_45, %c0_46] : memref<1x128xf32, #tpu.memory_space<vmem>>, vector<1x128xf32>
    %cst_47 = arith.constant dense<0.000000e+00> : vector<32xf32>
    %114 = vector.multi_reduction <add>, %111, %cst_47 [1] : vector<32x128xf32> to vector<32xf32>
    %115 = vector.shape_cast %114 : vector<32xf32> to vector<32x1xf32>
    %cst_48 = arith.constant 1.280000e+02 : f32
    %116 = vector.broadcast %cst_48 : f32 to vector<32x1xf32>
    %117 = arith.divf %115, %116 : vector<32x1xf32>
    %118 = vector.broadcast %117 : vector<32x1xf32> to vector<32x128xf32>
    %119 = arith.subf %111, %118 : vector<32x128xf32>
    %120 = arith.mulf %119, %119 : vector<32x128xf32>
    %cst_49 = arith.constant dense<0.000000e+00> : vector<32xf32>
    %121 = vector.multi_reduction <add>, %120, %cst_49 [1] : vector<32x128xf32> to vector<32xf32>
    %122 = vector.shape_cast %121 : vector<32xf32> to vector<32x1xf32>
    %cst_50 = arith.constant 1.280000e+02 : f32
    %123 = vector.broadcast %cst_50 : f32 to vector<32x1xf32>
    %124 = arith.divf %122, %123 : vector<32x1xf32>
    %cst_51 = arith.constant 9.99999974E-6 : f32
    %125 = vector.broadcast %cst_51 : f32 to vector<32x1xf32>
    %126 = arith.addf %124, %125 : vector<32x1xf32>
    %127 = math.rsqrt %126 : vector<32x1xf32>
    %128 = vector.broadcast %127 : vector<32x1xf32> to vector<32x128xf32>
    %129 = arith.mulf %119, %128 : vector<32x128xf32>
    %130 = vector.broadcast %112 : vector<1x128xf32> to vector<32x128xf32>
    %131 = arith.mulf %129, %130 : vector<32x128xf32>
    %132 = vector.broadcast %113 : vector<1x128xf32> to vector<32x128xf32>
    %133 = arith.addf %131, %132 : vector<32x128xf32>
    %cst_52 = arith.constant 0.000000e+00 : f32
    %134 = vector.broadcast %cst_52 : f32 to vector<32x128xf32>
    %135 = arith.maximumf %133, %134 : vector<32x128xf32>
    %136 = arith.truncf %135 : vector<32x128xf32> to vector<32x128xbf16>
    %c0_53 = arith.constant 0 : index
    %c0_54 = arith.constant 0 : index
    %137 = vector.load %arg13[%c0_53, %c0_54] : memref<128x256xbf16, #tpu.memory_space<vmem>>, vector<128x256xbf16>
    %cst_55 = arith.constant dense<0.000000e+00> : vector<32x256xf32>
    %138 = tpu.matmul %136, %137, %cst_55 {dimension_numbers = #tpu.dot_dimension_numbers<[1], [0], [0], [1], [0, 0, 1, 1], [], []>} : vector<32x128xbf16>, vector<128x256xbf16>, vector<32x256xf32> -> vector<32x256xf32>
    %c0_56 = arith.constant 0 : index
    %c0_57 = arith.constant 0 : index
    %139 = vector.load %arg14[%c0_56, %c0_57] : memref<1x256xf32, #tpu.memory_space<vmem>>, vector<1x256xf32>
    %140 = vector.broadcast %139 : vector<1x256xf32> to vector<32x256xf32>
    %141 = arith.addf %138, %140 : vector<32x256xf32>
    %142 = arith.addf %0, %141 : vector<32x256xf32>
    %c0_58 = arith.constant 0 : index
    %c0_59 = arith.constant 0 : index
    %143 = vector.load %arg15[%c0_58, %c0_59] : memref<32x256xf32, #tpu.memory_space<vmem>>, vector<32x256xf32>
    tpu.vector_store %arg15[%c0_58, %c0_59], %142 {strides = array<i32>} : memref<32x256xf32, #tpu.memory_space<vmem>>, vector<32x256xf32>,
    return
  }
  func.func @transform_0(%arg0: i32) -> (i32, i32) {
    %c0_i32 = arith.constant 0 : i32
    %c0_i32_0 = arith.constant 0 : i32
    return %arg0, %c0_i32 : i32, i32
  }
  func.func @transform_1(%arg0: i32) -> (i32, i32) {
    %c0_i32 = arith.constant 0 : i32
    %c0_i32_0 = arith.constant 0 : i32
    return %arg0, %c0_i32 : i32, i32
  }
  func.func @transform_2(%arg0: i32) -> (i32, i32) {
    %c0_i32 = arith.constant 0 : i32
    %c0_i32_0 = arith.constant 0 : i32
    %c0_i32_1 = arith.constant 0 : i32
    return %c0_i32, %c0_i32_0 : i32, i32
  }
  func.func @transform_3(%arg0: i32) -> (i32, i32) {
    %c0_i32 = arith.constant 0 : i32
    %c0_i32_0 = arith.constant 0 : i32
    %c0_i32_1 = arith.constant 0 : i32
    return %c0_i32, %c0_i32_0 : i32, i32
  }
  func.func @transform_4(%arg0: i32) -> (i32, i32) {
    %c0_i32 = arith.constant 0 : i32
    %c0_i32_0 = arith.constant 0 : i32
    %c0_i32_1 = arith.constant 0 : i32
    return %c0_i32, %c0_i32_0 : i32, i32
  }
  func.func @transform_5(%arg0: i32) -> (i32, i32) {
    %c0_i32 = arith.constant 0 : i32
    %c0_i32_0 = arith.constant 0 : i32
    %c0_i32_1 = arith.constant 0 : i32
    return %c0_i32, %c0_i32_0 : i32, i32
  }
  func.func @transform_6(%arg0: i32) -> (i32, i32) {
    %c0_i32 = arith.constant 0 : i32
    %c0_i32_0 = arith.constant 0 : i32
    %c0_i32_1 = arith.constant 0 : i32
    return %c0_i32, %c0_i32_0 : i32, i32
  }
  func.func @transform_7(%arg0: i32) -> (i32, i32) {
    %c0_i32 = arith.constant 0 : i32
    %c0_i32_0 = arith.constant 0 : i32
    %c0_i32_1 = arith.constant 0 : i32
    return %c0_i32, %c0_i32_0 : i32, i32
  }
  func.func @transform_8(%arg0: i32) -> (i32, i32) {
    %c0_i32 = arith.constant 0 : i32
    %c0_i32_0 = arith.constant 0 : i32
    %c0_i32_1 = arith.constant 0 : i32
    return %c0_i32, %c0_i32_0 : i32, i32
  }
  func.func @transform_9(%arg0: i32) -> (i32, i32) {
    %c0_i32 = arith.constant 0 : i32
    %c0_i32_0 = arith.constant 0 : i32
    %c0_i32_1 = arith.constant 0 : i32
    return %c0_i32, %c0_i32_0 : i32, i32
  }
  func.func @transform_10(%arg0: i32) -> (i32, i32) {
    %c0_i32 = arith.constant 0 : i32
    %c0_i32_0 = arith.constant 0 : i32
    %c0_i32_1 = arith.constant 0 : i32
    return %c0_i32, %c0_i32_0 : i32, i32
  }
  func.func @transform_11(%arg0: i32) -> (i32, i32) {
    %c0_i32 = arith.constant 0 : i32
    %c0_i32_0 = arith.constant 0 : i32
    %c0_i32_1 = arith.constant 0 : i32
    return %c0_i32, %c0_i32_0 : i32, i32
  }
  func.func @transform_12(%arg0: i32) -> (i32, i32) {
    %c0_i32 = arith.constant 0 : i32
    %c0_i32_0 = arith.constant 0 : i32
    %c0_i32_1 = arith.constant 0 : i32
    return %c0_i32, %c0_i32_0 : i32, i32
  }
  func.func @transform_13(%arg0: i32) -> (i32, i32) {
    %c0_i32 = arith.constant 0 : i32
    %c0_i32_0 = arith.constant 0 : i32
    %c0_i32_1 = arith.constant 0 : i32
    return %c0_i32, %c0_i32_0 : i32, i32
  }
  func.func @transform_14(%arg0: i32) -> (i32, i32) {
    %c0_i32 = arith.constant 0 : i32
    %c0_i32_0 = arith.constant 0 : i32
    return %arg0, %c0_i32 : i32, i32
  }
}

module attributes {stable_mosaic.version = 11 : i64} {
  func.func @_block_kernel(%arg0: i32, %arg1: memref<32x256xf32, #tpu.memory_space<vmem>>, %arg2: memref<32x1xf32, #tpu.memory_space<vmem>>, %arg3: memref<1x256xf32, #tpu.memory_space<vmem>>, %arg4: memref<1x256xf32, #tpu.memory_space<vmem>>, %arg5: memref<256x128xbf16, #tpu.memory_space<vmem>>, %arg6: memref<1x128xf32, #tpu.memory_space<vmem>>, %arg7: memref<1x128xf32, #tpu.memory_space<vmem>>, %arg8: memref<1x128xf32, #tpu.memory_space<vmem>>, %arg9: memref<128x384xbf16, #tpu.memory_space<vmem>>, %arg10: memref<1x128xf32, #tpu.memory_space<vmem>>, %arg11: memref<1x128xf32, #tpu.memory_space<vmem>>, %arg12: memref<1x128xf32, #tpu.memory_space<vmem>>, %arg13: memref<128x256xbf16, #tpu.memory_space<vmem>>, %arg14: memref<1x256xf32, #tpu.memory_space<vmem>>, %arg15: memref<32x256xf32, #tpu.memory_space<vmem>>) attributes {dimension_semantics = [#tpu.dimension_semantics<parallel>], iteration_bounds = array<i64: 2>, scalar_prefetch = 0 : i64, scratch_operands = 0 : i64, tpu.core_type = #tpu.core_type<tc>, window_params = [{transform_indices = @transform_0, window_bounds = array<i64: 32, 256>}, {transform_indices = @transform_1, window_bounds = array<i64: 32, 1>}, {pipeline_mode = #tpu.pipeline_mode<synchronous>, transform_indices = @transform_2, window_bounds = array<i64: 1, 256>}, {pipeline_mode = #tpu.pipeline_mode<synchronous>, transform_indices = @transform_3, window_bounds = array<i64: 1, 256>}, {pipeline_mode = #tpu.pipeline_mode<synchronous>, transform_indices = @transform_4, window_bounds = array<i64: 256, 128>}, {pipeline_mode = #tpu.pipeline_mode<synchronous>, transform_indices = @transform_5, window_bounds = array<i64: 1, 128>}, {pipeline_mode = #tpu.pipeline_mode<synchronous>, transform_indices = @transform_6, window_bounds = array<i64: 1, 128>}, {pipeline_mode = #tpu.pipeline_mode<synchronous>, transform_indices = @transform_7, window_bounds = array<i64: 1, 128>}, {pipeline_mode = #tpu.pipeline_mode<synchronous>, transform_indices = @transform_8, window_bounds = array<i64: 128, 384>}, {pipeline_mode = #tpu.pipeline_mode<synchronous>, transform_indices = @transform_9, window_bounds = array<i64: 1, 128>}, {pipeline_mode = #tpu.pipeline_mode<synchronous>, transform_indices = @transform_10, window_bounds = array<i64: 1, 128>}, {pipeline_mode = #tpu.pipeline_mode<synchronous>, transform_indices = @transform_11, window_bounds = array<i64: 1, 128>}, {pipeline_mode = #tpu.pipeline_mode<synchronous>, transform_indices = @transform_12, window_bounds = array<i64: 128, 256>}, {pipeline_mode = #tpu.pipeline_mode<synchronous>, transform_indices = @transform_13, window_bounds = array<i64: 1, 256>}, {transform_indices = @transform_14, window_bounds = array<i64: 32, 256>}]} {
    %c0 = arith.constant 0 : index
    %c0_0 = arith.constant 0 : index
    %0 = vector.load %arg1[%c0, %c0_0] : memref<32x256xf32, #tpu.memory_space<vmem>>, vector<32x256xf32>
    %c0_1 = arith.constant 0 : index
    %c0_2 = arith.constant 0 : index
    %1 = vector.load %arg3[%c0_1, %c0_2] : memref<1x256xf32, #tpu.memory_space<vmem>>, vector<1x256xf32>
    %c0_3 = arith.constant 0 : index
    %c0_4 = arith.constant 0 : index
    %2 = vector.load %arg4[%c0_3, %c0_4] : memref<1x256xf32, #tpu.memory_space<vmem>>, vector<1x256xf32>
    %cst = arith.constant dense<0.000000e+00> : vector<32xf32>
    %3 = vector.multi_reduction <add>, %0, %cst [1] : vector<32x256xf32> to vector<32xf32>
    %4 = vector.shape_cast %3 : vector<32xf32> to vector<32x1xf32>
    %cst_5 = arith.constant 2.560000e+02 : f32
    %5 = vector.broadcast %cst_5 : f32 to vector<32x1xf32>
    %6 = arith.divf %4, %5 : vector<32x1xf32>
    %7 = vector.broadcast %6 : vector<32x1xf32> to vector<32x256xf32>
    %8 = arith.subf %0, %7 : vector<32x256xf32>
    %9 = arith.mulf %8, %8 : vector<32x256xf32>
    %cst_6 = arith.constant dense<0.000000e+00> : vector<32xf32>
    %10 = vector.multi_reduction <add>, %9, %cst_6 [1] : vector<32x256xf32> to vector<32xf32>
    %11 = vector.shape_cast %10 : vector<32xf32> to vector<32x1xf32>
    %cst_7 = arith.constant 2.560000e+02 : f32
    %12 = vector.broadcast %cst_7 : f32 to vector<32x1xf32>
    %13 = arith.divf %11, %12 : vector<32x1xf32>
    %cst_8 = arith.constant 9.99999974E-6 : f32
    %14 = vector.broadcast %cst_8 : f32 to vector<32x1xf32>
    %15 = arith.addf %13, %14 : vector<32x1xf32>
    %16 = math.rsqrt %15 : vector<32x1xf32>
    %17 = vector.broadcast %16 : vector<32x1xf32> to vector<32x256xf32>
    %18 = arith.mulf %8, %17 : vector<32x256xf32>
    %19 = vector.broadcast %1 : vector<1x256xf32> to vector<32x256xf32>
    %20 = arith.mulf %18, %19 : vector<32x256xf32>
    %21 = vector.broadcast %2 : vector<1x256xf32> to vector<32x256xf32>
    %22 = arith.addf %20, %21 : vector<32x256xf32>
    %cst_9 = arith.constant 0.000000e+00 : f32
    %23 = vector.broadcast %cst_9 : f32 to vector<32x256xf32>
    %24 = arith.maximumf %22, %23 : vector<32x256xf32>
    %25 = arith.truncf %24 : vector<32x256xf32> to vector<32x256xbf16>
    %c0_10 = arith.constant 0 : index
    %c0_11 = arith.constant 0 : index
    %26 = vector.load %arg5[%c0_10, %c0_11] : memref<256x128xbf16, #tpu.memory_space<vmem>>, vector<256x128xbf16>
    %cst_12 = arith.constant dense<0.000000e+00> : vector<32x128xf32>
    %27 = tpu.matmul %25, %26, %cst_12 {dimension_numbers = #tpu.dot_dimension_numbers<[1], [0], [0], [1], [0, 0, 1, 1], [], []>} : vector<32x256xbf16>, vector<256x128xbf16>, vector<32x128xf32> -> vector<32x128xf32>
    %c0_13 = arith.constant 0 : index
    %c0_14 = arith.constant 0 : index
    %28 = vector.load %arg6[%c0_13, %c0_14] : memref<1x128xf32, #tpu.memory_space<vmem>>, vector<1x128xf32>
    %29 = vector.broadcast %28 : vector<1x128xf32> to vector<32x128xf32>
    %30 = arith.addf %27, %29 : vector<32x128xf32>
    %c0_15 = arith.constant 0 : index
    %c0_16 = arith.constant 0 : index
    %31 = vector.load %arg7[%c0_15, %c0_16] : memref<1x128xf32, #tpu.memory_space<vmem>>, vector<1x128xf32>
    %c0_17 = arith.constant 0 : index
    %c0_18 = arith.constant 0 : index
    %32 = vector.load %arg8[%c0_17, %c0_18] : memref<1x128xf32, #tpu.memory_space<vmem>>, vector<1x128xf32>
    %cst_19 = arith.constant dense<0.000000e+00> : vector<32xf32>
    %33 = vector.multi_reduction <add>, %30, %cst_19 [1] : vector<32x128xf32> to vector<32xf32>
    %34 = vector.shape_cast %33 : vector<32xf32> to vector<32x1xf32>
    %cst_20 = arith.constant 1.280000e+02 : f32
    %35 = vector.broadcast %cst_20 : f32 to vector<32x1xf32>
    %36 = arith.divf %34, %35 : vector<32x1xf32>
    %37 = vector.broadcast %36 : vector<32x1xf32> to vector<32x128xf32>
    %38 = arith.subf %30, %37 : vector<32x128xf32>
    %39 = arith.mulf %38, %38 : vector<32x128xf32>
    %cst_21 = arith.constant dense<0.000000e+00> : vector<32xf32>
    %40 = vector.multi_reduction <add>, %39, %cst_21 [1] : vector<32x128xf32> to vector<32xf32>
    %41 = vector.shape_cast %40 : vector<32xf32> to vector<32x1xf32>
    %cst_22 = arith.constant 1.280000e+02 : f32
    %42 = vector.broadcast %cst_22 : f32 to vector<32x1xf32>
    %43 = arith.divf %41, %42 : vector<32x1xf32>
    %cst_23 = arith.constant 9.99999974E-6 : f32
    %44 = vector.broadcast %cst_23 : f32 to vector<32x1xf32>
    %45 = arith.addf %43, %44 : vector<32x1xf32>
    %46 = math.rsqrt %45 : vector<32x1xf32>
    %47 = vector.broadcast %46 : vector<32x1xf32> to vector<32x128xf32>
    %48 = arith.mulf %38, %47 : vector<32x128xf32>
    %49 = vector.broadcast %31 : vector<1x128xf32> to vector<32x128xf32>
    %50 = arith.mulf %48, %49 : vector<32x128xf32>
    %51 = vector.broadcast %32 : vector<1x128xf32> to vector<32x128xf32>
    %52 = arith.addf %50, %51 : vector<32x128xf32>
    %cst_24 = arith.constant 0.000000e+00 : f32
    %53 = vector.broadcast %cst_24 : f32 to vector<32x128xf32>
    %54 = arith.maximumf %52, %53 : vector<32x128xf32>
    %c0_25 = arith.constant 0 : index
    %c0_26 = arith.constant 0 : index
    %55 = vector.load %arg2[%c0_25, %c0_26] : memref<32x1xf32, #tpu.memory_space<vmem>>, vector<32x1xf32>
    %56 = vector.broadcast %55 : vector<32x1xf32> to vector<32x128xf32>
    %57 = arith.mulf %54, %56 : vector<32x128xf32>
    %58 = arith.truncf %57 : vector<32x128xf32> to vector<32x128xbf16>
    %c0_27 = arith.constant 0 : index
    %c0_28 = arith.constant 0 : index
    %59 = vector.load %arg9[%c0_27, %c0_28] : memref<128x384xbf16, #tpu.memory_space<vmem>>, vector<128x384xbf16>
    %cst_29 = arith.constant dense<0.000000e+00> : vector<32x384xf32>
    %60 = tpu.matmul %58, %59, %cst_29 {dimension_numbers = #tpu.dot_dimension_numbers<[1], [0], [0], [1], [0, 0, 1, 1], [], []>} : vector<32x128xbf16>, vector<128x384xbf16>, vector<32x384xf32> -> vector<32x384xf32>
    %61 = tpu.iota {dimensions = array<i32: 0>} : vector<32x1xi32>
    %c32_i32 = arith.constant 32 : i32
    %c0_i32 = arith.constant 0 : i32
    %62 = arith.cmpi eq, %c32_i32, %c0_i32 : i32
    %c1_i32 = arith.constant 1 : i32
    %63 = arith.select %62, %c1_i32, %c32_i32 : i32
    %64 = vector.broadcast %63 : i32 to vector<32x1xi32>
    %65 = arith.remsi %61, %64 : vector<32x1xi32>
    %c0_i32_30 = arith.constant 0 : i32
    %66 = vector.broadcast %c0_i32_30 : i32 to vector<32x1xi32>
    %67 = arith.cmpi ne, %65, %66 : vector<32x1xi32>
    %c0_i32_31 = arith.constant 0 : i32
    %68 = vector.broadcast %c0_i32_31 : i32 to vector<32x1xi32>
    %69 = arith.cmpi slt, %65, %68 : vector<32x1xi32>
    %c0_i32_32 = arith.constant 0 : i32
    %70 = arith.cmpi slt, %63, %c0_i32_32 : i32
    %71 = vector.broadcast %70 : i1 to vector<32x1xi1>
    %72 = vector.broadcast %71 : vector<32x1xi1> to vector<32x1xi1>
    %73 = arith.xori %69, %72 : vector<32x1xi1>
    %74 = arith.andi %73, %67 : vector<32x1xi1>
    %75 = vector.broadcast %63 : i32 to vector<32x1xi32>
    %76 = arith.addi %65, %75 : vector<32x1xi32>
    %77 = arith.select %74, %76, %65 : vector<32x1xi1>, vector<32x1xi32>
    %cst_33 = arith.constant 0.000000e+00 : f32
    %78 = vector.broadcast %cst_33 : f32 to vector<32x128xf32>
    %79 = vector.extract_strided_slice %60 {offsets = [0, 0], sizes = [32, 128], strides = [1, 1]} : vector<32x384xf32> to vector<32x128xf32>
    %c1_i32_34 = arith.constant 1 : i32
    %80 = tpu.dynamic_rotate %79 by %c1_i32_34 dim 0 : vector<32x128xf32>, i32 -> vector<32x128xf32>
    %c-1_i32 = arith.constant -1 : i32
    %81 = vector.broadcast %c-1_i32 : i32 to vector<32x1xi32>
    %82 = arith.addi %77, %81 : vector<32x1xi32>
    %c0_i32_35 = arith.constant 0 : i32
    %83 = vector.broadcast %c0_i32_35 : i32 to vector<32x1xi32>
    %84 = arith.cmpi sge, %82, %83 : vector<32x1xi32>
    %c32_i32_36 = arith.constant 32 : i32
    %85 = vector.broadcast %c32_i32_36 : i32 to vector<32x1xi32>
    %86 = arith.cmpi slt, %82, %85 : vector<32x1xi32>
    %87 = arith.andi %84, %86 : vector<32x1xi1>
    %cst_37 = arith.constant 0.000000e+00 : f32
    %88 = vector.shape_cast %87 : vector<32x1xi1> to vector<32x1xi1>
    %89 = vector.broadcast %88 : vector<32x1xi1> to vector<32x128xi1>
    %90 = vector.broadcast %cst_37 : f32 to vector<32x128xf32>
    %91 = arith.select %89, %80, %90 : vector<32x128xi1>, vector<32x128xf32>
    %92 = arith.addf %78, %91 : vector<32x128xf32>
    %93 = vector.extract_strided_slice %60 {offsets = [0, 128], sizes = [32, 128], strides = [1, 1]} : vector<32x384xf32> to vector<32x128xf32>
    %94 = arith.addf %92, %93 : vector<32x128xf32>
    %95 = vector.extract_strided_slice %60 {offsets = [0, 256], sizes = [32, 128], strides = [1, 1]} : vector<32x384xf32> to vector<32x128xf32>
    %c31_i32 = arith.constant 31 : i32
    %96 = tpu.dynamic_rotate %95 by %c31_i32 dim 0 : vector<32x128xf32>, i32 -> vector<32x128xf32>
    %c1_i32_38 = arith.constant 1 : i32
    %97 = vector.broadcast %c1_i32_38 : i32 to vector<32x1xi32>
    %98 = arith.addi %77, %97 : vector<32x1xi32>
    %c0_i32_39 = arith.constant 0 : i32
    %99 = vector.broadcast %c0_i32_39 : i32 to vector<32x1xi32>
    %100 = arith.cmpi sge, %98, %99 : vector<32x1xi32>
    %c32_i32_40 = arith.constant 32 : i32
    %101 = vector.broadcast %c32_i32_40 : i32 to vector<32x1xi32>
    %102 = arith.cmpi slt, %98, %101 : vector<32x1xi32>
    %103 = arith.andi %100, %102 : vector<32x1xi1>
    %cst_41 = arith.constant 0.000000e+00 : f32
    %104 = vector.shape_cast %103 : vector<32x1xi1> to vector<32x1xi1>
    %105 = vector.broadcast %104 : vector<32x1xi1> to vector<32x128xi1>
    %106 = vector.broadcast %cst_41 : f32 to vector<32x128xf32>
    %107 = arith.select %105, %96, %106 : vector<32x128xi1>, vector<32x128xf32>
    %108 = arith.addf %94, %107 : vector<32x128xf32>
    %c0_42 = arith.constant 0 : index
    %c0_43 = arith.constant 0 : index
    %109 = vector.load %arg10[%c0_42, %c0_43] : memref<1x128xf32, #tpu.memory_space<vmem>>, vector<1x128xf32>
    %110 = vector.broadcast %109 : vector<1x128xf32> to vector<32x128xf32>
    %111 = arith.addf %108, %110 : vector<32x128xf32>
    %c0_44 = arith.constant 0 : index
    %c0_45 = arith.constant 0 : index
    %112 = vector.load %arg11[%c0_44, %c0_45] : memref<1x128xf32, #tpu.memory_space<vmem>>, vector<1x128xf32>
    %c0_46 = arith.constant 0 : index
    %c0_47 = arith.constant 0 : index
    %113 = vector.load %arg12[%c0_46, %c0_47] : memref<1x128xf32, #tpu.memory_space<vmem>>, vector<1x128xf32>
    %cst_48 = arith.constant dense<0.000000e+00> : vector<32xf32>
    %114 = vector.multi_reduction <add>, %111, %cst_48 [1] : vector<32x128xf32> to vector<32xf32>
    %115 = vector.shape_cast %114 : vector<32xf32> to vector<32x1xf32>
    %cst_49 = arith.constant 1.280000e+02 : f32
    %116 = vector.broadcast %cst_49 : f32 to vector<32x1xf32>
    %117 = arith.divf %115, %116 : vector<32x1xf32>
    %118 = vector.broadcast %117 : vector<32x1xf32> to vector<32x128xf32>
    %119 = arith.subf %111, %118 : vector<32x128xf32>
    %120 = arith.mulf %119, %119 : vector<32x128xf32>
    %cst_50 = arith.constant dense<0.000000e+00> : vector<32xf32>
    %121 = vector.multi_reduction <add>, %120, %cst_50 [1] : vector<32x128xf32> to vector<32xf32>
    %122 = vector.shape_cast %121 : vector<32xf32> to vector<32x1xf32>
    %cst_51 = arith.constant 1.280000e+02 : f32
    %123 = vector.broadcast %cst_51 : f32 to vector<32x1xf32>
    %124 = arith.divf %122, %123 : vector<32x1xf32>
    %cst_52 = arith.constant 9.99999974E-6 : f32
    %125 = vector.broadcast %cst_52 : f32 to vector<32x1xf32>
    %126 = arith.addf %124, %125 : vector<32x1xf32>
    %127 = math.rsqrt %126 : vector<32x1xf32>
    %128 = vector.broadcast %127 : vector<32x1xf32> to vector<32x128xf32>
    %129 = arith.mulf %119, %128 : vector<32x128xf32>
    %130 = vector.broadcast %112 : vector<1x128xf32> to vector<32x128xf32>
    %131 = arith.mulf %129, %130 : vector<32x128xf32>
    %132 = vector.broadcast %113 : vector<1x128xf32> to vector<32x128xf32>
    %133 = arith.addf %131, %132 : vector<32x128xf32>
    %cst_53 = arith.constant 0.000000e+00 : f32
    %134 = vector.broadcast %cst_53 : f32 to vector<32x128xf32>
    %135 = arith.maximumf %133, %134 : vector<32x128xf32>
    %136 = arith.truncf %135 : vector<32x128xf32> to vector<32x128xbf16>
    %c0_54 = arith.constant 0 : index
    %c0_55 = arith.constant 0 : index
    %137 = vector.load %arg13[%c0_54, %c0_55] : memref<128x256xbf16, #tpu.memory_space<vmem>>, vector<128x256xbf16>
    %cst_56 = arith.constant dense<0.000000e+00> : vector<32x256xf32>
    %138 = tpu.matmul %136, %137, %cst_56 {dimension_numbers = #tpu.dot_dimension_numbers<[1], [0], [0], [1], [0, 0, 1, 1], [], []>} : vector<32x128xbf16>, vector<128x256xbf16>, vector<32x256xf32> -> vector<32x256xf32>
    %c0_57 = arith.constant 0 : index
    %c0_58 = arith.constant 0 : index
    %139 = vector.load %arg14[%c0_57, %c0_58] : memref<1x256xf32, #tpu.memory_space<vmem>>, vector<1x256xf32>
    %140 = vector.broadcast %139 : vector<1x256xf32> to vector<32x256xf32>
    %141 = arith.addf %138, %140 : vector<32x256xf32>
    %142 = arith.addf %0, %141 : vector<32x256xf32>
    %c0_59 = arith.constant 0 : index
    %c0_60 = arith.constant 0 : index
    %143 = vector.load %arg15[%c0_59, %c0_60] : memref<32x256xf32, #tpu.memory_space<vmem>>, vector<32x256xf32>
    tpu.vector_store %arg15[%c0_59, %c0_60], %142 {strides = array<i32>} : memref<32x256xf32, #tpu.memory_space<vmem>>, vector<32x256xf32>,
    return
  }
  func.func @transform_0(%arg0: i32) -> (i32, i32) {
    %c0_i32 = arith.constant 0 : i32
    %c0_i32_0 = arith.constant 0 : i32
    return %arg0, %c0_i32 : i32, i32
  }
  func.func @transform_1(%arg0: i32) -> (i32, i32) {
    %c0_i32 = arith.constant 0 : i32
    %c0_i32_0 = arith.constant 0 : i32
    return %arg0, %c0_i32 : i32, i32
  }
  func.func @transform_2(%arg0: i32) -> (i32, i32) {
    %c0_i32 = arith.constant 0 : i32
    %c0_i32_0 = arith.constant 0 : i32
    %c0_i32_1 = arith.constant 0 : i32
    return %c0_i32, %c0_i32_0 : i32, i32
  }
  func.func @transform_3(%arg0: i32) -> (i32, i32) {
    %c0_i32 = arith.constant 0 : i32
    %c0_i32_0 = arith.constant 0 : i32
    %c0_i32_1 = arith.constant 0 : i32
    return %c0_i32, %c0_i32_0 : i32, i32
  }
  func.func @transform_4(%arg0: i32) -> (i32, i32) {
    %c0_i32 = arith.constant 0 : i32
    %c0_i32_0 = arith.constant 0 : i32
    %c0_i32_1 = arith.constant 0 : i32
    return %c0_i32, %c0_i32_0 : i32, i32
  }
  func.func @transform_5(%arg0: i32) -> (i32, i32) {
    %c0_i32 = arith.constant 0 : i32
    %c0_i32_0 = arith.constant 0 : i32
    %c0_i32_1 = arith.constant 0 : i32
    return %c0_i32, %c0_i32_0 : i32, i32
  }
  func.func @transform_6(%arg0: i32) -> (i32, i32) {
    %c0_i32 = arith.constant 0 : i32
    %c0_i32_0 = arith.constant 0 : i32
    %c0_i32_1 = arith.constant 0 : i32
    return %c0_i32, %c0_i32_0 : i32, i32
  }
  func.func @transform_7(%arg0: i32) -> (i32, i32) {
    %c0_i32 = arith.constant 0 : i32
    %c0_i32_0 = arith.constant 0 : i32
    %c0_i32_1 = arith.constant 0 : i32
    return %c0_i32, %c0_i32_0 : i32, i32
  }
  func.func @transform_8(%arg0: i32) -> (i32, i32) {
    %c0_i32 = arith.constant 0 : i32
    %c0_i32_0 = arith.constant 0 : i32
    %c0_i32_1 = arith.constant 0 : i32
    return %c0_i32, %c0_i32_0 : i32, i32
  }
  func.func @transform_9(%arg0: i32) -> (i32, i32) {
    %c0_i32 = arith.constant 0 : i32
    %c0_i32_0 = arith.constant 0 : i32
    %c0_i32_1 = arith.constant 0 : i32
    return %c0_i32, %c0_i32_0 : i32, i32
  }
  func.func @transform_10(%arg0: i32) -> (i32, i32) {
    %c0_i32 = arith.constant 0 : i32
    %c0_i32_0 = arith.constant 0 : i32
    %c0_i32_1 = arith.constant 0 : i32
    return %c0_i32, %c0_i32_0 : i32, i32
  }
  func.func @transform_11(%arg0: i32) -> (i32, i32) {
    %c0_i32 = arith.constant 0 : i32
    %c0_i32_0 = arith.constant 0 : i32
    %c0_i32_1 = arith.constant 0 : i32
    return %c0_i32, %c0_i32_0 : i32, i32
  }
  func.func @transform_12(%arg0: i32) -> (i32, i32) {
    %c0_i32 = arith.constant 0 : i32
    %c0_i32_0 = arith.constant 0 : i32
    %c0_i32_1 = arith.constant 0 : i32
    return %c0_i32, %c0_i32_0 : i32, i32
  }
  func.func @transform_13(%arg0: i32) -> (i32, i32) {
    %c0_i32 = arith.constant 0 : i32
    %c0_i32_0 = arith.constant 0 : i32
    %c0_i32_1 = arith.constant 0 : i32
    return %c0_i32, %c0_i32_0 : i32, i32
  }
  func.func @transform_14(%arg0: i32) -> (i32, i32) {
    %c0_i32 = arith.constant 0 : i32
    %c0_i32_0 = arith.constant 0 : i32
    return %arg0, %c0_i32 : i32, i32
  }
}

</mosaic_0001>

<bundles_post_ra>
// kernel: tpu_custom_call.1
= control target key start
LH: loop header
LB: loop body
LE: loop exit
PB: predicated region body
PF: predicated region fallthrough
CT: control target
= control target key end

     0   :  { %6 = vsyncpa [#allocation3], 0  ;;  %s441_s0 = inlined_call_operand.hbm [shape: f32[8,128], index: 0, kind: input, shape index: {}]   ;;  %s442_s1 = inlined_call_operand.hbm [shape: f32[16,128], index: 1, kind: output, shape index: {}]  }
   0x1   :  { %7 = vsyncpa [#allocation4], 0 }
   0x2   :  { %9 = vsyncpa [#allocation4 + $0x1], 0  ;;  %s357_s6 = smov 0   ;;  %s359_s7 = smov 0  }
   0x3   :  { %s361_s8 = smov 0   ;;  %s363_s9 = smov 0  }
   0x4 LB: > { %s378_s10 = sadd.s32 4294967295, %s344_s9   ;;  %s188_s11 = sadd.s32 4294967294, %s344_s9   ;;  %s344_s9 = sphi %s363_s9, %s448_s9   ;;  %s340_s8 = sphi %s361_s8, %s447_s8   ;;  %s336_s7 = sphi %s359_s7, %s446_s7   ;;  %s332_s6 = sphi %s357_s6, %s445_s6  }
   0x5   : > { %s382_s12 = sadd.s32 1, %s344_s9   ;;  %s43_s13 = sadd.s32 1, %s340_s8 }
   0x6   : > { %s40_s14 = ssub.s32 %s344_s9, %s382_s12  ;;  %p53_p0 = scmp.ne.s32.totalorder %s340_s8, %s336_s7 }
   0x7   : > { %p41_p1 = scmp.eq.s32.totalorder %s40_s14, 0  ;;  %p54_p2 = scmp.eq.s32.totalorder %s378_s10, 1 }
   0x8   : > { %p59_p3 = scmp.ne.s32.totalorder %s336_s7, %s332_s6  ;;  %p60_p4 = scmp.eq.s32.totalorder %s188_s11, 1 }
   0x9   : > { %s393_s15 = scalar_select %p41_p1, %s340_s8, %s43_s13  }
   0xa   : > { %p395_p5 = por %p54_p2, %p53_p0  ;;  %p399_p6 = por %p60_p4, %p59_p3 }
   0xb   : > { %p189_p7 = scmp.ge.s32.totalorder %s344_s9, 1  ;;  %p67_p8 = scmp.lt.s32.totalorder %s344_s9, 3 }
   0xc   : > { %p212_p9 = scmp.eq.s32.totalorder %s378_s10, 0  ;;  %s79_s20 = sshll.u32 %s441_s0, 4  ;;  %s80_s20 = int_to_ptr.hbm [resolvable:$true] %s79_s20 }
   0xd   : > { %p68_p10 = pnand %p189_p7, %p67_p8  ;;  %s346_s21 = smov [#allocation2]  }
   0xe   : > { %s81_s22 = sshll.u32 %s346_s21, 4  ;;  %s82_s22 = int_to_ptr.vmem [resolvable:$true] %s81_s22 }
   0xf   : > { %p204_p11 = pneg %p68_p10  ;;  %94 = sbr.rel (%p68_p10) target bundleno = 37 (0x25), region = 24 }
  0x11   : > { %p205_p12 = pnand %p212_p9, %p204_p11 }
  0x13   : > { %207 = dma.hbm_to_vmem [thread:$0]  (!%p205_p12), %s80_s20, 128, %s82_s22, [#allocation3]  }
  0x14   : > { %323 = dma.done.wait (%p212_p9), [#allocation3], 128  }
  0x15   : > { %325 = vsyncadd (%p212_p9), [#allocation3], 4294967168  ;;  %s107_s23 = sand.u32 1, %s336_s7   ;;  %s195_s24 = sshll.u32 %s378_s10, 3  ;;  %v110_v0 = vld [vmem:[#allocation2] sm:$0xff] }
  0x16   : > { %s193_s25 = sshll.u32 %s107_s23, 3  ;;  %s124_s28 = scalar_lea.hbm %s442_s1, %s195_s24  ;;  %v111_v1 = vadd.f32 1.0, %v110_v0 }
  0x17   : > { %s109_s29 = scalar_lea.vmem [#allocation5], %s193_s25  ;;  %s128_s2 = sshll.u32 %s124_s28, 4  ;;  %s129_s2 = int_to_ptr.hbm [resolvable:$true] %s128_s2 }
  0x18   : > { %s126_s30 = sshll.u32 %s109_s29, 4  ;;  %112 = vst [vmem:[%s109_s29] sm:$0xff] %v111_v1  ;;  %s114_s3 = scalar_lea.sflag [#allocation4], %s107_s23  ;;  %s127_s30 = int_to_ptr.vmem [resolvable:$true] %s126_s30 }
  0x19   : > { %s292_s4 = sshra.s32 %s129_s2, 4  ;;  %s298_s13 = scalar_lea.hbm %s442_s1, 16  ;;  %s293_s4 = int_to_ptr.hbm [resolvable:$true] %s292_s4 }
  0x1a   : > { %s294_s5 = scalar_lea.hbm %s293_s4, 8  ;;  %p299_p2 = scmp.lt.s32.totalorder %s293_s4, %s442_s1 }
  0x1b   : > { %p295_p13 = scmp.ne.s32.totalorder %s293_s4, %s294_s5  ;;  %p300_p3 = scmp.lt.s32.totalorder %s298_s13, %s294_s5 }
  0x1d   : > { %p296_p0 = pnand %p295_p13, %p395_p5  ;;  %p301_p4 = por %p300_p3, %p299_p2 }
  0x1f   : > { %p297_p1 = pneg %p296_p0 }
  0x21   : > { %p302_p7 = pnand %p301_p4, %p297_p1 }
  0x23   : > { %305 = shalt.err (!%p302_p7)
}
  0x24   : > { %202 = dma.vmem_to_hbm [thread:$0]  (%p395_p5), %s127_s30, 128, %s129_s2, %s114_s3  }
  0x25 PF: > { %p214_p8 = scmp.ge.s32.totalorder %s344_s9, 2  ;;  %s140_s19 = sand.u32 1, %s332_s6  }
  0x26   : > { %s141_s20 = scalar_lea.sflag [#allocation4], %s140_s19 }
  0x27   : > { %p209_p9 = pnand %p214_p8, %p399_p6 }
  0x29   : > { %p210_p10 = pneg %p209_p9 }
  0x2b   : > { %327 = dma.done.wait (%p210_p10), %s141_s20, 128  }
  0x2c   : > { %329 = vsyncadd (%p210_p10), %s141_s20, 4294967168  ;;  %p12_p11 = scmp.ge.s32.totalorder %s382_s12, 4   ;;  %s445_s6 = smov %s336_s7 }
  0x2d   : > { %s446_s7 = smov %s340_s8  ;;  %s447_s8 = smov %s393_s15 }
  0x2e   : > { %s448_s9 = smov %s382_s12  ;;  %14 = sbr.rel (!%p12_p11) target bundleno = 4 (0x4), region = 61 }
  0x33   :  { %147 = vsyncpa [#allocation3], 1 }
  0x34   :  { %149 = vsyncpa [#allocation3 + $0x1], 1 }
  0x35   :  { %150 = vsyncpa [#allocation4], 1 }
  0x36   :  { %152 = vsyncpa [#allocation4 + $0x1], 1 }

// kernel: bytenet_forward.4
= control target key start
LH: loop header
LB: loop body
LE: loop exit
PB: predicated region body
PF: predicated region fallthrough
CT: control target
= control target key end

     0   :  { %s2093_s29 = smov 0   ;;  %s2650_s0 = inlined_call_operand.vmem [shape: f32[64,256], index: 0, kind: input, shape index: {}, may-alias: {0,14}]   ;;  %s2651_s1 = inlined_call_operand.vmem [shape: f32[64,1], index: 1, kind: input, shape index: {}]   ;;  %s2652_s2 = inlined_call_operand.vmem [shape: f32[1,256], index: 2, kind: input, shape index: {}]   ;;  %s2653_s3 = inlined_call_operand.vmem [shape: f32[1,256], index: 3, kind: input, shape index: {}]   ;;  %s2654_s4 = inlined_call_operand.vmem [shape: bf16[256,128], index: 4, kind: input, shape index: {}]   ;;  %s2655_s5 = inlined_call_operand.vmem [shape: f32[1,128], index: 5, kind: input, shape index: {}]   ;;  %s2656_s6 = inlined_call_operand.vmem [shape: f32[1,128], index: 6, kind: input, shape index: {}]   ;;  %s2657_s7 = inlined_call_operand.vmem [shape: f32[1,128], index: 7, kind: input, shape index: {}]   ;;  %s2658_s8 = inlined_call_operand.vmem [shape: bf16[128,384], index: 8, kind: input, shape index: {}]   ;;  %s2659_s9 = inlined_call_operand.vmem [shape: f32[1,128], index: 9, kind: input, shape index: {}]   ;;  %s2660_s10 = inlined_call_operand.vmem [shape: f32[1,128], index: 10, kind: input, shape index: {}]   ;;  %s2661_s11 = inlined_call_operand.vmem [shape: f32[1,128], index: 11, kind: input, shape index: {}]   ;;  %s2662_s12 = inlined_call_operand.vmem [shape: bf16[128,256], index: 12, kind: input, shape index: {}]   ;;  %s2663_s13 = inlined_call_operand.vmem [shape: f32[1,256], index: 13, kind: input, shape index: {}]   ;;  %s2664_s14 = inlined_call_operand.vmem [shape: f32[64,256], index: 14, kind: output, shape index: {}, may-alias: {0,14}]  }
   0x1 LB: > { %s1652_s30 = sadd.s32 4294967295, %s2013_s29   ;;  %p1656_p0 = scmp.ge.s32.totalorder %s2013_s29, 1  ;;  %s2013_s29 = sphi %s2093_s29, %s24_s29  }
   0x2   : > { %p425_p1 = scmp.lt.s32.totalorder %s2013_s29, 3 }
   0x4   : > { %p426_p2 = pnand %p1656_p0, %p425_p1 }
   0x5   : > { %s1657_s15 = sshll.u32 (!%p426_p2), %s1652_s30, 2 }
   0x6   : > { %429 = sbr.rel (%p426_p2) target bundleno = 1310 (0x51e), region = 76  ;;  %p479_p3 = scmp.lt.s32.totalorder (!%p426_p2), %s1657_s15, 7 }
   0xb   : > { %s2666_s15 = smov (!%p479_p3, %s1657_s15), 7  ;;  %v2015_v12 = vmov 256.0   ;;  %v1900_v47 = vld [vmem:[%s2654_s4 + $0x38] sm:$0xff]  ;;  %v1899_v49 = vld [vmem:[%s2654_s4 + $0x30] sm:$0xff]  ;;  %v1898_v51 = vld [vmem:[%s2654_s4 + $0x28] sm:$0xff] }
   0xc   : > { %s1891_s16 = sshll.u32 %s2666_s15, 4  ;;  %1977 = vrcp.f32 %v2015_v12  ;;  %v1908_v48 = vld [vmem:[%s2654_s4 + $0x78] sm:$0xff]  ;;  %785 = vmatpush.bf16.msra.mxu0 %v1900_v47  ;;  %v1907_v50 = vld [vmem:[%s2654_s4 + $0x70] sm:$0xff]  ;;  %v1906_v52 = vld [vmem:[%s2654_s4 + $0x68] sm:$0xff]  ;;  %s1661_s22 = sshll.u32 %s2666_s15, 3 }
   0xd   : > { %s2109_s19 = scalar_lea.vmem %s2650_s0, %s1891_s16  ;;  %804 = vmatpush.bf16.msra.mxu1 %v1908_v48  ;;  %v1897_v53 = vld [vmem:[%s2654_s4 + $0x20] sm:$0xff]  ;;  %v1896_v55 = vld [vmem:[%s2654_s4 + $0x18] sm:$0xff]  ;;  %v1895_v57 = vld [vmem:[%s2654_s4 + $0x10] sm:$0xff]  ;;  %s2259_s25 = scalar_lea.vmem %s2651_s1, %s1661_s22 }
   0xe   : > { %v2112_v0 = vld [vmem:[%s2109_s19 + $0x20] sm:$0xff]  ;;  %v2115_v1 = vld [vmem:[%s2109_s19 + $0x28] sm:$0xff]  ;;  %v2122_v6 = vld [vmem:[%s2109_s19 + $0x30] sm:$0xff]  ;;  %s2629_s20 = scalar_lea.vmem %s2664_s14, %s1891_s16 }
   0xf   : > { %v498_v2 = vld [vmem:[%s2109_s19] sm:$0xff]  ;;  %v514_v3 = vadd.f32 %v2115_v1, %v2112_v0  ;;  %v499_v4 = vld [vmem:[%s2109_s19 + $0x8] sm:$0xff]  ;;  %v2125_v7 = vld [vmem:[%s2109_s19 + $0x38] sm:$0xff] }
  0x10   : > { %v508_v5 = vadd.f32 %v499_v4, %v498_v2  ;;  %v2128_v8 = vld [vmem:[%s2109_s19 + $0x10] sm:$0xff]  ;;  %v2131_v9 = vld [vmem:[%s2109_s19 + $0x18] sm:$0xff]  ;;  %v517_v10 = vadd.f32 %v2125_v7, %v2122_v6  ;;  %786 = vmatpush.bf16.msra.mxu0 %v1899_v49  ;;  %v1905_v54 = vld [vmem:[%s2654_s4 + $0x60] sm:$0xff] }
  0x11   : > { %515 = vadd.xlane.f32.xlu1 %v514_v3  ;;  %v511_v11 = vadd.f32 %v2131_v9, %v2128_v8  ;;  %805 = vmatpush.bf16.msra.mxu1 %v1907_v50  ;;  %v1904_v56 = vld [vmem:[%s2654_s4 + $0x58] sm:$0xff]  ;;  %v1903_v58 = vld [vmem:[%s2654_s4 + $0x50] sm:$0xff]  ;;  %v1894_v59 = vld [vmem:[%s2654_s4 + $0x8] sm:$0xff] }
  0x12   : > { %509 = vadd.xlane.f32.xlu0 %v508_v5  ;;  %v1978_v13 = vpop.eup %1977  ;;  %v1902_v60 = vld [vmem:[%s2654_s4 + $0x48] sm:$0xff]  ;;  %v1893_v3 = vld [vmem:[%s2654_s4] sm:$0xff] }
  0x13   : > { %v521_v14 = vmul.f32 256.0, %v1978_v13  ;;  %vm525_vm0 = vweird.f32 %v1978_v13  ;;  %v507_v50 = vld [vmem:[%s2653_s3] sm:$0x3] }
  0x14   : > { %787 = vmatpush.bf16.msra.mxu0 %v1898_v51 }
  0x15   : > { %v522_v15 = vsub.f32 1.0, %v521_v14  ;;  %806 = vmatpush.bf16.msra.mxu1 %v1906_v52 }
  0x17   : > { %v523_v16 = vmul.f32 %v1978_v13, %v522_v15 }
  0x18   : > { %788 = vmatpush.bf16.msra.mxu0 %v1897_v53 }
  0x19   : > { %518 = vadd.xlane.f32.xlu1 %v517_v10  ;;  %v524_v17 = vadd.f32 %v1978_v13, %v523_v16  ;;  %807 = vmatpush.bf16.msra.mxu1 %v1905_v54  ;;  %v629_v54 = vperm.slane %v507_v50, 0 }
  0x1a   : > { %512 = vadd.xlane.f32.xlu0 %v511_v11 }
  0x1b   : > { %v2137_v18 = vsel %vm525_vm0, %v1978_v13, %v524_v17 }
  0x1c   : > { %789 = vmatpush.bf16.msra.mxu0 %v1896_v55 }
  0x1d   : > { %808 = vmatpush.bf16.msra.mxu1 %v1904_v56  ;;  %v630_v56 = vperm.slane %v507_v50, 1 }
  0x20   : > { %790 = vmatpush.bf16.msra.mxu0 %v1895_v57 }
  0x21   : > { %809 = vmatpush.bf16.msra.mxu1 %v1903_v58 }
  0x24   : > { %791 = vmatpush.bf16.msra.mxu0 %v1894_v59 }
  0x25   : > { %810 = vmatpush.bf16.msra.mxu1 %v1902_v60 }
  0x28   : > { %792 = vmatpush.bf16.msra.mxu0 %v1893_v3 }
  0x84   : > { %v516_v19 = vpop.xlane.xlu1 %515 }
  0x85   : > { %v529_v20 = vmul.f32 %v2137_v18, %v516_v19  ;;  %v510_v21 = vpop.xlane.xlu0 %509 }
  0x86   : > { %v527_v22 = vmul.f32 %v2137_v18, %v510_v21 }
  0x87   : > { %v2142_v23 = vsub.f32 %v2112_v0, %v529_v20  ;;  %v2145_v24 = vsub.f32 %v2115_v1, %v529_v20 }
  0x88   : > { %v2147_v25 = vsub.f32 %v498_v2, %v527_v22  ;;  %v2149_v26 = vsub.f32 %v499_v4, %v527_v22  ;;  %v1901_v4 = vld [vmem:[%s2654_s4 + $0x40] sm:$0xff] }
  0x89   : > { %v543_v27 = vmul.f32 %v2142_v23, %v2142_v23  ;;  %v544_v28 = vmul.f32 %v2145_v24, %v2145_v24  ;;  %811 = vmatpush.bf16.msra.mxu1 %v1901_v4 }
  0x8a   : > { %v539_v29 = vmul.f32 %v2147_v25, %v2147_v25  ;;  %v540_v30 = vmul.f32 %v2149_v26, %v2149_v26 }
  0x8b   : > { %v553_v31 = vadd.f32 %v544_v28, %v543_v27 }
  0x8c   : > { %v519_v32 = vpop.xlane.xlu1 %518  ;;  %v547_v33 = vadd.f32 %v540_v30, %v539_v29 }
  0x8d   : > { %v530_v34 = vmul.f32 %v2137_v18, %v519_v32  ;;  %v513_v35 = vpop.xlane.xlu0 %512  ;;  %554 = vadd.xlane.f32.xlu0 %v553_v31 }
  0x8e   : > { %v528_v36 = vmul.f32 %v2137_v18, %v513_v35  ;;  %548 = vadd.xlane.f32.xlu2 %v547_v33 }
  0x8f   : > { %v2162_v37 = vsub.f32 %v2122_v6, %v530_v34  ;;  %v2165_v38 = vsub.f32 %v2125_v7, %v530_v34 }
  0x90   : > { %v2168_v39 = vsub.f32 %v2128_v8, %v528_v36  ;;  %v2171_v40 = vsub.f32 %v2131_v9, %v528_v36 }
  0x91   : > { %v545_v41 = vmul.f32 %v2162_v37, %v2162_v37  ;;  %v546_v42 = vmul.f32 %v2165_v38, %v2165_v38 }
  0x92   : > { %v541_v43 = vmul.f32 %v2168_v39, %v2168_v39  ;;  %v542_v44 = vmul.f32 %v2171_v40, %v2171_v40 }
  0x93   : > { %v556_v45 = vadd.f32 %v546_v42, %v545_v41  ;;  %v506_v41 = vld [vmem:[%s2652_s2] sm:$0x3] }
  0x94   : > { %v550_v46 = vadd.f32 %v542_v44, %v541_v43  ;;  %v617_v47 = vperm.slane %v506_v41, 1 }
  0x95   : > { %557 = vadd.xlane.f32.xlu1 %v556_v45  ;;  %v616_v45 = vperm.slane %v506_v41, 0 }
  0x96   : > { %551 = vadd.xlane.f32.xlu2 %v550_v46 }
 0x100   : > { %v555_v61 = vpop.xlane.xlu0 %554 }
 0x101   : > { %v549_v62 = vpop.xlane.xlu2 %548  ;;  %v561_v2 = vmul.f32 %v555_v61, %v2137_v18 }
 0x102   : > { %v559_v63 = vmul.f32 %v549_v62, %v2137_v18 }
 0x103   : > { %v2231_v10 = vadd.f32 1e-05, %v561_v2 }
 0x104   : > { %v563_v5 = vadd.f32 1e-05, %v559_v63 }
 0x105   : > { %vm593_vm9 = vweird.f32 %v2231_v10 }
 0x106   : > { %1979 = vrsqrt.f32 %v563_v5  ;;  %vm573_vm2 = vweird.f32 %v563_v5 }
 0x107   : > { %1981 = vrsqrt.f32 %v2231_v10 }
 0x108   : > { %v558_v11 = vpop.xlane.xlu1 %557 }
 0x109   : > { %v562_v12 = vmul.f32 %v558_v11, %v2137_v18  ;;  %v552_v13 = vpop.xlane.xlu2 %551 }
 0x10a   : > { %v560_v14 = vmul.f32 %v552_v13, %v2137_v18 }
 0x10b   : > { %v566_v15 = vadd.f32 1e-05, %v562_v12 }
 0x10c   : > { %v1980_v16 = vpop.eup %1979  ;;  %v564_v17 = vadd.f32 1e-05, %v560_v14 }
 0x10d   : > { %v568_v19 = vmul.f32 %v1980_v16, %v563_v5  ;;  %1983 = vrsqrt.f32 %v566_v15  ;;  %v1982_v21 = vpop.eup %1981  ;;  %vm574_vm1 = vweird.f32 %v1980_v16  ;;  %vm603_vm7 = vweird.f32 %v566_v15 }
 0x10e   : > { %1985 = vrsqrt.f32 %v564_v17  ;;  %v588_v29 = vmul.f32 %v1982_v21, %v2231_v10  ;;  %vm575_vm3 = vmor %vm573_vm2, %vm574_vm1  ;;  %vm583_vm5 = vweird.f32 %v564_v17  ;;  %vm594_vm10 = vweird.f32 %v1982_v21 }
 0x10f   : > { %v569_v20 = vmul.f32 %v1980_v16, %v568_v19  ;;  %vm595_vm12 = vmor %vm593_vm9, %vm594_vm10 }
 0x110   : > { %v589_v35 = vmul.f32 %v1982_v21, %v588_v29 }
 0x111   : > { %v570_v22 = vmul.f32 0.5, %v569_v20 }
 0x112   : > { %v590_v48 = vmul.f32 0.5, %v589_v35 }
 0x113   : > { %v1984_v27 = vpop.eup %1983  ;;  %v571_v28 = vsub.f32 1.5, %v570_v22 }
 0x114   : > { %v1986_v30 = vpop.eup %1985  ;;  %v598_v31 = vmul.f32 %v1984_v27, %v566_v15  ;;  %vm604_vm8 = vweird.f32 %v1984_v27 }
 0x115   : > { %v572_v32 = vmul.f32 %v1980_v16, %v571_v28  ;;  %v578_v33 = vmul.f32 %v1986_v30, %v564_v17  ;;  %vm584_vm4 = vweird.f32 %v1986_v30  ;;  %vm605_vm11 = vmor %vm603_vm7, %vm604_vm8 }
 0x116   : > { %v599_v18 = vmul.f32 %v1984_v27, %v598_v31  ;;  %vm585_vm6 = vmor %vm583_vm5, %vm584_vm4 }
 0x117   : > { %v576_v34 = vsel %vm575_vm3, %v1980_v16, %v572_v32  ;;  %v579_v36 = vmul.f32 %v1986_v30, %v578_v33 }
 0x118   : > { %v600_v42 = vmul.f32 0.5, %v599_v18  ;;  %v607_v44 = vmul.f32 %v576_v34, %v2147_v25  ;;  %v608_v46 = vmul.f32 %v576_v34, %v2149_v26  ;;  %v591_v25 = vsub.f32 1.5, %v590_v48 }
 0x119   : > { %v580_v43 = vmul.f32 0.5, %v579_v36 }
 0x11a   : > { %v601_v51 = vsub.f32 1.5, %v600_v42  ;;  %v620_v53 = vmul.f32 %v616_v45, %v607_v44  ;;  %v621_v55 = vmul.f32 %v617_v47, %v608_v46  ;;  %v592_v2 = vmul.f32 %v1982_v21, %v591_v25 }
 0x11b   : > { %v581_v49 = vsub.f32 1.5, %v580_v43 }
 0x11c   : > { %v602_v59 = vmul.f32 %v1984_v27, %v601_v51  ;;  %v633_v61 = vadd.f32 %v629_v54, %v620_v53  ;;  %v634_v63 = vadd.f32 %v630_v56, %v621_v55  ;;  %v596_v14 = vsel %vm595_vm12, %v1982_v21, %v592_v2  ;;  %v931_v55 = vld [vmem:[%s2259_s25 + $0x8] sm:$0xff] }
 0x11d   : > { %v582_v52 = vmul.f32 %v1986_v30, %v581_v49  ;;  %v611_v17 = vmul.f32 %v596_v14, %v2142_v23  ;;  %v612_v19 = vmul.f32 %v596_v14, %v2145_v24  ;;  %v1971_v23 = vld [vmem:[%s2655_s5] ss:$0 sm:$0xff]  ;;  %v2016_v24 = vmov 0  }
 0x11e   : > { %v606_v5 = vsel %vm605_vm11, %v1984_v27, %v602_v59  ;;  %v641_v11 = vmax.f32 %v633_v61, 0.0  ;;  %v642_v13 = vmax.f32 %v634_v63, 0.0  ;;  %1969 = vset.pattern.permute.xlu2 %v2016_v24  ;;  %1968 = vset.pattern.permute.xlu1 %v2016_v24 }
 0x11f   : > { %v586_v26 = vsel %vm585_vm6, %v1986_v30, %v582_v52  ;;  %v613_v10 = vmul.f32 %v606_v5, %v2162_v37  ;;  %v614_v16 = vmul.f32 %v606_v5, %v2165_v38  ;;  %v624_v27 = vmul.f32 %v616_v45, %v611_v17  ;;  %1970 = vset.pattern.permute.xlu0 %v2016_v24  ;;  %v930_v17 = vld [vmem:[%s2259_s25] sm:$0xff]  ;;  %v1811_v24 = vld [vmem:[%s2658_s8 + $0x98] sm:$0xf] }
 0x120   : > { %v609_v57 = vmul.f32 %v586_v26, %v2168_v39  ;;  %v610_v58 = vmul.f32 %v586_v26, %v2171_v40  ;;  %v625_v28 = vmul.f32 %v617_v47, %v612_v19  ;;  %v933_v19 = vld [vmem:[%s2259_s25 + $0x18] sm:$0xff] }
 0x121   : > { %v626_v20 = vmul.f32 %v616_v45, %v613_v10  ;;  %v627_v22 = vmul.f32 %v617_v47, %v614_v16  ;;  %v637_v31 = vadd.f32 %v629_v54, %v624_v27  ;;  %v1931_v27 = vld [vmem:[%s2658_s8 + $0xb0] sm:$0xf0] }
 0x122   : > { %v622_v60 = vmul.f32 %v616_v45, %v609_v57  ;;  %v623_v62 = vmul.f32 %v617_v47, %v610_v58  ;;  %v638_v21 = vadd.f32 %v630_v56, %v625_v28  ;;  %v1930_v28 = vld [vmem:[%s2658_s8 + $0xac] sm:$0xf] }
 0x123   : > { %v639_v29 = vadd.f32 %v629_v54, %v626_v20  ;;  %v640_v30 = vadd.f32 %v630_v56, %v627_v22  ;;  %v645_v18 = vmax.f32 %v637_v31, 0.0  ;;  %v932_v20 = vld [vmem:[%s2259_s25 + $0x10] sm:$0xff]  ;;  %v1815_v22 = vld [vmem:[%s2658_s8 + $0xa8] sm:$0xf] }
 0x124   : > { %v635_v3 = vadd.f32 %v629_v54, %v622_v60  ;;  %v636_v4 = vadd.f32 %v630_v56, %v623_v62  ;;  %v646_v37 = vmax.f32 %v638_v21, 0.0  ;;  %v2017_v56 = vmov 128.0   ;;  %v1823_v31 = vld [vmem:[%s2658_s8 + $0xb0] sm:$0xf]  ;;  %v1932_v21 = vld [vmem:[%s2658_s8 + $0xb8] sm:$0xf0] }
 0x125   : > { %v647_v32 = vmax.f32 %v639_v29, 0.0  ;;  %v648_v33 = vmax.f32 %v640_v30, 0.0  ;;  %1987 = vrcp.f32 %v2017_v56  ;;  %v1816_v29 = vor.u32 %v1931_v27, %v1815_v22  ;;  %v1817_v30 = vld [vmem:[%s2658_s8 + $0xb4] sm:$0xf0]  ;;  %v1787_v56 = vld [vmem:[%s2658_s8 + $0x68] sm:$0xf] }
 0x126   : > { %v643_v12 = vmax.f32 %v635_v3, 0.0  ;;  %v644_v39 = vmax.f32 %v636_v4, 0.0 }
 0x127   : > { %v651_v34 = vpack.c.bf16 %v647_v32, %v645_v18  ;;  %v652_v38 = vpack.c.bf16 %v648_v33, %v646_v37  ;;  %v1820_v32 = vor.u32 %v1930_v28, %v1817_v30  ;;  %v2305_v33 = vor.u32 %v1932_v21, %v1823_v31  ;;  %1120 = vmatpush.bf16.msra.mxu2 %v1816_v29  ;;  %v1803_v18 = vld [vmem:[%s2658_s8 + $0x90] sm:$0xf]  ;;  %v1928_v37 = vld [vmem:[%s2658_s8 + $0x98] sm:$0xf0]  ;;  %v1743_v29 = vld [vmem:[%s2658_s8 + $0x18] sm:$0xf] }
 0x128   : > { %v649_v40 = vpack.c.bf16 %v643_v12, %v641_v11  ;;  %v650_v15 = vpack.c.bf16 %v644_v39, %v642_v13  ;;  %v1913_v30 = vld [vmem:[%s2658_s8 + $0x20] sm:$0xf0]  ;;  %v1912_v31 = vld [vmem:[%s2658_s8 + $0x1c] sm:$0xf] }
 0x129   : > { %1139 = vmatpush.bf16.msra.mxu3 %v1820_v32  ;;  %1158 = vmatpush.bf16.msrb.mxu0 %v2305_v33  ;;  %v1744_v21 = vor.u32 %v1913_v30, %v1743_v29  ;;  %v1745_v32 = vld [vmem:[%s2658_s8 + $0x24] sm:$0xf0] }
 0x12a   : > { %793 = vmatmul.bf16.vlgmr.msra.gmra.mxu0 %v649_v40  ;;  %812 = vmatmul.bf16.vlgmr.msra.gmra.mxu1 %v650_v15 }
 0x12b   : > { %v1988_v25 = vpop.eup %1987 }
 0x12c   : > { %v834_v26 = vmul.f32 128.0, %v1988_v25  ;;  %vm838_vm13 = vweird.f32 %v1988_v25 }
 0x12e   : > { %v835_v57 = vsub.f32 1.0, %v834_v26 }
 0x130   : > { %v836_v58 = vmul.f32 %v1988_v25, %v835_v57 }
 0x132   : > { %v837_v59 = vadd.f32 %v1988_v25, %v836_v58  ;;  %v1767_v58 = vld [vmem:[%s2658_s8 + $0x48] sm:$0xf] }
 0x134   : > { %v2262_v60 = vsel %vm838_vm13, %v1988_v25, %v837_v59  ;;  %v1923_v25 = vld [vmem:[%s2658_s8 + $0x70] sm:$0xf0] }
 0x135   : > { %v2368_v57 = vor.u32 %v1923_v25, %v1787_v56  ;;  %v1919_v59 = vld [vmem:[%s2658_s8 + $0x50] sm:$0xf0] }
 0x13a   : > { %798 = vmatmul.bf16.gmra.mxu0 %v651_v34  ;;  %817 = vmatmul.bf16.gmra.mxu1 %v652_v38  ;;  %v1927_v34 = vld [vmem:[%s2658_s8 + $0x94] sm:$0xf]  ;;  %v1804_v38 = vor.u32 %v1928_v37, %v1803_v18  ;;  %v1751_v18 = vld [vmem:[%s2658_s8 + $0x20] sm:$0xf]  ;;  %v1914_v37 = vld [vmem:[%s2658_s8 + $0x28] sm:$0xf0] }
 0x13c   : > { %1121 = vmatpush.bf16.msra.mxu2 %v1804_v38  ;;  %v1748_v38 = vor.u32 %v1912_v31, %v1745_v32 }
 0x1a7   : > { %v794_v35 = vpop.f32.mrf.mxu0  ;;  %v813_v36 = vpop.f32.mrf.mxu1 }
 0x1a8   : > { %v795_v41 = vadd.f32 %v1971_v23, %v794_v35  ;;  %v1929_v35 = vld [vmem:[%s2658_s8 + $0xa0] sm:$0xf0] }
 0x1aa   : > { %v814_v42 = vadd.f32 %v813_v36, %v795_v41  ;;  %v2326_v41 = vor.u32 %v1929_v35, %v1811_v24  ;;  %v1731_v24 = vld [vmem:[%s2658_s8] sm:$0xf]  ;;  %v1910_v35 = vld [vmem:[%s2658_s8 + $0x8] sm:$0xf0] }
 0x1ac   : > { %825 = vadd.xlane.f32.xlu2 %v814_v42  ;;  %1159 = vmatpush.bf16.msrb.mxu0 %v2326_v41 }
 0x1af   : > { %v796_v43 = vpop.f32.mrf.mxu0  ;;  %v815_v44 = vpop.f32.mrf.mxu1 }
 0x1b0   : > { %v797_v45 = vadd.f32 %v1971_v23, %v796_v43  ;;  %v1925_v43 = vld [vmem:[%s2658_s8 + $0x80] sm:$0xf0] }
 0x1b2   : > { %v816_v46 = vadd.f32 %v815_v44, %v797_v45  ;;  %v1924_v44 = vld [vmem:[%s2658_s8 + $0x7c] sm:$0xf] }
 0x1b4   : > { %827 = vadd.xlane.f32.xlu0 %v816_v46 }
 0x1b7   : > { %v799_v47 = vpop.f32.mrf.mxu0  ;;  %v818_v48 = vpop.f32.mrf.mxu1 }
 0x1b8   : > { %v800_v49 = vadd.f32 %v1971_v23, %v799_v47  ;;  %v1799_v47 = vld [vmem:[%s2658_s8 + $0x80] sm:$0xf] }
 0x1ba   : > { %v819_v50 = vadd.f32 %v818_v48, %v800_v49  ;;  %v1926_v48 = vld [vmem:[%s2658_s8 + $0x88] sm:$0xf0] }
 0x1bc   : > { %829 = vadd.xlane.f32.xlu1 %v819_v50 }
 0x1bf   : > { %v801_v51 = vpop.f32.mrf.mxu0  ;;  %v820_v53 = vpop.f32.mrf.mxu1 }
 0x1c0   : > { %v802_v52 = vadd.f32 %v1971_v23, %v801_v51  ;;  %v1805_v23 = vld [vmem:[%s2658_s8 + $0x9c] sm:$0xf0] }
 0x1c1   : > { %v1808_v36 = vor.u32 %v1927_v34, %v1805_v23  ;;  %v1779_v51 = vld [vmem:[%s2658_s8 + $0x60] sm:$0xf]  ;;  %v2432_v23 = vor.u32 %v1914_v37, %v1751_v18 }
 0x1c2   : > { %v821_v54 = vadd.f32 %v820_v53, %v802_v52  ;;  %v1922_v52 = vld [vmem:[%s2658_s8 + $0x68] sm:$0xf0]  ;;  %v1921_v53 = vld [vmem:[%s2658_s8 + $0x64] sm:$0xf] }
 0x1c3   : > { %1140 = vmatpush.bf16.msra.mxu3 %v1808_v36  ;;  %v1909_v36 = vld [vmem:[%s2658_s8 + $0x4] sm:$0xf] }
 0x1c4   : > { %831 = vadd.xlane.f32.xlu2 %v821_v54 }
 0x1dc   : > { %941 = vperm.xlu2 %1969, %v931_v55   ;;  %v1781_v55 = vld [vmem:[%s2658_s8 + $0x6c] sm:$0xf0] }
 0x1dd   : > { %v1784_v26 = vor.u32 %v1921_v53, %v1781_v55 }
 0x21f   : > { %v826_v61 = vpop.xlane.xlu2 %825 }
 0x220   : > { %v840_v62 = vmul.f32 %v2262_v60, %v826_v61  ;;  %v1918_v61 = vld [vmem:[%s2658_s8 + $0x4c] sm:$0xf] }
 0x222   : > { %v2265_v63 = vsub.f32 %v814_v42, %v840_v62  ;;  %v1791_v42 = vld [vmem:[%s2658_s8 + $0x78] sm:$0xf]  ;;  %v1768_v62 = vor.u32 %v1919_v59, %v1767_v58 }
 0x223   : > { %v1792_v45 = vor.u32 %v1925_v43, %v1791_v42  ;;  %v1732_v42 = vor.u32 %v1910_v35, %v1731_v24  ;;  %v1733_v43 = vld [vmem:[%s2658_s8 + $0xc] sm:$0xf0] }
 0x224   : > { %v848_v2 = vmul.f32 %v2265_v63, %v2265_v63 }
 0x225   : > { %1122 = vmatpush.bf16.msra.mxu2 %v1792_v45  ;;  %v1911_v45 = vld [vmem:[%s2658_s8 + $0x10] sm:$0xf0] }
 0x226   : > { %852 = vadd.xlane.f32.xlu0 %v848_v2  ;;  %v1769_v2 = vld [vmem:[%s2658_s8 + $0x54] sm:$0xf0] }
 0x227   : > { %v828_v3 = vpop.xlane.xlu0 %827 }
 0x228   : > { %v841_v4 = vmul.f32 %v2262_v60, %v828_v3  ;;  %v1775_v3 = vld [vmem:[%s2658_s8 + $0x50] sm:$0xf] }
 0x22a   : > { %v2270_v5 = vsub.f32 %v816_v46, %v841_v4  ;;  %v1793_v46 = vld [vmem:[%s2658_s8 + $0x84] sm:$0xf0]  ;;  %v1920_v4 = vld [vmem:[%s2658_s8 + $0x58] sm:$0xf0] }
 0x22b   : > { %v1796_v49 = vor.u32 %v1924_v44, %v1793_v46  ;;  %v1739_v44 = vld [vmem:[%s2658_s8 + $0x8] sm:$0xf]  ;;  %v1736_v46 = vor.u32 %v1909_v36, %v1733_v43 }
 0x22c   : > { %v849_v11 = vmul.f32 %v2270_v5, %v2270_v5 }
 0x22d   : > { %1141 = vmatpush.bf16.msra.mxu3 %v1796_v49 }
 0x22e   : > { %854 = vadd.xlane.f32.xlu1 %v849_v11  ;;  %v1772_v11 = vor.u32 %v1918_v61, %v1769_v2 }
 0x22f   : > { %v830_v12 = vpop.xlane.xlu1 %829 }
 0x230   : > { %v842_v13 = vmul.f32 %v2262_v60, %v830_v12  ;;  %v2389_v12 = vor.u32 %v1920_v4, %v1775_v3 }
 0x231   : > { %1142 = vmatpush.bf16.msra.mxu3 %v1784_v26 }
 0x232   : > { %v2275_v39 = vsub.f32 %v819_v50, %v842_v13  ;;  %v2347_v50 = vor.u32 %v1926_v48, %v1799_v47  ;;  %v1755_v13 = vld [vmem:[%s2658_s8 + $0x30] sm:$0xf]  ;;  %v2453_v47 = vor.u32 %v1911_v45, %v1739_v44 }
 0x234   : > { %v850_v14 = vmul.f32 %v2275_v39, %v2275_v39  ;;  %1160 = vmatpush.bf16.msrb.mxu0 %v2347_v50 }
 0x235   : > { %1143 = vmatpush.bf16.msra.mxu3 %v1772_v11 }
 0x236   : > { %856 = vadd.xlane.f32.xlu2 %v850_v14  ;;  %v1916_v14 = vld [vmem:[%s2658_s8 + $0x38] sm:$0xf0] }
 0x237   : > { %v832_v40 = vpop.xlane.xlu2 %831 }
 0x238   : > { %v843_v15 = vmul.f32 %v2262_v60, %v832_v40  ;;  %1161 = vmatpush.bf16.msrb.mxu0 %v2368_v57  ;;  %v1915_v40 = vld [vmem:[%s2658_s8 + $0x34] sm:$0xf] }
 0x23a   : > { %v2280_v10 = vsub.f32 %v821_v54, %v843_v15  ;;  %v1780_v54 = vor.u32 %v1922_v52, %v1779_v51  ;;  %v1756_v15 = vor.u32 %v1916_v14, %v1755_v13  ;;  %v1972_v13 = vld [vmem:[%s2656_s6] ss:$0 sm:$0xff] }
 0x23c   : > { %v851_v16 = vmul.f32 %v2280_v10, %v2280_v10  ;;  %1123 = vmatpush.bf16.msra.mxu2 %v1780_v54  ;;  %1162 = vmatpush.bf16.msrb.mxu0 %v2389_v12 }
 0x23e   : > { %858 = vadd.xlane.f32.xlu0 %v851_v16  ;;  %v1757_v16 = vld [vmem:[%s2658_s8 + $0x3c] sm:$0xf0] }
 0x23f   : > { %v2455_v48 = vpop.permute.xlu2 %941 }
 0x240   : > { %1124 = vmatpush.bf16.msra.mxu2 %v1768_v62 }
 0x244   : > { %1125 = vmatpush.bf16.msra.mxu2 %v1756_v15 }
 0x247   : > { %936 = vperm.xlu1 %1968, %v930_v17   ;;  %v1763_v17 = vld [vmem:[%s2658_s8 + $0x38] sm:$0xf] }
 0x248   : > { %1126 = vmatpush.bf16.msra.mxu2 %v1744_v21 }
 0x24c   : > { %1127 = vmatpush.bf16.msra.mxu2 %v1732_v42 }
 0x24e   : > { %951 = vperm.xlu2 %1969, %v933_v19   ;;  %v1917_v19 = vld [vmem:[%s2658_s8 + $0x40] sm:$0xf0] }
 0x24f   : > { %v2410_v22 = vor.u32 %v1917_v19, %v1763_v17 }
 0x251   : > { %1163 = vmatpush.bf16.msrb.mxu0 %v2410_v22 }
 0x252   : > { %946 = vperm.xlu0 %1970, %v932_v20   ;;  %v1760_v20 = vor.u32 %v1915_v40, %v1757_v16 }
 0x254   : > { %1144 = vmatpush.bf16.msra.mxu3 %v1760_v20 }
 0x255   : > { %1164 = vmatpush.bf16.msrb.mxu0 %v2432_v23 }
 0x258   : > { %1145 = vmatpush.bf16.msra.mxu3 %v1748_v38 }
 0x259   : > { %1165 = vmatpush.bf16.msrb.mxu0 %v2453_v47 }
 0x25c   : > { %1146 = vmatpush.bf16.msra.mxu3 %v1736_v46 }
 0x260   : > { %1949 = vmatpush.bf16.msrb.mxu3 %v2305_v33 }
 0x264   : > { %1950 = vmatpush.bf16.msrb.mxu3 %v2326_v41 }
 0x268   : > { %1951 = vmatpush.bf16.msrb.mxu3 %v2347_v50 }
 0x26c   : > { %1952 = vmatpush.bf16.msrb.mxu3 %v2368_v57  ;;  %v1973_v57 = vld [vmem:[%s2657_s7] ss:$0 sm:$0xff] }
 0x270   : > { %1953 = vmatpush.bf16.msrb.mxu3 %v2389_v12 }
 0x274   : > { %1954 = vmatpush.bf16.msrb.mxu3 %v2410_v22 }
 0x278   : > { %1955 = vmatpush.bf16.msrb.mxu3 %v2432_v23 }
 0x27c   : > { %1956 = vmatpush.bf16.msrb.mxu3 %v2453_v47 }
 0x299   : > { %v853_v27 = vpop.xlane.xlu0 %852 }
 0x29a   : > { %v860_v28 = vmul.f32 %v853_v27, %v2262_v60 }
 0x29c   : > { %v864_v34 = vadd.f32 1e-05, %v860_v28 }
 0x29e   : > { %1989 = vrsqrt.f32 %v864_v34  ;;  %vm874_vm15 = vweird.f32 %v864_v34 }
 0x2a1   : > { %v855_v49 = vpop.xlane.xlu1 %854 }
 0x2a2   : > { %v861_v51 = vmul.f32 %v855_v49, %v2262_v60 }
 0x2a4   : > { %v1990_v52 = vpop.eup %1989  ;;  %v865_v53 = vadd.f32 1e-05, %v861_v51 }
 0x2a5   : > { %v869_v54 = vmul.f32 %v1990_v52, %v864_v34  ;;  %vm875_vm14 = vweird.f32 %v1990_v52 }
 0x2a6   : > { %1991 = vrsqrt.f32 %v865_v53  ;;  %vm876_vm0 = vmor %vm874_vm15, %vm875_vm14  ;;  %vm884_vm2 = vweird.f32 %v865_v53 }
 0x2a7   : > { %v870_v55 = vmul.f32 %v1990_v52, %v869_v54 }
 0x2a9   : > { %v871_v56 = vmul.f32 0.5, %v870_v55  ;;  %v857_v25 = vpop.xlane.xlu2 %856 }
 0x2aa   : > { %v862_v26 = vmul.f32 %v857_v25, %v2262_v60 }
 0x2ab   : > { %v872_v58 = vsub.f32 1.5, %v871_v56 }
 0x2ac   : > { %v1992_v59 = vpop.eup %1991  ;;  %v866_v61 = vadd.f32 1e-05, %v862_v26 }
 0x2ad   : > { %v873_v62 = vmul.f32 %v1990_v52, %v872_v58  ;;  %v879_v33 = vmul.f32 %v1992_v59, %v865_v53  ;;  %vm885_vm1 = vweird.f32 %v1992_v59 }
 0x2ae   : > { %1993 = vrsqrt.f32 %v866_v61  ;;  %vm886_vm3 = vmor %vm884_vm2, %vm885_vm1  ;;  %vm894_vm5 = vweird.f32 %v866_v61 }
 0x2af   : > { %v880_v2 = vmul.f32 %v1992_v59, %v879_v33  ;;  %v877_v3 = vsel %vm876_vm0, %v1990_v52, %v873_v62  ;;  %v1177_v62 = vlaneseq }
 0x2b0   : > { %v908_v50 = vmul.f32 %v877_v3, %v2265_v63 }
 0x2b1   : > { %v881_v41 = vmul.f32 0.5, %v880_v2  ;;  %v859_v4 = vpop.xlane.xlu0 %858  ;;  %v952_v54 = vpop.permute.xlu2 %951 }
 0x2b2   : > { %v863_v11 = vmul.f32 %v859_v4, %v2262_v60  ;;  %v915_v19 = vmul.f32 %v1972_v13, %v908_v50 }
 0x2b3   : > { %v882_v14 = vsub.f32 1.5, %v881_v41 }
 0x2b4   : > { %v1994_v40 = vpop.eup %1993  ;;  %v867_v15 = vadd.f32 1e-05, %v863_v11  ;;  %v922_v29 = vadd.f32 %v1973_v57, %v915_v19 }
 0x2b5   : > { %v883_v16 = vmul.f32 %v1992_v59, %v882_v14  ;;  %v889_v17 = vmul.f32 %v1994_v40, %v866_v61  ;;  %vm895_vm4 = vweird.f32 %v1994_v40 }
 0x2b6   : > { %1995 = vrsqrt.f32 %v867_v15  ;;  %vm896_vm6 = vmor %vm894_vm5, %vm895_vm4  ;;  %v926_v38 = vmax.f32 %v922_v29, 0.0  ;;  %vm904_vm8 = vweird.f32 %v867_v15 }
 0x2b7   : > { %v887_v20 = vsel %vm886_vm3, %v1992_v59, %v883_v16  ;;  %v890_v27 = vmul.f32 %v1994_v40, %v889_v17 }
 0x2b8   : > { %v909_v63 = vmul.f32 %v887_v20, %v2270_v5 }
 0x2b9   : > { %v891_v28 = vmul.f32 0.5, %v890_v27  ;;  %v937_v37 = vpop.permute.xlu1 %936  ;;  %v1974_v27 = vld [vmem:[%s2659_s9] ss:$0 sm:$0xff] }
 0x2ba   : > { %v916_v12 = vmul.f32 %v1972_v13, %v909_v63  ;;  %v954_v35 = vmul.f32 %v937_v37, %v926_v38 }
 0x2bb   : > { %v892_v30 = vsub.f32 1.5, %v891_v28 }
 0x2bc   : > { %v1996_v31 = vpop.eup %1995  ;;  %v923_v21 = vadd.f32 %v1973_v57, %v916_v12 }
 0x2bd   : > { %v893_v32 = vmul.f32 %v1994_v40, %v892_v30  ;;  %v899_v18 = vmul.f32 %v1996_v31, %v867_v15  ;;  %vm905_vm7 = vweird.f32 %v1996_v31 }
 0x2be   : > { %v927_v34 = vmax.f32 %v923_v21, 0.0  ;;  %vm906_vm9 = vmor %vm904_vm8, %vm905_vm7 }
 0x2bf   : > { %v900_v24 = vmul.f32 %v1996_v31, %v899_v18  ;;  %v897_v22 = vsel %vm896_vm6, %v1994_v40, %v893_v32 }
 0x2c0   : > { %v955_v5 = vmul.f32 %v2455_v48, %v927_v34  ;;  %v910_v36 = vmul.f32 %v897_v22, %v2275_v39 }
 0x2c1   : > { %v901_v42 = vmul.f32 0.5, %v900_v24 }
 0x2c2   : > { %v958_v23 = vpack.c.bf16 %v955_v5, %v954_v35  ;;  %v917_v44 = vmul.f32 %v1972_v13, %v910_v36 }
 0x2c3   : > { %v902_v43 = vsub.f32 1.5, %v901_v42 }
 0x2c4   : > { %1128 = vmatmul.bf16.vlgmr.msra.gmra.mxu2 %v958_v23  ;;  %1147 = vmatmul.bf16.vlgmr.msra.gmra.mxu3 %v958_v23  ;;  %v924_v47 = vadd.f32 %v1973_v57, %v917_v44  ;;  %v947_v53 = vpop.permute.xlu0 %946 }
 0x2c5   : > { %v903_v45 = vmul.f32 %v1996_v31, %v902_v43  ;;  %1166 = vmatmul.bf16.vlgmr.msrb.gmra.mxu0 %v958_v23 }
 0x2c6   : > { %v928_v52 = vmax.f32 %v924_v47, 0.0 }
 0x2c7   : > { %v907_v46 = vsel %vm906_vm9, %v1996_v31, %v903_v45 }
 0x2c8   : > { %v911_v49 = vmul.f32 %v907_v46, %v2280_v10  ;;  %v956_v56 = vmul.f32 %v947_v53, %v928_v52  ;;  %v1178_v10 = vshrl.u32 %v1177_v62, 7 }
 0x2ca   : > { %v918_v51 = vmul.f32 %v1972_v13, %v911_v49  ;;  %v1186_v41 = vand.u32 31, %v1178_v10  ;;  %vm1234_vm11 = vcmp.lt.s32.totalorder %v1178_v10, 1  ;;  %vm1279_vm12 = vcmp.lt.s32.totalorder %v1178_v10, 7 }
 0x2cb   : > { %v1181_v63 = vadd.s32 24, %v1178_v10 }
 0x2cc   : > { %v925_v48 = vadd.f32 %v1973_v57, %v918_v51  ;;  %v1239_v4 = vadd.s32 4294967295, %v1186_v41  ;;  %v1947_v41 = vld [vmem:[%s2662_s12 + $0x74] sm:$0xf] }
 0x2cd   : > { %v1207_v32 = vand.u32 31, %v1181_v63  ;;  %v1867_v63 = vld [vmem:[%s2662_s12 + $0x50] sm:$0xf] }
 0x2ce   : > { %v929_v39 = vmax.f32 %v925_v48, 0.0  ;;  %vm1243_vm10 = vcmp.ge.s32.totalorder %v1239_v4, 0  ;;  %v1885_v4 = vld [vmem:[%s2662_s12 + $0x78] sm:$0xf0] }
 0x2cf   : > { %v1287_v24 = vadd.s32 1, %v1207_v32 }
 0x2d0   : > { %v957_v55 = vmul.f32 %v952_v54, %v929_v39 }
 0x2d1   : > { %vm1295_vm13 = vcmp.lt.s32.totalorder %v1287_v24, 32  ;;  %v1851_v24 = vld [vmem:[%s2662_s12 + $0x30] sm:$0xf] }
 0x2d2   : > { %v959_v25 = vpack.c.bf16 %v957_v55, %v956_v56 }
 0x2d4   : > { %1133 = vmatmul.bf16.gmra.mxu2 %v959_v25  ;;  %1152 = vmatmul.bf16.gmra.mxu3 %v959_v25 }
 0x2e4   : > { %1171 = vmatmul.bf16.vlgmr.msrb.gmra.mxu3 %v959_v25 }
 0x342   : > { %v1167_v33 = vpop.f32.mrf.mxu0 }
 0x343   : > { %v1275_v57 = vrot.slane %v1167_v33, 1 }
 0x347   : > { %v1129_v26 = vpop.f32.mrf.mxu2  ;;  %v1148_v58 = vpop.f32.mrf.mxu3 }
 0x348   : > { %v1230_v14 = vrot.slane %v1129_v26, 7 }
 0x34a   : > { %v1169_v11 = vpop.f32.mrf.mxu0 }
 0x34b   : > { %v1276_v15 = vrot.slane %v1169_v11, 1  ;;  %v1883_v11 = vld [vmem:[%s2662_s12 + $0x70] sm:$0xf] }
 0x34d   : > { %v1282_v28 = vsel %vm1279_vm12, %v1275_v57, %v1276_v15 }
 0x34f   : > { %v1131_v59 = vpop.f32.mrf.mxu2  ;;  %v1150_v61 = vpop.f32.mrf.mxu3 }
 0x350   : > { %v1231_v16 = vrot.slane %v1131_v59, 7 }
 0x352   : > { %v1237_v12 = vsel %vm1234_vm11, %v1230_v14, %v1231_v16 }
 0x353   : > { %v1272_v18 = vadd.f32 %v1237_v12, %v1150_v61  ;;  %v1944_v12 = vld [vmem:[%s2662_s12 + $0x54] sm:$0xf0] }
 0x357   : > { %v1134_v2 = vpop.f32.mrf.mxu2  ;;  %v1153_v3 = vpop.f32.mrf.mxu3 }
 0x358   : > { %v1232_v37 = vrot.slane %v1134_v2, 7 }
 0x35a   : > { %v1236_v5 = vsel %vm1234_vm11, %v1231_v16, %v1232_v37  ;;  %v1875_v16 = vld [vmem:[%s2662_s12 + $0x60] sm:$0xf] }
 0x35b   : > { %v1273_v23 = vadd.f32 %v1236_v5, %v1153_v3  ;;  %v1940_v5 = vld [vmem:[%s2662_s12 + $0x34] sm:$0xf0] }
 0x35f   : > { %v1136_v13 = vpop.f32.mrf.mxu2  ;;  %v1155_v50 = vpop.f32.mrf.mxu3 }
 0x360   : > { %v1233_v40 = vrot.slane %v1136_v13, 7  ;;  %v1888_v13 = vor.u32 %v1947_v41, %v1885_v4 }
 0x362   : > { %v1238_v17 = vsel %vm1234_vm11, %v1233_v40, %v1230_v14  ;;  %v1235_v35 = vsel %vm1234_vm11, %v1232_v37, %v1233_v40  ;;  %1547 = vmatpush.bf16.msrb.mxu2 %v1888_v13  ;;  %v1945_v40 = vld [vmem:[%s2662_s12 + $0x64] sm:$0xf] }
 0x363   : > { %v1263_v19 = vsel %vm1243_vm10, %v1238_v17, 0.0  ;;  %v1274_v43 = vadd.f32 %v1235_v35, %v1155_v50  ;;  %v1948_v50 = vld [vmem:[%s2662_s12 + $0x74] sm:$0xf0]  ;;  %v1852_v35 = vor.u32 %v1940_v5, %v1851_v24  ;;  %v1976_v24 = vld [vmem:[%s2661_s11] ss:$0 sm:$0xff] }
 0x364   : > { %v1271_v20 = vadd.f32 %v1263_v19, %v1148_v58  ;;  %v1884_v14 = vor.u32 %v1948_v50, %v1883_v11 }
 0x366   : > { %v1312_v29 = vadd.f32 %v1282_v28, %v1271_v20  ;;  %1528 = vmatpush.bf16.msrb.mxu1 %v1884_v14  ;;  %v1943_v20 = vld [vmem:[%s2662_s12 + $0x54] sm:$0xf] }
 0x367   : > { %v1172_v30 = vpop.f32.mrf.mxu3 }
 0x368   : > { %v1277_v31 = vrot.slane %v1172_v30, 1  ;;  %v1320_v21 = vadd.f32 %v1974_v27, %v1312_v29  ;;  %v1868_v29 = vor.u32 %v1944_v12, %v1867_v63  ;;  %v1941_v30 = vld [vmem:[%s2662_s12 + $0x44] sm:$0xf] }
 0x36a   : > { %1326 = vadd.xlane.f32.xlu1 %v1320_v21  ;;  %v1281_v34 = vsel %vm1279_vm12, %v1276_v15, %v1277_v31  ;;  %v1877_v15 = vld [vmem:[%s2662_s12 + $0x68] sm:$0xf0] }
 0x36b   : > { %v1313_v38 = vadd.f32 %v1281_v34, %v1272_v18  ;;  %v1880_v17 = vor.u32 %v1945_v40, %v1877_v15  ;;  %v1942_v18 = vld [vmem:[%s2662_s12 + $0x44] sm:$0xf0]  ;;  %v1939_v34 = vld [vmem:[%s2662_s12 + $0x34] sm:$0xf] }
 0x36d   : > { %v1321_v22 = vadd.f32 %v1974_v27, %v1313_v38  ;;  %1548 = vmatpush.bf16.msrb.mxu2 %v1880_v17  ;;  %v1853_v38 = vld [vmem:[%s2662_s12 + $0x38] sm:$0xf0] }
 0x36f   : > { %1328 = vadd.xlane.f32.xlu2 %v1321_v22  ;;  %v1174_v36 = vpop.f32.mrf.mxu3 }
 0x370   : > { %v1278_v42 = vrot.slane %v1174_v36, 1  ;;  %v1937_v36 = vld [vmem:[%s2662_s12 + $0x24] sm:$0xf] }
 0x372   : > { %v1280_v44 = vsel %vm1279_vm12, %v1277_v31, %v1278_v42  ;;  %v1283_v45 = vsel %vm1279_vm12, %v1278_v42, %v1275_v57  ;;  %v1946_v57 = vld [vmem:[%s2662_s12 + $0x64] sm:$0xf0]  ;;  %v1861_v31 = vld [vmem:[%s2662_s12 + $0x48] sm:$0xf0] }
 0x373   : > { %v1314_v46 = vadd.f32 %v1280_v44, %v1273_v23  ;;  %v1311_v49 = vsel %vm1295_vm13, %v1283_v45, 0.0  ;;  %v1876_v19 = vor.u32 %v1946_v57, %v1875_v16  ;;  %v1864_v32 = vor.u32 %v1941_v30, %v1861_v31  ;;  %v1845_v42 = vld [vmem:[%s2662_s12 + $0x28] sm:$0xf0]  ;;  %v1843_v23 = vld [vmem:[%s2662_s12 + $0x20] sm:$0xf] }
 0x374   : > { %v1315_v47 = vadd.f32 %v1311_v49, %v1274_v43  ;;  %v1848_v43 = vor.u32 %v1937_v36, %v1845_v42  ;;  %v1938_v44 = vld [vmem:[%s2662_s12 + $0x24] sm:$0xf0]  ;;  %v1837_v49 = vld [vmem:[%s2662_s12 + $0x18] sm:$0xf0]  ;;  %v1975_v30 = vld [vmem:[%s2660_s10] ss:$0 sm:$0xff] }
 0x375   : > { %v1322_v51 = vadd.f32 %v1974_v27, %v1314_v46  ;;  %1529 = vmatpush.bf16.msrb.mxu1 %v1876_v19  ;;  %v1844_v45 = vor.u32 %v1938_v44, %v1843_v23  ;;  %v1935_v46 = vld [vmem:[%s2662_s12 + $0x14] sm:$0xf] }
 0x376   : > { %v1323_v48 = vadd.f32 %v1974_v27, %v1315_v47  ;;  %v1869_v27 = vld [vmem:[%s2662_s12 + $0x58] sm:$0xf0]  ;;  %v1835_v47 = vld [vmem:[%s2662_s12 + $0x10] sm:$0xf] }
 0x377   : > { %1330 = vadd.xlane.f32.xlu0 %v1322_v51  ;;  %v1872_v28 = vor.u32 %v1943_v20, %v1869_v27 }
 0x378   : > { %1332 = vadd.xlane.f32.xlu1 %v1323_v48 }
 0x379   : > { %1549 = vmatpush.bf16.msrb.mxu2 %v1872_v28  ;;  %1530 = vmatpush.bf16.msrb.mxu1 %v1868_v29 }
 0x37d   : > { %1550 = vmatpush.bf16.msrb.mxu2 %v1864_v32 }
 0x3dd   : > { %v1327_v52 = vpop.xlane.xlu1 %1326 }
 0x3de   : > { %v1334_v53 = vmul.f32 %v1327_v52, %v2262_v60 }
 0x3e0   : > { %v2492_v39 = vsub.f32 %v1320_v21, %v1334_v53  ;;  %v1859_v21 = vld [vmem:[%s2662_s12 + $0x40] sm:$0xf] }
 0x3e1   : > { %v1860_v37 = vor.u32 %v1942_v18, %v1859_v21 }
 0x3e2   : > { %v1329_v54 = vpop.xlane.xlu2 %1328  ;;  %v1342_v55 = vmul.f32 %v2492_v39, %v2492_v39 }
 0x3e3   : > { %v1335_v56 = vmul.f32 %v1329_v54, %v2262_v60  ;;  %1531 = vmatpush.bf16.msrb.mxu1 %v1860_v37 }
 0x3e4   : > { %1346 = vadd.xlane.f32.xlu2 %v1342_v55  ;;  %v1933_v55 = vld [vmem:[%s2662_s12 + $0x4] sm:$0xf] }
 0x3e5   : > { %v2497_v25 = vsub.f32 %v1321_v22, %v1335_v56  ;;  %v1856_v22 = vor.u32 %v1939_v34, %v1853_v38  ;;  %v1829_v56 = vld [vmem:[%s2662_s12 + $0x8] sm:$0xf0] }
 0x3e7   : > { %v1343_v26 = vmul.f32 %v2497_v25, %v2497_v25  ;;  %1551 = vmatpush.bf16.msrb.mxu2 %v1856_v22  ;;  %1532 = vmatpush.bf16.msrb.mxu1 %v1852_v35 }
 0x3e9   : > { %1348 = vadd.xlane.f32.xlu1 %v1343_v26  ;;  %v1827_v26 = vld [vmem:[%s2662_s12] sm:$0xf] }
 0x3ea   : > { %v1331_v58 = vpop.xlane.xlu0 %1330 }
 0x3eb   : > { %v1336_v59 = vmul.f32 %v1331_v58, %v2262_v60  ;;  %v1333_v61 = vpop.xlane.xlu1 %1332  ;;  %1552 = vmatpush.bf16.msrb.mxu2 %v1848_v43  ;;  %1533 = vmatpush.bf16.msrb.mxu1 %v1844_v45  ;;  %v1832_v58 = vor.u32 %v1933_v55, %v1829_v56 }
 0x3ec   : > { %v1337_v62 = vmul.f32 %v1333_v61, %v2262_v60 }
 0x3ed   : > { %v2503_v33 = vsub.f32 %v1322_v51, %v1336_v59  ;;  %v1840_v51 = vor.u32 %v1935_v46, %v1837_v49  ;;  %v1934_v59 = vld [vmem:[%s2662_s12 + $0x4] sm:$0xf0] }
 0x3ee   : > { %v2505_v10 = vsub.f32 %v1323_v48, %v1337_v62  ;;  %v1936_v48 = vld [vmem:[%s2662_s12 + $0x14] sm:$0xf0]  ;;  %v1828_v62 = vor.u32 %v1934_v59, %v1827_v26 }
 0x3ef   : > { %v1344_v2 = vmul.f32 %v2503_v33, %v2503_v33  ;;  %v1836_v52 = vor.u32 %v1936_v48, %v1835_v47  ;;  %1553 = vmatpush.bf16.msrb.mxu2 %v1840_v51 }
 0x3f0   : > { %v1345_v3 = vmul.f32 %v2505_v10, %v2505_v10 }
 0x3f1   : > { %1350 = vadd.xlane.f32.xlu2 %v1344_v2  ;;  %1534 = vmatpush.bf16.msrb.mxu1 %v1836_v52 }
 0x3f2   : > { %1352 = vadd.xlane.f32.xlu1 %v1345_v3 }
 0x3f3   : > { %1554 = vmatpush.bf16.msrb.mxu2 %v1832_v58 }
 0x3f5   : > { %1535 = vmatpush.bf16.msrb.mxu1 %v1828_v62 }
 0x457   : > { %v1347_v53 = vpop.xlane.xlu2 %1346 }
 0x458   : > { %v1354_v54 = vmul.f32 %v1347_v53, %v2262_v60 }
 0x45a   : > { %v1358_v61 = vadd.f32 1e-05, %v1354_v54 }
 0x45c   : > { %1997 = vrsqrt.f32 %v1358_v61  ;;  %v1349_v2 = vpop.xlane.xlu1 %1348  ;;  %vm1368_vm15 = vweird.f32 %v1358_v61 }
 0x45d   : > { %v1355_v3 = vmul.f32 %v1349_v2, %v2262_v60 }
 0x45f   : > { %v1359_v41 = vadd.f32 1e-05, %v1355_v3 }
 0x461   : > { %1999 = vrsqrt.f32 %v1359_v41  ;;  %vm1378_vm2 = vweird.f32 %v1359_v41 }
 0x462   : > { %v1998_v4 = vpop.eup %1997 }
 0x463   : > { %v1363_v11 = vmul.f32 %v1998_v4, %v1358_v61  ;;  %vm1369_vm14 = vweird.f32 %v1998_v4 }
 0x464   : > { %v1351_v13 = vpop.xlane.xlu2 %1350  ;;  %vm1370_vm0 = vmor %vm1368_vm15, %vm1369_vm14 }
 0x465   : > { %v1364_v50 = vmul.f32 %v1998_v4, %v1363_v11  ;;  %v1356_v14 = vmul.f32 %v1351_v13, %v2262_v60  ;;  %v1353_v40 = vpop.xlane.xlu1 %1352 }
 0x466   : > { %v1357_v15 = vmul.f32 %v1353_v40, %v2262_v60 }
 0x467   : > { %v2000_v16 = vpop.eup %1999  ;;  %v1365_v17 = vmul.f32 0.5, %v1364_v50  ;;  %v1360_v57 = vadd.f32 1e-05, %v1356_v14 }
 0x468   : > { %v1373_v19 = vmul.f32 %v2000_v16, %v1359_v41  ;;  %v1361_v20 = vadd.f32 1e-05, %v1357_v15  ;;  %vm1379_vm1 = vweird.f32 %v2000_v16 }
 0x469   : > { %v1366_v27 = vsub.f32 1.5, %v1365_v17  ;;  %2001 = vrsqrt.f32 %v1360_v57  ;;  %vm1380_vm3 = vmor %vm1378_vm2, %vm1379_vm1  ;;  %vm1388_vm6 = vweird.f32 %v1360_v57 }
 0x46a   : > { %v1374_v63 = vmul.f32 %v2000_v16, %v1373_v19  ;;  %2003 = vrsqrt.f32 %v1361_v20  ;;  %vm1398_vm8 = vweird.f32 %v1361_v20 }
 0x46b   : > { %v1367_v28 = vmul.f32 %v1998_v4, %v1366_v27 }
 0x46c   : > { %v1375_v12 = vmul.f32 0.5, %v1374_v63 }
 0x46d   : > { %v1371_v29 = vsel %vm1370_vm0, %v1998_v4, %v1367_v28  ;;  %v2005_v4 = vld [vmem:[%s2109_s19] sm:$0xff] }
 0x46e   : > { %v1402_v60 = vmul.f32 %v1371_v29, %v2492_v39  ;;  %v1376_v31 = vsub.f32 1.5, %v1375_v12 }
 0x46f   : > { %v2002_v21 = vpop.eup %2001 }
 0x470   : > { %v2004_v32 = vpop.eup %2003  ;;  %v1377_v18 = vmul.f32 %v2000_v16, %v1376_v31  ;;  %v1383_v37 = vmul.f32 %v2002_v21, %v1360_v57  ;;  %v1409_v38 = vmul.f32 %v1975_v30, %v1402_v60  ;;  %vm1389_vm4 = vweird.f32 %v2002_v21 }
 0x471   : > { %v1393_v34 = vmul.f32 %v2004_v32, %v1361_v20  ;;  %vm1399_vm5 = vweird.f32 %v2004_v32  ;;  %vm1390_vm7 = vmor %vm1388_vm6, %vm1389_vm4 }
 0x472   : > { %v1381_v22 = vsel %vm1380_vm3, %v2000_v16, %v1377_v18  ;;  %v1384_v5 = vmul.f32 %v2002_v21, %v1383_v37  ;;  %v1416_v43 = vadd.f32 %v1976_v24, %v1409_v38  ;;  %vm1400_vm9 = vmor %vm1398_vm8, %vm1399_vm5 }
 0x473   : > { %v1403_v35 = vmul.f32 %v1381_v22, %v2497_v25  ;;  %v1394_v36 = vmul.f32 %v2004_v32, %v1393_v34 }
 0x474   : > { %v1385_v39 = vmul.f32 0.5, %v1384_v5  ;;  %v1420_v51 = vmax.f32 %v1416_v43, 0.0 }
 0x475   : > { %v1395_v42 = vmul.f32 0.5, %v1394_v36  ;;  %v1410_v23 = vmul.f32 %v1975_v30, %v1403_v35 }
 0x476   : > { %v1386_v44 = vsub.f32 1.5, %v1385_v39 }
 0x477   : > { %v1396_v45 = vsub.f32 1.5, %v1395_v42  ;;  %v1417_v46 = vadd.f32 %v1976_v24, %v1410_v23 }
 0x478   : > { %v1387_v49 = vmul.f32 %v2002_v21, %v1386_v44 }
 0x479   : > { %v1397_v47 = vmul.f32 %v2004_v32, %v1396_v45  ;;  %v1421_v48 = vmax.f32 %v1417_v46, 0.0 }
 0x47a   : > { %v1391_v52 = vsel %vm1390_vm7, %v2002_v21, %v1387_v49 }
 0x47b   : > { %v1401_v25 = vsel %vm1400_vm9, %v2004_v32, %v1397_v47  ;;  %v1424_v53 = vpack.c.bf16 %v1421_v48, %v1420_v51  ;;  %v1404_v54 = vmul.f32 %v1391_v52, %v2503_v33  ;;  %v1442_v33 = vld [vmem:[%s2663_s13] sm:$0x3] }
 0x47c   : > { %v1405_v55 = vmul.f32 %v1401_v25, %v2505_v10  ;;  %v1444_v3 = vperm.slane %v1442_v33, 0  ;;  %v1445_v13 = vperm.slane %v1442_v33, 1 }
 0x47d   : > { %1536 = vmatmul.bf16.vlgmr.msrb.gmra.mxu1 %v1424_v53  ;;  %1555 = vmatmul.bf16.vlgmr.msrb.gmra.mxu2 %v1424_v53  ;;  %v1411_v56 = vmul.f32 %v1975_v30, %v1404_v54 }
 0x47e   : > { %v1412_v26 = vmul.f32 %v1975_v30, %v1405_v55 }
 0x47f   : > { %v1418_v58 = vadd.f32 %v1976_v24, %v1411_v56 }
 0x480   : > { %v1419_v59 = vadd.f32 %v1976_v24, %v1412_v26 }
 0x481   : > { %v1422_v61 = vmax.f32 %v1418_v58, 0.0 }
 0x482   : > { %v1423_v62 = vmax.f32 %v1419_v59, 0.0 }
 0x484   : > { %v1425_v2 = vpack.c.bf16 %v1423_v62, %v1422_v61 }
 0x48d   : > { %1541 = vmatmul.bf16.gmra.mxu1 %v1425_v2  ;;  %1560 = vmatmul.bf16.gmra.mxu2 %v1425_v2 }
 0x4fa   : > { %v1537_v10 = vpop.f32.mrf.mxu1 }
 0x4fb   : > { %v1538_v41 = vadd.f32 %v1537_v10, %v1444_v3 }
 0x4fd   : > { %v1566_v11 = vadd.f32 %v2005_v4, %v1538_v41 }
 0x4ff   : > { %1574 = vst [vmem:[%s2629_s20] sm:$0xff] %v1566_v11 }
 0x500   : > { %v1556_v50 = vpop.f32.mrf.mxu2 }
 0x501   : > { %v1557_v14 = vadd.f32 %v1556_v50, %v1445_v13 }
 0x502   : > { %v1539_v40 = vpop.f32.mrf.mxu1 }
 0x503   : > { %v1540_v17 = vadd.f32 %v1539_v40, %v1444_v3 }
 0x505   : > { %v1568_v57 = vadd.f32 %v1540_v17, %v2128_v8 }
 0x506   : > { %v2006_v15 = vld [vmem:[%s2109_s19 + $0x8] sm:$0xff] }
 0x507   : > { %v1567_v16 = vadd.f32 %v2006_v15, %v1557_v14  ;;  %1576 = vst [vmem:[%s2629_s20 + $0x10] sm:$0xff] %v1568_v57 }
 0x508   : > { %v1558_v19 = vpop.f32.mrf.mxu2 }
 0x509   : > { %1575 = vst [vmem:[%s2629_s20 + $0x8] sm:$0xff] %v1567_v16  ;;  %v1559_v20 = vadd.f32 %v1558_v19, %v1445_v13 }
 0x50a   : > { %v1542_v27 = vpop.f32.mrf.mxu1 }
 0x50b   : > { %v1569_v63 = vadd.f32 %v1559_v20, %v2131_v9  ;;  %v1543_v28 = vadd.f32 %v1542_v27, %v1444_v3 }
 0x50d   : > { %1577 = vst [vmem:[%s2629_s20 + $0x18] sm:$0xff] %v1569_v63  ;;  %v1570_v12 = vadd.f32 %v1543_v28, %v2112_v0 }
 0x50f   : > { %1578 = vst [vmem:[%s2629_s20 + $0x20] sm:$0xff] %v1570_v12 }
 0x510   : > { %v1561_v29 = vpop.f32.mrf.mxu2 }
 0x511   : > { %v1562_v30 = vadd.f32 %v1561_v29, %v1445_v13 }
 0x512   : > { %v1544_v60 = vpop.f32.mrf.mxu1 }
 0x513   : > { %v1571_v31 = vadd.f32 %v1562_v30, %v2115_v1  ;;  %v1545_v21 = vadd.f32 %v1544_v60, %v1444_v3 }
 0x515   : > { %1579 = vst [vmem:[%s2629_s20 + $0x28] sm:$0xff] %v1571_v31  ;;  %v1572_v8 = vadd.f32 %v1545_v21, %v2122_v6 }
 0x517   : > { %1580 = vst [vmem:[%s2629_s20 + $0x30] sm:$0xff] %v1572_v8 }
 0x518   : > { %v1563_v32 = vpop.f32.mrf.mxu2 }
 0x519   : > { %v1564_v18 = vadd.f32 %v1563_v32, %v1445_v13 }
 0x51b   : > { %v1573_v9 = vadd.f32 %v1564_v18, %v2125_v7 }
 0x51d   : > { %1581 = vst [vmem:[%s2629_s20 + $0x38] sm:$0xff] %v1573_v9 }
 0x51e PF: > { %s24_s29 = sadd.s32 1, %s2013_s29  }
 0x51f   : > { %p21_p4 = scmp.ge.s32.totalorder %s24_s29, 4  }
 0x521   :  { %23 = sbr.rel (!%p21_p4) target bundleno = 1 (0x1), region = 109 }

// kernel: bytenet_forward.5
= control target key start
LH: loop header
LB: loop body
LE: loop exit
PB: predicated region body
PF: predicated region fallthrough
CT: control target
= control target key end

     0   :  { %s2093_s29 = smov 0   ;;  %s2650_s0 = inlined_call_operand.vmem [shape: f32[64,256], index: 0, kind: input, shape index: {}, may-alias: {0,14}]   ;;  %s2651_s1 = inlined_call_operand.vmem [shape: f32[64,1], index: 1, kind: input, shape index: {}]   ;;  %s2652_s2 = inlined_call_operand.vmem [shape: f32[1,256], index: 2, kind: input, shape index: {}]   ;;  %s2653_s3 = inlined_call_operand.vmem [shape: f32[1,256], index: 3, kind: input, shape index: {}]   ;;  %s2654_s4 = inlined_call_operand.vmem [shape: bf16[256,128], index: 4, kind: input, shape index: {}]   ;;  %s2655_s5 = inlined_call_operand.vmem [shape: f32[1,128], index: 5, kind: input, shape index: {}]   ;;  %s2656_s6 = inlined_call_operand.vmem [shape: f32[1,128], index: 6, kind: input, shape index: {}]   ;;  %s2657_s7 = inlined_call_operand.vmem [shape: f32[1,128], index: 7, kind: input, shape index: {}]   ;;  %s2658_s8 = inlined_call_operand.vmem [shape: bf16[128,384], index: 8, kind: input, shape index: {}]   ;;  %s2659_s9 = inlined_call_operand.vmem [shape: f32[1,128], index: 9, kind: input, shape index: {}]   ;;  %s2660_s10 = inlined_call_operand.vmem [shape: f32[1,128], index: 10, kind: input, shape index: {}]   ;;  %s2661_s11 = inlined_call_operand.vmem [shape: f32[1,128], index: 11, kind: input, shape index: {}]   ;;  %s2662_s12 = inlined_call_operand.vmem [shape: bf16[128,256], index: 12, kind: input, shape index: {}]   ;;  %s2663_s13 = inlined_call_operand.vmem [shape: f32[1,256], index: 13, kind: input, shape index: {}]   ;;  %s2664_s14 = inlined_call_operand.vmem [shape: f32[64,256], index: 14, kind: output, shape index: {}, may-alias: {0,14}]  }
   0x1 LB: > { %s1652_s30 = sadd.s32 4294967295, %s2013_s29   ;;  %p1656_p0 = scmp.ge.s32.totalorder %s2013_s29, 1  ;;  %s2013_s29 = sphi %s2093_s29, %s24_s29  }
   0x2   : > { %p425_p1 = scmp.lt.s32.totalorder %s2013_s29, 3 }
   0x4   : > { %p426_p2 = pnand %p1656_p0, %p425_p1 }
   0x5   : > { %s1657_s15 = sshll.u32 (!%p426_p2), %s1652_s30, 2 }
   0x6   : > { %429 = sbr.rel (%p426_p2) target bundleno = 1310 (0x51e), region = 76  ;;  %p479_p3 = scmp.lt.s32.totalorder (!%p426_p2), %s1657_s15, 7 }
   0xb   : > { %s2666_s15 = smov (!%p479_p3, %s1657_s15), 7  ;;  %v2015_v12 = vmov 256.0   ;;  %v1900_v47 = vld [vmem:[%s2654_s4 + $0x38] sm:$0xff]  ;;  %v1899_v49 = vld [vmem:[%s2654_s4 + $0x30] sm:$0xff]  ;;  %v1898_v51 = vld [vmem:[%s2654_s4 + $0x28] sm:$0xff] }
   0xc   : > { %s1891_s16 = sshll.u32 %s2666_s15, 4  ;;  %1977 = vrcp.f32 %v2015_v12  ;;  %v1908_v48 = vld [vmem:[%s2654_s4 + $0x78] sm:$0xff]  ;;  %785 = vmatpush.bf16.msra.mxu0 %v1900_v47  ;;  %v1907_v50 = vld [vmem:[%s2654_s4 + $0x70] sm:$0xff]  ;;  %v1906_v52 = vld [vmem:[%s2654_s4 + $0x68] sm:$0xff]  ;;  %s1661_s22 = sshll.u32 %s2666_s15, 3 }
   0xd   : > { %s2109_s19 = scalar_lea.vmem %s2650_s0, %s1891_s16  ;;  %804 = vmatpush.bf16.msra.mxu1 %v1908_v48  ;;  %v1897_v53 = vld [vmem:[%s2654_s4 + $0x20] sm:$0xff]  ;;  %v1896_v55 = vld [vmem:[%s2654_s4 + $0x18] sm:$0xff]  ;;  %v1895_v57 = vld [vmem:[%s2654_s4 + $0x10] sm:$0xff]  ;;  %s2259_s25 = scalar_lea.vmem %s2651_s1, %s1661_s22 }
   0xe   : > { %v2112_v0 = vld [vmem:[%s2109_s19 + $0x20] sm:$0xff]  ;;  %v2115_v1 = vld [vmem:[%s2109_s19 + $0x28] sm:$0xff]  ;;  %v2122_v6 = vld [vmem:[%s2109_s19 + $0x30] sm:$0xff]  ;;  %s2629_s20 = scalar_lea.vmem %s2664_s14, %s1891_s16 }
   0xf   : > { %v498_v2 = vld [vmem:[%s2109_s19] sm:$0xff]  ;;  %v514_v3 = vadd.f32 %v2115_v1, %v2112_v0  ;;  %v499_v4 = vld [vmem:[%s2109_s19 + $0x8] sm:$0xff]  ;;  %v2125_v7 = vld [vmem:[%s2109_s19 + $0x38] sm:$0xff] }
  0x10   : > { %v508_v5 = vadd.f32 %v499_v4, %v498_v2  ;;  %v2128_v8 = vld [vmem:[%s2109_s19 + $0x10] sm:$0xff]  ;;  %v2131_v9 = vld [vmem:[%s2109_s19 + $0x18] sm:$0xff]  ;;  %v517_v10 = vadd.f32 %v2125_v7, %v2122_v6  ;;  %786 = vmatpush.bf16.msra.mxu0 %v1899_v49  ;;  %v1905_v54 = vld [vmem:[%s2654_s4 + $0x60] sm:$0xff] }
  0x11   : > { %515 = vadd.xlane.f32.xlu1 %v514_v3  ;;  %v511_v11 = vadd.f32 %v2131_v9, %v2128_v8  ;;  %805 = vmatpush.bf16.msra.mxu1 %v1907_v50  ;;  %v1904_v56 = vld [vmem:[%s2654_s4 + $0x58] sm:$0xff]  ;;  %v1903_v58 = vld [vmem:[%s2654_s4 + $0x50] sm:$0xff]  ;;  %v1894_v59 = vld [vmem:[%s2654_s4 + $0x8] sm:$0xff] }
  0x12   : > { %509 = vadd.xlane.f32.xlu0 %v508_v5  ;;  %v1978_v13 = vpop.eup %1977  ;;  %v1902_v60 = vld [vmem:[%s2654_s4 + $0x48] sm:$0xff]  ;;  %v1893_v3 = vld [vmem:[%s2654_s4] sm:$0xff] }
  0x13   : > { %v521_v14 = vmul.f32 256.0, %v1978_v13  ;;  %vm525_vm0 = vweird.f32 %v1978_v13  ;;  %v507_v50 = vld [vmem:[%s2653_s3] sm:$0x3] }
  0x14   : > { %787 = vmatpush.bf16.msra.mxu0 %v1898_v51 }
  0x15   : > { %v522_v15 = vsub.f32 1.0, %v521_v14  ;;  %806 = vmatpush.bf16.msra.mxu1 %v1906_v52 }
  0x17   : > { %v523_v16 = vmul.f32 %v1978_v13, %v522_v15 }
  0x18   : > { %788 = vmatpush.bf16.msra.mxu0 %v1897_v53 }
  0x19   : > { %518 = vadd.xlane.f32.xlu1 %v517_v10  ;;  %v524_v17 = vadd.f32 %v1978_v13, %v523_v16  ;;  %807 = vmatpush.bf16.msra.mxu1 %v1905_v54  ;;  %v629_v54 = vperm.slane %v507_v50, 0 }
  0x1a   : > { %512 = vadd.xlane.f32.xlu0 %v511_v11 }
  0x1b   : > { %v2137_v18 = vsel %vm525_vm0, %v1978_v13, %v524_v17 }
  0x1c   : > { %789 = vmatpush.bf16.msra.mxu0 %v1896_v55 }
  0x1d   : > { %808 = vmatpush.bf16.msra.mxu1 %v1904_v56  ;;  %v630_v56 = vperm.slane %v507_v50, 1 }
  0x20   : > { %790 = vmatpush.bf16.msra.mxu0 %v1895_v57 }
  0x21   : > { %809 = vmatpush.bf16.msra.mxu1 %v1903_v58 }
  0x24   : > { %791 = vmatpush.bf16.msra.mxu0 %v1894_v59 }
  0x25   : > { %810 = vmatpush.bf16.msra.mxu1 %v1902_v60 }
  0x28   : > { %792 = vmatpush.bf16.msra.mxu0 %v1893_v3 }
  0x84   : > { %v516_v19 = vpop.xlane.xlu1 %515 }
  0x85   : > { %v529_v20 = vmul.f32 %v2137_v18, %v516_v19  ;;  %v510_v21 = vpop.xlane.xlu0 %509 }
  0x86   : > { %v527_v22 = vmul.f32 %v2137_v18, %v510_v21 }
  0x87   : > { %v2142_v23 = vsub.f32 %v2112_v0, %v529_v20  ;;  %v2145_v24 = vsub.f32 %v2115_v1, %v529_v20 }
  0x88   : > { %v2147_v25 = vsub.f32 %v498_v2, %v527_v22  ;;  %v2149_v26 = vsub.f32 %v499_v4, %v527_v22  ;;  %v1901_v4 = vld [vmem:[%s2654_s4 + $0x40] sm:$0xff] }
  0x89   : > { %v543_v27 = vmul.f32 %v2142_v23, %v2142_v23  ;;  %v544_v28 = vmul.f32 %v2145_v24, %v2145_v24  ;;  %811 = vmatpush.bf16.msra.mxu1 %v1901_v4 }
  0x8a   : > { %v539_v29 = vmul.f32 %v2147_v25, %v2147_v25  ;;  %v540_v30 = vmul.f32 %v2149_v26, %v2149_v26 }
  0x8b   : > { %v553_v31 = vadd.f32 %v544_v28, %v543_v27 }
  0x8c   : > { %v519_v32 = vpop.xlane.xlu1 %518  ;;  %v547_v33 = vadd.f32 %v540_v30, %v539_v29 }
  0x8d   : > { %v530_v34 = vmul.f32 %v2137_v18, %v519_v32  ;;  %v513_v35 = vpop.xlane.xlu0 %512  ;;  %554 = vadd.xlane.f32.xlu0 %v553_v31 }
  0x8e   : > { %v528_v36 = vmul.f32 %v2137_v18, %v513_v35  ;;  %548 = vadd.xlane.f32.xlu2 %v547_v33 }
  0x8f   : > { %v2162_v37 = vsub.f32 %v2122_v6, %v530_v34  ;;  %v2165_v38 = vsub.f32 %v2125_v7, %v530_v34 }
  0x90   : > { %v2168_v39 = vsub.f32 %v2128_v8, %v528_v36  ;;  %v2171_v40 = vsub.f32 %v2131_v9, %v528_v36 }
  0x91   : > { %v545_v41 = vmul.f32 %v2162_v37, %v2162_v37  ;;  %v546_v42 = vmul.f32 %v2165_v38, %v2165_v38 }
  0x92   : > { %v541_v43 = vmul.f32 %v2168_v39, %v2168_v39  ;;  %v542_v44 = vmul.f32 %v2171_v40, %v2171_v40 }
  0x93   : > { %v556_v45 = vadd.f32 %v546_v42, %v545_v41  ;;  %v506_v41 = vld [vmem:[%s2652_s2] sm:$0x3] }
  0x94   : > { %v550_v46 = vadd.f32 %v542_v44, %v541_v43  ;;  %v617_v47 = vperm.slane %v506_v41, 1 }
  0x95   : > { %557 = vadd.xlane.f32.xlu1 %v556_v45  ;;  %v616_v45 = vperm.slane %v506_v41, 0 }
  0x96   : > { %551 = vadd.xlane.f32.xlu2 %v550_v46 }
 0x100   : > { %v555_v61 = vpop.xlane.xlu0 %554 }
 0x101   : > { %v549_v62 = vpop.xlane.xlu2 %548  ;;  %v561_v2 = vmul.f32 %v555_v61, %v2137_v18 }
 0x102   : > { %v559_v63 = vmul.f32 %v549_v62, %v2137_v18 }
 0x103   : > { %v2231_v10 = vadd.f32 1e-05, %v561_v2 }
 0x104   : > { %v563_v5 = vadd.f32 1e-05, %v559_v63 }
 0x105   : > { %vm593_vm9 = vweird.f32 %v2231_v10 }
 0x106   : > { %1979 = vrsqrt.f32 %v563_v5  ;;  %vm573_vm2 = vweird.f32 %v563_v5 }
 0x107   : > { %1981 = vrsqrt.f32 %v2231_v10 }
 0x108   : > { %v558_v11 = vpop.xlane.xlu1 %557 }
 0x109   : > { %v562_v12 = vmul.f32 %v558_v11, %v2137_v18  ;;  %v552_v13 = vpop.xlane.xlu2 %551 }
 0x10a   : > { %v560_v14 = vmul.f32 %v552_v13, %v2137_v18 }
 0x10b   : > { %v566_v15 = vadd.f32 1e-05, %v562_v12 }
 0x10c   : > { %v1980_v16 = vpop.eup %1979  ;;  %v564_v17 = vadd.f32 1e-05, %v560_v14 }
 0x10d   : > { %v568_v19 = vmul.f32 %v1980_v16, %v563_v5  ;;  %1983 = vrsqrt.f32 %v566_v15  ;;  %v1982_v21 = vpop.eup %1981  ;;  %vm574_vm1 = vweird.f32 %v1980_v16  ;;  %vm603_vm7 = vweird.f32 %v566_v15 }
 0x10e   : > { %1985 = vrsqrt.f32 %v564_v17  ;;  %v588_v29 = vmul.f32 %v1982_v21, %v2231_v10  ;;  %vm575_vm3 = vmor %vm573_vm2, %vm574_vm1  ;;  %vm583_vm5 = vweird.f32 %v564_v17  ;;  %vm594_vm10 = vweird.f32 %v1982_v21 }
 0x10f   : > { %v569_v20 = vmul.f32 %v1980_v16, %v568_v19  ;;  %vm595_vm12 = vmor %vm593_vm9, %vm594_vm10 }
 0x110   : > { %v589_v35 = vmul.f32 %v1982_v21, %v588_v29 }
 0x111   : > { %v570_v22 = vmul.f32 0.5, %v569_v20 }
 0x112   : > { %v590_v48 = vmul.f32 0.5, %v589_v35 }
 0x113   : > { %v1984_v27 = vpop.eup %1983  ;;  %v571_v28 = vsub.f32 1.5, %v570_v22 }
 0x114   : > { %v1986_v30 = vpop.eup %1985  ;;  %v598_v31 = vmul.f32 %v1984_v27, %v566_v15  ;;  %vm604_vm8 = vweird.f32 %v1984_v27 }
 0x115   : > { %v572_v32 = vmul.f32 %v1980_v16, %v571_v28  ;;  %v578_v33 = vmul.f32 %v1986_v30, %v564_v17  ;;  %vm584_vm4 = vweird.f32 %v1986_v30  ;;  %vm605_vm11 = vmor %vm603_vm7, %vm604_vm8 }
 0x116   : > { %v599_v18 = vmul.f32 %v1984_v27, %v598_v31  ;;  %vm585_vm6 = vmor %vm583_vm5, %vm584_vm4 }
 0x117   : > { %v576_v34 = vsel %vm575_vm3, %v1980_v16, %v572_v32  ;;  %v579_v36 = vmul.f32 %v1986_v30, %v578_v33 }
 0x118   : > { %v600_v42 = vmul.f32 0.5, %v599_v18  ;;  %v607_v44 = vmul.f32 %v576_v34, %v2147_v25  ;;  %v608_v46 = vmul.f32 %v576_v34, %v2149_v26  ;;  %v591_v25 = vsub.f32 1.5, %v590_v48 }
 0x119   : > { %v580_v43 = vmul.f32 0.5, %v579_v36 }
 0x11a   : > { %v601_v51 = vsub.f32 1.5, %v600_v42  ;;  %v620_v53 = vmul.f32 %v616_v45, %v607_v44  ;;  %v621_v55 = vmul.f32 %v617_v47, %v608_v46  ;;  %v592_v2 = vmul.f32 %v1982_v21, %v591_v25 }
 0x11b   : > { %v581_v49 = vsub.f32 1.5, %v580_v43 }
 0x11c   : > { %v602_v59 = vmul.f32 %v1984_v27, %v601_v51  ;;  %v633_v61 = vadd.f32 %v629_v54, %v620_v53  ;;  %v634_v63 = vadd.f32 %v630_v56, %v621_v55  ;;  %v596_v14 = vsel %vm595_vm12, %v1982_v21, %v592_v2  ;;  %v931_v55 = vld [vmem:[%s2259_s25 + $0x8] sm:$0xff] }
 0x11d   : > { %v582_v52 = vmul.f32 %v1986_v30, %v581_v49  ;;  %v611_v17 = vmul.f32 %v596_v14, %v2142_v23  ;;  %v612_v19 = vmul.f32 %v596_v14, %v2145_v24  ;;  %v1971_v23 = vld [vmem:[%s2655_s5] ss:$0 sm:$0xff]  ;;  %v2016_v24 = vmov 0  }
 0x11e   : > { %v606_v5 = vsel %vm605_vm11, %v1984_v27, %v602_v59  ;;  %v641_v11 = vmax.f32 %v633_v61, 0.0  ;;  %v642_v13 = vmax.f32 %v634_v63, 0.0  ;;  %1969 = vset.pattern.permute.xlu2 %v2016_v24  ;;  %1968 = vset.pattern.permute.xlu1 %v2016_v24 }
 0x11f   : > { %v586_v26 = vsel %vm585_vm6, %v1986_v30, %v582_v52  ;;  %v613_v10 = vmul.f32 %v606_v5, %v2162_v37  ;;  %v614_v16 = vmul.f32 %v606_v5, %v2165_v38  ;;  %v624_v27 = vmul.f32 %v616_v45, %v611_v17  ;;  %1970 = vset.pattern.permute.xlu0 %v2016_v24  ;;  %v930_v17 = vld [vmem:[%s2259_s25] sm:$0xff]  ;;  %v1811_v24 = vld [vmem:[%s2658_s8 + $0x98] sm:$0xf] }
 0x120   : > { %v609_v57 = vmul.f32 %v586_v26, %v2168_v39  ;;  %v610_v58 = vmul.f32 %v586_v26, %v2171_v40  ;;  %v625_v28 = vmul.f32 %v617_v47, %v612_v19  ;;  %v933_v19 = vld [vmem:[%s2259_s25 + $0x18] sm:$0xff] }
 0x121   : > { %v626_v20 = vmul.f32 %v616_v45, %v613_v10  ;;  %v627_v22 = vmul.f32 %v617_v47, %v614_v16  ;;  %v637_v31 = vadd.f32 %v629_v54, %v624_v27  ;;  %v1931_v27 = vld [vmem:[%s2658_s8 + $0xb0] sm:$0xf0] }
 0x122   : > { %v622_v60 = vmul.f32 %v616_v45, %v609_v57  ;;  %v623_v62 = vmul.f32 %v617_v47, %v610_v58  ;;  %v638_v21 = vadd.f32 %v630_v56, %v625_v28  ;;  %v1930_v28 = vld [vmem:[%s2658_s8 + $0xac] sm:$0xf] }
 0x123   : > { %v639_v29 = vadd.f32 %v629_v54, %v626_v20  ;;  %v640_v30 = vadd.f32 %v630_v56, %v627_v22  ;;  %v645_v18 = vmax.f32 %v637_v31, 0.0  ;;  %v932_v20 = vld [vmem:[%s2259_s25 + $0x10] sm:$0xff]  ;;  %v1815_v22 = vld [vmem:[%s2658_s8 + $0xa8] sm:$0xf] }
 0x124   : > { %v635_v3 = vadd.f32 %v629_v54, %v622_v60  ;;  %v636_v4 = vadd.f32 %v630_v56, %v623_v62  ;;  %v646_v37 = vmax.f32 %v638_v21, 0.0  ;;  %v2017_v56 = vmov 128.0   ;;  %v1823_v31 = vld [vmem:[%s2658_s8 + $0xb0] sm:$0xf]  ;;  %v1932_v21 = vld [vmem:[%s2658_s8 + $0xb8] sm:$0xf0] }
 0x125   : > { %v647_v32 = vmax.f32 %v639_v29, 0.0  ;;  %v648_v33 = vmax.f32 %v640_v30, 0.0  ;;  %1987 = vrcp.f32 %v2017_v56  ;;  %v1816_v29 = vor.u32 %v1931_v27, %v1815_v22  ;;  %v1817_v30 = vld [vmem:[%s2658_s8 + $0xb4] sm:$0xf0]  ;;  %v1787_v56 = vld [vmem:[%s2658_s8 + $0x68] sm:$0xf] }
 0x126   : > { %v643_v12 = vmax.f32 %v635_v3, 0.0  ;;  %v644_v39 = vmax.f32 %v636_v4, 0.0 }
 0x127   : > { %v651_v34 = vpack.c.bf16 %v647_v32, %v645_v18  ;;  %v652_v38 = vpack.c.bf16 %v648_v33, %v646_v37  ;;  %v1820_v32 = vor.u32 %v1930_v28, %v1817_v30  ;;  %v2305_v33 = vor.u32 %v1932_v21, %v1823_v31  ;;  %1120 = vmatpush.bf16.msra.mxu2 %v1816_v29  ;;  %v1803_v18 = vld [vmem:[%s2658_s8 + $0x90] sm:$0xf]  ;;  %v1928_v37 = vld [vmem:[%s2658_s8 + $0x98] sm:$0xf0]  ;;  %v1743_v29 = vld [vmem:[%s2658_s8 + $0x18] sm:$0xf] }
 0x128   : > { %v649_v40 = vpack.c.bf16 %v643_v12, %v641_v11  ;;  %v650_v15 = vpack.c.bf16 %v644_v39, %v642_v13  ;;  %v1913_v30 = vld [vmem:[%s2658_s8 + $0x20] sm:$0xf0]  ;;  %v1912_v31 = vld [vmem:[%s2658_s8 + $0x1c] sm:$0xf] }
 0x129   : > { %1139 = vmatpush.bf16.msra.mxu3 %v1820_v32  ;;  %1158 = vmatpush.bf16.msrb.mxu0 %v2305_v33  ;;  %v1744_v21 = vor.u32 %v1913_v30, %v1743_v29  ;;  %v1745_v32 = vld [vmem:[%s2658_s8 + $0x24] sm:$0xf0] }
 0x12a   : > { %793 = vmatmul.bf16.vlgmr.msra.gmra.mxu0 %v649_v40  ;;  %812 = vmatmul.bf16.vlgmr.msra.gmra.mxu1 %v650_v15 }
 0x12b   : > { %v1988_v25 = vpop.eup %1987 }
 0x12c   : > { %v834_v26 = vmul.f32 128.0, %v1988_v25  ;;  %vm838_vm13 = vweird.f32 %v1988_v25 }
 0x12e   : > { %v835_v57 = vsub.f32 1.0, %v834_v26 }
 0x130   : > { %v836_v58 = vmul.f32 %v1988_v25, %v835_v57 }
 0x132   : > { %v837_v59 = vadd.f32 %v1988_v25, %v836_v58  ;;  %v1767_v58 = vld [vmem:[%s2658_s8 + $0x48] sm:$0xf] }
 0x134   : > { %v2262_v60 = vsel %vm838_vm13, %v1988_v25, %v837_v59  ;;  %v1923_v25 = vld [vmem:[%s2658_s8 + $0x70] sm:$0xf0] }
 0x135   : > { %v2368_v57 = vor.u32 %v1923_v25, %v1787_v56  ;;  %v1919_v59 = vld [vmem:[%s2658_s8 + $0x50] sm:$0xf0] }
 0x13a   : > { %798 = vmatmul.bf16.gmra.mxu0 %v651_v34  ;;  %817 = vmatmul.bf16.gmra.mxu1 %v652_v38  ;;  %v1927_v34 = vld [vmem:[%s2658_s8 + $0x94] sm:$0xf]  ;;  %v1804_v38 = vor.u32 %v1928_v37, %v1803_v18  ;;  %v1751_v18 = vld [vmem:[%s2658_s8 + $0x20] sm:$0xf]  ;;  %v1914_v37 = vld [vmem:[%s2658_s8 + $0x28] sm:$0xf0] }
 0x13c   : > { %1121 = vmatpush.bf16.msra.mxu2 %v1804_v38  ;;  %v1748_v38 = vor.u32 %v1912_v31, %v1745_v32 }
 0x1a7   : > { %v794_v35 = vpop.f32.mrf.mxu0  ;;  %v813_v36 = vpop.f32.mrf.mxu1 }
 0x1a8   : > { %v795_v41 = vadd.f32 %v1971_v23, %v794_v35  ;;  %v1929_v35 = vld [vmem:[%s2658_s8 + $0xa0] sm:$0xf0] }
 0x1aa   : > { %v814_v42 = vadd.f32 %v813_v36, %v795_v41  ;;  %v2326_v41 = vor.u32 %v1929_v35, %v1811_v24  ;;  %v1731_v24 = vld [vmem:[%s2658_s8] sm:$0xf]  ;;  %v1910_v35 = vld [vmem:[%s2658_s8 + $0x8] sm:$0xf0] }
 0x1ac   : > { %825 = vadd.xlane.f32.xlu2 %v814_v42  ;;  %1159 = vmatpush.bf16.msrb.mxu0 %v2326_v41 }
 0x1af   : > { %v796_v43 = vpop.f32.mrf.mxu0  ;;  %v815_v44 = vpop.f32.mrf.mxu1 }
 0x1b0   : > { %v797_v45 = vadd.f32 %v1971_v23, %v796_v43  ;;  %v1925_v43 = vld [vmem:[%s2658_s8 + $0x80] sm:$0xf0] }
 0x1b2   : > { %v816_v46 = vadd.f32 %v815_v44, %v797_v45  ;;  %v1924_v44 = vld [vmem:[%s2658_s8 + $0x7c] sm:$0xf] }
 0x1b4   : > { %827 = vadd.xlane.f32.xlu0 %v816_v46 }
 0x1b7   : > { %v799_v47 = vpop.f32.mrf.mxu0  ;;  %v818_v48 = vpop.f32.mrf.mxu1 }
 0x1b8   : > { %v800_v49 = vadd.f32 %v1971_v23, %v799_v47  ;;  %v1799_v47 = vld [vmem:[%s2658_s8 + $0x80] sm:$0xf] }
 0x1ba   : > { %v819_v50 = vadd.f32 %v818_v48, %v800_v49  ;;  %v1926_v48 = vld [vmem:[%s2658_s8 + $0x88] sm:$0xf0] }
 0x1bc   : > { %829 = vadd.xlane.f32.xlu1 %v819_v50 }
 0x1bf   : > { %v801_v51 = vpop.f32.mrf.mxu0  ;;  %v820_v53 = vpop.f32.mrf.mxu1 }
 0x1c0   : > { %v802_v52 = vadd.f32 %v1971_v23, %v801_v51  ;;  %v1805_v23 = vld [vmem:[%s2658_s8 + $0x9c] sm:$0xf0] }
 0x1c1   : > { %v1808_v36 = vor.u32 %v1927_v34, %v1805_v23  ;;  %v1779_v51 = vld [vmem:[%s2658_s8 + $0x60] sm:$0xf]  ;;  %v2432_v23 = vor.u32 %v1914_v37, %v1751_v18 }
 0x1c2   : > { %v821_v54 = vadd.f32 %v820_v53, %v802_v52  ;;  %v1922_v52 = vld [vmem:[%s2658_s8 + $0x68] sm:$0xf0]  ;;  %v1921_v53 = vld [vmem:[%s2658_s8 + $0x64] sm:$0xf] }
 0x1c3   : > { %1140 = vmatpush.bf16.msra.mxu3 %v1808_v36  ;;  %v1909_v36 = vld [vmem:[%s2658_s8 + $0x4] sm:$0xf] }
 0x1c4   : > { %831 = vadd.xlane.f32.xlu2 %v821_v54 }
 0x1dc   : > { %941 = vperm.xlu2 %1969, %v931_v55   ;;  %v1781_v55 = vld [vmem:[%s2658_s8 + $0x6c] sm:$0xf0] }
 0x1dd   : > { %v1784_v26 = vor.u32 %v1921_v53, %v1781_v55 }
 0x21f   : > { %v826_v61 = vpop.xlane.xlu2 %825 }
 0x220   : > { %v840_v62 = vmul.f32 %v2262_v60, %v826_v61  ;;  %v1918_v61 = vld [vmem:[%s2658_s8 + $0x4c] sm:$0xf] }
 0x222   : > { %v2265_v63 = vsub.f32 %v814_v42, %v840_v62  ;;  %v1791_v42 = vld [vmem:[%s2658_s8 + $0x78] sm:$0xf]  ;;  %v1768_v62 = vor.u32 %v1919_v59, %v1767_v58 }
 0x223   : > { %v1792_v45 = vor.u32 %v1925_v43, %v1791_v42  ;;  %v1732_v42 = vor.u32 %v1910_v35, %v1731_v24  ;;  %v1733_v43 = vld [vmem:[%s2658_s8 + $0xc] sm:$0xf0] }
 0x224   : > { %v848_v2 = vmul.f32 %v2265_v63, %v2265_v63 }
 0x225   : > { %1122 = vmatpush.bf16.msra.mxu2 %v1792_v45  ;;  %v1911_v45 = vld [vmem:[%s2658_s8 + $0x10] sm:$0xf0] }
 0x226   : > { %852 = vadd.xlane.f32.xlu0 %v848_v2  ;;  %v1769_v2 = vld [vmem:[%s2658_s8 + $0x54] sm:$0xf0] }
 0x227   : > { %v828_v3 = vpop.xlane.xlu0 %827 }
 0x228   : > { %v841_v4 = vmul.f32 %v2262_v60, %v828_v3  ;;  %v1775_v3 = vld [vmem:[%s2658_s8 + $0x50] sm:$0xf] }
 0x22a   : > { %v2270_v5 = vsub.f32 %v816_v46, %v841_v4  ;;  %v1793_v46 = vld [vmem:[%s2658_s8 + $0x84] sm:$0xf0]  ;;  %v1920_v4 = vld [vmem:[%s2658_s8 + $0x58] sm:$0xf0] }
 0x22b   : > { %v1796_v49 = vor.u32 %v1924_v44, %v1793_v46  ;;  %v1739_v44 = vld [vmem:[%s2658_s8 + $0x8] sm:$0xf]  ;;  %v1736_v46 = vor.u32 %v1909_v36, %v1733_v43 }
 0x22c   : > { %v849_v11 = vmul.f32 %v2270_v5, %v2270_v5 }
 0x22d   : > { %1141 = vmatpush.bf16.msra.mxu3 %v1796_v49 }
 0x22e   : > { %854 = vadd.xlane.f32.xlu1 %v849_v11  ;;  %v1772_v11 = vor.u32 %v1918_v61, %v1769_v2 }
 0x22f   : > { %v830_v12 = vpop.xlane.xlu1 %829 }
 0x230   : > { %v842_v13 = vmul.f32 %v2262_v60, %v830_v12  ;;  %v2389_v12 = vor.u32 %v1920_v4, %v1775_v3 }
 0x231   : > { %1142 = vmatpush.bf16.msra.mxu3 %v1784_v26 }
 0x232   : > { %v2275_v39 = vsub.f32 %v819_v50, %v842_v13  ;;  %v2347_v50 = vor.u32 %v1926_v48, %v1799_v47  ;;  %v1755_v13 = vld [vmem:[%s2658_s8 + $0x30] sm:$0xf]  ;;  %v2453_v47 = vor.u32 %v1911_v45, %v1739_v44 }
 0x234   : > { %v850_v14 = vmul.f32 %v2275_v39, %v2275_v39  ;;  %1160 = vmatpush.bf16.msrb.mxu0 %v2347_v50 }
 0x235   : > { %1143 = vmatpush.bf16.msra.mxu3 %v1772_v11 }
 0x236   : > { %856 = vadd.xlane.f32.xlu2 %v850_v14  ;;  %v1916_v14 = vld [vmem:[%s2658_s8 + $0x38] sm:$0xf0] }
 0x237   : > { %v832_v40 = vpop.xlane.xlu2 %831 }
 0x238   : > { %v843_v15 = vmul.f32 %v2262_v60, %v832_v40  ;;  %1161 = vmatpush.bf16.msrb.mxu0 %v2368_v57  ;;  %v1915_v40 = vld [vmem:[%s2658_s8 + $0x34] sm:$0xf] }
 0x23a   : > { %v2280_v10 = vsub.f32 %v821_v54, %v843_v15  ;;  %v1780_v54 = vor.u32 %v1922_v52, %v1779_v51  ;;  %v1756_v15 = vor.u32 %v1916_v14, %v1755_v13  ;;  %v1972_v13 = vld [vmem:[%s2656_s6] ss:$0 sm:$0xff] }
 0x23c   : > { %v851_v16 = vmul.f32 %v2280_v10, %v2280_v10  ;;  %1123 = vmatpush.bf16.msra.mxu2 %v1780_v54  ;;  %1162 = vmatpush.bf16.msrb.mxu0 %v2389_v12 }
 0x23e   : > { %858 = vadd.xlane.f32.xlu0 %v851_v16  ;;  %v1757_v16 = vld [vmem:[%s2658_s8 + $0x3c] sm:$0xf0] }
 0x23f   : > { %v2455_v48 = vpop.permute.xlu2 %941 }
 0x240   : > { %1124 = vmatpush.bf16.msra.mxu2 %v1768_v62 }
 0x244   : > { %1125 = vmatpush.bf16.msra.mxu2 %v1756_v15 }
 0x247   : > { %936 = vperm.xlu1 %1968, %v930_v17   ;;  %v1763_v17 = vld [vmem:[%s2658_s8 + $0x38] sm:$0xf] }
 0x248   : > { %1126 = vmatpush.bf16.msra.mxu2 %v1744_v21 }
 0x24c   : > { %1127 = vmatpush.bf16.msra.mxu2 %v1732_v42 }
 0x24e   : > { %951 = vperm.xlu2 %1969, %v933_v19   ;;  %v1917_v19 = vld [vmem:[%s2658_s8 + $0x40] sm:$0xf0] }
 0x24f   : > { %v2410_v22 = vor.u32 %v1917_v19, %v1763_v17 }
 0x251   : > { %1163 = vmatpush.bf16.msrb.mxu0 %v2410_v22 }
 0x252   : > { %946 = vperm.xlu0 %1970, %v932_v20   ;;  %v1760_v20 = vor.u32 %v1915_v40, %v1757_v16 }
 0x254   : > { %1144 = vmatpush.bf16.msra.mxu3 %v1760_v20 }
 0x255   : > { %1164 = vmatpush.bf16.msrb.mxu0 %v2432_v23 }
 0x258   : > { %1145 = vmatpush.bf16.msra.mxu3 %v1748_v38 }
 0x259   : > { %1165 = vmatpush.bf16.msrb.mxu0 %v2453_v47 }
 0x25c   : > { %1146 = vmatpush.bf16.msra.mxu3 %v1736_v46 }
 0x260   : > { %1949 = vmatpush.bf16.msrb.mxu3 %v2305_v33 }
 0x264   : > { %1950 = vmatpush.bf16.msrb.mxu3 %v2326_v41 }
 0x268   : > { %1951 = vmatpush.bf16.msrb.mxu3 %v2347_v50 }
 0x26c   : > { %1952 = vmatpush.bf16.msrb.mxu3 %v2368_v57  ;;  %v1973_v57 = vld [vmem:[%s2657_s7] ss:$0 sm:$0xff] }
 0x270   : > { %1953 = vmatpush.bf16.msrb.mxu3 %v2389_v12 }
 0x274   : > { %1954 = vmatpush.bf16.msrb.mxu3 %v2410_v22 }
 0x278   : > { %1955 = vmatpush.bf16.msrb.mxu3 %v2432_v23 }
 0x27c   : > { %1956 = vmatpush.bf16.msrb.mxu3 %v2453_v47 }
 0x299   : > { %v853_v27 = vpop.xlane.xlu0 %852 }
 0x29a   : > { %v860_v28 = vmul.f32 %v853_v27, %v2262_v60 }
 0x29c   : > { %v864_v34 = vadd.f32 1e-05, %v860_v28 }
 0x29e   : > { %1989 = vrsqrt.f32 %v864_v34  ;;  %vm874_vm15 = vweird.f32 %v864_v34 }
 0x2a1   : > { %v855_v49 = vpop.xlane.xlu1 %854 }
 0x2a2   : > { %v861_v51 = vmul.f32 %v855_v49, %v2262_v60 }
 0x2a4   : > { %v1990_v52 = vpop.eup %1989  ;;  %v865_v53 = vadd.f32 1e-05, %v861_v51 }
 0x2a5   : > { %v869_v54 = vmul.f32 %v1990_v52, %v864_v34  ;;  %vm875_vm14 = vweird.f32 %v1990_v52 }
 0x2a6   : > { %1991 = vrsqrt.f32 %v865_v53  ;;  %vm876_vm0 = vmor %vm874_vm15, %vm875_vm14  ;;  %vm884_vm2 = vweird.f32 %v865_v53 }
 0x2a7   : > { %v870_v55 = vmul.f32 %v1990_v52, %v869_v54 }
 0x2a9   : > { %v871_v56 = vmul.f32 0.5, %v870_v55  ;;  %v857_v25 = vpop.xlane.xlu2 %856 }
 0x2aa   : > { %v862_v26 = vmul.f32 %v857_v25, %v2262_v60 }
 0x2ab   : > { %v872_v58 = vsub.f32 1.5, %v871_v56 }
 0x2ac   : > { %v1992_v59 = vpop.eup %1991  ;;  %v866_v61 = vadd.f32 1e-05, %v862_v26 }
 0x2ad   : > { %v873_v62 = vmul.f32 %v1990_v52, %v872_v58  ;;  %v879_v33 = vmul.f32 %v1992_v59, %v865_v53  ;;  %vm885_vm1 = vweird.f32 %v1992_v59 }
 0x2ae   : > { %1993 = vrsqrt.f32 %v866_v61  ;;  %vm886_vm3 = vmor %vm884_vm2, %vm885_vm1  ;;  %vm894_vm5 = vweird.f32 %v866_v61 }
 0x2af   : > { %v880_v2 = vmul.f32 %v1992_v59, %v879_v33  ;;  %v877_v3 = vsel %vm876_vm0, %v1990_v52, %v873_v62  ;;  %v1177_v62 = vlaneseq }
 0x2b0   : > { %v908_v50 = vmul.f32 %v877_v3, %v2265_v63 }
 0x2b1   : > { %v881_v41 = vmul.f32 0.5, %v880_v2  ;;  %v859_v4 = vpop.xlane.xlu0 %858  ;;  %v952_v54 = vpop.permute.xlu2 %951 }
 0x2b2   : > { %v863_v11 = vmul.f32 %v859_v4, %v2262_v60  ;;  %v915_v19 = vmul.f32 %v1972_v13, %v908_v50 }
 0x2b3   : > { %v882_v14 = vsub.f32 1.5, %v881_v41 }
 0x2b4   : > { %v1994_v40 = vpop.eup %1993  ;;  %v867_v15 = vadd.f32 1e-05, %v863_v11  ;;  %v922_v29 = vadd.f32 %v1973_v57, %v915_v19 }
 0x2b5   : > { %v883_v16 = vmul.f32 %v1992_v59, %v882_v14  ;;  %v889_v17 = vmul.f32 %v1994_v40, %v866_v61  ;;  %vm895_vm4 = vweird.f32 %v1994_v40 }
 0x2b6   : > { %1995 = vrsqrt.f32 %v867_v15  ;;  %vm896_vm6 = vmor %vm894_vm5, %vm895_vm4  ;;  %v926_v38 = vmax.f32 %v922_v29, 0.0  ;;  %vm904_vm8 = vweird.f32 %v867_v15 }
 0x2b7   : > { %v887_v20 = vsel %vm886_vm3, %v1992_v59, %v883_v16  ;;  %v890_v27 = vmul.f32 %v1994_v40, %v889_v17 }
 0x2b8   : > { %v909_v63 = vmul.f32 %v887_v20, %v2270_v5 }
 0x2b9   : > { %v891_v28 = vmul.f32 0.5, %v890_v27  ;;  %v937_v37 = vpop.permute.xlu1 %936  ;;  %v1974_v27 = vld [vmem:[%s2659_s9] ss:$0 sm:$0xff] }
 0x2ba   : > { %v916_v12 = vmul.f32 %v1972_v13, %v909_v63  ;;  %v954_v35 = vmul.f32 %v937_v37, %v926_v38 }
 0x2bb   : > { %v892_v30 = vsub.f32 1.5, %v891_v28 }
 0x2bc   : > { %v1996_v31 = vpop.eup %1995  ;;  %v923_v21 = vadd.f32 %v1973_v57, %v916_v12 }
 0x2bd   : > { %v893_v32 = vmul.f32 %v1994_v40, %v892_v30  ;;  %v899_v18 = vmul.f32 %v1996_v31, %v867_v15  ;;  %vm905_vm7 = vweird.f32 %v1996_v31 }
 0x2be   : > { %v927_v34 = vmax.f32 %v923_v21, 0.0  ;;  %vm906_vm9 = vmor %vm904_vm8, %vm905_vm7 }
 0x2bf   : > { %v900_v24 = vmul.f32 %v1996_v31, %v899_v18  ;;  %v897_v22 = vsel %vm896_vm6, %v1994_v40, %v893_v32 }
 0x2c0   : > { %v955_v5 = vmul.f32 %v2455_v48, %v927_v34  ;;  %v910_v36 = vmul.f32 %v897_v22, %v2275_v39 }
 0x2c1   : > { %v901_v42 = vmul.f32 0.5, %v900_v24 }
 0x2c2   : > { %v958_v23 = vpack.c.bf16 %v955_v5, %v954_v35  ;;  %v917_v44 = vmul.f32 %v1972_v13, %v910_v36 }
 0x2c3   : > { %v902_v43 = vsub.f32 1.5, %v901_v42 }
 0x2c4   : > { %1128 = vmatmul.bf16.vlgmr.msra.gmra.mxu2 %v958_v23  ;;  %1147 = vmatmul.bf16.vlgmr.msra.gmra.mxu3 %v958_v23  ;;  %v924_v47 = vadd.f32 %v1973_v57, %v917_v44  ;;  %v947_v53 = vpop.permute.xlu0 %946 }
 0x2c5   : > { %v903_v45 = vmul.f32 %v1996_v31, %v902_v43  ;;  %1166 = vmatmul.bf16.vlgmr.msrb.gmra.mxu0 %v958_v23 }
 0x2c6   : > { %v928_v52 = vmax.f32 %v924_v47, 0.0 }
 0x2c7   : > { %v907_v46 = vsel %vm906_vm9, %v1996_v31, %v903_v45 }
 0x2c8   : > { %v911_v49 = vmul.f32 %v907_v46, %v2280_v10  ;;  %v956_v56 = vmul.f32 %v947_v53, %v928_v52  ;;  %v1178_v10 = vshrl.u32 %v1177_v62, 7 }
 0x2ca   : > { %v918_v51 = vmul.f32 %v1972_v13, %v911_v49  ;;  %v1186_v41 = vand.u32 31, %v1178_v10  ;;  %vm1234_vm11 = vcmp.lt.s32.totalorder %v1178_v10, 2  ;;  %vm1279_vm12 = vcmp.lt.s32.totalorder %v1178_v10, 6 }
 0x2cb   : > { %v1181_v63 = vadd.s32 24, %v1178_v10 }
 0x2cc   : > { %v925_v48 = vadd.f32 %v1973_v57, %v918_v51  ;;  %v1239_v4 = vadd.s32 4294967294, %v1186_v41  ;;  %v1947_v41 = vld [vmem:[%s2662_s12 + $0x74] sm:$0xf] }
 0x2cd   : > { %v1207_v32 = vand.u32 31, %v1181_v63  ;;  %v1867_v63 = vld [vmem:[%s2662_s12 + $0x50] sm:$0xf] }
 0x2ce   : > { %v929_v39 = vmax.f32 %v925_v48, 0.0  ;;  %vm1243_vm10 = vcmp.ge.s32.totalorder %v1239_v4, 0  ;;  %v1885_v4 = vld [vmem:[%s2662_s12 + $0x78] sm:$0xf0] }
 0x2cf   : > { %v1287_v24 = vadd.s32 2, %v1207_v32 }
 0x2d0   : > { %v957_v55 = vmul.f32 %v952_v54, %v929_v39 }
 0x2d1   : > { %vm1295_vm13 = vcmp.lt.s32.totalorder %v1287_v24, 32  ;;  %v1851_v24 = vld [vmem:[%s2662_s12 + $0x30] sm:$0xf] }
 0x2d2   : > { %v959_v25 = vpack.c.bf16 %v957_v55, %v956_v56 }
 0x2d4   : > { %1133 = vmatmul.bf16.gmra.mxu2 %v959_v25  ;;  %1152 = vmatmul.bf16.gmra.mxu3 %v959_v25 }
 0x2e4   : > { %1171 = vmatmul.bf16.vlgmr.msrb.gmra.mxu3 %v959_v25 }
 0x342   : > { %v1167_v33 = vpop.f32.mrf.mxu0 }
 0x343   : > { %v1275_v57 = vrot.slane %v1167_v33, 2 }
 0x347   : > { %v1129_v26 = vpop.f32.mrf.mxu2  ;;  %v1148_v58 = vpop.f32.mrf.mxu3 }
 0x348   : > { %v1230_v14 = vrot.slane %v1129_v26, 6 }
 0x34a   : > { %v1169_v11 = vpop.f32.mrf.mxu0 }
 0x34b   : > { %v1276_v15 = vrot.slane %v1169_v11, 2  ;;  %v1883_v11 = vld [vmem:[%s2662_s12 + $0x70] sm:$0xf] }
 0x34d   : > { %v1282_v28 = vsel %vm1279_vm12, %v1275_v57, %v1276_v15 }
 0x34f   : > { %v1131_v59 = vpop.f32.mrf.mxu2  ;;  %v1150_v61 = vpop.f32.mrf.mxu3 }
 0x350   : > { %v1231_v16 = vrot.slane %v1131_v59, 6 }
 0x352   : > { %v1237_v12 = vsel %vm1234_vm11, %v1230_v14, %v1231_v16 }
 0x353   : > { %v1272_v18 = vadd.f32 %v1237_v12, %v1150_v61  ;;  %v1944_v12 = vld [vmem:[%s2662_s12 + $0x54] sm:$0xf0] }
 0x357   : > { %v1134_v2 = vpop.f32.mrf.mxu2  ;;  %v1153_v3 = vpop.f32.mrf.mxu3 }
 0x358   : > { %v1232_v37 = vrot.slane %v1134_v2, 6 }
 0x35a   : > { %v1236_v5 = vsel %vm1234_vm11, %v1231_v16, %v1232_v37  ;;  %v1875_v16 = vld [vmem:[%s2662_s12 + $0x60] sm:$0xf] }
 0x35b   : > { %v1273_v23 = vadd.f32 %v1236_v5, %v1153_v3  ;;  %v1940_v5 = vld [vmem:[%s2662_s12 + $0x34] sm:$0xf0] }
 0x35f   : > { %v1136_v13 = vpop.f32.mrf.mxu2  ;;  %v1155_v50 = vpop.f32.mrf.mxu3 }
 0x360   : > { %v1233_v40 = vrot.slane %v1136_v13, 6  ;;  %v1888_v13 = vor.u32 %v1947_v41, %v1885_v4 }
 0x362   : > { %v1238_v17 = vsel %vm1234_vm11, %v1233_v40, %v1230_v14  ;;  %v1235_v35 = vsel %vm1234_vm11, %v1232_v37, %v1233_v40  ;;  %1547 = vmatpush.bf16.msrb.mxu2 %v1888_v13  ;;  %v1945_v40 = vld [vmem:[%s2662_s12 + $0x64] sm:$0xf] }
 0x363   : > { %v1263_v19 = vsel %vm1243_vm10, %v1238_v17, 0.0  ;;  %v1274_v43 = vadd.f32 %v1235_v35, %v1155_v50  ;;  %v1948_v50 = vld [vmem:[%s2662_s12 + $0x74] sm:$0xf0]  ;;  %v1852_v35 = vor.u32 %v1940_v5, %v1851_v24  ;;  %v1976_v24 = vld [vmem:[%s2661_s11] ss:$0 sm:$0xff] }
 0x364   : > { %v1271_v20 = vadd.f32 %v1263_v19, %v1148_v58  ;;  %v1884_v14 = vor.u32 %v1948_v50, %v1883_v11 }
 0x366   : > { %v1312_v29 = vadd.f32 %v1282_v28, %v1271_v20  ;;  %1528 = vmatpush.bf16.msrb.mxu1 %v1884_v14  ;;  %v1943_v20 = vld [vmem:[%s2662_s12 + $0x54] sm:$0xf] }
 0x367   : > { %v1172_v30 = vpop.f32.mrf.mxu3 }
 0x368   : > { %v1277_v31 = vrot.slane %v1172_v30, 2  ;;  %v1320_v21 = vadd.f32 %v1974_v27, %v1312_v29  ;;  %v1868_v29 = vor.u32 %v1944_v12, %v1867_v63  ;;  %v1941_v30 = vld [vmem:[%s2662_s12 + $0x44] sm:$0xf] }
 0x36a   : > { %1326 = vadd.xlane.f32.xlu1 %v1320_v21  ;;  %v1281_v34 = vsel %vm1279_vm12, %v1276_v15, %v1277_v31  ;;  %v1877_v15 = vld [vmem:[%s2662_s12 + $0x68] sm:$0xf0] }
 0x36b   : > { %v1313_v38 = vadd.f32 %v1281_v34, %v1272_v18  ;;  %v1880_v17 = vor.u32 %v1945_v40, %v1877_v15  ;;  %v1942_v18 = vld [vmem:[%s2662_s12 + $0x44] sm:$0xf0]  ;;  %v1939_v34 = vld [vmem:[%s2662_s12 + $0x34] sm:$0xf] }
 0x36d   : > { %v1321_v22 = vadd.f32 %v1974_v27, %v1313_v38  ;;  %1548 = vmatpush.bf16.msrb.mxu2 %v1880_v17  ;;  %v1853_v38 = vld [vmem:[%s2662_s12 + $0x38] sm:$0xf0] }
 0x36f   : > { %1328 = vadd.xlane.f32.xlu2 %v1321_v22  ;;  %v1174_v36 = vpop.f32.mrf.mxu3 }
 0x370   : > { %v1278_v42 = vrot.slane %v1174_v36, 2  ;;  %v1937_v36 = vld [vmem:[%s2662_s12 + $0x24] sm:$0xf] }
 0x372   : > { %v1280_v44 = vsel %vm1279_vm12, %v1277_v31, %v1278_v42  ;;  %v1283_v45 = vsel %vm1279_vm12, %v1278_v42, %v1275_v57  ;;  %v1946_v57 = vld [vmem:[%s2662_s12 + $0x64] sm:$0xf0]  ;;  %v1861_v31 = vld [vmem:[%s2662_s12 + $0x48] sm:$0xf0] }
 0x373   : > { %v1314_v46 = vadd.f32 %v1280_v44, %v1273_v23  ;;  %v1311_v49 = vsel %vm1295_vm13, %v1283_v45, 0.0  ;;  %v1876_v19 = vor.u32 %v1946_v57, %v1875_v16  ;;  %v1864_v32 = vor.u32 %v1941_v30, %v1861_v31  ;;  %v1845_v42 = vld [vmem:[%s2662_s12 + $0x28] sm:$0xf0]  ;;  %v1843_v23 = vld [vmem:[%s2662_s12 + $0x20] sm:$0xf] }
 0x374   : > { %v1315_v47 = vadd.f32 %v1311_v49, %v1274_v43  ;;  %v1848_v43 = vor.u32 %v1937_v36, %v1845_v42  ;;  %v1938_v44 = vld [vmem:[%s2662_s12 + $0x24] sm:$0xf0]  ;;  %v1837_v49 = vld [vmem:[%s2662_s12 + $0x18] sm:$0xf0]  ;;  %v1975_v30 = vld [vmem:[%s2660_s10] ss:$0 sm:$0xff] }
 0x375   : > { %v1322_v51 = vadd.f32 %v1974_v27, %v1314_v46  ;;  %1529 = vmatpush.bf16.msrb.mxu1 %v1876_v19  ;;  %v1844_v45 = vor.u32 %v1938_v44, %v1843_v23  ;;  %v1935_v46 = vld [vmem:[%s2662_s12 + $0x14] sm:$0xf] }
 0x376   : > { %v1323_v48 = vadd.f32 %v1974_v27, %v1315_v47  ;;  %v1869_v27 = vld [vmem:[%s2662_s12 + $0x58] sm:$0xf0]  ;;  %v1835_v47 = vld [vmem:[%s2662_s12 + $0x10] sm:$0xf] }
 0x377   : > { %1330 = vadd.xlane.f32.xlu0 %v1322_v51  ;;  %v1872_v28 = vor.u32 %v1943_v20, %v1869_v27 }
 0x378   : > { %1332 = vadd.xlane.f32.xlu1 %v1323_v48 }
 0x379   : > { %1549 = vmatpush.bf16.msrb.mxu2 %v1872_v28  ;;  %1530 = vmatpush.bf16.msrb.mxu1 %v1868_v29 }
 0x37d   : > { %1550 = vmatpush.bf16.msrb.mxu2 %v1864_v32 }
 0x3dd   : > { %v1327_v52 = vpop.xlane.xlu1 %1326 }
 0x3de   : > { %v1334_v53 = vmul.f32 %v1327_v52, %v2262_v60 }
 0x3e0   : > { %v2492_v39 = vsub.f32 %v1320_v21, %v1334_v53  ;;  %v1859_v21 = vld [vmem:[%s2662_s12 + $0x40] sm:$0xf] }
 0x3e1   : > { %v1860_v37 = vor.u32 %v1942_v18, %v1859_v21 }
 0x3e2   : > { %v1329_v54 = vpop.xlane.xlu2 %1328  ;;  %v1342_v55 = vmul.f32 %v2492_v39, %v2492_v39 }
 0x3e3   : > { %v1335_v56 = vmul.f32 %v1329_v54, %v2262_v60  ;;  %1531 = vmatpush.bf16.msrb.mxu1 %v1860_v37 }
 0x3e4   : > { %1346 = vadd.xlane.f32.xlu2 %v1342_v55  ;;  %v1933_v55 = vld [vmem:[%s2662_s12 + $0x4] sm:$0xf] }
 0x3e5   : > { %v2497_v25 = vsub.f32 %v1321_v22, %v1335_v56  ;;  %v1856_v22 = vor.u32 %v1939_v34, %v1853_v38  ;;  %v1829_v56 = vld [vmem:[%s2662_s12 + $0x8] sm:$0xf0] }
 0x3e7   : > { %v1343_v26 = vmul.f32 %v2497_v25, %v2497_v25  ;;  %1551 = vmatpush.bf16.msrb.mxu2 %v1856_v22  ;;  %1532 = vmatpush.bf16.msrb.mxu1 %v1852_v35 }
 0x3e9   : > { %1348 = vadd.xlane.f32.xlu1 %v1343_v26  ;;  %v1827_v26 = vld [vmem:[%s2662_s12] sm:$0xf] }
 0x3ea   : > { %v1331_v58 = vpop.xlane.xlu0 %1330 }
 0x3eb   : > { %v1336_v59 = vmul.f32 %v1331_v58, %v2262_v60  ;;  %v1333_v61 = vpop.xlane.xlu1 %1332  ;;  %1552 = vmatpush.bf16.msrb.mxu2 %v1848_v43  ;;  %1533 = vmatpush.bf16.msrb.mxu1 %v1844_v45  ;;  %v1832_v58 = vor.u32 %v1933_v55, %v1829_v56 }
 0x3ec   : > { %v1337_v62 = vmul.f32 %v1333_v61, %v2262_v60 }
 0x3ed   : > { %v2503_v33 = vsub.f32 %v1322_v51, %v1336_v59  ;;  %v1840_v51 = vor.u32 %v1935_v46, %v1837_v49  ;;  %v1934_v59 = vld [vmem:[%s2662_s12 + $0x4] sm:$0xf0] }
 0x3ee   : > { %v2505_v10 = vsub.f32 %v1323_v48, %v1337_v62  ;;  %v1936_v48 = vld [vmem:[%s2662_s12 + $0x14] sm:$0xf0]  ;;  %v1828_v62 = vor.u32 %v1934_v59, %v1827_v26 }
 0x3ef   : > { %v1344_v2 = vmul.f32 %v2503_v33, %v2503_v33  ;;  %v1836_v52 = vor.u32 %v1936_v48, %v1835_v47  ;;  %1553 = vmatpush.bf16.msrb.mxu2 %v1840_v51 }
 0x3f0   : > { %v1345_v3 = vmul.f32 %v2505_v10, %v2505_v10 }
 0x3f1   : > { %1350 = vadd.xlane.f32.xlu2 %v1344_v2  ;;  %1534 = vmatpush.bf16.msrb.mxu1 %v1836_v52 }
 0x3f2   : > { %1352 = vadd.xlane.f32.xlu1 %v1345_v3 }
 0x3f3   : > { %1554 = vmatpush.bf16.msrb.mxu2 %v1832_v58 }
 0x3f5   : > { %1535 = vmatpush.bf16.msrb.mxu1 %v1828_v62 }
 0x457   : > { %v1347_v53 = vpop.xlane.xlu2 %1346 }
 0x458   : > { %v1354_v54 = vmul.f32 %v1347_v53, %v2262_v60 }
 0x45a   : > { %v1358_v61 = vadd.f32 1e-05, %v1354_v54 }
 0x45c   : > { %1997 = vrsqrt.f32 %v1358_v61  ;;  %v1349_v2 = vpop.xlane.xlu1 %1348  ;;  %vm1368_vm15 = vweird.f32 %v1358_v61 }
 0x45d   : > { %v1355_v3 = vmul.f32 %v1349_v2, %v2262_v60 }
 0x45f   : > { %v1359_v41 = vadd.f32 1e-05, %v1355_v3 }
 0x461   : > { %1999 = vrsqrt.f32 %v1359_v41  ;;  %vm1378_vm2 = vweird.f32 %v1359_v41 }
 0x462   : > { %v1998_v4 = vpop.eup %1997 }
 0x463   : > { %v1363_v11 = vmul.f32 %v1998_v4, %v1358_v61  ;;  %vm1369_vm14 = vweird.f32 %v1998_v4 }
 0x464   : > { %v1351_v13 = vpop.xlane.xlu2 %1350  ;;  %vm1370_vm0 = vmor %vm1368_vm15, %vm1369_vm14 }
 0x465   : > { %v1364_v50 = vmul.f32 %v1998_v4, %v1363_v11  ;;  %v1356_v14 = vmul.f32 %v1351_v13, %v2262_v60  ;;  %v1353_v40 = vpop.xlane.xlu1 %1352 }
 0x466   : > { %v1357_v15 = vmul.f32 %v1353_v40, %v2262_v60 }
 0x467   : > { %v2000_v16 = vpop.eup %1999  ;;  %v1365_v17 = vmul.f32 0.5, %v1364_v50  ;;  %v1360_v57 = vadd.f32 1e-05, %v1356_v14 }
 0x468   : > { %v1373_v19 = vmul.f32 %v2000_v16, %v1359_v41  ;;  %v1361_v20 = vadd.f32 1e-05, %v1357_v15  ;;  %vm1379_vm1 = vweird.f32 %v2000_v16 }
 0x469   : > { %v1366_v27 = vsub.f32 1.5, %v1365_v17  ;;  %2001 = vrsqrt.f32 %v1360_v57  ;;  %vm1380_vm3 = vmor %vm1378_vm2, %vm1379_vm1  ;;  %vm1388_vm6 = vweird.f32 %v1360_v57 }
 0x46a   : > { %v1374_v63 = vmul.f32 %v2000_v16, %v1373_v19  ;;  %2003 = vrsqrt.f32 %v1361_v20  ;;  %vm1398_vm8 = vweird.f32 %v1361_v20 }
 0x46b   : > { %v1367_v28 = vmul.f32 %v1998_v4, %v1366_v27 }
 0x46c   : > { %v1375_v12 = vmul.f32 0.5, %v1374_v63 }
 0x46d   : > { %v1371_v29 = vsel %vm1370_vm0, %v1998_v4, %v1367_v28  ;;  %v2005_v4 = vld [vmem:[%s2109_s19] sm:$0xff] }
 0x46e   : > { %v1402_v60 = vmul.f32 %v1371_v29, %v2492_v39  ;;  %v1376_v31 = vsub.f32 1.5, %v1375_v12 }
 0x46f   : > { %v2002_v21 = vpop.eup %2001 }
 0x470   : > { %v2004_v32 = vpop.eup %2003  ;;  %v1377_v18 = vmul.f32 %v2000_v16, %v1376_v31  ;;  %v1383_v37 = vmul.f32 %v2002_v21, %v1360_v57  ;;  %v1409_v38 = vmul.f32 %v1975_v30, %v1402_v60  ;;  %vm1389_vm4 = vweird.f32 %v2002_v21 }
 0x471   : > { %v1393_v34 = vmul.f32 %v2004_v32, %v1361_v20  ;;  %vm1399_vm5 = vweird.f32 %v2004_v32  ;;  %vm1390_vm7 = vmor %vm1388_vm6, %vm1389_vm4 }
 0x472   : > { %v1381_v22 = vsel %vm1380_vm3, %v2000_v16, %v1377_v18  ;;  %v1384_v5 = vmul.f32 %v2002_v21, %v1383_v37  ;;  %v1416_v43 = vadd.f32 %v1976_v24, %v1409_v38  ;;  %vm1400_vm9 = vmor %vm1398_vm8, %vm1399_vm5 }
 0x473   : > { %v1403_v35 = vmul.f32 %v1381_v22, %v2497_v25  ;;  %v1394_v36 = vmul.f32 %v2004_v32, %v1393_v34 }
 0x474   : > { %v1385_v39 = vmul.f32 0.5, %v1384_v5  ;;  %v1420_v51 = vmax.f32 %v1416_v43, 0.0 }
 0x475   : > { %v1395_v42 = vmul.f32 0.5, %v1394_v36  ;;  %v1410_v23 = vmul.f32 %v1975_v30, %v1403_v35 }
 0x476   : > { %v1386_v44 = vsub.f32 1.5, %v1385_v39 }
 0x477   : > { %v1396_v45 = vsub.f32 1.5, %v1395_v42  ;;  %v1417_v46 = vadd.f32 %v1976_v24, %v1410_v23 }
 0x478   : > { %v1387_v49 = vmul.f32 %v2002_v21, %v1386_v44 }
 0x479   : > { %v1397_v47 = vmul.f32 %v2004_v32, %v1396_v45  ;;  %v1421_v48 = vmax.f32 %v1417_v46, 0.0 }
 0x47a   : > { %v1391_v52 = vsel %vm1390_vm7, %v2002_v21, %v1387_v49 }
 0x47b   : > { %v1401_v25 = vsel %vm1400_vm9, %v2004_v32, %v1397_v47  ;;  %v1424_v53 = vpack.c.bf16 %v1421_v48, %v1420_v51  ;;  %v1404_v54 = vmul.f32 %v1391_v52, %v2503_v33  ;;  %v1442_v33 = vld [vmem:[%s2663_s13] sm:$0x3] }
 0x47c   : > { %v1405_v55 = vmul.f32 %v1401_v25, %v2505_v10  ;;  %v1444_v3 = vperm.slane %v1442_v33, 0  ;;  %v1445_v13 = vperm.slane %v1442_v33, 1 }
 0x47d   : > { %1536 = vmatmul.bf16.vlgmr.msrb.gmra.mxu1 %v1424_v53  ;;  %1555 = vmatmul.bf16.vlgmr.msrb.gmra.mxu2 %v1424_v53  ;;  %v1411_v56 = vmul.f32 %v1975_v30, %v1404_v54 }
 0x47e   : > { %v1412_v26 = vmul.f32 %v1975_v30, %v1405_v55 }
 0x47f   : > { %v1418_v58 = vadd.f32 %v1976_v24, %v1411_v56 }
 0x480   : > { %v1419_v59 = vadd.f32 %v1976_v24, %v1412_v26 }
 0x481   : > { %v1422_v61 = vmax.f32 %v1418_v58, 0.0 }
 0x482   : > { %v1423_v62 = vmax.f32 %v1419_v59, 0.0 }
 0x484   : > { %v1425_v2 = vpack.c.bf16 %v1423_v62, %v1422_v61 }
 0x48d   : > { %1541 = vmatmul.bf16.gmra.mxu1 %v1425_v2  ;;  %1560 = vmatmul.bf16.gmra.mxu2 %v1425_v2 }
 0x4fa   : > { %v1537_v10 = vpop.f32.mrf.mxu1 }
 0x4fb   : > { %v1538_v41 = vadd.f32 %v1537_v10, %v1444_v3 }
 0x4fd   : > { %v1566_v11 = vadd.f32 %v2005_v4, %v1538_v41 }
 0x4ff   : > { %1574 = vst [vmem:[%s2629_s20] sm:$0xff] %v1566_v11 }
 0x500   : > { %v1556_v50 = vpop.f32.mrf.mxu2 }
 0x501   : > { %v1557_v14 = vadd.f32 %v1556_v50, %v1445_v13 }
 0x502   : > { %v1539_v40 = vpop.f32.mrf.mxu1 }
 0x503   : > { %v1540_v17 = vadd.f32 %v1539_v40, %v1444_v3 }
 0x505   : > { %v1568_v57 = vadd.f32 %v1540_v17, %v2128_v8 }
 0x506   : > { %v2006_v15 = vld [vmem:[%s2109_s19 + $0x8] sm:$0xff] }
 0x507   : > { %v1567_v16 = vadd.f32 %v2006_v15, %v1557_v14  ;;  %1576 = vst [vmem:[%s2629_s20 + $0x10] sm:$0xff] %v1568_v57 }
 0x508   : > { %v1558_v19 = vpop.f32.mrf.mxu2 }
 0x509   : > { %1575 = vst [vmem:[%s2629_s20 + $0x8] sm:$0xff] %v1567_v16  ;;  %v1559_v20 = vadd.f32 %v1558_v19, %v1445_v13 }
 0x50a   : > { %v1542_v27 = vpop.f32.mrf.mxu1 }
 0x50b   : > { %v1569_v63 = vadd.f32 %v1559_v20, %v2131_v9  ;;  %v1543_v28 = vadd.f32 %v1542_v27, %v1444_v3 }
 0x50d   : > { %1577 = vst [vmem:[%s2629_s20 + $0x18] sm:$0xff] %v1569_v63  ;;  %v1570_v12 = vadd.f32 %v1543_v28, %v2112_v0 }
 0x50f   : > { %1578 = vst [vmem:[%s2629_s20 + $0x20] sm:$0xff] %v1570_v12 }
 0x510   : > { %v1561_v29 = vpop.f32.mrf.mxu2 }
 0x511   : > { %v1562_v30 = vadd.f32 %v1561_v29, %v1445_v13 }
 0x512   : > { %v1544_v60 = vpop.f32.mrf.mxu1 }
 0x513   : > { %v1571_v31 = vadd.f32 %v1562_v30, %v2115_v1  ;;  %v1545_v21 = vadd.f32 %v1544_v60, %v1444_v3 }
 0x515   : > { %1579 = vst [vmem:[%s2629_s20 + $0x28] sm:$0xff] %v1571_v31  ;;  %v1572_v8 = vadd.f32 %v1545_v21, %v2122_v6 }
 0x517   : > { %1580 = vst [vmem:[%s2629_s20 + $0x30] sm:$0xff] %v1572_v8 }
 0x518   : > { %v1563_v32 = vpop.f32.mrf.mxu2 }
 0x519   : > { %v1564_v18 = vadd.f32 %v1563_v32, %v1445_v13 }
 0x51b   : > { %v1573_v9 = vadd.f32 %v1564_v18, %v2125_v7 }
 0x51d   : > { %1581 = vst [vmem:[%s2629_s20 + $0x38] sm:$0xff] %v1573_v9 }
 0x51e PF: > { %s24_s29 = sadd.s32 1, %s2013_s29  }
 0x51f   : > { %p21_p4 = scmp.ge.s32.totalorder %s24_s29, 4  }
 0x521   :  { %23 = sbr.rel (!%p21_p4) target bundleno = 1 (0x1), region = 109 }

// kernel: bytenet_forward.6
= control target key start
LH: loop header
LB: loop body
LE: loop exit
PB: predicated region body
PF: predicated region fallthrough
CT: control target
= control target key end

     0   :  { %19 = vsyncpa [#allocation3], 0  ;;  %s2167_s29 = smov 0   ;;  %s2724_s0 = inlined_call_operand.vmem [shape: f32[64,256], index: 0, kind: input, shape index: {}, may-alias: {0,14}]   ;;  %s2725_s1 = inlined_call_operand.vmem [shape: f32[64,1], index: 1, kind: input, shape index: {}]   ;;  %s2726_s2 = inlined_call_operand.vmem [shape: f32[1,256], index: 2, kind: input, shape index: {}]   ;;  %s2727_s3 = inlined_call_operand.vmem [shape: f32[1,256], index: 3, kind: input, shape index: {}]   ;;  %s2728_s4 = inlined_call_operand.vmem [shape: bf16[256,128], index: 4, kind: input, shape index: {}]   ;;  %s2729_s5 = inlined_call_operand.vmem [shape: f32[1,128], index: 5, kind: input, shape index: {}]   ;;  %s2730_s6 = inlined_call_operand.vmem [shape: f32[1,128], index: 6, kind: input, shape index: {}]   ;;  %s2731_s7 = inlined_call_operand.vmem [shape: f32[1,128], index: 7, kind: input, shape index: {}]   ;;  %s2732_s8 = inlined_call_operand.vmem [shape: bf16[128,384], index: 8, kind: input, shape index: {}]   ;;  %s2733_s9 = inlined_call_operand.vmem [shape: f32[1,128], index: 9, kind: input, shape index: {}]   ;;  %s2734_s10 = inlined_call_operand.vmem [shape: f32[1,128], index: 10, kind: input, shape index: {}]   ;;  %s2735_s11 = inlined_call_operand.hbm [shape: f32[1,128], index: 11, kind: input, shape index: {}]   ;;  %s2736_s12 = inlined_call_operand.vmem [shape: bf16[128,256], index: 12, kind: input, shape index: {}]   ;;  %s2737_s13 = inlined_call_operand.vmem [shape: f32[1,256], index: 13, kind: input, shape index: {}]   ;;  %s2738_s14 = inlined_call_operand.vmem [shape: f32[64,256], index: 14, kind: output, shape index: {}, may-alias: {0,14}]  }
   0x1 LB: > { %s1678_s30 = sadd.s32 4294967295, %s2086_s29   ;;  %p1680_p0 = scmp.ge.s32.totalorder %s2086_s29, 1  ;;  %s2086_s29 = sphi %s2167_s29, %s25_s29  }
   0x2   : > { %p360_p1 = scmp.lt.s32.totalorder %s2086_s29, 3  ;;  %s399_s17 = sshll.u32 %s2735_s11, 4  ;;  %s400_s17 = int_to_ptr.hbm [resolvable:$true] %s399_s17 }
   0x3   : > { %p1993_p3 = scmp.eq.s32.totalorder %s1678_s30, 0  ;;  %s2088_s18 = smov [#allocation2]  }
   0x4   : > { %p361_p2 = pnand %p1680_p0, %p360_p1  ;;  %s401_s19 = sshll.u32 %s2088_s18, 4  ;;  %s402_s19 = int_to_ptr.vmem [resolvable:$true] %s401_s19 }
   0x6   : > { %p1989_p4 = pneg %p361_p2  ;;  %439 = sbr.rel (%p361_p2) target bundleno = 1314 (0x522), region = 76 }
   0x8   : > { %p1990_p5 = pnand %p1993_p3, %p1989_p4 }
   0xa   : > { %1992 = dma.hbm_to_vmem [thread:$0]  (!%p1990_p5), %s400_s17, 16, %s402_s19, [#allocation3]  }
   0xb   : > { %2081 = dma.done.wait (%p1993_p3), [#allocation3], 16  }
   0xc   : > { %2083 = vsyncadd (%p1993_p3), [#allocation3], 4294967280  ;;  %s1685_s20 = sshll.u32 %s1678_s30, 2  ;;  %v2089_v12 = vmov 256.0   ;;  %v1928_v47 = vld [vmem:[%s2728_s4 + $0x38] sm:$0xff]  ;;  %v1927_v49 = vld [vmem:[%s2728_s4 + $0x30] sm:$0xff] }
   0xd   : > { %p494_p6 = scmp.lt.s32.totalorder %s1685_s20, 7  ;;  %2016 = vrcp.f32 %v2089_v12  ;;  %v1936_v48 = vld [vmem:[%s2728_s4 + $0x78] sm:$0xff]  ;;  %800 = vmatpush.bf16.msra.mxu0 %v1928_v47  ;;  %v1935_v50 = vld [vmem:[%s2728_s4 + $0x70] sm:$0xff]  ;;  %v1926_v51 = vld [vmem:[%s2728_s4 + $0x28] sm:$0xff] }
   0xe   : > { %819 = vmatpush.bf16.msra.mxu1 %v1936_v48  ;;  %v1934_v52 = vld [vmem:[%s2728_s4 + $0x68] sm:$0xff]  ;;  %v1925_v53 = vld [vmem:[%s2728_s4 + $0x20] sm:$0xff]  ;;  %v1924_v55 = vld [vmem:[%s2728_s4 + $0x18] sm:$0xff] }
   0xf   : > { %s2740_s20 = smov (!%p494_p6, %s1685_s20), 7  ;;  %v1933_v54 = vld [vmem:[%s2728_s4 + $0x60] sm:$0xff]  ;;  %v1932_v56 = vld [vmem:[%s2728_s4 + $0x58] sm:$0xff]  ;;  %v1923_v57 = vld [vmem:[%s2728_s4 + $0x10] sm:$0xff] }
  0x10   : > { %s1919_s21 = sshll.u32 %s2740_s20, 4  ;;  %v1931_v58 = vld [vmem:[%s2728_s4 + $0x50] sm:$0xff]  ;;  %v1922_v59 = vld [vmem:[%s2728_s4 + $0x8] sm:$0xff]  ;;  %s1689_s27 = sshll.u32 %s2740_s20, 3 }
  0x11   : > { %s2186_s24 = scalar_lea.vmem %s2724_s0, %s1919_s21  ;;  %801 = vmatpush.bf16.msra.mxu0 %v1927_v49  ;;  %v1930_v60 = vld [vmem:[%s2728_s4 + $0x48] sm:$0xff]  ;;  %s2336_s15 = scalar_lea.vmem %s2725_s1, %s1689_s27 }
  0x12   : > { %v2189_v0 = vld [vmem:[%s2186_s24 + $0x20] sm:$0xff]  ;;  %v2192_v1 = vld [vmem:[%s2186_s24 + $0x28] sm:$0xff]  ;;  %v2199_v6 = vld [vmem:[%s2186_s24 + $0x30] sm:$0xff]  ;;  %820 = vmatpush.bf16.msra.mxu1 %v1935_v50  ;;  %s2703_s22 = scalar_lea.vmem %s2738_s14, %s1919_s21 }
  0x13   : > { %v513_v2 = vld [vmem:[%s2186_s24] sm:$0xff]  ;;  %v529_v3 = vadd.f32 %v2192_v1, %v2189_v0  ;;  %v514_v4 = vld [vmem:[%s2186_s24 + $0x8] sm:$0xff]  ;;  %v2202_v7 = vld [vmem:[%s2186_s24 + $0x38] sm:$0xff]  ;;  %v2017_v13 = vpop.eup %2016 }
  0x14   : > { %v523_v5 = vadd.f32 %v514_v4, %v513_v2  ;;  %v2205_v8 = vld [vmem:[%s2186_s24 + $0x10] sm:$0xff]  ;;  %v2208_v9 = vld [vmem:[%s2186_s24 + $0x18] sm:$0xff]  ;;  %v532_v10 = vadd.f32 %v2202_v7, %v2199_v6  ;;  %v536_v14 = vmul.f32 256.0, %v2017_v13  ;;  %vm540_vm0 = vweird.f32 %v2017_v13  ;;  %v522_v50 = vld [vmem:[%s2727_s3] sm:$0x3] }
  0x15   : > { %530 = vadd.xlane.f32.xlu1 %v529_v3  ;;  %v526_v11 = vadd.f32 %v2208_v9, %v2205_v8  ;;  %802 = vmatpush.bf16.msra.mxu0 %v1926_v51  ;;  %v1921_v3 = vld [vmem:[%s2728_s4] sm:$0xff] }
  0x16   : > { %524 = vadd.xlane.f32.xlu0 %v523_v5  ;;  %v537_v15 = vsub.f32 1.0, %v536_v14  ;;  %821 = vmatpush.bf16.msra.mxu1 %v1934_v52 }
  0x18   : > { %v538_v16 = vmul.f32 %v2017_v13, %v537_v15 }
  0x19   : > { %803 = vmatpush.bf16.msra.mxu0 %v1925_v53 }
  0x1a   : > { %v539_v17 = vadd.f32 %v2017_v13, %v538_v16  ;;  %822 = vmatpush.bf16.msra.mxu1 %v1933_v54  ;;  %v644_v54 = vperm.slane %v522_v50, 0 }
  0x1c   : > { %v2214_v18 = vsel %vm540_vm0, %v2017_v13, %v539_v17 }
  0x1d   : > { %533 = vadd.xlane.f32.xlu1 %v532_v10  ;;  %804 = vmatpush.bf16.msra.mxu0 %v1924_v55 }
  0x1e   : > { %527 = vadd.xlane.f32.xlu0 %v526_v11  ;;  %823 = vmatpush.bf16.msra.mxu1 %v1932_v56  ;;  %v645_v56 = vperm.slane %v522_v50, 1 }
  0x21   : > { %805 = vmatpush.bf16.msra.mxu0 %v1923_v57 }
  0x22   : > { %824 = vmatpush.bf16.msra.mxu1 %v1931_v58 }
  0x25   : > { %806 = vmatpush.bf16.msra.mxu0 %v1922_v59 }
  0x26   : > { %825 = vmatpush.bf16.msra.mxu1 %v1930_v60 }
  0x29   : > { %807 = vmatpush.bf16.msra.mxu0 %v1921_v3 }
  0x88   : > { %v531_v19 = vpop.xlane.xlu1 %530 }
  0x89   : > { %v544_v20 = vmul.f32 %v2214_v18, %v531_v19  ;;  %v525_v21 = vpop.xlane.xlu0 %524 }
  0x8a   : > { %v542_v22 = vmul.f32 %v2214_v18, %v525_v21 }
  0x8b   : > { %v2219_v23 = vsub.f32 %v2189_v0, %v544_v20  ;;  %v2222_v24 = vsub.f32 %v2192_v1, %v544_v20 }
  0x8c   : > { %v2224_v25 = vsub.f32 %v513_v2, %v542_v22  ;;  %v2226_v26 = vsub.f32 %v514_v4, %v542_v22  ;;  %v1929_v4 = vld [vmem:[%s2728_s4 + $0x40] sm:$0xff] }
  0x8d   : > { %v558_v27 = vmul.f32 %v2219_v23, %v2219_v23  ;;  %v559_v28 = vmul.f32 %v2222_v24, %v2222_v24  ;;  %826 = vmatpush.bf16.msra.mxu1 %v1929_v4 }
  0x8e   : > { %v554_v29 = vmul.f32 %v2224_v25, %v2224_v25  ;;  %v555_v30 = vmul.f32 %v2226_v26, %v2226_v26 }
  0x8f   : > { %v568_v31 = vadd.f32 %v559_v28, %v558_v27 }
  0x90   : > { %v534_v32 = vpop.xlane.xlu1 %533  ;;  %v562_v33 = vadd.f32 %v555_v30, %v554_v29 }
  0x91   : > { %v545_v34 = vmul.f32 %v2214_v18, %v534_v32  ;;  %v528_v35 = vpop.xlane.xlu0 %527  ;;  %569 = vadd.xlane.f32.xlu0 %v568_v31 }
  0x92   : > { %v543_v36 = vmul.f32 %v2214_v18, %v528_v35  ;;  %563 = vadd.xlane.f32.xlu2 %v562_v33 }
  0x93   : > { %v2239_v37 = vsub.f32 %v2199_v6, %v545_v34  ;;  %v2242_v38 = vsub.f32 %v2202_v7, %v545_v34 }
  0x94   : > { %v2245_v39 = vsub.f32 %v2205_v8, %v543_v36  ;;  %v2248_v40 = vsub.f32 %v2208_v9, %v543_v36 }
  0x95   : > { %v560_v41 = vmul.f32 %v2239_v37, %v2239_v37  ;;  %v561_v42 = vmul.f32 %v2242_v38, %v2242_v38 }
  0x96   : > { %v556_v43 = vmul.f32 %v2245_v39, %v2245_v39  ;;  %v557_v44 = vmul.f32 %v2248_v40, %v2248_v40 }
  0x97   : > { %v571_v45 = vadd.f32 %v561_v42, %v560_v41  ;;  %v521_v41 = vld [vmem:[%s2726_s2] sm:$0x3] }
  0x98   : > { %v565_v46 = vadd.f32 %v557_v44, %v556_v43  ;;  %v632_v47 = vperm.slane %v521_v41, 1 }
  0x99   : > { %572 = vadd.xlane.f32.xlu1 %v571_v45  ;;  %v631_v45 = vperm.slane %v521_v41, 0 }
  0x9a   : > { %566 = vadd.xlane.f32.xlu2 %v565_v46 }
 0x104   : > { %v570_v61 = vpop.xlane.xlu0 %569 }
 0x105   : > { %v564_v62 = vpop.xlane.xlu2 %563  ;;  %v576_v2 = vmul.f32 %v570_v61, %v2214_v18 }
 0x106   : > { %v574_v63 = vmul.f32 %v564_v62, %v2214_v18 }
 0x107   : > { %v2308_v10 = vadd.f32 1e-05, %v576_v2 }
 0x108   : > { %v578_v5 = vadd.f32 1e-05, %v574_v63 }
 0x109   : > { %vm608_vm9 = vweird.f32 %v2308_v10 }
 0x10a   : > { %2018 = vrsqrt.f32 %v578_v5  ;;  %vm588_vm2 = vweird.f32 %v578_v5 }
 0x10b   : > { %2020 = vrsqrt.f32 %v2308_v10 }
 0x10c   : > { %v573_v11 = vpop.xlane.xlu1 %572 }
 0x10d   : > { %v577_v12 = vmul.f32 %v573_v11, %v2214_v18  ;;  %v567_v13 = vpop.xlane.xlu2 %566 }
 0x10e   : > { %v575_v14 = vmul.f32 %v567_v13, %v2214_v18 }
 0x10f   : > { %v581_v15 = vadd.f32 1e-05, %v577_v12 }
 0x110   : > { %v2019_v16 = vpop.eup %2018  ;;  %v579_v17 = vadd.f32 1e-05, %v575_v14 }
 0x111   : > { %v583_v19 = vmul.f32 %v2019_v16, %v578_v5  ;;  %2022 = vrsqrt.f32 %v581_v15  ;;  %v2021_v21 = vpop.eup %2020  ;;  %vm589_vm1 = vweird.f32 %v2019_v16  ;;  %vm618_vm7 = vweird.f32 %v581_v15 }
 0x112   : > { %2024 = vrsqrt.f32 %v579_v17  ;;  %v603_v29 = vmul.f32 %v2021_v21, %v2308_v10  ;;  %vm590_vm3 = vmor %vm588_vm2, %vm589_vm1  ;;  %vm598_vm5 = vweird.f32 %v579_v17  ;;  %vm609_vm10 = vweird.f32 %v2021_v21 }
 0x113   : > { %v584_v20 = vmul.f32 %v2019_v16, %v583_v19  ;;  %vm610_vm12 = vmor %vm608_vm9, %vm609_vm10 }
 0x114   : > { %v604_v35 = vmul.f32 %v2021_v21, %v603_v29 }
 0x115   : > { %v585_v22 = vmul.f32 0.5, %v584_v20 }
 0x116   : > { %v605_v48 = vmul.f32 0.5, %v604_v35 }
 0x117   : > { %v2023_v27 = vpop.eup %2022  ;;  %v586_v28 = vsub.f32 1.5, %v585_v22 }
 0x118   : > { %v2025_v30 = vpop.eup %2024  ;;  %v613_v31 = vmul.f32 %v2023_v27, %v581_v15  ;;  %vm619_vm8 = vweird.f32 %v2023_v27 }
 0x119   : > { %v587_v32 = vmul.f32 %v2019_v16, %v586_v28  ;;  %v593_v33 = vmul.f32 %v2025_v30, %v579_v17  ;;  %vm599_vm4 = vweird.f32 %v2025_v30  ;;  %vm620_vm11 = vmor %vm618_vm7, %vm619_vm8 }
 0x11a   : > { %v614_v18 = vmul.f32 %v2023_v27, %v613_v31  ;;  %vm600_vm6 = vmor %vm598_vm5, %vm599_vm4 }
 0x11b   : > { %v591_v34 = vsel %vm590_vm3, %v2019_v16, %v587_v32  ;;  %v594_v36 = vmul.f32 %v2025_v30, %v593_v33 }
 0x11c   : > { %v615_v42 = vmul.f32 0.5, %v614_v18  ;;  %v622_v44 = vmul.f32 %v591_v34, %v2224_v25  ;;  %v623_v46 = vmul.f32 %v591_v34, %v2226_v26  ;;  %v606_v25 = vsub.f32 1.5, %v605_v48 }
 0x11d   : > { %v595_v43 = vmul.f32 0.5, %v594_v36 }
 0x11e   : > { %v616_v51 = vsub.f32 1.5, %v615_v42  ;;  %v635_v53 = vmul.f32 %v631_v45, %v622_v44  ;;  %v636_v55 = vmul.f32 %v632_v47, %v623_v46  ;;  %v607_v2 = vmul.f32 %v2021_v21, %v606_v25 }
 0x11f   : > { %v596_v49 = vsub.f32 1.5, %v595_v43 }
 0x120   : > { %v617_v59 = vmul.f32 %v2023_v27, %v616_v51  ;;  %v648_v61 = vadd.f32 %v644_v54, %v635_v53  ;;  %v649_v63 = vadd.f32 %v645_v56, %v636_v55  ;;  %v611_v14 = vsel %vm610_vm12, %v2021_v21, %v607_v2  ;;  %v946_v55 = vld [vmem:[%s2336_s15 + $0x8] sm:$0xff] }
 0x121   : > { %v597_v52 = vmul.f32 %v2025_v30, %v596_v49  ;;  %v626_v17 = vmul.f32 %v611_v14, %v2219_v23  ;;  %v627_v19 = vmul.f32 %v611_v14, %v2222_v24  ;;  %v2010_v23 = vld [vmem:[%s2729_s5] ss:$0 sm:$0xff]  ;;  %v2090_v24 = vmov 0  }
 0x122   : > { %v621_v5 = vsel %vm620_vm11, %v2023_v27, %v617_v59  ;;  %v656_v11 = vmax.f32 %v648_v61, 0.0  ;;  %v657_v13 = vmax.f32 %v649_v63, 0.0  ;;  %2008 = vset.pattern.permute.xlu2 %v2090_v24  ;;  %2007 = vset.pattern.permute.xlu1 %v2090_v24 }
 0x123   : > { %v601_v26 = vsel %vm600_vm6, %v2025_v30, %v597_v52  ;;  %v628_v10 = vmul.f32 %v621_v5, %v2239_v37  ;;  %v629_v16 = vmul.f32 %v621_v5, %v2242_v38  ;;  %v639_v27 = vmul.f32 %v631_v45, %v626_v17  ;;  %2009 = vset.pattern.permute.xlu0 %v2090_v24  ;;  %v945_v17 = vld [vmem:[%s2336_s15] sm:$0xff]  ;;  %v1839_v24 = vld [vmem:[%s2732_s8 + $0x98] sm:$0xf] }
 0x124   : > { %v624_v57 = vmul.f32 %v601_v26, %v2245_v39  ;;  %v625_v58 = vmul.f32 %v601_v26, %v2248_v40  ;;  %v640_v28 = vmul.f32 %v632_v47, %v627_v19  ;;  %v948_v19 = vld [vmem:[%s2336_s15 + $0x18] sm:$0xff] }
 0x125   : > { %v641_v20 = vmul.f32 %v631_v45, %v628_v10  ;;  %v642_v22 = vmul.f32 %v632_v47, %v629_v16  ;;  %v652_v31 = vadd.f32 %v644_v54, %v639_v27  ;;  %v1959_v27 = vld [vmem:[%s2732_s8 + $0xb0] sm:$0xf0] }
 0x126   : > { %v637_v60 = vmul.f32 %v631_v45, %v624_v57  ;;  %v638_v62 = vmul.f32 %v632_v47, %v625_v58  ;;  %v653_v21 = vadd.f32 %v645_v56, %v640_v28  ;;  %v1958_v28 = vld [vmem:[%s2732_s8 + $0xac] sm:$0xf] }
 0x127   : > { %v654_v29 = vadd.f32 %v644_v54, %v641_v20  ;;  %v655_v30 = vadd.f32 %v645_v56, %v642_v22  ;;  %v660_v18 = vmax.f32 %v652_v31, 0.0  ;;  %v947_v20 = vld [vmem:[%s2336_s15 + $0x10] sm:$0xff]  ;;  %v1843_v22 = vld [vmem:[%s2732_s8 + $0xa8] sm:$0xf] }
 0x128   : > { %v650_v3 = vadd.f32 %v644_v54, %v637_v60  ;;  %v651_v4 = vadd.f32 %v645_v56, %v638_v62  ;;  %v661_v37 = vmax.f32 %v653_v21, 0.0  ;;  %v2091_v56 = vmov 128.0   ;;  %v1851_v31 = vld [vmem:[%s2732_s8 + $0xb0] sm:$0xf]  ;;  %v1960_v21 = vld [vmem:[%s2732_s8 + $0xb8] sm:$0xf0] }
 0x129   : > { %v662_v32 = vmax.f32 %v654_v29, 0.0  ;;  %v663_v33 = vmax.f32 %v655_v30, 0.0  ;;  %2026 = vrcp.f32 %v2091_v56  ;;  %v1844_v29 = vor.u32 %v1959_v27, %v1843_v22  ;;  %v1845_v30 = vld [vmem:[%s2732_s8 + $0xb4] sm:$0xf0]  ;;  %v1815_v56 = vld [vmem:[%s2732_s8 + $0x68] sm:$0xf] }
 0x12a   : > { %v658_v12 = vmax.f32 %v650_v3, 0.0  ;;  %v659_v39 = vmax.f32 %v651_v4, 0.0 }
 0x12b   : > { %v666_v34 = vpack.c.bf16 %v662_v32, %v660_v18  ;;  %v667_v38 = vpack.c.bf16 %v663_v33, %v661_v37  ;;  %v1848_v32 = vor.u32 %v1958_v28, %v1845_v30  ;;  %v2382_v33 = vor.u32 %v1960_v21, %v1851_v31  ;;  %1135 = vmatpush.bf16.msra.mxu2 %v1844_v29  ;;  %v1831_v18 = vld [vmem:[%s2732_s8 + $0x90] sm:$0xf]  ;;  %v1956_v37 = vld [vmem:[%s2732_s8 + $0x98] sm:$0xf0]  ;;  %v1771_v29 = vld [vmem:[%s2732_s8 + $0x18] sm:$0xf] }
 0x12c   : > { %v664_v40 = vpack.c.bf16 %v658_v12, %v656_v11  ;;  %v665_v15 = vpack.c.bf16 %v659_v39, %v657_v13  ;;  %v1941_v30 = vld [vmem:[%s2732_s8 + $0x20] sm:$0xf0]  ;;  %v1940_v31 = vld [vmem:[%s2732_s8 + $0x1c] sm:$0xf] }
 0x12d   : > { %1154 = vmatpush.bf16.msra.mxu3 %v1848_v32  ;;  %1173 = vmatpush.bf16.msrb.mxu0 %v2382_v33  ;;  %v1772_v21 = vor.u32 %v1941_v30, %v1771_v29  ;;  %v1773_v32 = vld [vmem:[%s2732_s8 + $0x24] sm:$0xf0] }
 0x12e   : > { %808 = vmatmul.bf16.vlgmr.msra.gmra.mxu0 %v664_v40  ;;  %827 = vmatmul.bf16.vlgmr.msra.gmra.mxu1 %v665_v15 }
 0x12f   : > { %v2027_v25 = vpop.eup %2026 }
 0x130   : > { %v849_v26 = vmul.f32 128.0, %v2027_v25  ;;  %vm853_vm13 = vweird.f32 %v2027_v25 }
 0x132   : > { %v850_v57 = vsub.f32 1.0, %v849_v26 }
 0x134   : > { %v851_v58 = vmul.f32 %v2027_v25, %v850_v57 }
 0x136   : > { %v852_v59 = vadd.f32 %v2027_v25, %v851_v58  ;;  %v1795_v58 = vld [vmem:[%s2732_s8 + $0x48] sm:$0xf] }
 0x138   : > { %v2339_v60 = vsel %vm853_vm13, %v2027_v25, %v852_v59  ;;  %v1951_v25 = vld [vmem:[%s2732_s8 + $0x70] sm:$0xf0] }
 0x139   : > { %v2445_v57 = vor.u32 %v1951_v25, %v1815_v56  ;;  %v1947_v59 = vld [vmem:[%s2732_s8 + $0x50] sm:$0xf0] }
 0x13e   : > { %813 = vmatmul.bf16.gmra.mxu0 %v666_v34  ;;  %832 = vmatmul.bf16.gmra.mxu1 %v667_v38  ;;  %v1955_v34 = vld [vmem:[%s2732_s8 + $0x94] sm:$0xf]  ;;  %v1832_v38 = vor.u32 %v1956_v37, %v1831_v18  ;;  %v1779_v18 = vld [vmem:[%s2732_s8 + $0x20] sm:$0xf]  ;;  %v1942_v37 = vld [vmem:[%s2732_s8 + $0x28] sm:$0xf0] }
 0x140   : > { %1136 = vmatpush.bf16.msra.mxu2 %v1832_v38  ;;  %v1776_v38 = vor.u32 %v1940_v31, %v1773_v32 }
 0x1ab   : > { %v809_v35 = vpop.f32.mrf.mxu0  ;;  %v828_v36 = vpop.f32.mrf.mxu1 }
 0x1ac   : > { %v810_v41 = vadd.f32 %v2010_v23, %v809_v35  ;;  %v1957_v35 = vld [vmem:[%s2732_s8 + $0xa0] sm:$0xf0] }
 0x1ae   : > { %v829_v42 = vadd.f32 %v828_v36, %v810_v41  ;;  %v2403_v41 = vor.u32 %v1957_v35, %v1839_v24  ;;  %v1759_v24 = vld [vmem:[%s2732_s8] sm:$0xf]  ;;  %v1938_v35 = vld [vmem:[%s2732_s8 + $0x8] sm:$0xf0] }
 0x1b0   : > { %840 = vadd.xlane.f32.xlu2 %v829_v42  ;;  %1174 = vmatpush.bf16.msrb.mxu0 %v2403_v41 }
 0x1b3   : > { %v811_v43 = vpop.f32.mrf.mxu0  ;;  %v830_v44 = vpop.f32.mrf.mxu1 }
 0x1b4   : > { %v812_v45 = vadd.f32 %v2010_v23, %v811_v43  ;;  %v1953_v43 = vld [vmem:[%s2732_s8 + $0x80] sm:$0xf0] }
 0x1b6   : > { %v831_v46 = vadd.f32 %v830_v44, %v812_v45  ;;  %v1952_v44 = vld [vmem:[%s2732_s8 + $0x7c] sm:$0xf] }
 0x1b8   : > { %842 = vadd.xlane.f32.xlu0 %v831_v46 }
 0x1bb   : > { %v814_v47 = vpop.f32.mrf.mxu0  ;;  %v833_v48 = vpop.f32.mrf.mxu1 }
 0x1bc   : > { %v815_v49 = vadd.f32 %v2010_v23, %v814_v47  ;;  %v1827_v47 = vld [vmem:[%s2732_s8 + $0x80] sm:$0xf] }
 0x1be   : > { %v834_v50 = vadd.f32 %v833_v48, %v815_v49  ;;  %v1954_v48 = vld [vmem:[%s2732_s8 + $0x88] sm:$0xf0] }
 0x1c0   : > { %844 = vadd.xlane.f32.xlu1 %v834_v50 }
 0x1c3   : > { %v816_v51 = vpop.f32.mrf.mxu0  ;;  %v835_v53 = vpop.f32.mrf.mxu1 }
 0x1c4   : > { %v817_v52 = vadd.f32 %v2010_v23, %v816_v51  ;;  %v1833_v23 = vld [vmem:[%s2732_s8 + $0x9c] sm:$0xf0] }
 0x1c5   : > { %v1836_v36 = vor.u32 %v1955_v34, %v1833_v23  ;;  %v1807_v51 = vld [vmem:[%s2732_s8 + $0x60] sm:$0xf]  ;;  %v2509_v23 = vor.u32 %v1942_v37, %v1779_v18 }
 0x1c6   : > { %v836_v54 = vadd.f32 %v835_v53, %v817_v52  ;;  %v1950_v52 = vld [vmem:[%s2732_s8 + $0x68] sm:$0xf0]  ;;  %v1949_v53 = vld [vmem:[%s2732_s8 + $0x64] sm:$0xf] }
 0x1c7   : > { %1155 = vmatpush.bf16.msra.mxu3 %v1836_v36  ;;  %v1937_v36 = vld [vmem:[%s2732_s8 + $0x4] sm:$0xf] }
 0x1c8   : > { %846 = vadd.xlane.f32.xlu2 %v836_v54 }
 0x1e0   : > { %956 = vperm.xlu2 %2008, %v946_v55   ;;  %v1809_v55 = vld [vmem:[%s2732_s8 + $0x6c] sm:$0xf0] }
 0x1e1   : > { %v1812_v26 = vor.u32 %v1949_v53, %v1809_v55 }
 0x223   : > { %v841_v61 = vpop.xlane.xlu2 %840 }
 0x224   : > { %v855_v62 = vmul.f32 %v2339_v60, %v841_v61  ;;  %v1946_v61 = vld [vmem:[%s2732_s8 + $0x4c] sm:$0xf] }
 0x226   : > { %v2342_v63 = vsub.f32 %v829_v42, %v855_v62  ;;  %v1819_v42 = vld [vmem:[%s2732_s8 + $0x78] sm:$0xf]  ;;  %v1796_v62 = vor.u32 %v1947_v59, %v1795_v58 }
 0x227   : > { %v1820_v45 = vor.u32 %v1953_v43, %v1819_v42  ;;  %v1760_v42 = vor.u32 %v1938_v35, %v1759_v24  ;;  %v1761_v43 = vld [vmem:[%s2732_s8 + $0xc] sm:$0xf0] }
 0x228   : > { %v863_v2 = vmul.f32 %v2342_v63, %v2342_v63 }
 0x229   : > { %1137 = vmatpush.bf16.msra.mxu2 %v1820_v45  ;;  %v1939_v45 = vld [vmem:[%s2732_s8 + $0x10] sm:$0xf0] }
 0x22a   : > { %867 = vadd.xlane.f32.xlu0 %v863_v2  ;;  %v1797_v2 = vld [vmem:[%s2732_s8 + $0x54] sm:$0xf0] }
 0x22b   : > { %v843_v3 = vpop.xlane.xlu0 %842 }
 0x22c   : > { %v856_v4 = vmul.f32 %v2339_v60, %v843_v3  ;;  %v1803_v3 = vld [vmem:[%s2732_s8 + $0x50] sm:$0xf] }
 0x22e   : > { %v2347_v5 = vsub.f32 %v831_v46, %v856_v4  ;;  %v1821_v46 = vld [vmem:[%s2732_s8 + $0x84] sm:$0xf0]  ;;  %v1948_v4 = vld [vmem:[%s2732_s8 + $0x58] sm:$0xf0] }
 0x22f   : > { %v1824_v49 = vor.u32 %v1952_v44, %v1821_v46  ;;  %v1767_v44 = vld [vmem:[%s2732_s8 + $0x8] sm:$0xf]  ;;  %v1764_v46 = vor.u32 %v1937_v36, %v1761_v43 }
 0x230   : > { %v864_v11 = vmul.f32 %v2347_v5, %v2347_v5 }
 0x231   : > { %1156 = vmatpush.bf16.msra.mxu3 %v1824_v49 }
 0x232   : > { %869 = vadd.xlane.f32.xlu1 %v864_v11  ;;  %v1800_v11 = vor.u32 %v1946_v61, %v1797_v2 }
 0x233   : > { %v845_v12 = vpop.xlane.xlu1 %844 }
 0x234   : > { %v857_v13 = vmul.f32 %v2339_v60, %v845_v12  ;;  %v2466_v12 = vor.u32 %v1948_v4, %v1803_v3 }
 0x235   : > { %1157 = vmatpush.bf16.msra.mxu3 %v1812_v26 }
 0x236   : > { %v2352_v39 = vsub.f32 %v834_v50, %v857_v13  ;;  %v2424_v50 = vor.u32 %v1954_v48, %v1827_v47  ;;  %v1783_v13 = vld [vmem:[%s2732_s8 + $0x30] sm:$0xf]  ;;  %v2530_v47 = vor.u32 %v1939_v45, %v1767_v44 }
 0x238   : > { %v865_v14 = vmul.f32 %v2352_v39, %v2352_v39  ;;  %1175 = vmatpush.bf16.msrb.mxu0 %v2424_v50 }
 0x239   : > { %1158 = vmatpush.bf16.msra.mxu3 %v1800_v11 }
 0x23a   : > { %871 = vadd.xlane.f32.xlu2 %v865_v14  ;;  %v1944_v14 = vld [vmem:[%s2732_s8 + $0x38] sm:$0xf0] }
 0x23b   : > { %v847_v40 = vpop.xlane.xlu2 %846 }
 0x23c   : > { %v858_v15 = vmul.f32 %v2339_v60, %v847_v40  ;;  %1176 = vmatpush.bf16.msrb.mxu0 %v2445_v57  ;;  %v1943_v40 = vld [vmem:[%s2732_s8 + $0x34] sm:$0xf] }
 0x23e   : > { %v2357_v10 = vsub.f32 %v836_v54, %v858_v15  ;;  %v1808_v54 = vor.u32 %v1950_v52, %v1807_v51  ;;  %v1784_v15 = vor.u32 %v1944_v14, %v1783_v13  ;;  %v2011_v13 = vld [vmem:[%s2730_s6] ss:$0 sm:$0xff] }
 0x240   : > { %v866_v16 = vmul.f32 %v2357_v10, %v2357_v10  ;;  %1138 = vmatpush.bf16.msra.mxu2 %v1808_v54  ;;  %1177 = vmatpush.bf16.msrb.mxu0 %v2466_v12 }
 0x242   : > { %873 = vadd.xlane.f32.xlu0 %v866_v16  ;;  %v1785_v16 = vld [vmem:[%s2732_s8 + $0x3c] sm:$0xf0] }
 0x243   : > { %v2532_v48 = vpop.permute.xlu2 %956 }
 0x244   : > { %1139 = vmatpush.bf16.msra.mxu2 %v1796_v62 }
 0x248   : > { %1140 = vmatpush.bf16.msra.mxu2 %v1784_v15 }
 0x24b   : > { %951 = vperm.xlu1 %2007, %v945_v17   ;;  %v1791_v17 = vld [vmem:[%s2732_s8 + $0x38] sm:$0xf] }
 0x24c   : > { %1141 = vmatpush.bf16.msra.mxu2 %v1772_v21 }
 0x250   : > { %1142 = vmatpush.bf16.msra.mxu2 %v1760_v42 }
 0x252   : > { %966 = vperm.xlu2 %2008, %v948_v19   ;;  %v1945_v19 = vld [vmem:[%s2732_s8 + $0x40] sm:$0xf0] }
 0x253   : > { %v2487_v22 = vor.u32 %v1945_v19, %v1791_v17 }
 0x255   : > { %1178 = vmatpush.bf16.msrb.mxu0 %v2487_v22 }
 0x256   : > { %961 = vperm.xlu0 %2009, %v947_v20   ;;  %v1788_v20 = vor.u32 %v1943_v40, %v1785_v16 }
 0x258   : > { %1159 = vmatpush.bf16.msra.mxu3 %v1788_v20 }
 0x259   : > { %1179 = vmatpush.bf16.msrb.mxu0 %v2509_v23 }
 0x25c   : > { %1160 = vmatpush.bf16.msra.mxu3 %v1776_v38 }
 0x25d   : > { %1180 = vmatpush.bf16.msrb.mxu0 %v2530_v47 }
 0x260   : > { %1161 = vmatpush.bf16.msra.mxu3 %v1764_v46 }
 0x264   : > { %1977 = vmatpush.bf16.msrb.mxu3 %v2382_v33 }
 0x268   : > { %1978 = vmatpush.bf16.msrb.mxu3 %v2403_v41 }
 0x26c   : > { %1979 = vmatpush.bf16.msrb.mxu3 %v2424_v50 }
 0x270   : > { %1980 = vmatpush.bf16.msrb.mxu3 %v2445_v57  ;;  %v2012_v57 = vld [vmem:[%s2731_s7] ss:$0 sm:$0xff] }
 0x274   : > { %1981 = vmatpush.bf16.msrb.mxu3 %v2466_v12 }
 0x278   : > { %1982 = vmatpush.bf16.msrb.mxu3 %v2487_v22 }
 0x27c   : > { %1983 = vmatpush.bf16.msrb.mxu3 %v2509_v23 }
 0x280   : > { %1984 = vmatpush.bf16.msrb.mxu3 %v2530_v47 }
 0x29d   : > { %v868_v27 = vpop.xlane.xlu0 %867 }
 0x29e   : > { %v875_v28 = vmul.f32 %v868_v27, %v2339_v60 }
 0x2a0   : > { %v879_v34 = vadd.f32 1e-05, %v875_v28 }
 0x2a2   : > { %2028 = vrsqrt.f32 %v879_v34  ;;  %vm889_vm15 = vweird.f32 %v879_v34 }
 0x2a5   : > { %v870_v49 = vpop.xlane.xlu1 %869 }
 0x2a6   : > { %v876_v51 = vmul.f32 %v870_v49, %v2339_v60 }
 0x2a8   : > { %v2029_v52 = vpop.eup %2028  ;;  %v880_v53 = vadd.f32 1e-05, %v876_v51 }
 0x2a9   : > { %v884_v54 = vmul.f32 %v2029_v52, %v879_v34  ;;  %vm890_vm14 = vweird.f32 %v2029_v52 }
 0x2aa   : > { %2030 = vrsqrt.f32 %v880_v53  ;;  %vm891_vm0 = vmor %vm889_vm15, %vm890_vm14  ;;  %vm899_vm2 = vweird.f32 %v880_v53 }
 0x2ab   : > { %v885_v55 = vmul.f32 %v2029_v52, %v884_v54 }
 0x2ad   : > { %v886_v56 = vmul.f32 0.5, %v885_v55  ;;  %v872_v25 = vpop.xlane.xlu2 %871 }
 0x2ae   : > { %v877_v26 = vmul.f32 %v872_v25, %v2339_v60 }
 0x2af   : > { %v887_v58 = vsub.f32 1.5, %v886_v56 }
 0x2b0   : > { %v2031_v59 = vpop.eup %2030  ;;  %v881_v61 = vadd.f32 1e-05, %v877_v26 }
 0x2b1   : > { %v888_v62 = vmul.f32 %v2029_v52, %v887_v58  ;;  %v894_v33 = vmul.f32 %v2031_v59, %v880_v53  ;;  %vm900_vm1 = vweird.f32 %v2031_v59 }
 0x2b2   : > { %2032 = vrsqrt.f32 %v881_v61  ;;  %vm901_vm3 = vmor %vm899_vm2, %vm900_vm1  ;;  %vm909_vm5 = vweird.f32 %v881_v61 }
 0x2b3   : > { %v895_v2 = vmul.f32 %v2031_v59, %v894_v33  ;;  %v892_v3 = vsel %vm891_vm0, %v2029_v52, %v888_v62  ;;  %v1192_v62 = vlaneseq }
 0x2b4   : > { %v923_v50 = vmul.f32 %v892_v3, %v2342_v63 }
 0x2b5   : > { %v896_v41 = vmul.f32 0.5, %v895_v2  ;;  %v874_v4 = vpop.xlane.xlu0 %873  ;;  %v967_v54 = vpop.permute.xlu2 %966 }
 0x2b6   : > { %v878_v11 = vmul.f32 %v874_v4, %v2339_v60  ;;  %v930_v19 = vmul.f32 %v2011_v13, %v923_v50 }
 0x2b7   : > { %v897_v14 = vsub.f32 1.5, %v896_v41 }
 0x2b8   : > { %v2033_v40 = vpop.eup %2032  ;;  %v882_v15 = vadd.f32 1e-05, %v878_v11  ;;  %v937_v29 = vadd.f32 %v2012_v57, %v930_v19 }
 0x2b9   : > { %v898_v16 = vmul.f32 %v2031_v59, %v897_v14  ;;  %v904_v17 = vmul.f32 %v2033_v40, %v881_v61  ;;  %vm910_vm4 = vweird.f32 %v2033_v40 }
 0x2ba   : > { %2034 = vrsqrt.f32 %v882_v15  ;;  %vm911_vm6 = vmor %vm909_vm5, %vm910_vm4  ;;  %v941_v38 = vmax.f32 %v937_v29, 0.0  ;;  %vm919_vm8 = vweird.f32 %v882_v15 }
 0x2bb   : > { %v902_v20 = vsel %vm901_vm3, %v2031_v59, %v898_v16  ;;  %v905_v27 = vmul.f32 %v2033_v40, %v904_v17 }
 0x2bc   : > { %v924_v63 = vmul.f32 %v902_v20, %v2347_v5 }
 0x2bd   : > { %v906_v28 = vmul.f32 0.5, %v905_v27  ;;  %v952_v37 = vpop.permute.xlu1 %951  ;;  %v2013_v27 = vld [vmem:[%s2733_s9] ss:$0 sm:$0xff] }
 0x2be   : > { %v931_v12 = vmul.f32 %v2011_v13, %v924_v63  ;;  %v969_v35 = vmul.f32 %v952_v37, %v941_v38 }
 0x2bf   : > { %v907_v30 = vsub.f32 1.5, %v906_v28 }
 0x2c0   : > { %v2035_v31 = vpop.eup %2034  ;;  %v938_v21 = vadd.f32 %v2012_v57, %v931_v12 }
 0x2c1   : > { %v908_v32 = vmul.f32 %v2033_v40, %v907_v30  ;;  %v914_v18 = vmul.f32 %v2035_v31, %v882_v15  ;;  %vm920_vm7 = vweird.f32 %v2035_v31 }
 0x2c2   : > { %v942_v34 = vmax.f32 %v938_v21, 0.0  ;;  %vm921_vm9 = vmor %vm919_vm8, %vm920_vm7 }
 0x2c3   : > { %v915_v24 = vmul.f32 %v2035_v31, %v914_v18  ;;  %v912_v22 = vsel %vm911_vm6, %v2033_v40, %v908_v32 }
 0x2c4   : > { %v970_v5 = vmul.f32 %v2532_v48, %v942_v34  ;;  %v925_v36 = vmul.f32 %v912_v22, %v2352_v39 }
 0x2c5   : > { %v916_v42 = vmul.f32 0.5, %v915_v24 }
 0x2c6   : > { %v973_v23 = vpack.c.bf16 %v970_v5, %v969_v35  ;;  %v932_v44 = vmul.f32 %v2011_v13, %v925_v36 }
 0x2c7   : > { %v917_v43 = vsub.f32 1.5, %v916_v42 }
 0x2c8   : > { %1143 = vmatmul.bf16.vlgmr.msra.gmra.mxu2 %v973_v23  ;;  %1162 = vmatmul.bf16.vlgmr.msra.gmra.mxu3 %v973_v23  ;;  %v939_v47 = vadd.f32 %v2012_v57, %v932_v44  ;;  %v962_v53 = vpop.permute.xlu0 %961 }
 0x2c9   : > { %v918_v45 = vmul.f32 %v2035_v31, %v917_v43  ;;  %1181 = vmatmul.bf16.vlgmr.msrb.gmra.mxu0 %v973_v23 }
 0x2ca   : > { %v943_v52 = vmax.f32 %v939_v47, 0.0 }
 0x2cb   : > { %v922_v46 = vsel %vm921_vm9, %v2035_v31, %v918_v45 }
 0x2cc   : > { %v926_v49 = vmul.f32 %v922_v46, %v2357_v10  ;;  %v971_v56 = vmul.f32 %v962_v53, %v943_v52  ;;  %v1193_v10 = vshrl.u32 %v1192_v62, 7 }
 0x2ce   : > { %v933_v51 = vmul.f32 %v2011_v13, %v926_v49  ;;  %v1201_v41 = vand.u32 31, %v1193_v10  ;;  %vm1249_vm11 = vcmp.lt.s32.totalorder %v1193_v10, 4  ;;  %v1196_v63 = vadd.s32 24, %v1193_v10 }
 0x2d0   : > { %v940_v48 = vadd.f32 %v2012_v57, %v933_v51  ;;  %v1254_v4 = vadd.s32 4294967292, %v1201_v41  ;;  %v1222_v32 = vand.u32 31, %v1196_v63  ;;  %v1975_v41 = vld [vmem:[%s2736_s12 + $0x74] sm:$0xf]  ;;  %v1895_v63 = vld [vmem:[%s2736_s12 + $0x50] sm:$0xf] }
 0x2d2   : > { %v944_v39 = vmax.f32 %v940_v48, 0.0  ;;  %vm1258_vm10 = vcmp.ge.s32.totalorder %v1254_v4, 0  ;;  %v1301_v24 = vadd.s32 4, %v1222_v32  ;;  %v1913_v4 = vld [vmem:[%s2736_s12 + $0x78] sm:$0xf0] }
 0x2d4   : > { %v972_v55 = vmul.f32 %v967_v54, %v944_v39  ;;  %vm1309_vm12 = vcmp.lt.s32.totalorder %v1301_v24, 32  ;;  %v1879_v24 = vld [vmem:[%s2736_s12 + $0x30] sm:$0xf] }
 0x2d6   : > { %v974_v25 = vpack.c.bf16 %v972_v55, %v971_v56 }
 0x2d8   : > { %1148 = vmatmul.bf16.gmra.mxu2 %v974_v25  ;;  %1167 = vmatmul.bf16.gmra.mxu3 %v974_v25 }
 0x2e8   : > { %1186 = vmatmul.bf16.vlgmr.msrb.gmra.mxu3 %v974_v25 }
 0x346   : > { %v1182_v33 = vpop.f32.mrf.mxu0 }
 0x347   : > { %v1290_v57 = vrot.slane %v1182_v33, 4 }
 0x34b   : > { %v1144_v26 = vpop.f32.mrf.mxu2  ;;  %v1163_v58 = vpop.f32.mrf.mxu3 }
 0x34c   : > { %v1245_v14 = vrot.slane %v1144_v26, 4 }
 0x34e   : > { %v1184_v11 = vpop.f32.mrf.mxu0 }
 0x34f   : > { %v1291_v15 = vrot.slane %v1184_v11, 4  ;;  %v1911_v11 = vld [vmem:[%s2736_s12 + $0x70] sm:$0xf] }
 0x351   : > { %v1296_v28 = vsel %vm1249_vm11, %v1290_v57, %v1291_v15 }
 0x353   : > { %v1146_v59 = vpop.f32.mrf.mxu2  ;;  %v1165_v61 = vpop.f32.mrf.mxu3 }
 0x354   : > { %v1246_v16 = vrot.slane %v1146_v59, 4 }
 0x356   : > { %v1252_v12 = vsel %vm1249_vm11, %v1245_v14, %v1246_v16 }
 0x357   : > { %v1287_v18 = vadd.f32 %v1252_v12, %v1165_v61  ;;  %v1972_v12 = vld [vmem:[%s2736_s12 + $0x54] sm:$0xf0] }
 0x35b   : > { %v1149_v2 = vpop.f32.mrf.mxu2  ;;  %v1168_v3 = vpop.f32.mrf.mxu3 }
 0x35c   : > { %v1247_v37 = vrot.slane %v1149_v2, 4 }
 0x35e   : > { %v1251_v5 = vsel %vm1249_vm11, %v1246_v16, %v1247_v37  ;;  %v1903_v16 = vld [vmem:[%s2736_s12 + $0x60] sm:$0xf] }
 0x35f   : > { %v1288_v23 = vadd.f32 %v1251_v5, %v1168_v3  ;;  %v1968_v5 = vld [vmem:[%s2736_s12 + $0x34] sm:$0xf0] }
 0x363   : > { %v1151_v13 = vpop.f32.mrf.mxu2  ;;  %v1170_v50 = vpop.f32.mrf.mxu3 }
 0x364   : > { %v1248_v40 = vrot.slane %v1151_v13, 4  ;;  %v1916_v13 = vor.u32 %v1975_v41, %v1913_v4 }
 0x366   : > { %v1253_v17 = vsel %vm1249_vm11, %v1248_v40, %v1245_v14  ;;  %v1250_v35 = vsel %vm1249_vm11, %v1247_v37, %v1248_v40  ;;  %1561 = vmatpush.bf16.msrb.mxu2 %v1916_v13  ;;  %v1973_v40 = vld [vmem:[%s2736_s12 + $0x64] sm:$0xf] }
 0x367   : > { %v1278_v19 = vsel %vm1258_vm10, %v1253_v17, 0.0  ;;  %v1289_v43 = vadd.f32 %v1250_v35, %v1170_v50  ;;  %v1976_v50 = vld [vmem:[%s2736_s12 + $0x74] sm:$0xf0]  ;;  %v1880_v35 = vor.u32 %v1968_v5, %v1879_v24  ;;  %v2015_v24 = vld [vmem:[#allocation2] ss:$0 sm:$0xff] }
 0x368   : > { %v1286_v20 = vadd.f32 %v1278_v19, %v1163_v58  ;;  %v1912_v14 = vor.u32 %v1976_v50, %v1911_v11 }
 0x36a   : > { %v1326_v29 = vadd.f32 %v1296_v28, %v1286_v20  ;;  %1542 = vmatpush.bf16.msrb.mxu1 %v1912_v14  ;;  %v1971_v20 = vld [vmem:[%s2736_s12 + $0x54] sm:$0xf] }
 0x36b   : > { %v1187_v30 = vpop.f32.mrf.mxu3 }
 0x36c   : > { %v1292_v31 = vrot.slane %v1187_v30, 4  ;;  %v1334_v21 = vadd.f32 %v2013_v27, %v1326_v29  ;;  %v1896_v29 = vor.u32 %v1972_v12, %v1895_v63  ;;  %v1969_v30 = vld [vmem:[%s2736_s12 + $0x44] sm:$0xf] }
 0x36e   : > { %1340 = vadd.xlane.f32.xlu1 %v1334_v21  ;;  %v1295_v34 = vsel %vm1249_vm11, %v1291_v15, %v1292_v31  ;;  %v1905_v15 = vld [vmem:[%s2736_s12 + $0x68] sm:$0xf0] }
 0x36f   : > { %v1327_v38 = vadd.f32 %v1295_v34, %v1287_v18  ;;  %v1908_v17 = vor.u32 %v1973_v40, %v1905_v15  ;;  %v1970_v18 = vld [vmem:[%s2736_s12 + $0x44] sm:$0xf0]  ;;  %v1967_v34 = vld [vmem:[%s2736_s12 + $0x34] sm:$0xf] }
 0x371   : > { %v1335_v22 = vadd.f32 %v2013_v27, %v1327_v38  ;;  %1562 = vmatpush.bf16.msrb.mxu2 %v1908_v17  ;;  %v1881_v38 = vld [vmem:[%s2736_s12 + $0x38] sm:$0xf0] }
 0x373   : > { %1342 = vadd.xlane.f32.xlu2 %v1335_v22  ;;  %v1189_v36 = vpop.f32.mrf.mxu3 }
 0x374   : > { %v1293_v42 = vrot.slane %v1189_v36, 4  ;;  %v1965_v36 = vld [vmem:[%s2736_s12 + $0x24] sm:$0xf] }
 0x376   : > { %v1294_v44 = vsel %vm1249_vm11, %v1292_v31, %v1293_v42  ;;  %v1297_v45 = vsel %vm1249_vm11, %v1293_v42, %v1290_v57  ;;  %v1974_v57 = vld [vmem:[%s2736_s12 + $0x64] sm:$0xf0]  ;;  %v1889_v31 = vld [vmem:[%s2736_s12 + $0x48] sm:$0xf0] }
 0x377   : > { %v1328_v46 = vadd.f32 %v1294_v44, %v1288_v23  ;;  %v1325_v49 = vsel %vm1309_vm12, %v1297_v45, 0.0  ;;  %v1904_v19 = vor.u32 %v1974_v57, %v1903_v16  ;;  %v1892_v32 = vor.u32 %v1969_v30, %v1889_v31  ;;  %v1873_v42 = vld [vmem:[%s2736_s12 + $0x28] sm:$0xf0]  ;;  %v1871_v23 = vld [vmem:[%s2736_s12 + $0x20] sm:$0xf] }
 0x378   : > { %v1329_v47 = vadd.f32 %v1325_v49, %v1289_v43  ;;  %v1876_v43 = vor.u32 %v1965_v36, %v1873_v42  ;;  %v1966_v44 = vld [vmem:[%s2736_s12 + $0x24] sm:$0xf0]  ;;  %v1865_v49 = vld [vmem:[%s2736_s12 + $0x18] sm:$0xf0]  ;;  %v2014_v30 = vld [vmem:[%s2734_s10] ss:$0 sm:$0xff] }
 0x379   : > { %v1336_v51 = vadd.f32 %v2013_v27, %v1328_v46  ;;  %1543 = vmatpush.bf16.msrb.mxu1 %v1904_v19  ;;  %v1872_v45 = vor.u32 %v1966_v44, %v1871_v23  ;;  %v1963_v46 = vld [vmem:[%s2736_s12 + $0x14] sm:$0xf] }
 0x37a   : > { %v1337_v48 = vadd.f32 %v2013_v27, %v1329_v47  ;;  %v1897_v27 = vld [vmem:[%s2736_s12 + $0x58] sm:$0xf0]  ;;  %v1863_v47 = vld [vmem:[%s2736_s12 + $0x10] sm:$0xf] }
 0x37b   : > { %1344 = vadd.xlane.f32.xlu0 %v1336_v51  ;;  %v1900_v28 = vor.u32 %v1971_v20, %v1897_v27 }
 0x37c   : > { %1346 = vadd.xlane.f32.xlu1 %v1337_v48 }
 0x37d   : > { %1563 = vmatpush.bf16.msrb.mxu2 %v1900_v28  ;;  %1544 = vmatpush.bf16.msrb.mxu1 %v1896_v29 }
 0x381   : > { %1564 = vmatpush.bf16.msrb.mxu2 %v1892_v32 }
 0x3e1   : > { %v1341_v52 = vpop.xlane.xlu1 %1340 }
 0x3e2   : > { %v1348_v53 = vmul.f32 %v1341_v52, %v2339_v60 }
 0x3e4   : > { %v2569_v39 = vsub.f32 %v1334_v21, %v1348_v53  ;;  %v1887_v21 = vld [vmem:[%s2736_s12 + $0x40] sm:$0xf] }
 0x3e5   : > { %v1888_v37 = vor.u32 %v1970_v18, %v1887_v21 }
 0x3e6   : > { %v1343_v54 = vpop.xlane.xlu2 %1342  ;;  %v1356_v55 = vmul.f32 %v2569_v39, %v2569_v39 }
 0x3e7   : > { %v1349_v56 = vmul.f32 %v1343_v54, %v2339_v60  ;;  %1545 = vmatpush.bf16.msrb.mxu1 %v1888_v37 }
 0x3e8   : > { %1360 = vadd.xlane.f32.xlu2 %v1356_v55  ;;  %v1961_v55 = vld [vmem:[%s2736_s12 + $0x4] sm:$0xf] }
 0x3e9   : > { %v2574_v25 = vsub.f32 %v1335_v22, %v1349_v56  ;;  %v1884_v22 = vor.u32 %v1967_v34, %v1881_v38  ;;  %v1857_v56 = vld [vmem:[%s2736_s12 + $0x8] sm:$0xf0] }
 0x3eb   : > { %v1357_v26 = vmul.f32 %v2574_v25, %v2574_v25  ;;  %1565 = vmatpush.bf16.msrb.mxu2 %v1884_v22  ;;  %1546 = vmatpush.bf16.msrb.mxu1 %v1880_v35 }
 0x3ed   : > { %1362 = vadd.xlane.f32.xlu1 %v1357_v26  ;;  %v1855_v26 = vld [vmem:[%s2736_s12] sm:$0xf] }
 0x3ee   : > { %v1345_v58 = vpop.xlane.xlu0 %1344 }
 0x3ef   : > { %v1350_v59 = vmul.f32 %v1345_v58, %v2339_v60  ;;  %v1347_v61 = vpop.xlane.xlu1 %1346  ;;  %1566 = vmatpush.bf16.msrb.mxu2 %v1876_v43  ;;  %1547 = vmatpush.bf16.msrb.mxu1 %v1872_v45  ;;  %v1860_v58 = vor.u32 %v1961_v55, %v1857_v56 }
 0x3f0   : > { %v1351_v62 = vmul.f32 %v1347_v61, %v2339_v60 }
 0x3f1   : > { %v2580_v33 = vsub.f32 %v1336_v51, %v1350_v59  ;;  %v1868_v51 = vor.u32 %v1963_v46, %v1865_v49  ;;  %v1962_v59 = vld [vmem:[%s2736_s12 + $0x4] sm:$0xf0] }
 0x3f2   : > { %v2582_v10 = vsub.f32 %v1337_v48, %v1351_v62  ;;  %v1964_v48 = vld [vmem:[%s2736_s12 + $0x14] sm:$0xf0]  ;;  %v1856_v62 = vor.u32 %v1962_v59, %v1855_v26 }
 0x3f3   : > { %v1358_v2 = vmul.f32 %v2580_v33, %v2580_v33  ;;  %v1864_v52 = vor.u32 %v1964_v48, %v1863_v47  ;;  %1567 = vmatpush.bf16.msrb.mxu2 %v1868_v51 }
 0x3f4   : > { %v1359_v3 = vmul.f32 %v2582_v10, %v2582_v10 }
 0x3f5   : > { %1364 = vadd.xlane.f32.xlu2 %v1358_v2  ;;  %1548 = vmatpush.bf16.msrb.mxu1 %v1864_v52 }
 0x3f6   : > { %1366 = vadd.xlane.f32.xlu1 %v1359_v3 }
 0x3f7   : > { %1568 = vmatpush.bf16.msrb.mxu2 %v1860_v58 }
 0x3f9   : > { %1549 = vmatpush.bf16.msrb.mxu1 %v1856_v62 }
 0x45b   : > { %v1361_v53 = vpop.xlane.xlu2 %1360 }
 0x45c   : > { %v1368_v54 = vmul.f32 %v1361_v53, %v2339_v60 }
 0x45e   : > { %v1372_v61 = vadd.f32 1e-05, %v1368_v54 }
 0x460   : > { %2036 = vrsqrt.f32 %v1372_v61  ;;  %v1363_v2 = vpop.xlane.xlu1 %1362  ;;  %vm1382_vm14 = vweird.f32 %v1372_v61 }
 0x461   : > { %v1369_v3 = vmul.f32 %v1363_v2, %v2339_v60 }
 0x463   : > { %v1373_v41 = vadd.f32 1e-05, %v1369_v3 }
 0x465   : > { %2038 = vrsqrt.f32 %v1373_v41  ;;  %vm1392_vm1 = vweird.f32 %v1373_v41 }
 0x466   : > { %v2037_v4 = vpop.eup %2036 }
 0x467   : > { %v1377_v11 = vmul.f32 %v2037_v4, %v1372_v61  ;;  %vm1383_vm13 = vweird.f32 %v2037_v4 }
 0x468   : > { %v1365_v13 = vpop.xlane.xlu2 %1364  ;;  %vm1384_vm15 = vmor %vm1382_vm14, %vm1383_vm13 }
 0x469   : > { %v1378_v50 = vmul.f32 %v2037_v4, %v1377_v11  ;;  %v1370_v14 = vmul.f32 %v1365_v13, %v2339_v60  ;;  %v1367_v40 = vpop.xlane.xlu1 %1366 }
 0x46a   : > { %v1371_v15 = vmul.f32 %v1367_v40, %v2339_v60 }
 0x46b   : > { %v2039_v16 = vpop.eup %2038  ;;  %v1379_v17 = vmul.f32 0.5, %v1378_v50  ;;  %v1374_v57 = vadd.f32 1e-05, %v1370_v14 }
 0x46c   : > { %v1387_v19 = vmul.f32 %v2039_v16, %v1373_v41  ;;  %v1375_v20 = vadd.f32 1e-05, %v1371_v15  ;;  %vm1393_vm0 = vweird.f32 %v2039_v16 }
 0x46d   : > { %v1380_v27 = vsub.f32 1.5, %v1379_v17  ;;  %2040 = vrsqrt.f32 %v1374_v57  ;;  %vm1394_vm2 = vmor %vm1392_vm1, %vm1393_vm0  ;;  %vm1402_vm5 = vweird.f32 %v1374_v57 }
 0x46e   : > { %v1388_v63 = vmul.f32 %v2039_v16, %v1387_v19  ;;  %2042 = vrsqrt.f32 %v1375_v20  ;;  %vm1412_vm7 = vweird.f32 %v1375_v20 }
 0x46f   : > { %v1381_v28 = vmul.f32 %v2037_v4, %v1380_v27 }
 0x470   : > { %v1389_v12 = vmul.f32 0.5, %v1388_v63 }
 0x471   : > { %v1385_v29 = vsel %vm1384_vm15, %v2037_v4, %v1381_v28  ;;  %v2044_v4 = vld [vmem:[%s2186_s24] sm:$0xff] }
 0x472   : > { %v1416_v60 = vmul.f32 %v1385_v29, %v2569_v39  ;;  %v1390_v31 = vsub.f32 1.5, %v1389_v12 }
 0x473   : > { %v2041_v21 = vpop.eup %2040 }
 0x474   : > { %v2043_v32 = vpop.eup %2042  ;;  %v1391_v18 = vmul.f32 %v2039_v16, %v1390_v31  ;;  %v1397_v37 = vmul.f32 %v2041_v21, %v1374_v57  ;;  %v1423_v38 = vmul.f32 %v2014_v30, %v1416_v60  ;;  %vm1403_vm3 = vweird.f32 %v2041_v21 }
 0x475   : > { %v1407_v34 = vmul.f32 %v2043_v32, %v1375_v20  ;;  %vm1413_vm4 = vweird.f32 %v2043_v32  ;;  %vm1404_vm6 = vmor %vm1402_vm5, %vm1403_vm3 }
 0x476   : > { %v1395_v22 = vsel %vm1394_vm2, %v2039_v16, %v1391_v18  ;;  %v1398_v5 = vmul.f32 %v2041_v21, %v1397_v37  ;;  %v1430_v39 = vadd.f32 %v2015_v24, %v1423_v38  ;;  %vm1414_vm8 = vmor %vm1412_vm7, %vm1413_vm4 }
 0x477   : > { %v1417_v35 = vmul.f32 %v1395_v22, %v2574_v25  ;;  %v1408_v36 = vmul.f32 %v2043_v32, %v1407_v34 }
 0x478   : > { %v1399_v42 = vmul.f32 0.5, %v1398_v5  ;;  %v1434_v51 = vmax.f32 %v1430_v39, 0.0 }
 0x479   : > { %v1409_v23 = vmul.f32 0.5, %v1408_v36  ;;  %v1424_v43 = vmul.f32 %v2014_v30, %v1417_v35 }
 0x47a   : > { %v1400_v44 = vsub.f32 1.5, %v1399_v42 }
 0x47b   : > { %v1410_v45 = vsub.f32 1.5, %v1409_v23  ;;  %v1431_v46 = vadd.f32 %v2015_v24, %v1424_v43 }
 0x47c   : > { %v1401_v49 = vmul.f32 %v2041_v21, %v1400_v44 }
 0x47d   : > { %v1411_v47 = vmul.f32 %v2043_v32, %v1410_v45  ;;  %v1435_v48 = vmax.f32 %v1431_v46, 0.0 }
 0x47e   : > { %v1405_v52 = vsel %vm1404_vm6, %v2041_v21, %v1401_v49 }
 0x47f   : > { %v1415_v25 = vsel %vm1414_vm8, %v2043_v32, %v1411_v47  ;;  %v1438_v53 = vpack.c.bf16 %v1435_v48, %v1434_v51  ;;  %v1418_v54 = vmul.f32 %v1405_v52, %v2580_v33  ;;  %v1456_v33 = vld [vmem:[%s2737_s13] sm:$0x3] }
 0x480   : > { %v1419_v55 = vmul.f32 %v1415_v25, %v2582_v10  ;;  %v1458_v3 = vperm.slane %v1456_v33, 0  ;;  %v1459_v13 = vperm.slane %v1456_v33, 1 }
 0x481   : > { %1550 = vmatmul.bf16.vlgmr.msrb.gmra.mxu1 %v1438_v53  ;;  %1569 = vmatmul.bf16.vlgmr.msrb.gmra.mxu2 %v1438_v53  ;;  %v1425_v56 = vmul.f32 %v2014_v30, %v1418_v54 }
 0x482   : > { %v1426_v26 = vmul.f32 %v2014_v30, %v1419_v55 }
 0x483   : > { %v1432_v58 = vadd.f32 %v2015_v24, %v1425_v56 }
 0x484   : > { %v1433_v59 = vadd.f32 %v2015_v24, %v1426_v26 }
 0x485   : > { %v1436_v61 = vmax.f32 %v1432_v58, 0.0 }
 0x486   : > { %v1437_v62 = vmax.f32 %v1433_v59, 0.0 }
 0x488   : > { %v1439_v2 = vpack.c.bf16 %v1437_v62, %v1436_v61 }
 0x491   : > { %1555 = vmatmul.bf16.gmra.mxu1 %v1439_v2  ;;  %1574 = vmatmul.bf16.gmra.mxu2 %v1439_v2 }
 0x4fe   : > { %v1551_v10 = vpop.f32.mrf.mxu1 }
 0x4ff   : > { %v1552_v41 = vadd.f32 %v1551_v10, %v1458_v3 }
 0x501   : > { %v1580_v11 = vadd.f32 %v2044_v4, %v1552_v41 }
 0x503   : > { %1588 = vst [vmem:[%s2703_s22] sm:$0xff] %v1580_v11 }
 0x504   : > { %v1570_v50 = vpop.f32.mrf.mxu2 }
 0x505   : > { %v1571_v14 = vadd.f32 %v1570_v50, %v1459_v13 }
 0x506   : > { %v1553_v40 = vpop.f32.mrf.mxu1 }
 0x507   : > { %v1554_v17 = vadd.f32 %v1553_v40, %v1458_v3 }
 0x509   : > { %v1582_v57 = vadd.f32 %v1554_v17, %v2205_v8 }
 0x50a   : > { %v2045_v15 = vld [vmem:[%s2186_s24 + $0x8] sm:$0xff] }
 0x50b   : > { %v1581_v16 = vadd.f32 %v2045_v15, %v1571_v14  ;;  %1590 = vst [vmem:[%s2703_s22 + $0x10] sm:$0xff] %v1582_v57 }
 0x50c   : > { %v1572_v19 = vpop.f32.mrf.mxu2 }
 0x50d   : > { %1589 = vst [vmem:[%s2703_s22 + $0x8] sm:$0xff] %v1581_v16  ;;  %v1573_v20 = vadd.f32 %v1572_v19, %v1459_v13 }
 0x50e   : > { %v1556_v27 = vpop.f32.mrf.mxu1 }
 0x50f   : > { %v1583_v63 = vadd.f32 %v1573_v20, %v2208_v9  ;;  %v1557_v28 = vadd.f32 %v1556_v27, %v1458_v3 }
 0x511   : > { %1591 = vst [vmem:[%s2703_s22 + $0x18] sm:$0xff] %v1583_v63  ;;  %v1584_v12 = vadd.f32 %v1557_v28, %v2189_v0 }
 0x513   : > { %1592 = vst [vmem:[%s2703_s22 + $0x20] sm:$0xff] %v1584_v12 }
 0x514   : > { %v1575_v29 = vpop.f32.mrf.mxu2 }
 0x515   : > { %v1576_v30 = vadd.f32 %v1575_v29, %v1459_v13 }
 0x516   : > { %v1558_v60 = vpop.f32.mrf.mxu1 }
 0x517   : > { %v1585_v31 = vadd.f32 %v1576_v30, %v2192_v1  ;;  %v1559_v21 = vadd.f32 %v1558_v60, %v1458_v3 }
 0x519   : > { %1593 = vst [vmem:[%s2703_s22 + $0x28] sm:$0xff] %v1585_v31  ;;  %v1586_v8 = vadd.f32 %v1559_v21, %v2199_v6 }
 0x51b   : > { %1594 = vst [vmem:[%s2703_s22 + $0x30] sm:$0xff] %v1586_v8 }
 0x51c   : > { %v1577_v32 = vpop.f32.mrf.mxu2 }
 0x51d   : > { %v1578_v18 = vadd.f32 %v1577_v32, %v1459_v13 }
 0x51f   : > { %v1587_v9 = vadd.f32 %v1578_v18, %v2202_v7 }
 0x521   : > { %1595 = vst [vmem:[%s2703_s22 + $0x38] sm:$0xff] %v1587_v9 }
 0x522 PF: > { %s25_s29 = sadd.s32 1, %s2086_s29  }
 0x523   : > { %p22_p7 = scmp.ge.s32.totalorder %s25_s29, 4  }
 0x525   :  { %24 = sbr.rel (!%p22_p7) target bundleno = 1 (0x1), region = 114 }
 0x52a   :  { %1620 = vsyncpa [#allocation3], 1 }
 0x52b   :  { %1622 = vsyncpa [#allocation3 + $0x1], 1 }

// kernel: bytenet_forward.7
= control target key start
LH: loop header
LB: loop body
LE: loop exit
PB: predicated region body
PF: predicated region fallthrough
CT: control target
= control target key end

     0   :  { %s3143_s0 = inlined_call_operand.vmem [shape: f32[64,256], index: 0, kind: input, shape index: {}, may-alias: {0,14}]   ;;  %s3144_s1 = inlined_call_operand.vmem [shape: f32[64,1], index: 1, kind: input, shape index: {}]   ;;  %s3145_s2 = inlined_call_operand.vmem [shape: f32[1,256], index: 2, kind: input, shape index: {}]   ;;  %s3146_s3 = inlined_call_operand.vmem [shape: f32[1,256], index: 3, kind: input, shape index: {}]   ;;  %s3147_s4 = inlined_call_operand.hbm [shape: bf16[256,128], index: 4, kind: input, shape index: {}]   ;;  %s3148_s5 = inlined_call_operand.hbm [shape: f32[1,128], index: 5, kind: input, shape index: {}]   ;;  %s3149_s6 = inlined_call_operand.hbm [shape: f32[1,128], index: 6, kind: input, shape index: {}]   ;;  %s3150_s7 = inlined_call_operand.hbm [shape: f32[1,128], index: 7, kind: input, shape index: {}]   ;;  %s3151_s8 = inlined_call_operand.vmem [shape: bf16[128,384], index: 8, kind: input, shape index: {}]   ;;  %s3152_s9 = inlined_call_operand.hbm [shape: f32[1,128], index: 9, kind: input, shape index: {}]   ;;  %s3153_s10 = inlined_call_operand.hbm [shape: f32[1,128], index: 10, kind: input, shape index: {}]   ;;  %s3154_s11 = inlined_call_operand.hbm [shape: f32[1,128], index: 11, kind: input, shape index: {}]   ;;  %s3155_s12 = inlined_call_operand.hbm [shape: bf16[128,256], index: 12, kind: input, shape index: {}]   ;;  %s3156_s13 = inlined_call_operand.vmem [shape: f32[1,256], index: 13, kind: input, shape index: {}]   ;;  %s3157_s14 = inlined_call_operand.vmem [shape: f32[64,256], index: 14, kind: output, shape index: {}, may-alias: {0,14}]  }
   0x1   :  { %3159 = sst [smem:[#allocation20_spill]] %s3147_s4 }
   0x2   :  { %3160 = sst [smem:[#allocation21_spill]] %s3148_s5 }
   0x3   :  { %3161 = sst [smem:[#allocation22_spill]] %s3150_s7 }
   0x4   :  { %19 = vsyncpa [#allocation3], 0 }
   0x5   :  { %20 = vsyncpa [#allocation5], 0 }
   0x6   :  { %21 = vsyncpa [#allocation8], 0 }
   0x7   :  { %22 = vsyncpa [#allocation11], 0 }
   0x8   :  { %23 = vsyncpa [#allocation14], 0  ;;  %s2666_s29 = smov 0  }
   0x9 LB: > { %s3162_s5 = sld [smem:[#allocation21_spill]]  ;;  %s3158_s17 = sadd.s32 4294967295, %s2574_s29   ;;  %s2574_s29 = sphi %s2666_s29, %s29_s29  }
   0xa   : > { %p1854_p0 = scmp.ge.s32.totalorder %s2574_s29, 1  ;;  %p364_p1 = scmp.lt.s32.totalorder %s2574_s29, 3 }
   0xb   : > { %p2679_p2 = scmp.eq.s32.totalorder %s3158_s17, 0  ;;  %s2576_s20 = smov [#allocation4]  }
   0xc   : > { %p2683_p3 = pnand %p1854_p0, %p364_p1  ;;  %s398_s21 = sshll.u32 %s2576_s20, 4  ;;  %s399_s21 = int_to_ptr.vmem [resolvable:$true] %s398_s21 }
   0xd   : > { %s3165_s7 = sld [smem:[#allocation22_spill]]  ;;  %s447_s27 = sshll.u32 %s3153_s10, 4  ;;  %s448_s27 = int_to_ptr.hbm [resolvable:$true] %s447_s27 }
   0xe   : > { %p2205_p4 = pneg %p2683_p3  ;;  %s2577_s30 = smov [#allocation7]  }
   0xf   : > { %s396_s16 = sshll.u32 %s3162_s5, 4  ;;  %s422_s15 = sshll.u32 %s2577_s30, 4  ;;  %s397_s16 = int_to_ptr.hbm [resolvable:$true] %s396_s16  ;;  %s423_s15 = int_to_ptr.vmem [resolvable:$true] %s422_s15 }
  0x10   : > { %p2697_p5 = pnand %p2679_p2, %p2205_p4  ;;  %s2578_s20 = smov [#allocation10]  }
  0x11   : > { %s449_s22 = sshll.u32 %s2578_s20, 4  ;;  %s3167_s4 = sld [smem:[#allocation20_spill]]  ;;  %s450_s22 = int_to_ptr.vmem [resolvable:$true] %s449_s22 }
  0x12   : > { %2211 = dma.hbm_to_vmem [thread:$0]  (!%p2697_p5), %s397_s16, 16, %s399_s21, [#allocation5]  }
  0x13   : > { %s420_s24 = sshll.u32 %s3165_s7, 4  ;;  %s2579_s17 = smov [#allocation2]   ;;  %s421_s24 = int_to_ptr.hbm [resolvable:$true] %s420_s24 }
  0x14   : > { %2217 = dma.hbm_to_vmem [thread:$0]  (!%p2697_p5), %s421_s24, 16, %s423_s15, [#allocation8]  }
  0x15   : > { %2223 = dma.hbm_to_vmem [thread:$0]  (!%p2697_p5), %s448_s27, 16, %s450_s22, [#allocation11]  }
  0x16   : > { %s383_s30 = sshll.u32 %s2579_s17, 4  ;;  %s408_s16 = sshll.u32 %s3149_s6, 4  ;;  %s384_s30 = int_to_ptr.vmem [resolvable:$true] %s383_s30  ;;  %s409_s16 = int_to_ptr.hbm [resolvable:$true] %s408_s16 }
  0x17   : > { %s381_s26 = sshll.u32 %s3167_s4, 4  ;;  %s2580_s21 = smov 64   ;;  %s382_s26 = int_to_ptr.hbm [resolvable:$true] %s381_s26 }
  0x18   : > { %s2581_s24 = smov 4   ;;  %s2582_s15 = smov [#allocation6]  }
  0x19   : > { %2208 = dma.hbm_to_vmem [thread:$0]  (!%p2697_p5), %s382_s26, 2048, %s384_s30, [#allocation3], %s2580_s21, %s2580_s21, %s2581_s24  }
  0x1a   : > { %s410_s20 = sshll.u32 %s2582_s15, 4  ;;  %s435_s27 = sshll.u32 %s3152_s9, 4  ;;  %s411_s20 = int_to_ptr.vmem [resolvable:$true] %s410_s20  ;;  %s436_s27 = int_to_ptr.hbm [resolvable:$true] %s435_s27 }
  0x1b   : > { %2214 = dma.hbm_to_vmem [thread:$0]  (!%p2697_p5), %s409_s16, 16, %s411_s20, [#allocation5]  }
  0x1c   : > { %s459_s7 = sshll.u32 %s3154_s11, 4  ;;  %s2583_s22 = smov [#allocation9]   ;;  %s460_s7 = int_to_ptr.hbm [resolvable:$true] %s459_s7 }
  0x1d   : > { %s437_s4 = sshll.u32 %s2583_s22, 4  ;;  %s2584_s26 = smov [#allocation12]   ;;  %s438_s4 = int_to_ptr.vmem [resolvable:$true] %s437_s4 }
  0x1e   : > { %2220 = dma.hbm_to_vmem [thread:$0]  (!%p2697_p5), %s436_s27, 16, %s438_s4, [#allocation8]  }
  0x1f   : > { %s461_s30 = sshll.u32 %s2584_s26, 4  ;;  %s470_s15 = sshll.u32 %s3155_s12, 4  ;;  %s462_s30 = int_to_ptr.vmem [resolvable:$true] %s461_s30  ;;  %s471_s15 = int_to_ptr.hbm [resolvable:$true] %s470_s15 }
  0x20   : > { %2226 = dma.hbm_to_vmem [thread:$0]  (!%p2697_p5), %s460_s7, 16, %s462_s30, [#allocation11]  }
  0x21   : > { %s2585_s16 = smov [#allocation13]   ;;  %s2586_s23 = smov 128  }
  0x22   : > { %s472_s20 = sshll.u32 %s2585_s16, 4  ;;  %s2587_s25 = smov 8   ;;  %s473_s20 = int_to_ptr.vmem [resolvable:$true] %s472_s20 }
  0x23   : > { %2229 = dma.hbm_to_vmem [thread:$0]  (!%p2697_p5), %s471_s15, 2048, %s473_s20, [#allocation14], %s2586_s23, %s2586_s23, %s2587_s25  }
  0x24   : > { %510 = sbr.rel (%p2683_p3) target bundleno = 1353 (0x549), region = 76 }
  0x29   : > { %2553 = dma.done.wait (%p2679_p2), [#allocation3], 2048  }
  0x2a   : > { %2555 = vsyncadd (%p2679_p2), [#allocation3], 4294965248 }
  0x2b   : > { %2557 = dma.done.wait (%p2679_p2), [#allocation5], 32  }
  0x2c   : > { %2559 = vsyncadd (%p2679_p2), [#allocation5], 4294967264 }
  0x2d   : > { %2561 = dma.done.wait (%p2679_p2), [#allocation8], 32  }
  0x2e   : > { %2563 = vsyncadd (%p2679_p2), [#allocation8], 4294967264 }
  0x2f   : > { %2565 = dma.done.wait (%p2679_p2), [#allocation11], 32  }
  0x30   : > { %2567 = vsyncadd (%p2679_p2), [#allocation11], 4294967264 }
  0x31   : > { %2569 = dma.done.wait (%p2679_p2), [#allocation14], 2048  }
  0x32   : > { %2571 = vsyncadd (%p2679_p2), [#allocation14], 4294965248  ;;  %s3168_s4 = sadd.s32 4294967295, %s2574_s29   ;;  %v2588_v12 = vmov 256.0   ;;  %v2116_v47 = vld [vmem:[#allocation2 + $0x38] sm:$0xff]  ;;  %v2115_v49 = vld [vmem:[#allocation2 + $0x30] sm:$0xff] }
  0x33   : > { %s1873_s19 = sshll.u32 %s3168_s4, 2  ;;  %2278 = vrcp.f32 %v2588_v12  ;;  %v2124_v48 = vld [vmem:[#allocation2 + $0x78] sm:$0xff]  ;;  %906 = vmatpush.bf16.msra.mxu0 %v2116_v47  ;;  %v2123_v50 = vld [vmem:[#allocation2 + $0x70] sm:$0xff]  ;;  %v2114_v51 = vld [vmem:[#allocation2 + $0x28] sm:$0xff] }
  0x34   : > { %p600_p6 = scmp.lt.s32.totalorder %s1873_s19, 7  ;;  %925 = vmatpush.bf16.msra.mxu1 %v2124_v48  ;;  %v2122_v52 = vld [vmem:[#allocation2 + $0x68] sm:$0xff]  ;;  %v2113_v53 = vld [vmem:[#allocation2 + $0x20] sm:$0xff]  ;;  %v2112_v55 = vld [vmem:[#allocation2 + $0x18] sm:$0xff] }
  0x35   : > { %v2121_v54 = vld [vmem:[#allocation2 + $0x60] sm:$0xff]  ;;  %v2120_v56 = vld [vmem:[#allocation2 + $0x58] sm:$0xff]  ;;  %v2111_v57 = vld [vmem:[#allocation2 + $0x10] sm:$0xff] }
  0x36   : > { %s3170_s19 = smov (!%p600_p6, %s1873_s19), 7  ;;  %v2119_v58 = vld [vmem:[#allocation2 + $0x50] sm:$0xff]  ;;  %v2110_v59 = vld [vmem:[#allocation2 + $0x8] sm:$0xff] }
  0x37   : > { %s2107_s28 = sshll.u32 %s3170_s19, 4  ;;  %907 = vmatpush.bf16.msra.mxu0 %v2115_v49  ;;  %v2118_v60 = vld [vmem:[#allocation2 + $0x48] sm:$0xff]  ;;  %s1877_s30 = sshll.u32 %s3170_s19, 3 }
  0x38   : > { %s2764_s5 = scalar_lea.vmem %s3143_s0, %s2107_s28  ;;  %926 = vmatpush.bf16.msra.mxu1 %v2123_v50  ;;  %v628_v50 = vld [vmem:[%s3146_s3] sm:$0x3]  ;;  %s2863_s15 = scalar_lea.vmem %s3144_s1, %s1877_s30 }
  0x39   : > { %v2767_v0 = vld [vmem:[%s2764_s5 + $0x20] sm:$0xff]  ;;  %v2770_v1 = vld [vmem:[%s2764_s5 + $0x28] sm:$0xff]  ;;  %v2777_v6 = vld [vmem:[%s2764_s5 + $0x30] sm:$0xff]  ;;  %v2279_v13 = vpop.eup %2278  ;;  %s3122_s26 = scalar_lea.vmem %s3157_s14, %s2107_s28 }
  0x3a   : > { %v619_v2 = vld [vmem:[%s2764_s5] sm:$0xff]  ;;  %v635_v3 = vadd.f32 %v2770_v1, %v2767_v0  ;;  %v620_v4 = vld [vmem:[%s2764_s5 + $0x8] sm:$0xff]  ;;  %v2780_v7 = vld [vmem:[%s2764_s5 + $0x38] sm:$0xff]  ;;  %v642_v14 = vmul.f32 256.0, %v2279_v13  ;;  %vm646_vm0 = vweird.f32 %v2279_v13 }
  0x3b   : > { %v629_v5 = vadd.f32 %v620_v4, %v619_v2  ;;  %v2783_v8 = vld [vmem:[%s2764_s5 + $0x10] sm:$0xff]  ;;  %v2786_v9 = vld [vmem:[%s2764_s5 + $0x18] sm:$0xff]  ;;  %v638_v10 = vadd.f32 %v2780_v7, %v2777_v6  ;;  %908 = vmatpush.bf16.msra.mxu0 %v2114_v51 }
  0x3c   : > { %636 = vadd.xlane.f32.xlu1 %v635_v3  ;;  %v632_v11 = vadd.f32 %v2786_v9, %v2783_v8  ;;  %v643_v15 = vsub.f32 1.0, %v642_v14  ;;  %927 = vmatpush.bf16.msra.mxu1 %v2122_v52  ;;  %v2109_v3 = vld [vmem:[#allocation2] sm:$0xff] }
  0x3d   : > { %630 = vadd.xlane.f32.xlu0 %v629_v5 }
  0x3e   : > { %v644_v16 = vmul.f32 %v2279_v13, %v643_v15 }
  0x3f   : > { %909 = vmatpush.bf16.msra.mxu0 %v2113_v53 }
  0x40   : > { %v645_v17 = vadd.f32 %v2279_v13, %v644_v16  ;;  %928 = vmatpush.bf16.msra.mxu1 %v2121_v54  ;;  %v750_v54 = vperm.slane %v628_v50, 0 }
  0x42   : > { %v2792_v18 = vsel %vm646_vm0, %v2279_v13, %v645_v17 }
  0x43   : > { %910 = vmatpush.bf16.msra.mxu0 %v2112_v55 }
  0x44   : > { %639 = vadd.xlane.f32.xlu1 %v638_v10  ;;  %929 = vmatpush.bf16.msra.mxu1 %v2120_v56  ;;  %v751_v56 = vperm.slane %v628_v50, 1 }
  0x45   : > { %633 = vadd.xlane.f32.xlu0 %v632_v11 }
  0x47   : > { %911 = vmatpush.bf16.msra.mxu0 %v2111_v57 }
  0x48   : > { %930 = vmatpush.bf16.msra.mxu1 %v2119_v58 }
  0x4b   : > { %912 = vmatpush.bf16.msra.mxu0 %v2110_v59 }
  0x4c   : > { %931 = vmatpush.bf16.msra.mxu1 %v2118_v60 }
  0x4f   : > { %913 = vmatpush.bf16.msra.mxu0 %v2109_v3 }
  0xaf   : > { %v637_v19 = vpop.xlane.xlu1 %636 }
  0xb0   : > { %v650_v20 = vmul.f32 %v2792_v18, %v637_v19  ;;  %v631_v21 = vpop.xlane.xlu0 %630 }
  0xb1   : > { %v648_v22 = vmul.f32 %v2792_v18, %v631_v21 }
  0xb2   : > { %v2797_v23 = vsub.f32 %v2767_v0, %v650_v20  ;;  %v2800_v24 = vsub.f32 %v2770_v1, %v650_v20 }
  0xb3   : > { %v2802_v25 = vsub.f32 %v619_v2, %v648_v22  ;;  %v2804_v26 = vsub.f32 %v620_v4, %v648_v22  ;;  %v2117_v4 = vld [vmem:[#allocation2 + $0x40] sm:$0xff] }
  0xb4   : > { %v664_v27 = vmul.f32 %v2797_v23, %v2797_v23  ;;  %v665_v28 = vmul.f32 %v2800_v24, %v2800_v24  ;;  %932 = vmatpush.bf16.msra.mxu1 %v2117_v4 }
  0xb5   : > { %v660_v29 = vmul.f32 %v2802_v25, %v2802_v25  ;;  %v661_v30 = vmul.f32 %v2804_v26, %v2804_v26 }
  0xb6   : > { %v674_v31 = vadd.f32 %v665_v28, %v664_v27 }
  0xb7   : > { %v640_v32 = vpop.xlane.xlu1 %639  ;;  %v668_v33 = vadd.f32 %v661_v30, %v660_v29 }
  0xb8   : > { %v651_v34 = vmul.f32 %v2792_v18, %v640_v32  ;;  %v634_v35 = vpop.xlane.xlu0 %633  ;;  %675 = vadd.xlane.f32.xlu0 %v674_v31 }
  0xb9   : > { %v649_v36 = vmul.f32 %v2792_v18, %v634_v35  ;;  %669 = vadd.xlane.f32.xlu2 %v668_v33 }
  0xba   : > { %v2817_v37 = vsub.f32 %v2777_v6, %v651_v34  ;;  %v2820_v38 = vsub.f32 %v2780_v7, %v651_v34 }
  0xbb   : > { %v2823_v39 = vsub.f32 %v2783_v8, %v649_v36  ;;  %v2826_v40 = vsub.f32 %v2786_v9, %v649_v36 }
  0xbc   : > { %v666_v41 = vmul.f32 %v2817_v37, %v2817_v37  ;;  %v667_v42 = vmul.f32 %v2820_v38, %v2820_v38 }
  0xbd   : > { %v662_v43 = vmul.f32 %v2823_v39, %v2823_v39  ;;  %v663_v44 = vmul.f32 %v2826_v40, %v2826_v40 }
  0xbe   : > { %v677_v45 = vadd.f32 %v667_v42, %v666_v41  ;;  %v627_v41 = vld [vmem:[%s3145_s2] sm:$0x3] }
  0xbf   : > { %v671_v46 = vadd.f32 %v663_v44, %v662_v43  ;;  %v738_v47 = vperm.slane %v627_v41, 1 }
  0xc0   : > { %678 = vadd.xlane.f32.xlu1 %v677_v45  ;;  %v737_v45 = vperm.slane %v627_v41, 0 }
  0xc1   : > { %672 = vadd.xlane.f32.xlu2 %v671_v46 }
 0x12b   : > { %v676_v61 = vpop.xlane.xlu0 %675 }
 0x12c   : > { %v670_v62 = vpop.xlane.xlu2 %669  ;;  %v682_v2 = vmul.f32 %v676_v61, %v2792_v18 }
 0x12d   : > { %v680_v63 = vmul.f32 %v670_v62, %v2792_v18 }
 0x12e   : > { %v2838_v10 = vadd.f32 1e-05, %v682_v2 }
 0x12f   : > { %v684_v5 = vadd.f32 1e-05, %v680_v63 }
 0x130   : > { %vm714_vm9 = vweird.f32 %v2838_v10 }
 0x131   : > { %2280 = vrsqrt.f32 %v684_v5  ;;  %vm694_vm2 = vweird.f32 %v684_v5 }
 0x132   : > { %2282 = vrsqrt.f32 %v2838_v10 }
 0x133   : > { %v679_v11 = vpop.xlane.xlu1 %678 }
 0x134   : > { %v683_v12 = vmul.f32 %v679_v11, %v2792_v18  ;;  %v673_v13 = vpop.xlane.xlu2 %672 }
 0x135   : > { %v681_v14 = vmul.f32 %v673_v13, %v2792_v18 }
 0x136   : > { %v687_v15 = vadd.f32 1e-05, %v683_v12 }
 0x137   : > { %v2281_v16 = vpop.eup %2280  ;;  %v685_v17 = vadd.f32 1e-05, %v681_v14 }
 0x138   : > { %v689_v19 = vmul.f32 %v2281_v16, %v684_v5  ;;  %2284 = vrsqrt.f32 %v687_v15  ;;  %v2283_v21 = vpop.eup %2282  ;;  %vm695_vm1 = vweird.f32 %v2281_v16  ;;  %vm724_vm7 = vweird.f32 %v687_v15 }
 0x139   : > { %2286 = vrsqrt.f32 %v685_v17  ;;  %v709_v29 = vmul.f32 %v2283_v21, %v2838_v10  ;;  %vm696_vm3 = vmor %vm694_vm2, %vm695_vm1  ;;  %vm704_vm5 = vweird.f32 %v685_v17  ;;  %vm715_vm10 = vweird.f32 %v2283_v21 }
 0x13a   : > { %v690_v20 = vmul.f32 %v2281_v16, %v689_v19  ;;  %vm716_vm12 = vmor %vm714_vm9, %vm715_vm10 }
 0x13b   : > { %v710_v35 = vmul.f32 %v2283_v21, %v709_v29 }
 0x13c   : > { %v691_v22 = vmul.f32 0.5, %v690_v20 }
 0x13d   : > { %v711_v48 = vmul.f32 0.5, %v710_v35  ;;  %v2272_v35 = vld [vmem:[#allocation4] ss:$0 sm:$0xff] }
 0x13e   : > { %v2285_v27 = vpop.eup %2284  ;;  %v692_v28 = vsub.f32 1.5, %v691_v22 }
 0x13f   : > { %v2287_v30 = vpop.eup %2286  ;;  %v719_v31 = vmul.f32 %v2285_v27, %v687_v15  ;;  %vm725_vm8 = vweird.f32 %v2285_v27 }
 0x140   : > { %v693_v32 = vmul.f32 %v2281_v16, %v692_v28  ;;  %v699_v33 = vmul.f32 %v2287_v30, %v685_v17  ;;  %vm705_vm4 = vweird.f32 %v2287_v30  ;;  %vm726_vm11 = vmor %vm724_vm7, %vm725_vm8 }
 0x141   : > { %v720_v18 = vmul.f32 %v2285_v27, %v719_v31  ;;  %vm706_vm6 = vmor %vm704_vm5, %vm705_vm4 }
 0x142   : > { %v697_v34 = vsel %vm696_vm3, %v2281_v16, %v693_v32  ;;  %v700_v36 = vmul.f32 %v2287_v30, %v699_v33 }
 0x143   : > { %v721_v42 = vmul.f32 0.5, %v720_v18  ;;  %v728_v44 = vmul.f32 %v697_v34, %v2802_v25  ;;  %v729_v46 = vmul.f32 %v697_v34, %v2804_v26  ;;  %v712_v25 = vsub.f32 1.5, %v711_v48 }
 0x144   : > { %v701_v43 = vmul.f32 0.5, %v700_v36 }
 0x145   : > { %v722_v51 = vsub.f32 1.5, %v721_v42  ;;  %v741_v53 = vmul.f32 %v737_v45, %v728_v44  ;;  %v742_v55 = vmul.f32 %v738_v47, %v729_v46  ;;  %v713_v2 = vmul.f32 %v2283_v21, %v712_v25 }
 0x146   : > { %v702_v49 = vsub.f32 1.5, %v701_v43 }
 0x147   : > { %v723_v59 = vmul.f32 %v2285_v27, %v722_v51  ;;  %v754_v61 = vadd.f32 %v750_v54, %v741_v53  ;;  %v755_v63 = vadd.f32 %v751_v56, %v742_v55  ;;  %v717_v14 = vsel %vm716_vm12, %v2283_v21, %v713_v2  ;;  %v1052_v55 = vld [vmem:[%s2863_s15 + $0x8] sm:$0xff] }
 0x148   : > { %v703_v52 = vmul.f32 %v2287_v30, %v702_v49  ;;  %v732_v17 = vmul.f32 %v717_v14, %v2797_v23  ;;  %v733_v19 = vmul.f32 %v717_v14, %v2800_v24  ;;  %v2589_v23 = vmov 0  }
 0x149   : > { %v727_v5 = vsel %vm726_vm11, %v2285_v27, %v723_v59  ;;  %v762_v11 = vmax.f32 %v754_v61, 0.0  ;;  %v763_v13 = vmax.f32 %v755_v63, 0.0  ;;  %2270 = vset.pattern.permute.xlu2 %v2589_v23  ;;  %2269 = vset.pattern.permute.xlu1 %v2589_v23 }
 0x14a   : > { %v707_v26 = vsel %vm706_vm6, %v2287_v30, %v703_v52  ;;  %v734_v10 = vmul.f32 %v727_v5, %v2817_v37  ;;  %v735_v16 = vmul.f32 %v727_v5, %v2820_v38  ;;  %v745_v27 = vmul.f32 %v737_v45, %v732_v17  ;;  %2271 = vset.pattern.permute.xlu0 %v2589_v23  ;;  %v1051_v17 = vld [vmem:[%s2863_s15] sm:$0xff]  ;;  %v2027_v23 = vld [vmem:[%s3151_s8 + $0x98] sm:$0xf] }
 0x14b   : > { %v730_v57 = vmul.f32 %v707_v26, %v2823_v39  ;;  %v731_v58 = vmul.f32 %v707_v26, %v2826_v40  ;;  %v746_v28 = vmul.f32 %v738_v47, %v733_v19  ;;  %v1054_v19 = vld [vmem:[%s2863_s15 + $0x18] sm:$0xff] }
 0x14c   : > { %v747_v20 = vmul.f32 %v737_v45, %v734_v10  ;;  %v748_v22 = vmul.f32 %v738_v47, %v735_v16  ;;  %v758_v31 = vadd.f32 %v750_v54, %v745_v27  ;;  %v2147_v27 = vld [vmem:[%s3151_s8 + $0xb0] sm:$0xf0] }
 0x14d   : > { %v743_v60 = vmul.f32 %v737_v45, %v730_v57  ;;  %v744_v62 = vmul.f32 %v738_v47, %v731_v58  ;;  %v759_v21 = vadd.f32 %v751_v56, %v746_v28  ;;  %v2146_v28 = vld [vmem:[%s3151_s8 + $0xac] sm:$0xf] }
 0x14e   : > { %v760_v29 = vadd.f32 %v750_v54, %v747_v20  ;;  %v761_v30 = vadd.f32 %v751_v56, %v748_v22  ;;  %v766_v18 = vmax.f32 %v758_v31, 0.0  ;;  %v1053_v20 = vld [vmem:[%s2863_s15 + $0x10] sm:$0xff]  ;;  %v2031_v22 = vld [vmem:[%s3151_s8 + $0xa8] sm:$0xf] }
 0x14f   : > { %v756_v3 = vadd.f32 %v750_v54, %v743_v60  ;;  %v757_v4 = vadd.f32 %v751_v56, %v744_v62  ;;  %v767_v37 = vmax.f32 %v759_v21, 0.0  ;;  %v2590_v56 = vmov 128.0   ;;  %v2039_v31 = vld [vmem:[%s3151_s8 + $0xb0] sm:$0xf]  ;;  %v2148_v21 = vld [vmem:[%s3151_s8 + $0xb8] sm:$0xf0] }
 0x150   : > { %v768_v32 = vmax.f32 %v760_v29, 0.0  ;;  %v769_v33 = vmax.f32 %v761_v30, 0.0  ;;  %2288 = vrcp.f32 %v2590_v56  ;;  %v2032_v29 = vor.u32 %v2147_v27, %v2031_v22  ;;  %v2033_v30 = vld [vmem:[%s3151_s8 + $0xb4] sm:$0xf0]  ;;  %v2003_v56 = vld [vmem:[%s3151_s8 + $0x68] sm:$0xf] }
 0x151   : > { %v764_v12 = vmax.f32 %v756_v3, 0.0  ;;  %v765_v39 = vmax.f32 %v757_v4, 0.0 }
 0x152   : > { %v772_v34 = vpack.c.bf16 %v768_v32, %v766_v18  ;;  %v773_v38 = vpack.c.bf16 %v769_v33, %v767_v37  ;;  %v2036_v32 = vor.u32 %v2146_v28, %v2033_v30  ;;  %v2909_v33 = vor.u32 %v2148_v21, %v2039_v31  ;;  %1241 = vmatpush.bf16.msra.mxu2 %v2032_v29  ;;  %v2019_v18 = vld [vmem:[%s3151_s8 + $0x90] sm:$0xf]  ;;  %v2144_v37 = vld [vmem:[%s3151_s8 + $0x98] sm:$0xf0]  ;;  %v1959_v29 = vld [vmem:[%s3151_s8 + $0x18] sm:$0xf] }
 0x153   : > { %v770_v40 = vpack.c.bf16 %v764_v12, %v762_v11  ;;  %v771_v15 = vpack.c.bf16 %v765_v39, %v763_v13  ;;  %v2129_v30 = vld [vmem:[%s3151_s8 + $0x20] sm:$0xf0]  ;;  %v2128_v31 = vld [vmem:[%s3151_s8 + $0x1c] sm:$0xf] }
 0x154   : > { %1260 = vmatpush.bf16.msra.mxu3 %v2036_v32  ;;  %1279 = vmatpush.bf16.msrb.mxu0 %v2909_v33  ;;  %v1960_v21 = vor.u32 %v2129_v30, %v1959_v29  ;;  %v1961_v32 = vld [vmem:[%s3151_s8 + $0x24] sm:$0xf0] }
 0x155   : > { %914 = vmatmul.bf16.vlgmr.msra.gmra.mxu0 %v770_v40  ;;  %933 = vmatmul.bf16.vlgmr.msra.gmra.mxu1 %v771_v15 }
 0x156   : > { %v2289_v25 = vpop.eup %2288 }
 0x157   : > { %v955_v26 = vmul.f32 128.0, %v2289_v25  ;;  %vm959_vm13 = vweird.f32 %v2289_v25 }
 0x159   : > { %v956_v57 = vsub.f32 1.0, %v955_v26 }
 0x15b   : > { %v957_v58 = vmul.f32 %v2289_v25, %v956_v57 }
 0x15d   : > { %v958_v59 = vadd.f32 %v2289_v25, %v957_v58  ;;  %v1983_v58 = vld [vmem:[%s3151_s8 + $0x48] sm:$0xf] }
 0x15f   : > { %v2866_v60 = vsel %vm959_vm13, %v2289_v25, %v958_v59  ;;  %v2139_v25 = vld [vmem:[%s3151_s8 + $0x70] sm:$0xf0] }
 0x160   : > { %v2972_v57 = vor.u32 %v2139_v25, %v2003_v56  ;;  %v2135_v59 = vld [vmem:[%s3151_s8 + $0x50] sm:$0xf0] }
 0x165   : > { %919 = vmatmul.bf16.gmra.mxu0 %v772_v34  ;;  %938 = vmatmul.bf16.gmra.mxu1 %v773_v38  ;;  %v2143_v34 = vld [vmem:[%s3151_s8 + $0x94] sm:$0xf]  ;;  %v2020_v38 = vor.u32 %v2144_v37, %v2019_v18  ;;  %v1967_v18 = vld [vmem:[%s3151_s8 + $0x20] sm:$0xf]  ;;  %v2130_v37 = vld [vmem:[%s3151_s8 + $0x28] sm:$0xf0] }
 0x167   : > { %1242 = vmatpush.bf16.msra.mxu2 %v2020_v38  ;;  %v1964_v38 = vor.u32 %v2128_v31, %v1961_v32 }
 0x1d2   : > { %v915_v24 = vpop.f32.mrf.mxu0  ;;  %v934_v36 = vpop.f32.mrf.mxu1 }
 0x1d3   : > { %v916_v41 = vadd.f32 %v2272_v35, %v915_v24  ;;  %v2145_v24 = vld [vmem:[%s3151_s8 + $0xa0] sm:$0xf0] }
 0x1d5   : > { %v935_v42 = vadd.f32 %v934_v36, %v916_v41  ;;  %v2930_v41 = vor.u32 %v2145_v24, %v2027_v23  ;;  %v1947_v23 = vld [vmem:[%s3151_s8] sm:$0xf]  ;;  %v2126_v24 = vld [vmem:[%s3151_s8 + $0x8] sm:$0xf0] }
 0x1d7   : > { %946 = vadd.xlane.f32.xlu2 %v935_v42  ;;  %1280 = vmatpush.bf16.msrb.mxu0 %v2930_v41 }
 0x1da   : > { %v917_v43 = vpop.f32.mrf.mxu0  ;;  %v936_v44 = vpop.f32.mrf.mxu1 }
 0x1db   : > { %v918_v45 = vadd.f32 %v2272_v35, %v917_v43  ;;  %v2141_v43 = vld [vmem:[%s3151_s8 + $0x80] sm:$0xf0] }
 0x1dd   : > { %v937_v46 = vadd.f32 %v936_v44, %v918_v45  ;;  %v2140_v44 = vld [vmem:[%s3151_s8 + $0x7c] sm:$0xf] }
 0x1df   : > { %948 = vadd.xlane.f32.xlu0 %v937_v46 }
 0x1e2   : > { %v920_v47 = vpop.f32.mrf.mxu0  ;;  %v939_v48 = vpop.f32.mrf.mxu1 }
 0x1e3   : > { %v921_v49 = vadd.f32 %v2272_v35, %v920_v47  ;;  %v2015_v47 = vld [vmem:[%s3151_s8 + $0x80] sm:$0xf] }
 0x1e5   : > { %v940_v50 = vadd.f32 %v939_v48, %v921_v49  ;;  %v2142_v48 = vld [vmem:[%s3151_s8 + $0x88] sm:$0xf0] }
 0x1e7   : > { %950 = vadd.xlane.f32.xlu1 %v940_v50 }
 0x1ea   : > { %v922_v51 = vpop.f32.mrf.mxu0  ;;  %v941_v53 = vpop.f32.mrf.mxu1 }
 0x1eb   : > { %v923_v52 = vadd.f32 %v2272_v35, %v922_v51  ;;  %v2021_v35 = vld [vmem:[%s3151_s8 + $0x9c] sm:$0xf0] }
 0x1ec   : > { %v2024_v36 = vor.u32 %v2143_v34, %v2021_v35  ;;  %v1995_v51 = vld [vmem:[%s3151_s8 + $0x60] sm:$0xf]  ;;  %v3036_v35 = vor.u32 %v2130_v37, %v1967_v18 }
 0x1ed   : > { %v942_v54 = vadd.f32 %v941_v53, %v923_v52  ;;  %v2138_v52 = vld [vmem:[%s3151_s8 + $0x68] sm:$0xf0]  ;;  %v2137_v53 = vld [vmem:[%s3151_s8 + $0x64] sm:$0xf] }
 0x1ee   : > { %1261 = vmatpush.bf16.msra.mxu3 %v2024_v36  ;;  %v2125_v36 = vld [vmem:[%s3151_s8 + $0x4] sm:$0xf] }
 0x1ef   : > { %952 = vadd.xlane.f32.xlu2 %v942_v54 }
 0x207   : > { %1062 = vperm.xlu2 %2270, %v1052_v55   ;;  %v1997_v55 = vld [vmem:[%s3151_s8 + $0x6c] sm:$0xf0] }
 0x208   : > { %v2000_v26 = vor.u32 %v2137_v53, %v1997_v55 }
 0x24a   : > { %v947_v61 = vpop.xlane.xlu2 %946 }
 0x24b   : > { %v961_v62 = vmul.f32 %v2866_v60, %v947_v61  ;;  %v2134_v61 = vld [vmem:[%s3151_s8 + $0x4c] sm:$0xf] }
 0x24d   : > { %v2869_v63 = vsub.f32 %v935_v42, %v961_v62  ;;  %v2007_v42 = vld [vmem:[%s3151_s8 + $0x78] sm:$0xf]  ;;  %v1984_v62 = vor.u32 %v2135_v59, %v1983_v58 }
 0x24e   : > { %v2008_v45 = vor.u32 %v2141_v43, %v2007_v42  ;;  %v1948_v42 = vor.u32 %v2126_v24, %v1947_v23  ;;  %v1949_v43 = vld [vmem:[%s3151_s8 + $0xc] sm:$0xf0] }
 0x24f   : > { %v969_v2 = vmul.f32 %v2869_v63, %v2869_v63 }
 0x250   : > { %1243 = vmatpush.bf16.msra.mxu2 %v2008_v45  ;;  %v2127_v45 = vld [vmem:[%s3151_s8 + $0x10] sm:$0xf0] }
 0x251   : > { %973 = vadd.xlane.f32.xlu0 %v969_v2  ;;  %v1985_v2 = vld [vmem:[%s3151_s8 + $0x54] sm:$0xf0] }
 0x252   : > { %v949_v3 = vpop.xlane.xlu0 %948 }
 0x253   : > { %v962_v4 = vmul.f32 %v2866_v60, %v949_v3  ;;  %v1991_v3 = vld [vmem:[%s3151_s8 + $0x50] sm:$0xf] }
 0x255   : > { %v2874_v5 = vsub.f32 %v937_v46, %v962_v4  ;;  %v2009_v46 = vld [vmem:[%s3151_s8 + $0x84] sm:$0xf0]  ;;  %v2136_v4 = vld [vmem:[%s3151_s8 + $0x58] sm:$0xf0] }
 0x256   : > { %v2012_v49 = vor.u32 %v2140_v44, %v2009_v46  ;;  %v1955_v44 = vld [vmem:[%s3151_s8 + $0x8] sm:$0xf]  ;;  %v1952_v46 = vor.u32 %v2125_v36, %v1949_v43 }
 0x257   : > { %v970_v11 = vmul.f32 %v2874_v5, %v2874_v5 }
 0x258   : > { %1262 = vmatpush.bf16.msra.mxu3 %v2012_v49 }
 0x259   : > { %975 = vadd.xlane.f32.xlu1 %v970_v11  ;;  %v1988_v11 = vor.u32 %v2134_v61, %v1985_v2 }
 0x25a   : > { %v951_v12 = vpop.xlane.xlu1 %950 }
 0x25b   : > { %v963_v13 = vmul.f32 %v2866_v60, %v951_v12  ;;  %v2993_v12 = vor.u32 %v2136_v4, %v1991_v3 }
 0x25c   : > { %1263 = vmatpush.bf16.msra.mxu3 %v2000_v26 }
 0x25d   : > { %v2879_v39 = vsub.f32 %v940_v50, %v963_v13  ;;  %v2951_v50 = vor.u32 %v2142_v48, %v2015_v47  ;;  %v1971_v13 = vld [vmem:[%s3151_s8 + $0x30] sm:$0xf]  ;;  %v3057_v47 = vor.u32 %v2127_v45, %v1955_v44 }
 0x25f   : > { %v971_v14 = vmul.f32 %v2879_v39, %v2879_v39  ;;  %1281 = vmatpush.bf16.msrb.mxu0 %v2951_v50 }
 0x260   : > { %1264 = vmatpush.bf16.msra.mxu3 %v1988_v11 }
 0x261   : > { %977 = vadd.xlane.f32.xlu2 %v971_v14  ;;  %v2132_v14 = vld [vmem:[%s3151_s8 + $0x38] sm:$0xf0] }
 0x262   : > { %v953_v40 = vpop.xlane.xlu2 %952 }
 0x263   : > { %v964_v15 = vmul.f32 %v2866_v60, %v953_v40  ;;  %1282 = vmatpush.bf16.msrb.mxu0 %v2972_v57  ;;  %v2131_v40 = vld [vmem:[%s3151_s8 + $0x34] sm:$0xf] }
 0x265   : > { %v2884_v10 = vsub.f32 %v942_v54, %v964_v15  ;;  %v1996_v54 = vor.u32 %v2138_v52, %v1995_v51  ;;  %v1972_v15 = vor.u32 %v2132_v14, %v1971_v13  ;;  %v2273_v13 = vld [vmem:[#allocation6] ss:$0 sm:$0xff] }
 0x267   : > { %v972_v16 = vmul.f32 %v2884_v10, %v2884_v10  ;;  %1244 = vmatpush.bf16.msra.mxu2 %v1996_v54  ;;  %1283 = vmatpush.bf16.msrb.mxu0 %v2993_v12 }
 0x269   : > { %979 = vadd.xlane.f32.xlu0 %v972_v16  ;;  %v1973_v16 = vld [vmem:[%s3151_s8 + $0x3c] sm:$0xf0] }
 0x26a   : > { %v3059_v48 = vpop.permute.xlu2 %1062 }
 0x26b   : > { %1245 = vmatpush.bf16.msra.mxu2 %v1984_v62 }
 0x26f   : > { %1246 = vmatpush.bf16.msra.mxu2 %v1972_v15 }
 0x272   : > { %1057 = vperm.xlu1 %2269, %v1051_v17   ;;  %v1979_v17 = vld [vmem:[%s3151_s8 + $0x38] sm:$0xf] }
 0x273   : > { %1247 = vmatpush.bf16.msra.mxu2 %v1960_v21 }
 0x277   : > { %1248 = vmatpush.bf16.msra.mxu2 %v1948_v42 }
 0x279   : > { %1072 = vperm.xlu2 %2270, %v1054_v19   ;;  %v2133_v19 = vld [vmem:[%s3151_s8 + $0x40] sm:$0xf0] }
 0x27a   : > { %v3014_v22 = vor.u32 %v2133_v19, %v1979_v17  ;;  %v2274_v19 = vld [vmem:[#allocation7] ss:$0 sm:$0xff] }
 0x27c   : > { %1284 = vmatpush.bf16.msrb.mxu0 %v3014_v22 }
 0x27d   : > { %1067 = vperm.xlu0 %2271, %v1053_v20   ;;  %v1976_v20 = vor.u32 %v2131_v40, %v1973_v16 }
 0x27f   : > { %1265 = vmatpush.bf16.msra.mxu3 %v1976_v20 }
 0x280   : > { %1285 = vmatpush.bf16.msrb.mxu0 %v3036_v35 }
 0x283   : > { %1266 = vmatpush.bf16.msra.mxu3 %v1964_v38 }
 0x284   : > { %1286 = vmatpush.bf16.msrb.mxu0 %v3057_v47 }
 0x287   : > { %1267 = vmatpush.bf16.msra.mxu3 %v1952_v46 }
 0x28b   : > { %2165 = vmatpush.bf16.msrb.mxu3 %v2909_v33 }
 0x28f   : > { %2166 = vmatpush.bf16.msrb.mxu3 %v2930_v41 }
 0x293   : > { %2167 = vmatpush.bf16.msrb.mxu3 %v2951_v50 }
 0x297   : > { %2168 = vmatpush.bf16.msrb.mxu3 %v2972_v57 }
 0x29b   : > { %2169 = vmatpush.bf16.msrb.mxu3 %v2993_v12 }
 0x29f   : > { %2170 = vmatpush.bf16.msrb.mxu3 %v3014_v22 }
 0x2a3   : > { %2171 = vmatpush.bf16.msrb.mxu3 %v3036_v35 }
 0x2a7   : > { %2172 = vmatpush.bf16.msrb.mxu3 %v3057_v47 }
 0x2c4   : > { %v974_v27 = vpop.xlane.xlu0 %973 }
 0x2c5   : > { %v981_v28 = vmul.f32 %v974_v27, %v2866_v60 }
 0x2c7   : > { %v985_v34 = vadd.f32 1e-05, %v981_v28 }
 0x2c9   : > { %2290 = vrsqrt.f32 %v985_v34  ;;  %vm995_vm15 = vweird.f32 %v985_v34 }
 0x2cc   : > { %v976_v49 = vpop.xlane.xlu1 %975 }
 0x2cd   : > { %v982_v51 = vmul.f32 %v976_v49, %v2866_v60 }
 0x2cf   : > { %v2291_v52 = vpop.eup %2290  ;;  %v986_v53 = vadd.f32 1e-05, %v982_v51 }
 0x2d0   : > { %v990_v54 = vmul.f32 %v2291_v52, %v985_v34  ;;  %vm996_vm14 = vweird.f32 %v2291_v52 }
 0x2d1   : > { %2292 = vrsqrt.f32 %v986_v53  ;;  %vm997_vm0 = vmor %vm995_vm15, %vm996_vm14  ;;  %vm1005_vm2 = vweird.f32 %v986_v53 }
 0x2d2   : > { %v991_v55 = vmul.f32 %v2291_v52, %v990_v54 }
 0x2d4   : > { %v992_v56 = vmul.f32 0.5, %v991_v55  ;;  %v978_v25 = vpop.xlane.xlu2 %977 }
 0x2d5   : > { %v983_v26 = vmul.f32 %v978_v25, %v2866_v60 }
 0x2d6   : > { %v993_v58 = vsub.f32 1.5, %v992_v56 }
 0x2d7   : > { %v2293_v59 = vpop.eup %2292  ;;  %v987_v61 = vadd.f32 1e-05, %v983_v26 }
 0x2d8   : > { %v994_v62 = vmul.f32 %v2291_v52, %v993_v58  ;;  %v1000_v33 = vmul.f32 %v2293_v59, %v986_v53  ;;  %vm1006_vm1 = vweird.f32 %v2293_v59 }
 0x2d9   : > { %2294 = vrsqrt.f32 %v987_v61  ;;  %vm1007_vm3 = vmor %vm1005_vm2, %vm1006_vm1  ;;  %vm1015_vm5 = vweird.f32 %v987_v61 }
 0x2da   : > { %v1001_v2 = vmul.f32 %v2293_v59, %v1000_v33  ;;  %v998_v3 = vsel %vm997_vm0, %v2291_v52, %v994_v62  ;;  %v1298_v62 = vlaneseq }
 0x2db   : > { %v1029_v14 = vmul.f32 %v998_v3, %v2869_v63 }
 0x2dc   : > { %v1002_v41 = vmul.f32 0.5, %v1001_v2  ;;  %v980_v4 = vpop.xlane.xlu0 %979  ;;  %v1073_v54 = vpop.permute.xlu2 %1072 }
 0x2dd   : > { %v984_v11 = vmul.f32 %v980_v4, %v2866_v60  ;;  %v1036_v57 = vmul.f32 %v2273_v13, %v1029_v14 }
 0x2de   : > { %v1003_v40 = vsub.f32 1.5, %v1002_v41 }
 0x2df   : > { %v2295_v50 = vpop.eup %2294  ;;  %v988_v15 = vadd.f32 1e-05, %v984_v11  ;;  %v1043_v30 = vadd.f32 %v2274_v19, %v1036_v57 }
 0x2e0   : > { %v1004_v16 = vmul.f32 %v2293_v59, %v1003_v40  ;;  %v1010_v17 = vmul.f32 %v2295_v50, %v987_v61  ;;  %vm1016_vm4 = vweird.f32 %v2295_v50 }
 0x2e1   : > { %2296 = vrsqrt.f32 %v988_v15  ;;  %vm1017_vm6 = vmor %vm1015_vm5, %vm1016_vm4  ;;  %v1047_v38 = vmax.f32 %v1043_v30, 0.0  ;;  %vm1025_vm8 = vweird.f32 %v988_v15 }
 0x2e2   : > { %v1008_v20 = vsel %vm1007_vm3, %v2293_v59, %v1004_v16  ;;  %v1011_v27 = vmul.f32 %v2295_v50, %v1010_v17 }
 0x2e3   : > { %v1030_v28 = vmul.f32 %v1008_v20, %v2874_v5 }
 0x2e4   : > { %v1012_v63 = vmul.f32 0.5, %v1011_v27  ;;  %v1058_v37 = vpop.permute.xlu1 %1057  ;;  %v2275_v27 = vld [vmem:[#allocation9] ss:$0 sm:$0xff] }
 0x2e5   : > { %v1037_v29 = vmul.f32 %v2273_v13, %v1030_v28  ;;  %v1075_v24 = vmul.f32 %v1058_v37, %v1047_v38 }
 0x2e6   : > { %v1013_v31 = vsub.f32 1.5, %v1012_v63 }
 0x2e7   : > { %v2297_v12 = vpop.eup %2296  ;;  %v1044_v21 = vadd.f32 %v2274_v19, %v1037_v29 }
 0x2e8   : > { %v1014_v32 = vmul.f32 %v2295_v50, %v1013_v31  ;;  %v1020_v18 = vmul.f32 %v2297_v12, %v988_v15  ;;  %vm1026_vm7 = vweird.f32 %v2297_v12 }
 0x2e9   : > { %v1048_v34 = vmax.f32 %v1044_v21, 0.0  ;;  %vm1027_vm9 = vmor %vm1025_vm8, %vm1026_vm7 }
 0x2ea   : > { %v1021_v23 = vmul.f32 %v2297_v12, %v1020_v18  ;;  %v1018_v22 = vsel %vm1017_vm6, %v2295_v50, %v1014_v32 }
 0x2eb   : > { %v1076_v5 = vmul.f32 %v3059_v48, %v1048_v34  ;;  %v1031_v36 = vmul.f32 %v1018_v22, %v2879_v39 }
 0x2ec   : > { %v1022_v42 = vmul.f32 0.5, %v1021_v23 }
 0x2ed   : > { %v1079_v35 = vpack.c.bf16 %v1076_v5, %v1075_v24  ;;  %v1038_v44 = vmul.f32 %v2273_v13, %v1031_v36 }
 0x2ee   : > { %v1023_v43 = vsub.f32 1.5, %v1022_v42 }
 0x2ef   : > { %1249 = vmatmul.bf16.vlgmr.msra.gmra.mxu2 %v1079_v35  ;;  %1268 = vmatmul.bf16.vlgmr.msra.gmra.mxu3 %v1079_v35  ;;  %v1045_v47 = vadd.f32 %v2274_v19, %v1038_v44  ;;  %v1068_v53 = vpop.permute.xlu0 %1067 }
 0x2f0   : > { %v1024_v45 = vmul.f32 %v2297_v12, %v1023_v43  ;;  %1287 = vmatmul.bf16.vlgmr.msrb.gmra.mxu0 %v1079_v35 }
 0x2f1   : > { %v1049_v52 = vmax.f32 %v1045_v47, 0.0 }
 0x2f2   : > { %v1028_v46 = vsel %vm1027_vm9, %v2297_v12, %v1024_v45 }
 0x2f3   : > { %v1032_v49 = vmul.f32 %v1028_v46, %v2884_v10  ;;  %v1077_v56 = vmul.f32 %v1068_v53, %v1049_v52  ;;  %v1299_v10 = vshrl.u32 %v1298_v62, 7 }
 0x2f5   : > { %v1039_v51 = vmul.f32 %v2273_v13, %v1032_v49  ;;  %v1307_v41 = vand.u32 31, %v1299_v10  ;;  %vm1355_vm11 = vcmp.lt.s32.totalorder %v1299_v10, 1  ;;  %vm1400_vm12 = vcmp.lt.s32.totalorder %v1299_v10, 7 }
 0x2f6   : > { %v1302_v28 = vadd.s32 24, %v1299_v10 }
 0x2f7   : > { %v1046_v48 = vadd.f32 %v2274_v19, %v1039_v51  ;;  %v1360_v4 = vadd.s32 4294967295, %v1307_v41  ;;  %v2163_v41 = vld [vmem:[#allocation13 + $0x74] sm:$0xf] }
 0x2f8   : > { %v1328_v32 = vand.u32 31, %v1302_v28  ;;  %v2083_v28 = vld [vmem:[#allocation13 + $0x50] sm:$0xf] }
 0x2f9   : > { %v1050_v39 = vmax.f32 %v1046_v48, 0.0  ;;  %vm1364_vm10 = vcmp.ge.s32.totalorder %v1360_v4, 0  ;;  %v2101_v4 = vld [vmem:[#allocation13 + $0x78] sm:$0xf0] }
 0x2fa   : > { %v1408_v23 = vadd.s32 1, %v1328_v32 }
 0x2fb   : > { %v1078_v55 = vmul.f32 %v1073_v54, %v1050_v39 }
 0x2fc   : > { %vm1416_vm13 = vcmp.lt.s32.totalorder %v1408_v23, 32  ;;  %v2067_v23 = vld [vmem:[#allocation13 + $0x30] sm:$0xf] }
 0x2fd   : > { %v1080_v25 = vpack.c.bf16 %v1078_v55, %v1077_v56 }
 0x2ff   : > { %1254 = vmatmul.bf16.gmra.mxu2 %v1080_v25  ;;  %1273 = vmatmul.bf16.gmra.mxu3 %v1080_v25 }
 0x30f   : > { %1292 = vmatmul.bf16.vlgmr.msrb.gmra.mxu3 %v1080_v25 }
 0x36d   : > { %v1288_v33 = vpop.f32.mrf.mxu0 }
 0x36e   : > { %v1396_v19 = vrot.slane %v1288_v33, 1 }
 0x372   : > { %v1250_v26 = vpop.f32.mrf.mxu2  ;;  %v1269_v58 = vpop.f32.mrf.mxu3 }
 0x373   : > { %v1351_v40 = vrot.slane %v1250_v26, 7 }
 0x375   : > { %v1290_v11 = vpop.f32.mrf.mxu0 }
 0x376   : > { %v1397_v15 = vrot.slane %v1290_v11, 1  ;;  %v2099_v11 = vld [vmem:[#allocation13 + $0x70] sm:$0xf] }
 0x378   : > { %v1403_v63 = vsel %vm1400_vm12, %v1396_v19, %v1397_v15 }
 0x37a   : > { %v1252_v59 = vpop.f32.mrf.mxu2  ;;  %v1271_v61 = vpop.f32.mrf.mxu3 }
 0x37b   : > { %v1352_v16 = vrot.slane %v1252_v59, 7 }
 0x37d   : > { %v1358_v29 = vsel %vm1355_vm11, %v1351_v40, %v1352_v16 }
 0x37e   : > { %v1393_v18 = vadd.f32 %v1358_v29, %v1271_v61  ;;  %v2160_v29 = vld [vmem:[#allocation13 + $0x54] sm:$0xf0] }
 0x382   : > { %v1255_v2 = vpop.f32.mrf.mxu2  ;;  %v1274_v3 = vpop.f32.mrf.mxu3 }
 0x383   : > { %v1353_v37 = vrot.slane %v1255_v2, 7 }
 0x385   : > { %v1357_v5 = vsel %vm1355_vm11, %v1352_v16, %v1353_v37  ;;  %v2091_v16 = vld [vmem:[#allocation13 + $0x60] sm:$0xf] }
 0x386   : > { %v1394_v35 = vadd.f32 %v1357_v5, %v1274_v3  ;;  %v2156_v5 = vld [vmem:[#allocation13 + $0x34] sm:$0xf0] }
 0x38a   : > { %v1257_v13 = vpop.f32.mrf.mxu2  ;;  %v1276_v14 = vpop.f32.mrf.mxu3 }
 0x38b   : > { %v1354_v50 = vrot.slane %v1257_v13, 7  ;;  %v2104_v13 = vor.u32 %v2163_v41, %v2101_v4 }
 0x38d   : > { %v1359_v17 = vsel %vm1355_vm11, %v1354_v50, %v1351_v40  ;;  %v1356_v24 = vsel %vm1355_vm11, %v1353_v37, %v1354_v50  ;;  %1668 = vmatpush.bf16.msrb.mxu2 %v2104_v13  ;;  %v2161_v50 = vld [vmem:[#allocation13 + $0x64] sm:$0xf] }
 0x38e   : > { %v1384_v57 = vsel %vm1364_vm10, %v1359_v17, 0.0  ;;  %v1395_v43 = vadd.f32 %v1356_v24, %v1276_v14  ;;  %v2164_v14 = vld [vmem:[#allocation13 + $0x74] sm:$0xf0]  ;;  %v2068_v24 = vor.u32 %v2156_v5, %v2067_v23  ;;  %v2277_v23 = vld [vmem:[#allocation12] ss:$0 sm:$0xff] }
 0x38f   : > { %v1392_v20 = vadd.f32 %v1384_v57, %v1269_v58  ;;  %v2100_v40 = vor.u32 %v2164_v14, %v2099_v11 }
 0x391   : > { %v1433_v30 = vadd.f32 %v1403_v63, %v1392_v20  ;;  %1649 = vmatpush.bf16.msrb.mxu1 %v2100_v40  ;;  %v2159_v20 = vld [vmem:[#allocation13 + $0x54] sm:$0xf] }
 0x392   : > { %v1293_v31 = vpop.f32.mrf.mxu3 }
 0x393   : > { %v1398_v12 = vrot.slane %v1293_v31, 1  ;;  %v1441_v21 = vadd.f32 %v2275_v27, %v1433_v30  ;;  %v2084_v30 = vor.u32 %v2160_v29, %v2083_v28  ;;  %v2157_v31 = vld [vmem:[#allocation13 + $0x44] sm:$0xf] }
 0x395   : > { %1447 = vadd.xlane.f32.xlu1 %v1441_v21  ;;  %v1402_v34 = vsel %vm1400_vm12, %v1397_v15, %v1398_v12  ;;  %v2093_v15 = vld [vmem:[#allocation13 + $0x68] sm:$0xf0] }
 0x396   : > { %v1434_v38 = vadd.f32 %v1402_v34, %v1393_v18  ;;  %v2096_v17 = vor.u32 %v2161_v50, %v2093_v15  ;;  %v2158_v18 = vld [vmem:[#allocation13 + $0x44] sm:$0xf0]  ;;  %v2155_v34 = vld [vmem:[#allocation13 + $0x34] sm:$0xf] }
 0x398   : > { %v1442_v22 = vadd.f32 %v2275_v27, %v1434_v38  ;;  %1669 = vmatpush.bf16.msrb.mxu2 %v2096_v17  ;;  %v2069_v38 = vld [vmem:[#allocation13 + $0x38] sm:$0xf0] }
 0x39a   : > { %1449 = vadd.xlane.f32.xlu2 %v1442_v22  ;;  %v1295_v36 = vpop.f32.mrf.mxu3 }
 0x39b   : > { %v1399_v42 = vrot.slane %v1295_v36, 1  ;;  %v2153_v36 = vld [vmem:[#allocation13 + $0x24] sm:$0xf] }
 0x39d   : > { %v1401_v44 = vsel %vm1400_vm12, %v1398_v12, %v1399_v42  ;;  %v1404_v45 = vsel %vm1400_vm12, %v1399_v42, %v1396_v19  ;;  %v2162_v19 = vld [vmem:[#allocation13 + $0x64] sm:$0xf0]  ;;  %v2077_v12 = vld [vmem:[#allocation13 + $0x48] sm:$0xf0] }
 0x39e   : > { %v1435_v46 = vadd.f32 %v1401_v44, %v1394_v35  ;;  %v1432_v49 = vsel %vm1416_vm13, %v1404_v45, 0.0  ;;  %v2092_v57 = vor.u32 %v2162_v19, %v2091_v16  ;;  %v2080_v32 = vor.u32 %v2157_v31, %v2077_v12  ;;  %v2061_v42 = vld [vmem:[#allocation13 + $0x28] sm:$0xf0]  ;;  %v2059_v35 = vld [vmem:[#allocation13 + $0x20] sm:$0xf] }
 0x39f   : > { %v1436_v47 = vadd.f32 %v1432_v49, %v1395_v43  ;;  %v2064_v43 = vor.u32 %v2153_v36, %v2061_v42  ;;  %v2154_v44 = vld [vmem:[#allocation13 + $0x24] sm:$0xf0]  ;;  %v2053_v49 = vld [vmem:[#allocation13 + $0x18] sm:$0xf0] }
 0x3a0   : > { %v1443_v51 = vadd.f32 %v2275_v27, %v1435_v46  ;;  %1650 = vmatpush.bf16.msrb.mxu1 %v2092_v57  ;;  %v2060_v45 = vor.u32 %v2154_v44, %v2059_v35  ;;  %v2151_v46 = vld [vmem:[#allocation13 + $0x14] sm:$0xf]  ;;  %v2276_v31 = vld [vmem:[#allocation10] ss:$0 sm:$0xff] }
 0x3a1   : > { %v1444_v48 = vadd.f32 %v2275_v27, %v1436_v47  ;;  %v2085_v27 = vld [vmem:[#allocation13 + $0x58] sm:$0xf0]  ;;  %v2051_v47 = vld [vmem:[#allocation13 + $0x10] sm:$0xf] }
 0x3a2   : > { %1451 = vadd.xlane.f32.xlu0 %v1443_v51  ;;  %v2088_v63 = vor.u32 %v2159_v20, %v2085_v27 }
 0x3a3   : > { %1453 = vadd.xlane.f32.xlu1 %v1444_v48 }
 0x3a4   : > { %1670 = vmatpush.bf16.msrb.mxu2 %v2088_v63  ;;  %1651 = vmatpush.bf16.msrb.mxu1 %v2084_v30 }
 0x3a8   : > { %1671 = vmatpush.bf16.msrb.mxu2 %v2080_v32 }
 0x408   : > { %v1448_v52 = vpop.xlane.xlu1 %1447 }
 0x409   : > { %v1455_v53 = vmul.f32 %v1448_v52, %v2866_v60 }
 0x40b   : > { %v3087_v39 = vsub.f32 %v1441_v21, %v1455_v53  ;;  %v2075_v21 = vld [vmem:[#allocation13 + $0x40] sm:$0xf] }
 0x40c   : > { %v2076_v37 = vor.u32 %v2158_v18, %v2075_v21 }
 0x40d   : > { %v1450_v54 = vpop.xlane.xlu2 %1449  ;;  %v1463_v55 = vmul.f32 %v3087_v39, %v3087_v39 }
 0x40e   : > { %v1456_v56 = vmul.f32 %v1450_v54, %v2866_v60  ;;  %1652 = vmatpush.bf16.msrb.mxu1 %v2076_v37 }
 0x40f   : > { %1467 = vadd.xlane.f32.xlu2 %v1463_v55  ;;  %v2149_v55 = vld [vmem:[#allocation13 + $0x4] sm:$0xf] }
 0x410   : > { %v3092_v25 = vsub.f32 %v1442_v22, %v1456_v56  ;;  %v2072_v22 = vor.u32 %v2155_v34, %v2069_v38  ;;  %v2045_v56 = vld [vmem:[#allocation13 + $0x8] sm:$0xf0] }
 0x412   : > { %v1464_v26 = vmul.f32 %v3092_v25, %v3092_v25  ;;  %1672 = vmatpush.bf16.msrb.mxu2 %v2072_v22  ;;  %1653 = vmatpush.bf16.msrb.mxu1 %v2068_v24 }
 0x414   : > { %1469 = vadd.xlane.f32.xlu1 %v1464_v26  ;;  %v2043_v26 = vld [vmem:[#allocation13] sm:$0xf] }
 0x415   : > { %v1452_v58 = vpop.xlane.xlu0 %1451 }
 0x416   : > { %v1457_v59 = vmul.f32 %v1452_v58, %v2866_v60  ;;  %v1454_v61 = vpop.xlane.xlu1 %1453  ;;  %1673 = vmatpush.bf16.msrb.mxu2 %v2064_v43  ;;  %1654 = vmatpush.bf16.msrb.mxu1 %v2060_v45  ;;  %v2048_v58 = vor.u32 %v2149_v55, %v2045_v56 }
 0x417   : > { %v1458_v62 = vmul.f32 %v1454_v61, %v2866_v60 }
 0x418   : > { %v3098_v33 = vsub.f32 %v1443_v51, %v1457_v59  ;;  %v2056_v51 = vor.u32 %v2151_v46, %v2053_v49  ;;  %v2150_v59 = vld [vmem:[#allocation13 + $0x4] sm:$0xf0] }
 0x419   : > { %v3100_v10 = vsub.f32 %v1444_v48, %v1458_v62  ;;  %v2152_v48 = vld [vmem:[#allocation13 + $0x14] sm:$0xf0]  ;;  %v2044_v62 = vor.u32 %v2150_v59, %v2043_v26 }
 0x41a   : > { %v1465_v2 = vmul.f32 %v3098_v33, %v3098_v33  ;;  %v2052_v52 = vor.u32 %v2152_v48, %v2051_v47  ;;  %1674 = vmatpush.bf16.msrb.mxu2 %v2056_v51 }
 0x41b   : > { %v1466_v3 = vmul.f32 %v3100_v10, %v3100_v10 }
 0x41c   : > { %1471 = vadd.xlane.f32.xlu2 %v1465_v2  ;;  %1655 = vmatpush.bf16.msrb.mxu1 %v2052_v52 }
 0x41d   : > { %1473 = vadd.xlane.f32.xlu1 %v1466_v3 }
 0x41e   : > { %1675 = vmatpush.bf16.msrb.mxu2 %v2048_v58 }
 0x420   : > { %1656 = vmatpush.bf16.msrb.mxu1 %v2044_v62 }
 0x482   : > { %v1468_v53 = vpop.xlane.xlu2 %1467 }
 0x483   : > { %v1475_v54 = vmul.f32 %v1468_v53, %v2866_v60 }
 0x485   : > { %v1479_v61 = vadd.f32 1e-05, %v1475_v54 }
 0x487   : > { %2298 = vrsqrt.f32 %v1479_v61  ;;  %v1470_v2 = vpop.xlane.xlu1 %1469  ;;  %vm1489_vm15 = vweird.f32 %v1479_v61 }
 0x488   : > { %v1476_v3 = vmul.f32 %v1470_v2, %v2866_v60 }
 0x48a   : > { %v1480_v41 = vadd.f32 1e-05, %v1476_v3 }
 0x48c   : > { %2300 = vrsqrt.f32 %v1480_v41  ;;  %vm1499_vm2 = vweird.f32 %v1480_v41 }
 0x48d   : > { %v2299_v4 = vpop.eup %2298 }
 0x48e   : > { %v1484_v11 = vmul.f32 %v2299_v4, %v1479_v61  ;;  %vm1490_vm14 = vweird.f32 %v2299_v4 }
 0x48f   : > { %v1472_v13 = vpop.xlane.xlu2 %1471  ;;  %vm1491_vm0 = vmor %vm1489_vm15, %vm1490_vm14 }
 0x490   : > { %v1485_v14 = vmul.f32 %v2299_v4, %v1484_v11  ;;  %v1477_v40 = vmul.f32 %v1472_v13, %v2866_v60  ;;  %v1474_v50 = vpop.xlane.xlu1 %1473 }
 0x491   : > { %v1478_v15 = vmul.f32 %v1474_v50, %v2866_v60 }
 0x492   : > { %v2301_v16 = vpop.eup %2300  ;;  %v1486_v17 = vmul.f32 0.5, %v1485_v14  ;;  %v1481_v19 = vadd.f32 1e-05, %v1477_v40 }
 0x493   : > { %v1494_v57 = vmul.f32 %v2301_v16, %v1480_v41  ;;  %v1482_v20 = vadd.f32 1e-05, %v1478_v15  ;;  %vm1500_vm1 = vweird.f32 %v2301_v16 }
 0x494   : > { %v1487_v27 = vsub.f32 1.5, %v1486_v17  ;;  %2302 = vrsqrt.f32 %v1481_v19  ;;  %vm1501_vm3 = vmor %vm1499_vm2, %vm1500_vm1  ;;  %vm1509_vm6 = vweird.f32 %v1481_v19 }
 0x495   : > { %v1495_v28 = vmul.f32 %v2301_v16, %v1494_v57  ;;  %2304 = vrsqrt.f32 %v1482_v20  ;;  %vm1519_vm8 = vweird.f32 %v1482_v20 }
 0x496   : > { %v1488_v63 = vmul.f32 %v2299_v4, %v1487_v27 }
 0x497   : > { %v1496_v29 = vmul.f32 0.5, %v1495_v28 }
 0x498   : > { %v1492_v30 = vsel %vm1491_vm0, %v2299_v4, %v1488_v63  ;;  %v2306_v4 = vld [vmem:[%s2764_s5] sm:$0xff] }
 0x499   : > { %v1523_v12 = vmul.f32 %v1492_v30, %v3087_v39  ;;  %v1497_v21 = vsub.f32 1.5, %v1496_v29 }
 0x49a   : > { %v2303_v60 = vpop.eup %2302 }
 0x49b   : > { %v2305_v32 = vpop.eup %2304  ;;  %v1498_v18 = vmul.f32 %v2301_v16, %v1497_v21  ;;  %v1504_v37 = vmul.f32 %v2303_v60, %v1481_v19  ;;  %v1530_v38 = vmul.f32 %v2276_v31, %v1523_v12  ;;  %vm1510_vm4 = vweird.f32 %v2303_v60 }
 0x49c   : > { %v1514_v34 = vmul.f32 %v2305_v32, %v1482_v20  ;;  %vm1520_vm5 = vweird.f32 %v2305_v32  ;;  %vm1511_vm7 = vmor %vm1509_vm6, %vm1510_vm4 }
 0x49d   : > { %v1502_v22 = vsel %vm1501_vm3, %v2301_v16, %v1498_v18  ;;  %v1505_v5 = vmul.f32 %v2303_v60, %v1504_v37  ;;  %v1537_v39 = vadd.f32 %v2277_v23, %v1530_v38  ;;  %vm1521_vm9 = vmor %vm1519_vm8, %vm1520_vm5 }
 0x49e   : > { %v1524_v24 = vmul.f32 %v1502_v22, %v3092_v25  ;;  %v1515_v36 = vmul.f32 %v2305_v32, %v1514_v34 }
 0x49f   : > { %v1506_v42 = vmul.f32 0.5, %v1505_v5  ;;  %v1541_v51 = vmax.f32 %v1537_v39, 0.0 }
 0x4a0   : > { %v1516_v35 = vmul.f32 0.5, %v1515_v36  ;;  %v1531_v43 = vmul.f32 %v2276_v31, %v1524_v24 }
 0x4a1   : > { %v1507_v44 = vsub.f32 1.5, %v1506_v42 }
 0x4a2   : > { %v1517_v45 = vsub.f32 1.5, %v1516_v35  ;;  %v1538_v46 = vadd.f32 %v2277_v23, %v1531_v43 }
 0x4a3   : > { %v1508_v49 = vmul.f32 %v2303_v60, %v1507_v44 }
 0x4a4   : > { %v1518_v47 = vmul.f32 %v2305_v32, %v1517_v45  ;;  %v1542_v48 = vmax.f32 %v1538_v46, 0.0 }
 0x4a5   : > { %v1512_v52 = vsel %vm1511_vm7, %v2303_v60, %v1508_v49 }
 0x4a6   : > { %v1522_v25 = vsel %vm1521_vm9, %v2305_v32, %v1518_v47  ;;  %v1545_v53 = vpack.c.bf16 %v1542_v48, %v1541_v51  ;;  %v1525_v54 = vmul.f32 %v1512_v52, %v3098_v33  ;;  %v1563_v33 = vld [vmem:[%s3156_s13] sm:$0x3] }
 0x4a7   : > { %v1526_v55 = vmul.f32 %v1522_v25, %v3100_v10  ;;  %v1565_v3 = vperm.slane %v1563_v33, 0  ;;  %v1566_v13 = vperm.slane %v1563_v33, 1 }
 0x4a8   : > { %1657 = vmatmul.bf16.vlgmr.msrb.gmra.mxu1 %v1545_v53  ;;  %1676 = vmatmul.bf16.vlgmr.msrb.gmra.mxu2 %v1545_v53  ;;  %v1532_v56 = vmul.f32 %v2276_v31, %v1525_v54 }
 0x4a9   : > { %v1533_v26 = vmul.f32 %v2276_v31, %v1526_v55 }
 0x4aa   : > { %v1539_v58 = vadd.f32 %v2277_v23, %v1532_v56 }
 0x4ab   : > { %v1540_v59 = vadd.f32 %v2277_v23, %v1533_v26 }
 0x4ac   : > { %v1543_v61 = vmax.f32 %v1539_v58, 0.0 }
 0x4ad   : > { %v1544_v62 = vmax.f32 %v1540_v59, 0.0 }
 0x4af   : > { %v1546_v2 = vpack.c.bf16 %v1544_v62, %v1543_v61 }
 0x4b8   : > { %1662 = vmatmul.bf16.gmra.mxu1 %v1546_v2  ;;  %1681 = vmatmul.bf16.gmra.mxu2 %v1546_v2 }
 0x525   : > { %v1658_v10 = vpop.f32.mrf.mxu1 }
 0x526   : > { %v1659_v41 = vadd.f32 %v1658_v10, %v1565_v3 }
 0x528   : > { %v1687_v11 = vadd.f32 %v2306_v4, %v1659_v41 }
 0x52a   : > { %1695 = vst [vmem:[%s3122_s26] sm:$0xff] %v1687_v11 }
 0x52b   : > { %v1677_v14 = vpop.f32.mrf.mxu2 }
 0x52c   : > { %v1678_v40 = vadd.f32 %v1677_v14, %v1566_v13 }
 0x52d   : > { %v1660_v50 = vpop.f32.mrf.mxu1 }
 0x52e   : > { %v1661_v17 = vadd.f32 %v1660_v50, %v1565_v3 }
 0x530   : > { %v1689_v19 = vadd.f32 %v1661_v17, %v2783_v8 }
 0x531   : > { %v2307_v15 = vld [vmem:[%s2764_s5 + $0x8] sm:$0xff] }
 0x532   : > { %v1688_v16 = vadd.f32 %v2307_v15, %v1678_v40  ;;  %1697 = vst [vmem:[%s3122_s26 + $0x10] sm:$0xff] %v1689_v19 }
 0x533   : > { %v1679_v57 = vpop.f32.mrf.mxu2 }
 0x534   : > { %1696 = vst [vmem:[%s3122_s26 + $0x8] sm:$0xff] %v1688_v16  ;;  %v1680_v20 = vadd.f32 %v1679_v57, %v1566_v13 }
 0x535   : > { %v1663_v27 = vpop.f32.mrf.mxu1 }
 0x536   : > { %v1690_v28 = vadd.f32 %v1680_v20, %v2786_v9  ;;  %v1664_v63 = vadd.f32 %v1663_v27, %v1565_v3 }
 0x538   : > { %1698 = vst [vmem:[%s3122_s26 + $0x18] sm:$0xff] %v1690_v28  ;;  %v1691_v29 = vadd.f32 %v1664_v63, %v2767_v0 }
 0x53a   : > { %1699 = vst [vmem:[%s3122_s26 + $0x20] sm:$0xff] %v1691_v29 }
 0x53b   : > { %v1682_v30 = vpop.f32.mrf.mxu2 }
 0x53c   : > { %v1683_v31 = vadd.f32 %v1682_v30, %v1566_v13 }
 0x53d   : > { %v1665_v12 = vpop.f32.mrf.mxu1 }
 0x53e   : > { %v1692_v21 = vadd.f32 %v1683_v31, %v2770_v1  ;;  %v1666_v60 = vadd.f32 %v1665_v12, %v1565_v3 }
 0x540   : > { %1700 = vst [vmem:[%s3122_s26 + $0x28] sm:$0xff] %v1692_v21  ;;  %v1693_v8 = vadd.f32 %v1666_v60, %v2777_v6 }
 0x542   : > { %1701 = vst [vmem:[%s3122_s26 + $0x30] sm:$0xff] %v1693_v8 }
 0x543   : > { %v1684_v32 = vpop.f32.mrf.mxu2 }
 0x544   : > { %v1685_v18 = vadd.f32 %v1684_v32, %v1566_v13 }
 0x546   : > { %v1694_v9 = vadd.f32 %v1685_v18, %v2780_v7 }
 0x548   : > { %1702 = vst [vmem:[%s3122_s26 + $0x38] sm:$0xff] %v1694_v9 }
 0x549 PF: > { %s29_s29 = sadd.s32 1, %s2574_s29  }
 0x54a   : > { %p26_p7 = scmp.ge.s32.totalorder %s29_s29, 4  }
 0x54c   :  { %28 = sbr.rel (!%p26_p7) target bundleno = 9 (0x9), region = 142 }
 0x551   :  { %1727 = vsyncpa [#allocation3], 1 }
 0x552   :  { %1729 = vsyncpa [#allocation3 + $0x1], 1 }
 0x553   :  { %1730 = vsyncpa [#allocation5], 1 }
 0x554   :  { %1731 = vsyncpa [#allocation8], 1 }
 0x555   :  { %1732 = vsyncpa [#allocation11], 1 }
 0x556   :  { %1733 = vsyncpa [#allocation14], 1 }

</bundles_post_ra>
